<compile_context>
chip_gen: v5e
topology: v5e:2x2
jax: 0.10.0
libtpu: 0.0.40
codegen_flags: <defaults>
</compile_context>

<pallas_src>
import functools

import jax
import jax.numpy as jnp
import numpy as np
from jax.experimental import pallas as pl
from jax.experimental.pallas import tpu as pltpu


def _round_up(x, m):
    return ((x + m - 1) // m) * m


def _gru_fc_kernel(num_layers, hp, t_blk, steps_last, mxu_dtype, *refs):
    # refs = [gi0 (t_blk,BP,3HP),
    #         w_hh0 (HP,3HP), b_hh0 (1,3HP),
    #         (w_ih (HP,3HP), w_hh (HP,3HP), b (2,1,3HP)) * (L-1),
    #         fc_w (HP,OP), fc_b (1,OP),
    #         out_ref (BP,OP), h_scratch (L,BP,HP)]
    n_upper = num_layers - 1
    gi0_ref = refs[0]
    w_hh0_ref = refs[1]
    b_hh0_ref = refs[2]
    upper = refs[3:3 + 3 * n_upper]
    fc_w_ref = refs[3 + 3 * n_upper]
    fc_b_ref = refs[4 + 3 * n_upper]
    out_ref = refs[5 + 3 * n_upper]
    h_ref = refs[6 + 3 * n_upper]

    t0 = pl.program_id(0)
    nb = pl.num_programs(0)
    bp = h_ref.shape[1]
    h2 = 2 * hp
    h3 = 3 * hp

    @pl.when(t0 == 0)
    def _():
        h_ref[...] = jnp.zeros_like(h_ref)

    # Hoisted, loop-invariant bias broadcasts (JAX does not CSE broadcast_in_dim).
    b0 = jnp.broadcast_to(b_hh0_ref[...], (bp, h3))
    upper_bias = []
    for l in range(1, num_layers):
        b_ref = upper[3 * (l - 1) + 2]
        upper_bias.append((jnp.broadcast_to(b_ref[0], (bp, h3)),
                           jnp.broadcast_to(b_ref[1], (bp, h3))))

    def gru_cell(gi, gh, h_prev):
        # gi carries the input-side biases, gh carries the hidden-side n bias.
        rz = jax.nn.sigmoid(gi[:, :h2] + gh[:, :h2])
        r = rz[:, :hp]
        z = rz[:, hp:]
        n = jnp.tanh(gi[:, h2:] + r * gh[:, h2:])
        return (1.0 - z) * n + z * h_prev

    def time_step(s):
        # ---- layer 0: input projection was hoisted; one fused recurrent matmul.
        h_prev = h_ref[0]
        gh = jnp.dot(h_prev.astype(mxu_dtype), w_hh0_ref[...],
                     preferred_element_type=jnp.float32) + b0
        h_new = gru_cell(gi0_ref[s], gh, h_prev)
        h_ref[0] = h_new
        inp = h_new
        # ---- layers 1..L-1: two fused matmuls per layer (gi slab, gh slab).
        for l in range(1, num_layers):
            w_ih_ref = upper[3 * (l - 1) + 0]
            w_hh_ref = upper[3 * (l - 1) + 1]
            b_gi, b_gh = upper_bias[l - 1]
            h_prev = h_ref[l]
            gi = jnp.dot(inp.astype(mxu_dtype), w_ih_ref[...],
                         preferred_element_type=jnp.float32) + b_gi
            gh = jnp.dot(h_prev.astype(mxu_dtype), w_hh_ref[...],
                         preferred_element_type=jnp.float32) + b_gh
            h_new = gru_cell(gi, gh, h_prev)
            h_ref[l] = h_new
            inp = h_new

    if steps_last == t_blk:
        # seq_len % t_blk == 0: every block is branch-free.
        for s in range(t_blk):
            time_step(s)
    else:
        # Steady-state blocks are branch-free; only the final partial block runs
        # a separately traced shorter unrolled loop (no per-step masking at all).
        @pl.when(t0 != nb - 1)
        def _():
            for s in range(t_blk):
                time_step(s)

        @pl.when(t0 == nb - 1)
        def _():
            for s in range(steps_last):
                time_step(s)

    @pl.when(t0 == nb - 1)
    def _():
        h_last = h_ref[num_layers - 1]                       # (BP, HP)
        out_ref[...] = (jnp.dot(h_last.astype(mxu_dtype), fc_w_ref[...],
                                preferred_element_type=jnp.float32)
                        + fc_b_ref[...])


def custom_gru_forward(x, params, *, num_layers, hidden_size, output_size,
                       t_blk=16, use_bf16=False):
    """x: (batch, seq, input_size) float32, batch_first like PyTorch."""
    batch, seq_len, input_size = x.shape
    H = hidden_size
    HP = _round_up(H, 128)            # lane-aligned gate slab width
    BP = _round_up(batch, 8)          # sublane-dense batch
    OP = _round_up(output_size, 128)  # lane-dense output
    mxu_dtype = jnp.bfloat16 if use_bf16 else jnp.float32

    t_blk = max(1, min(t_blk, seq_len))
    num_blocks = int(pl.cdiv(seq_len, t_blk))
    steps_last = seq_len - (num_blocks - 1) * t_blk
    seq_pad = num_blocks * t_blk

    def gate_stack_w(w):
        # (3H, H) PyTorch layout -> (HP, 3HP): pre-transposed, gates lane-stacked,
        # padded rows/cols are zero (h padding columns stay exactly zero).
        wt = jnp.swapaxes(w.reshape(3, H, H), 1, 2)            # (3, H_in, H_out)
        wt = jnp.pad(wt, ((0, 0), (0, HP - H), (0, HP - H)))   # (3, HP, HP)
        return jnp.transpose(wt, (1, 0, 2)).reshape(HP, 3 * HP).astype(mxu_dtype)

    def gate_stack_b(b3):             # (3, H) -> (1, 3HP)
        return jnp.pad(b3, ((0, 0), (0, HP - H))).reshape(1, 3 * HP)

    # ---- Hoisted layer-0 input projection: one big throughput-bound matmul over
    # the whole sequence, lane-stacked per gate, b_ih0 folded in.
    w_ih0, w_hh0, b_ih0, b_hh0 = params["layer_0"]
    w_ih0_g = w_ih0.reshape(3, H, input_size)
    if use_bf16:
        gi = jnp.einsum("bti,ghi->tbgh", x.astype(jnp.bfloat16),
                        w_ih0_g.astype(jnp.bfloat16),
                        preferred_element_type=jnp.float32)
    else:
        gi = jnp.einsum("bti,ghi->tbgh", x, w_ih0_g,
                        preferred_element_type=jnp.float32)
    gi = gi + b_ih0.reshape(1, 1, 3, H)
    gi = jnp.pad(gi, ((0, seq_pad - seq_len), (0, BP - batch),
                      (0, 0), (0, HP - H)))
    gi0 = gi.reshape(seq_pad, BP, 3 * HP)                      # (T, BP, 3HP) f32

    inputs = [gi0, gate_stack_w(w_hh0), gate_stack_b(b_hh0.reshape(3, H))]
    in_specs = [
        pl.BlockSpec((t_blk, BP, 3 * HP), lambda t: (t, 0, 0)),
        pl.BlockSpec((HP, 3 * HP), lambda t: (0, 0)),
        pl.BlockSpec((1, 3 * HP), lambda t: (0, 0)),
    ]

    # ---- Layers 1..L-1: gate-fused pre-transposed weights + pre-fused biases.
    for l in range(1, num_layers):
        w_ih, w_hh, b_ih, b_hh = params[f"layer_{l}"]
        bi = b_ih.reshape(3, H)
        bh = b_hh.reshape(3, H)
        b_gi = jnp.concatenate([bi[:2] + bh[:2], bi[2:3]], axis=0)      # r,z fused; n input side
        b_gh = jnp.concatenate([jnp.zeros((2, H), jnp.float32), bh[2:3]], axis=0)  # n hidden side
        b_l = jnp.stack([gate_stack_b(b_gi), gate_stack_b(b_gh)])        # (2, 1, 3HP)
        inputs += [gate_stack_w(w_ih), gate_stack_w(w_hh), b_l]
        in_specs += [pl.BlockSpec((HP, 3 * HP), lambda t: (0, 0)),
                     pl.BlockSpec((HP, 3 * HP), lambda t: (0, 0)),
                     pl.BlockSpec((2, 1, 3 * HP), lambda t: (0, 0, 0))]

    fc_w, fc_b = params["fc"]
    fc_w_p = jnp.pad(fc_w.T, ((0, HP - H), (0, OP - output_size))).astype(mxu_dtype)
    fc_b_p = jnp.pad(fc_b, (0, OP - output_size)).reshape(1, OP)
    inputs += [fc_w_p, fc_b_p]
    in_specs += [pl.BlockSpec((HP, OP), lambda t: (0, 0)),
                 pl.BlockSpec((1, OP), lambda t: (0, 0))]

    # ---- Generation-aware VMEM limit: request what is actually needed (with
    # pipeline double-buffering headroom), never the full physical VMEM of a
    # v7x TensorCore.  NOTE(prod sizes): single-buffer the constant weights via
    # pl.ANY + one-time DMA and shard batch over v7x's two TCs when H is large.
    itemsize = 2 if use_bf16 else 4
    n_w = 1 + 2 * (num_layers - 1)
    footprint = (2 * t_blk * BP * 3 * HP * 4            # gi stream (double-buffered)
                 + 2 * n_w * HP * 3 * HP * itemsize     # weights (pipeline holds 2 copies)
                 + 2 * (2 * num_layers) * 3 * HP * 4    # biases
                 + 2 * (HP * OP * itemsize + OP * 4)    # fc weight/bias
                 + num_layers * BP * HP * 4             # resident h scratch
                 + 2 * BP * OP * 4)                     # output
    cap = 128 * 1024 * 1024
    try:
        cap = int(getattr(pltpu.get_tpu_info(), "vmem_capacity_bytes", cap))
    except Exception:
        cap = 64 * 1024 * 1024                          # v7x worst case
    vmem_limit = int(min(max(2 * footprint, 16 * 1024 * 1024), 0.75 * cap))

    kernel = functools.partial(_gru_fc_kernel, num_layers, HP, t_blk,
                               steps_last, mxu_dtype)

    out_padded = pl.pallas_call(
        kernel,
        out_shape=jax.ShapeDtypeStruct((BP, OP), jnp.float32),
        grid_spec=pltpu.PrefetchScalarGridSpec(
            num_scalar_prefetch=0,
            grid=(num_blocks,),
            in_specs=in_specs,
            out_specs=pl.BlockSpec((BP, OP), lambda t: (0, 0)),
            scratch_shapes=[pltpu.VMEM((num_layers, BP, HP), jnp.float32)],
        ),
        compiler_params=pltpu.CompilerParams(
            # The time axis carries the recurrence through the VMEM scratch.
            dimension_semantics=("arbitrary",),
            vmem_limit_bytes=vmem_limit,
        ),
    )(*inputs)
    return out_padded[:batch, :output_size]


def _reference_forward(x, params, *, num_layers, hidden_size):
    """Pure-JAX reference matching torch.nn.GRU(batch_first=True) + Linear."""
    batch, seq_len, _ = x.shape
    H = hidden_size
    layer_in = x
    h_last = None
    for l in range(num_layers):
        w_ih, w_hh, b_ih, b_hh = params[f"layer_{l}"]
        h = jnp.zeros((batch, H), jnp.float32)

        def step(h, x_t, w_ih=w_ih, w_hh=w_hh, b_ih=b_ih, b_hh=b_hh):
            gi = x_t @ w_ih.T + b_ih
            gh = h @ w_hh.T + b_hh
            r = jax.nn.sigmoid(gi[:, :H] + gh[:, :H])
            z = jax.nn.sigmoid(gi[:, H:2 * H] + gh[:, H:2 * H])
            n = jnp.tanh(gi[:, 2 * H:] + r * gh[:, 2 * H:])
            h_new = (1.0 - z) * n + z * h
            return h_new, h_new

        h_last, outs = jax.lax.scan(step, h, jnp.transpose(layer_in, (1, 0, 2)))
        layer_in = jnp.transpose(outs, (1, 0, 2))
    fc_w, fc_b = params["fc"]
    return h_last @ fc_w.T + fc_b


def init_params(key, input_size, hidden_size, num_layers, output_size):
    params = {}
    bound = 1.0 / np.sqrt(hidden_size)
    for l in range(num_layers):
        in_dim = input_size if l == 0 else hidden_size
        key, k1, k2, k3, k4 = jax.random.split(key, 5)
        params[f"layer_{l}"] = (
            jax.random.uniform(k1, (3 * hidden_size, in_dim), jnp.float32, -bound, bound),
            jax.random.uniform(k2, (3 * hidden_size, hidden_size), jnp.float32, -bound, bound),
            jax.random.uniform(k3, (3 * hidden_size,), jnp.float32, -bound, bound),
            jax.random.uniform(k4, (3 * hidden_size,), jnp.float32, -bound, bound),
        )
    key, k1, k2 = jax.random.split(key, 3)
    fb = 1.0 / np.sqrt(hidden_size)
    params["fc"] = (
        jax.random.uniform(k1, (output_size, hidden_size), jnp.float32, -fb, fb),
        jax.random.uniform(k2, (output_size,), jnp.float32, -fb, fb),
    )
    return params


if __name__ == "__main__":
    batch, seq_len = 2, 8
    input_size, hidden_size, num_layers, output_size = 8, 32, 2, 8

    key = jax.random.PRNGKey(0)
    key, kx = jax.random.split(key)
    x = jax.random.normal(kx, (batch, seq_len, input_size), jnp.float32)
    params = init_params(key, input_size, hidden_size, num_layers, output_size)

    ref = jax.block_until_ready(
        _reference_forward(x, params, num_layers=num_layers, hidden_size=hidden_size))

    # f32 MXU path, seq divisible by t_blk (single grid block, branch-free).
    out_f32 = custom_gru_forward(
        x, params, num_layers=num_layers, hidden_size=hidden_size,
        output_size=output_size, t_blk=8, use_bf16=False)
    out_f32 = jax.block_until_ready(out_f32)
    np.testing.assert_allclose(np.asarray(out_f32), np.asarray(ref), rtol=1e-4, atol=1e-4)

    # Ragged time-blocking (seq_len % t_blk != 0) exercises the separately
    # traced final partial block (no per-step masking anywhere).
    out_ragged = custom_gru_forward(
        x, params, num_layers=num_layers, hidden_size=hidden_size,
        output_size=output_size, t_blk=5, use_bf16=False)
    out_ragged = jax.block_until_ready(out_ragged)
    np.testing.assert_allclose(np.asarray(out_ragged), np.asarray(ref), rtol=1e-4, atol=1e-4)

    # bf16 MXU path: bf16 weights/activations into the MXU (incl. the hoisted
    # layer-0 projection), f32 accumulation, f32 hidden state and gate math.
    # NOTE: bf16 quantization error compounds with sequence length; loose tol.
    out_bf16 = custom_gru_forward(
        x, params, num_layers=num_layers, hidden_size=hidden_size,
        output_size=output_size, t_blk=4, use_bf16=True)
    out_bf16 = jax.block_until_ready(out_bf16)
    np.testing.assert_allclose(np.asarray(out_bf16), np.asarray(ref), rtol=5e-2, atol=5e-2)

    print("KERNEL_OK")
</pallas_src>

<mosaic_0001>
module attributes {stable_mosaic.version = 11 : i64} {
  func.func @_gru_fc_kernel(%arg0: i32, %arg1: memref<8x8x384xf32, #tpu.memory_space<vmem>>, %arg2: memref<128x384xf32, #tpu.memory_space<vmem>>, %arg3: memref<1x384xf32, #tpu.memory_space<vmem>>, %arg4: memref<128x384xf32, #tpu.memory_space<vmem>>, %arg5: memref<128x384xf32, #tpu.memory_space<vmem>>, %arg6: memref<2x1x384xf32, #tpu.memory_space<vmem>>, %arg7: memref<128x128xf32, #tpu.memory_space<vmem>>, %arg8: memref<1x128xf32, #tpu.memory_space<vmem>>, %arg9: memref<8x128xf32, #tpu.memory_space<vmem>>, %arg10: memref<2x8x128xf32, #tpu.memory_space<vmem>>) attributes {dimension_semantics = [#tpu.dimension_semantics<arbitrary>], iteration_bounds = array<i64: 1>, scalar_prefetch = 0 : i64, scratch_operands = 1 : i64, tpu.core_type = #tpu.core_type<tc>, window_params = [{transform_indices = @transform_0, window_bounds = array<i64: 8, 8, 384>}, {pipeline_mode = #tpu.pipeline_mode<synchronous>, transform_indices = @transform_1, window_bounds = array<i64: 128, 384>}, {pipeline_mode = #tpu.pipeline_mode<synchronous>, transform_indices = @transform_2, window_bounds = array<i64: 1, 384>}, {pipeline_mode = #tpu.pipeline_mode<synchronous>, transform_indices = @transform_3, window_bounds = array<i64: 128, 384>}, {pipeline_mode = #tpu.pipeline_mode<synchronous>, transform_indices = @transform_4, window_bounds = array<i64: 128, 384>}, {pipeline_mode = #tpu.pipeline_mode<synchronous>, transform_indices = @transform_5, window_bounds = array<i64: 2, 1, 384>}, {pipeline_mode = #tpu.pipeline_mode<synchronous>, transform_indices = @transform_6, window_bounds = array<i64: 128, 128>}, {pipeline_mode = #tpu.pipeline_mode<synchronous>, transform_indices = @transform_7, window_bounds = array<i64: 1, 128>}, {pipeline_mode = #tpu.pipeline_mode<synchronous>, transform_indices = @transform_8, window_bounds = array<i64: 8, 128>}]} {
    %c0_i32 = arith.constant 0 : i32
    %0 = arith.cmpi eq, %arg0, %c0_i32 : i32
    %1 = arith.extui %0 : i1 to i32
    %c0_i32_0 = arith.constant 0 : i32
    %2 = arith.cmpi ne, %1, %c0_i32_0 : i32
    scf.if %2 {
      %cst_226 = arith.constant 0.000000e+00 : f32
      %505 = vector.broadcast %cst_226 : f32 to vector<2x8x128xf32>
      %c0_227 = arith.constant 0 : index
      %c0_228 = arith.constant 0 : index
      %c0_229 = arith.constant 0 : index
      %506 = vector.load %arg10[%c0_227, %c0_228, %c0_229] : memref<2x8x128xf32, #tpu.memory_space<vmem>>, vector<2x8x128xf32>
      tpu.vector_store %arg10[%c0_227, %c0_228, %c0_229], %505 {strides = array<i32>} : memref<2x8x128xf32, #tpu.memory_space<vmem>>, vector<2x8x128xf32>,
    } else {
    }
    %c0 = arith.constant 0 : index
    %c0_1 = arith.constant 0 : index
    %3 = vector.load %arg3[%c0, %c0_1] : memref<1x384xf32, #tpu.memory_space<vmem>>, vector<1x384xf32>
    %4 = vector.shape_cast %3 : vector<1x384xf32> to vector<1x384xf32>
    %5 = vector.broadcast %4 : vector<1x384xf32> to vector<8x384xf32>
    %c0_2 = arith.constant 0 : index
    %c0_3 = arith.constant 0 : index
    %c0_4 = arith.constant 0 : index
    %6 = vector.load %arg6[%c0_2, %c0_3, %c0_4] : memref<2x1x384xf32, #tpu.memory_space<vmem>>, vector<1x1x384xf32>
    %7 = vector.shape_cast %6 : vector<1x1x384xf32> to vector<1x384xf32>
    %8 = vector.shape_cast %7 : vector<1x384xf32> to vector<1x384xf32>
    %9 = vector.broadcast %8 : vector<1x384xf32> to vector<8x384xf32>
    %c1 = arith.constant 1 : index
    %c0_5 = arith.constant 0 : index
    %c0_6 = arith.constant 0 : index
    %10 = vector.load %arg6[%c1, %c0_5, %c0_6] : memref<2x1x384xf32, #tpu.memory_space<vmem>>, vector<1x1x384xf32>
    %11 = vector.shape_cast %10 : vector<1x1x384xf32> to vector<1x384xf32>
    %12 = vector.shape_cast %11 : vector<1x384xf32> to vector<1x384xf32>
    %13 = vector.broadcast %12 : vector<1x384xf32> to vector<8x384xf32>
    %c0_7 = arith.constant 0 : index
    %c0_8 = arith.constant 0 : index
    %c0_9 = arith.constant 0 : index
    %14 = vector.load %arg10[%c0_7, %c0_8, %c0_9] : memref<2x8x128xf32, #tpu.memory_space<vmem>>, vector<1x8x128xf32>
    %15 = vector.shape_cast %14 : vector<1x8x128xf32> to vector<8x128xf32>
    %c0_10 = arith.constant 0 : index
    %c0_11 = arith.constant 0 : index
    %16 = vector.load %arg2[%c0_10, %c0_11] : memref<128x384xf32, #tpu.memory_space<vmem>>, vector<128x384xf32>
    %cst = arith.constant dense<0.000000e+00> : vector<8x384xf32>
    %17 = tpu.matmul %15, %16, %cst {dimension_numbers = #tpu.dot_dimension_numbers<[1], [0], [0], [1], [0, 0, 1, 1], [], []>} : vector<8x128xf32>, vector<128x384xf32>, vector<8x384xf32> -> vector<8x384xf32>
    %18 = arith.addf %17, %5 : vector<8x384xf32>
    %c0_12 = arith.constant 0 : index
    %c0_13 = arith.constant 0 : index
    %c0_14 = arith.constant 0 : index
    %19 = vector.load %arg1[%c0_12, %c0_13, %c0_14] : memref<8x8x384xf32, #tpu.memory_space<vmem>>, vector<1x8x384xf32>
    %20 = vector.shape_cast %19 : vector<1x8x384xf32> to vector<8x384xf32>
    %21 = vector.extract_strided_slice %20 {offsets = [0, 0], sizes = [8, 256], strides = [1, 1]} : vector<8x384xf32> to vector<8x256xf32>
    %22 = vector.extract_strided_slice %18 {offsets = [0, 0], sizes = [8, 256], strides = [1, 1]} : vector<8x384xf32> to vector<8x256xf32>
    %23 = arith.addf %21, %22 : vector<8x256xf32>
    %24 = arith.negf %23 : vector<8x256xf32>
    %25 = math.exp %24 : vector<8x256xf32>
    %cst_15 = arith.constant 1.000000e+00 : f32
    %26 = vector.broadcast %cst_15 : f32 to vector<8x256xf32>
    %27 = arith.addf %26, %25 : vector<8x256xf32>
    %28 = arith.divf %26, %27 : vector<8x256xf32>
    %29 = vector.extract_strided_slice %28 {offsets = [0, 0], sizes = [8, 128], strides = [1, 1]} : vector<8x256xf32> to vector<8x128xf32>
    %30 = vector.extract_strided_slice %28 {offsets = [0, 128], sizes = [8, 128], strides = [1, 1]} : vector<8x256xf32> to vector<8x128xf32>
    %31 = vector.extract_strided_slice %20 {offsets = [0, 256], sizes = [8, 128], strides = [1, 1]} : vector<8x384xf32> to vector<8x128xf32>
    %32 = vector.extract_strided_slice %18 {offsets = [0, 256], sizes = [8, 128], strides = [1, 1]} : vector<8x384xf32> to vector<8x128xf32>
    %33 = arith.mulf %29, %32 : vector<8x128xf32>
    %34 = arith.addf %31, %33 : vector<8x128xf32>
    %35 = math.tanh %34 : vector<8x128xf32>
    %cst_16 = arith.constant 1.000000e+00 : f32
    %36 = vector.broadcast %cst_16 : f32 to vector<8x128xf32>
    %37 = arith.subf %36, %30 : vector<8x128xf32>
    %38 = arith.mulf %37, %35 : vector<8x128xf32>
    %39 = arith.mulf %30, %15 : vector<8x128xf32>
    %40 = arith.addf %38, %39 : vector<8x128xf32>
    %c0_17 = arith.constant 0 : index
    %c0_18 = arith.constant 0 : index
    %c0_19 = arith.constant 0 : index
    %41 = vector.load %arg10[%c0_17, %c0_18, %c0_19] : memref<2x8x128xf32, #tpu.memory_space<vmem>>, vector<1x8x128xf32>
    %42 = vector.shape_cast %41 : vector<1x8x128xf32> to vector<8x128xf32>
    %43 = vector.shape_cast %40 : vector<8x128xf32> to vector<1x8x128xf32>
    tpu.vector_store %arg10[%c0_17, %c0_18, %c0_19], %43 {strides = array<i32>} : memref<2x8x128xf32, #tpu.memory_space<vmem>>, vector<1x8x128xf32>,
    %c1_20 = arith.constant 1 : index
    %c0_21 = arith.constant 0 : index
    %c0_22 = arith.constant 0 : index
    %44 = vector.load %arg10[%c1_20, %c0_21, %c0_22] : memref<2x8x128xf32, #tpu.memory_space<vmem>>, vector<1x8x128xf32>
    %45 = vector.shape_cast %44 : vector<1x8x128xf32> to vector<8x128xf32>
    %c0_23 = arith.constant 0 : index
    %c0_24 = arith.constant 0 : index
    %46 = vector.load %arg4[%c0_23, %c0_24] : memref<128x384xf32, #tpu.memory_space<vmem>>, vector<128x384xf32>
    %cst_25 = arith.constant dense<0.000000e+00> : vector<8x384xf32>
    %47 = tpu.matmul %40, %46, %cst_25 {dimension_numbers = #tpu.dot_dimension_numbers<[1], [0], [0], [1], [0, 0, 1, 1], [], []>} : vector<8x128xf32>, vector<128x384xf32>, vector<8x384xf32> -> vector<8x384xf32>
    %48 = arith.addf %47, %9 : vector<8x384xf32>
    %c0_26 = arith.constant 0 : index
    %c0_27 = arith.constant 0 : index
    %49 = vector.load %arg5[%c0_26, %c0_27] : memref<128x384xf32, #tpu.memory_space<vmem>>, vector<128x384xf32>
    %cst_28 = arith.constant dense<0.000000e+00> : vector<8x384xf32>
    %50 = tpu.matmul %45, %49, %cst_28 {dimension_numbers = #tpu.dot_dimension_numbers<[1], [0], [0], [1], [0, 0, 1, 1], [], []>} : vector<8x128xf32>, vector<128x384xf32>, vector<8x384xf32> -> vector<8x384xf32>
    %51 = arith.addf %50, %13 : vector<8x384xf32>
    %52 = vector.extract_strided_slice %48 {offsets = [0, 0], sizes = [8, 256], strides = [1, 1]} : vector<8x384xf32> to vector<8x256xf32>
    %53 = vector.extract_strided_slice %51 {offsets = [0, 0], sizes = [8, 256], strides = [1, 1]} : vector<8x384xf32> to vector<8x256xf32>
    %54 = arith.addf %52, %53 : vector<8x256xf32>
    %55 = arith.negf %54 : vector<8x256xf32>
    %56 = math.exp %55 : vector<8x256xf32>
    %cst_29 = arith.constant 1.000000e+00 : f32
    %57 = vector.broadcast %cst_29 : f32 to vector<8x256xf32>
    %58 = arith.addf %57, %56 : vector<8x256xf32>
    %59 = arith.divf %57, %58 : vector<8x256xf32>
    %60 = vector.extract_strided_slice %59 {offsets = [0, 0], sizes = [8, 128], strides = [1, 1]} : vector<8x256xf32> to vector<8x128xf32>
    %61 = vector.extract_strided_slice %59 {offsets = [0, 128], sizes = [8, 128], strides = [1, 1]} : vector<8x256xf32> to vector<8x128xf32>
    %62 = vector.extract_strided_slice %48 {offsets = [0, 256], sizes = [8, 128], strides = [1, 1]} : vector<8x384xf32> to vector<8x128xf32>
    %63 = vector.extract_strided_slice %51 {offsets = [0, 256], sizes = [8, 128], strides = [1, 1]} : vector<8x384xf32> to vector<8x128xf32>
    %64 = arith.mulf %60, %63 : vector<8x128xf32>
    %65 = arith.addf %62, %64 : vector<8x128xf32>
    %66 = math.tanh %65 : vector<8x128xf32>
    %cst_30 = arith.constant 1.000000e+00 : f32
    %67 = vector.broadcast %cst_30 : f32 to vector<8x128xf32>
    %68 = arith.subf %67, %61 : vector<8x128xf32>
    %69 = arith.mulf %68, %66 : vector<8x128xf32>
    %70 = arith.mulf %61, %45 : vector<8x128xf32>
    %71 = arith.addf %69, %70 : vector<8x128xf32>
    %c1_31 = arith.constant 1 : index
    %c0_32 = arith.constant 0 : index
    %c0_33 = arith.constant 0 : index
    %72 = vector.load %arg10[%c1_31, %c0_32, %c0_33] : memref<2x8x128xf32, #tpu.memory_space<vmem>>, vector<1x8x128xf32>
    %73 = vector.shape_cast %72 : vector<1x8x128xf32> to vector<8x128xf32>
    %74 = vector.shape_cast %71 : vector<8x128xf32> to vector<1x8x128xf32>
    tpu.vector_store %arg10[%c1_31, %c0_32, %c0_33], %74 {strides = array<i32>} : memref<2x8x128xf32, #tpu.memory_space<vmem>>, vector<1x8x128xf32>,
    %c0_34 = arith.constant 0 : index
    %c0_35 = arith.constant 0 : index
    %c0_36 = arith.constant 0 : index
    %75 = vector.load %arg10[%c0_34, %c0_35, %c0_36] : memref<2x8x128xf32, #tpu.memory_space<vmem>>, vector<1x8x128xf32>
    %76 = vector.shape_cast %75 : vector<1x8x128xf32> to vector<8x128xf32>
    %c0_37 = arith.constant 0 : index
    %c0_38 = arith.constant 0 : index
    %77 = vector.load %arg2[%c0_37, %c0_38] : memref<128x384xf32, #tpu.memory_space<vmem>>, vector<128x384xf32>
    %cst_39 = arith.constant dense<0.000000e+00> : vector<8x384xf32>
    %78 = tpu.matmul %76, %77, %cst_39 {dimension_numbers = #tpu.dot_dimension_numbers<[1], [0], [0], [1], [0, 0, 1, 1], [], []>} : vector<8x128xf32>, vector<128x384xf32>, vector<8x384xf32> -> vector<8x384xf32>
    %79 = arith.addf %78, %5 : vector<8x384xf32>
    %c1_40 = arith.constant 1 : index
    %c0_41 = arith.constant 0 : index
    %c0_42 = arith.constant 0 : index
    %80 = vector.load %arg1[%c1_40, %c0_41, %c0_42] : memref<8x8x384xf32, #tpu.memory_space<vmem>>, vector<1x8x384xf32>
    %81 = vector.shape_cast %80 : vector<1x8x384xf32> to vector<8x384xf32>
    %82 = vector.extract_strided_slice %81 {offsets = [0, 0], sizes = [8, 256], strides = [1, 1]} : vector<8x384xf32> to vector<8x256xf32>
    %83 = vector.extract_strided_slice %79 {offsets = [0, 0], sizes = [8, 256], strides = [1, 1]} : vector<8x384xf32> to vector<8x256xf32>
    %84 = arith.addf %82, %83 : vector<8x256xf32>
    %85 = arith.negf %84 : vector<8x256xf32>
    %86 = math.exp %85 : vector<8x256xf32>
    %cst_43 = arith.constant 1.000000e+00 : f32
    %87 = vector.broadcast %cst_43 : f32 to vector<8x256xf32>
    %88 = arith.addf %87, %86 : vector<8x256xf32>
    %89 = arith.divf %87, %88 : vector<8x256xf32>
    %90 = vector.extract_strided_slice %89 {offsets = [0, 0], sizes = [8, 128], strides = [1, 1]} : vector<8x256xf32> to vector<8x128xf32>
    %91 = vector.extract_strided_slice %89 {offsets = [0, 128], sizes = [8, 128], strides = [1, 1]} : vector<8x256xf32> to vector<8x128xf32>
    %92 = vector.extract_strided_slice %81 {offsets = [0, 256], sizes = [8, 128], strides = [1, 1]} : vector<8x384xf32> to vector<8x128xf32>
    %93 = vector.extract_strided_slice %79 {offsets = [0, 256], sizes = [8, 128], strides = [1, 1]} : vector<8x384xf32> to vector<8x128xf32>
    %94 = arith.mulf %90, %93 : vector<8x128xf32>
    %95 = arith.addf %92, %94 : vector<8x128xf32>
    %96 = math.tanh %95 : vector<8x128xf32>
    %cst_44 = arith.constant 1.000000e+00 : f32
    %97 = vector.broadcast %cst_44 : f32 to vector<8x128xf32>
    %98 = arith.subf %97, %91 : vector<8x128xf32>
    %99 = arith.mulf %98, %96 : vector<8x128xf32>
    %100 = arith.mulf %91, %76 : vector<8x128xf32>
    %101 = arith.addf %99, %100 : vector<8x128xf32>
    %c0_45 = arith.constant 0 : index
    %c0_46 = arith.constant 0 : index
    %c0_47 = arith.constant 0 : index
    %102 = vector.load %arg10[%c0_45, %c0_46, %c0_47] : memref<2x8x128xf32, #tpu.memory_space<vmem>>, vector<1x8x128xf32>
    %103 = vector.shape_cast %102 : vector<1x8x128xf32> to vector<8x128xf32>
    %104 = vector.shape_cast %101 : vector<8x128xf32> to vector<1x8x128xf32>
    tpu.vector_store %arg10[%c0_45, %c0_46, %c0_47], %104 {strides = array<i32>} : memref<2x8x128xf32, #tpu.memory_space<vmem>>, vector<1x8x128xf32>,
    %c1_48 = arith.constant 1 : index
    %c0_49 = arith.constant 0 : index
    %c0_50 = arith.constant 0 : index
    %105 = vector.load %arg10[%c1_48, %c0_49, %c0_50] : memref<2x8x128xf32, #tpu.memory_space<vmem>>, vector<1x8x128xf32>
    %106 = vector.shape_cast %105 : vector<1x8x128xf32> to vector<8x128xf32>
    %c0_51 = arith.constant 0 : index
    %c0_52 = arith.constant 0 : index
    %107 = vector.load %arg4[%c0_51, %c0_52] : memref<128x384xf32, #tpu.memory_space<vmem>>, vector<128x384xf32>
    %cst_53 = arith.constant dense<0.000000e+00> : vector<8x384xf32>
    %108 = tpu.matmul %101, %107, %cst_53 {dimension_numbers = #tpu.dot_dimension_numbers<[1], [0], [0], [1], [0, 0, 1, 1], [], []>} : vector<8x128xf32>, vector<128x384xf32>, vector<8x384xf32> -> vector<8x384xf32>
    %109 = arith.addf %108, %9 : vector<8x384xf32>
    %c0_54 = arith.constant 0 : index
    %c0_55 = arith.constant 0 : index
    %110 = vector.load %arg5[%c0_54, %c0_55] : memref<128x384xf32, #tpu.memory_space<vmem>>, vector<128x384xf32>
    %cst_56 = arith.constant dense<0.000000e+00> : vector<8x384xf32>
    %111 = tpu.matmul %106, %110, %cst_56 {dimension_numbers = #tpu.dot_dimension_numbers<[1], [0], [0], [1], [0, 0, 1, 1], [], []>} : vector<8x128xf32>, vector<128x384xf32>, vector<8x384xf32> -> vector<8x384xf32>
    %112 = arith.addf %111, %13 : vector<8x384xf32>
    %113 = vector.extract_strided_slice %109 {offsets = [0, 0], sizes = [8, 256], strides = [1, 1]} : vector<8x384xf32> to vector<8x256xf32>
    %114 = vector.extract_strided_slice %112 {offsets = [0, 0], sizes = [8, 256], strides = [1, 1]} : vector<8x384xf32> to vector<8x256xf32>
    %115 = arith.addf %113, %114 : vector<8x256xf32>
    %116 = arith.negf %115 : vector<8x256xf32>
    %117 = math.exp %116 : vector<8x256xf32>
    %cst_57 = arith.constant 1.000000e+00 : f32
    %118 = vector.broadcast %cst_57 : f32 to vector<8x256xf32>
    %119 = arith.addf %118, %117 : vector<8x256xf32>
    %120 = arith.divf %118, %119 : vector<8x256xf32>
    %121 = vector.extract_strided_slice %120 {offsets = [0, 0], sizes = [8, 128], strides = [1, 1]} : vector<8x256xf32> to vector<8x128xf32>
    %122 = vector.extract_strided_slice %120 {offsets = [0, 128], sizes = [8, 128], strides = [1, 1]} : vector<8x256xf32> to vector<8x128xf32>
    %123 = vector.extract_strided_slice %109 {offsets = [0, 256], sizes = [8, 128], strides = [1, 1]} : vector<8x384xf32> to vector<8x128xf32>
    %124 = vector.extract_strided_slice %112 {offsets = [0, 256], sizes = [8, 128], strides = [1, 1]} : vector<8x384xf32> to vector<8x128xf32>
    %125 = arith.mulf %121, %124 : vector<8x128xf32>
    %126 = arith.addf %123, %125 : vector<8x128xf32>
    %127 = math.tanh %126 : vector<8x128xf32>
    %cst_58 = arith.constant 1.000000e+00 : f32
    %128 = vector.broadcast %cst_58 : f32 to vector<8x128xf32>
    %129 = arith.subf %128, %122 : vector<8x128xf32>
    %130 = arith.mulf %129, %127 : vector<8x128xf32>
    %131 = arith.mulf %122, %106 : vector<8x128xf32>
    %132 = arith.addf %130, %131 : vector<8x128xf32>
    %c1_59 = arith.constant 1 : index
    %c0_60 = arith.constant 0 : index
    %c0_61 = arith.constant 0 : index
    %133 = vector.load %arg10[%c1_59, %c0_60, %c0_61] : memref<2x8x128xf32, #tpu.memory_space<vmem>>, vector<1x8x128xf32>
    %134 = vector.shape_cast %133 : vector<1x8x128xf32> to vector<8x128xf32>
    %135 = vector.shape_cast %132 : vector<8x128xf32> to vector<1x8x128xf32>
    tpu.vector_store %arg10[%c1_59, %c0_60, %c0_61], %135 {strides = array<i32>} : memref<2x8x128xf32, #tpu.memory_space<vmem>>, vector<1x8x128xf32>,
    %c0_62 = arith.constant 0 : index
    %c0_63 = arith.constant 0 : index
    %c0_64 = arith.constant 0 : index
    %136 = vector.load %arg10[%c0_62, %c0_63, %c0_64] : memref<2x8x128xf32, #tpu.memory_space<vmem>>, vector<1x8x128xf32>
    %137 = vector.shape_cast %136 : vector<1x8x128xf32> to vector<8x128xf32>
    %c0_65 = arith.constant 0 : index
    %c0_66 = arith.constant 0 : index
    %138 = vector.load %arg2[%c0_65, %c0_66] : memref<128x384xf32, #tpu.memory_space<vmem>>, vector<128x384xf32>
    %cst_67 = arith.constant dense<0.000000e+00> : vector<8x384xf32>
    %139 = tpu.matmul %137, %138, %cst_67 {dimension_numbers = #tpu.dot_dimension_numbers<[1], [0], [0], [1], [0, 0, 1, 1], [], []>} : vector<8x128xf32>, vector<128x384xf32>, vector<8x384xf32> -> vector<8x384xf32>
    %140 = arith.addf %139, %5 : vector<8x384xf32>
    %c2 = arith.constant 2 : index
    %c0_68 = arith.constant 0 : index
    %c0_69 = arith.constant 0 : index
    %141 = vector.load %arg1[%c2, %c0_68, %c0_69] : memref<8x8x384xf32, #tpu.memory_space<vmem>>, vector<1x8x384xf32>
    %142 = vector.shape_cast %141 : vector<1x8x384xf32> to vector<8x384xf32>
    %143 = vector.extract_strided_slice %142 {offsets = [0, 0], sizes = [8, 256], strides = [1, 1]} : vector<8x384xf32> to vector<8x256xf32>
    %144 = vector.extract_strided_slice %140 {offsets = [0, 0], sizes = [8, 256], strides = [1, 1]} : vector<8x384xf32> to vector<8x256xf32>
    %145 = arith.addf %143, %144 : vector<8x256xf32>
    %146 = arith.negf %145 : vector<8x256xf32>
    %147 = math.exp %146 : vector<8x256xf32>
    %cst_70 = arith.constant 1.000000e+00 : f32
    %148 = vector.broadcast %cst_70 : f32 to vector<8x256xf32>
    %149 = arith.addf %148, %147 : vector<8x256xf32>
    %150 = arith.divf %148, %149 : vector<8x256xf32>
    %151 = vector.extract_strided_slice %150 {offsets = [0, 0], sizes = [8, 128], strides = [1, 1]} : vector<8x256xf32> to vector<8x128xf32>
    %152 = vector.extract_strided_slice %150 {offsets = [0, 128], sizes = [8, 128], strides = [1, 1]} : vector<8x256xf32> to vector<8x128xf32>
    %153 = vector.extract_strided_slice %142 {offsets = [0, 256], sizes = [8, 128], strides = [1, 1]} : vector<8x384xf32> to vector<8x128xf32>
    %154 = vector.extract_strided_slice %140 {offsets = [0, 256], sizes = [8, 128], strides = [1, 1]} : vector<8x384xf32> to vector<8x128xf32>
    %155 = arith.mulf %151, %154 : vector<8x128xf32>
    %156 = arith.addf %153, %155 : vector<8x128xf32>
    %157 = math.tanh %156 : vector<8x128xf32>
    %cst_71 = arith.constant 1.000000e+00 : f32
    %158 = vector.broadcast %cst_71 : f32 to vector<8x128xf32>
    %159 = arith.subf %158, %152 : vector<8x128xf32>
    %160 = arith.mulf %159, %157 : vector<8x128xf32>
    %161 = arith.mulf %152, %137 : vector<8x128xf32>
    %162 = arith.addf %160, %161 : vector<8x128xf32>
    %c0_72 = arith.constant 0 : index
    %c0_73 = arith.constant 0 : index
    %c0_74 = arith.constant 0 : index
    %163 = vector.load %arg10[%c0_72, %c0_73, %c0_74] : memref<2x8x128xf32, #tpu.memory_space<vmem>>, vector<1x8x128xf32>
    %164 = vector.shape_cast %163 : vector<1x8x128xf32> to vector<8x128xf32>
    %165 = vector.shape_cast %162 : vector<8x128xf32> to vector<1x8x128xf32>
    tpu.vector_store %arg10[%c0_72, %c0_73, %c0_74], %165 {strides = array<i32>} : memref<2x8x128xf32, #tpu.memory_space<vmem>>, vector<1x8x128xf32>,
    %c1_75 = arith.constant 1 : index
    %c0_76 = arith.constant 0 : index
    %c0_77 = arith.constant 0 : index
    %166 = vector.load %arg10[%c1_75, %c0_76, %c0_77] : memref<2x8x128xf32, #tpu.memory_space<vmem>>, vector<1x8x128xf32>
    %167 = vector.shape_cast %166 : vector<1x8x128xf32> to vector<8x128xf32>
    %c0_78 = arith.constant 0 : index
    %c0_79 = arith.constant 0 : index
    %168 = vector.load %arg4[%c0_78, %c0_79] : memref<128x384xf32, #tpu.memory_space<vmem>>, vector<128x384xf32>
    %cst_80 = arith.constant dense<0.000000e+00> : vector<8x384xf32>
    %169 = tpu.matmul %162, %168, %cst_80 {dimension_numbers = #tpu.dot_dimension_numbers<[1], [0], [0], [1], [0, 0, 1, 1], [], []>} : vector<8x128xf32>, vector<128x384xf32>, vector<8x384xf32> -> vector<8x384xf32>
    %170 = arith.addf %169, %9 : vector<8x384xf32>
    %c0_81 = arith.constant 0 : index
    %c0_82 = arith.constant 0 : index
    %171 = vector.load %arg5[%c0_81, %c0_82] : memref<128x384xf32, #tpu.memory_space<vmem>>, vector<128x384xf32>
    %cst_83 = arith.constant dense<0.000000e+00> : vector<8x384xf32>
    %172 = tpu.matmul %167, %171, %cst_83 {dimension_numbers = #tpu.dot_dimension_numbers<[1], [0], [0], [1], [0, 0, 1, 1], [], []>} : vector<8x128xf32>, vector<128x384xf32>, vector<8x384xf32> -> vector<8x384xf32>
    %173 = arith.addf %172, %13 : vector<8x384xf32>
    %174 = vector.extract_strided_slice %170 {offsets = [0, 0], sizes = [8, 256], strides = [1, 1]} : vector<8x384xf32> to vector<8x256xf32>
    %175 = vector.extract_strided_slice %173 {offsets = [0, 0], sizes = [8, 256], strides = [1, 1]} : vector<8x384xf32> to vector<8x256xf32>
    %176 = arith.addf %174, %175 : vector<8x256xf32>
    %177 = arith.negf %176 : vector<8x256xf32>
    %178 = math.exp %177 : vector<8x256xf32>
    %cst_84 = arith.constant 1.000000e+00 : f32
    %179 = vector.broadcast %cst_84 : f32 to vector<8x256xf32>
    %180 = arith.addf %179, %178 : vector<8x256xf32>
    %181 = arith.divf %179, %180 : vector<8x256xf32>
    %182 = vector.extract_strided_slice %181 {offsets = [0, 0], sizes = [8, 128], strides = [1, 1]} : vector<8x256xf32> to vector<8x128xf32>
    %183 = vector.extract_strided_slice %181 {offsets = [0, 128], sizes = [8, 128], strides = [1, 1]} : vector<8x256xf32> to vector<8x128xf32>
    %184 = vector.extract_strided_slice %170 {offsets = [0, 256], sizes = [8, 128], strides = [1, 1]} : vector<8x384xf32> to vector<8x128xf32>
    %185 = vector.extract_strided_slice %173 {offsets = [0, 256], sizes = [8, 128], strides = [1, 1]} : vector<8x384xf32> to vector<8x128xf32>
    %186 = arith.mulf %182, %185 : vector<8x128xf32>
    %187 = arith.addf %184, %186 : vector<8x128xf32>
    %188 = math.tanh %187 : vector<8x128xf32>
    %cst_85 = arith.constant 1.000000e+00 : f32
    %189 = vector.broadcast %cst_85 : f32 to vector<8x128xf32>
    %190 = arith.subf %189, %183 : vector<8x128xf32>
    %191 = arith.mulf %190, %188 : vector<8x128xf32>
    %192 = arith.mulf %183, %167 : vector<8x128xf32>
    %193 = arith.addf %191, %192 : vector<8x128xf32>
    %c1_86 = arith.constant 1 : index
    %c0_87 = arith.constant 0 : index
    %c0_88 = arith.constant 0 : index
    %194 = vector.load %arg10[%c1_86, %c0_87, %c0_88] : memref<2x8x128xf32, #tpu.memory_space<vmem>>, vector<1x8x128xf32>
    %195 = vector.shape_cast %194 : vector<1x8x128xf32> to vector<8x128xf32>
    %196 = vector.shape_cast %193 : vector<8x128xf32> to vector<1x8x128xf32>
    tpu.vector_store %arg10[%c1_86, %c0_87, %c0_88], %196 {strides = array<i32>} : memref<2x8x128xf32, #tpu.memory_space<vmem>>, vector<1x8x128xf32>,
    %c0_89 = arith.constant 0 : index
    %c0_90 = arith.constant 0 : index
    %c0_91 = arith.constant 0 : index
    %197 = vector.load %arg10[%c0_89, %c0_90, %c0_91] : memref<2x8x128xf32, #tpu.memory_space<vmem>>, vector<1x8x128xf32>
    %198 = vector.shape_cast %197 : vector<1x8x128xf32> to vector<8x128xf32>
    %c0_92 = arith.constant 0 : index
    %c0_93 = arith.constant 0 : index
    %199 = vector.load %arg2[%c0_92, %c0_93] : memref<128x384xf32, #tpu.memory_space<vmem>>, vector<128x384xf32>
    %cst_94 = arith.constant dense<0.000000e+00> : vector<8x384xf32>
    %200 = tpu.matmul %198, %199, %cst_94 {dimension_numbers = #tpu.dot_dimension_numbers<[1], [0], [0], [1], [0, 0, 1, 1], [], []>} : vector<8x128xf32>, vector<128x384xf32>, vector<8x384xf32> -> vector<8x384xf32>
    %201 = arith.addf %200, %5 : vector<8x384xf32>
    %c3 = arith.constant 3 : index
    %c0_95 = arith.constant 0 : index
    %c0_96 = arith.constant 0 : index
    %202 = vector.load %arg1[%c3, %c0_95, %c0_96] : memref<8x8x384xf32, #tpu.memory_space<vmem>>, vector<1x8x384xf32>
    %203 = vector.shape_cast %202 : vector<1x8x384xf32> to vector<8x384xf32>
    %204 = vector.extract_strided_slice %203 {offsets = [0, 0], sizes = [8, 256], strides = [1, 1]} : vector<8x384xf32> to vector<8x256xf32>
    %205 = vector.extract_strided_slice %201 {offsets = [0, 0], sizes = [8, 256], strides = [1, 1]} : vector<8x384xf32> to vector<8x256xf32>
    %206 = arith.addf %204, %205 : vector<8x256xf32>
    %207 = arith.negf %206 : vector<8x256xf32>
    %208 = math.exp %207 : vector<8x256xf32>
    %cst_97 = arith.constant 1.000000e+00 : f32
    %209 = vector.broadcast %cst_97 : f32 to vector<8x256xf32>
    %210 = arith.addf %209, %208 : vector<8x256xf32>
    %211 = arith.divf %209, %210 : vector<8x256xf32>
    %212 = vector.extract_strided_slice %211 {offsets = [0, 0], sizes = [8, 128], strides = [1, 1]} : vector<8x256xf32> to vector<8x128xf32>
    %213 = vector.extract_strided_slice %211 {offsets = [0, 128], sizes = [8, 128], strides = [1, 1]} : vector<8x256xf32> to vector<8x128xf32>
    %214 = vector.extract_strided_slice %203 {offsets = [0, 256], sizes = [8, 128], strides = [1, 1]} : vector<8x384xf32> to vector<8x128xf32>
    %215 = vector.extract_strided_slice %201 {offsets = [0, 256], sizes = [8, 128], strides = [1, 1]} : vector<8x384xf32> to vector<8x128xf32>
    %216 = arith.mulf %212, %215 : vector<8x128xf32>
    %217 = arith.addf %214, %216 : vector<8x128xf32>
    %218 = math.tanh %217 : vector<8x128xf32>
    %cst_98 = arith.constant 1.000000e+00 : f32
    %219 = vector.broadcast %cst_98 : f32 to vector<8x128xf32>
    %220 = arith.subf %219, %213 : vector<8x128xf32>
    %221 = arith.mulf %220, %218 : vector<8x128xf32>
    %222 = arith.mulf %213, %198 : vector<8x128xf32>
    %223 = arith.addf %221, %222 : vector<8x128xf32>
    %c0_99 = arith.constant 0 : index
    %c0_100 = arith.constant 0 : index
    %c0_101 = arith.constant 0 : index
    %224 = vector.load %arg10[%c0_99, %c0_100, %c0_101] : memref<2x8x128xf32, #tpu.memory_space<vmem>>, vector<1x8x128xf32>
    %225 = vector.shape_cast %224 : vector<1x8x128xf32> to vector<8x128xf32>
    %226 = vector.shape_cast %223 : vector<8x128xf32> to vector<1x8x128xf32>
    tpu.vector_store %arg10[%c0_99, %c0_100, %c0_101], %226 {strides = array<i32>} : memref<2x8x128xf32, #tpu.memory_space<vmem>>, vector<1x8x128xf32>,
    %c1_102 = arith.constant 1 : index
    %c0_103 = arith.constant 0 : index
    %c0_104 = arith.constant 0 : index
    %227 = vector.load %arg10[%c1_102, %c0_103, %c0_104] : memref<2x8x128xf32, #tpu.memory_space<vmem>>, vector<1x8x128xf32>
    %228 = vector.shape_cast %227 : vector<1x8x128xf32> to vector<8x128xf32>
    %c0_105 = arith.constant 0 : index
    %c0_106 = arith.constant 0 : index
    %229 = vector.load %arg4[%c0_105, %c0_106] : memref<128x384xf32, #tpu.memory_space<vmem>>, vector<128x384xf32>
    %cst_107 = arith.constant dense<0.000000e+00> : vector<8x384xf32>
    %230 = tpu.matmul %223, %229, %cst_107 {dimension_numbers = #tpu.dot_dimension_numbers<[1], [0], [0], [1], [0, 0, 1, 1], [], []>} : vector<8x128xf32>, vector<128x384xf32>, vector<8x384xf32> -> vector<8x384xf32>
    %231 = arith.addf %230, %9 : vector<8x384xf32>
    %c0_108 = arith.constant 0 : index
    %c0_109 = arith.constant 0 : index
    %232 = vector.load %arg5[%c0_108, %c0_109] : memref<128x384xf32, #tpu.memory_space<vmem>>, vector<128x384xf32>
    %cst_110 = arith.constant dense<0.000000e+00> : vector<8x384xf32>
    %233 = tpu.matmul %228, %232, %cst_110 {dimension_numbers = #tpu.dot_dimension_numbers<[1], [0], [0], [1], [0, 0, 1, 1], [], []>} : vector<8x128xf32>, vector<128x384xf32>, vector<8x384xf32> -> vector<8x384xf32>
    %234 = arith.addf %233, %13 : vector<8x384xf32>
    %235 = vector.extract_strided_slice %231 {offsets = [0, 0], sizes = [8, 256], strides = [1, 1]} : vector<8x384xf32> to vector<8x256xf32>
    %236 = vector.extract_strided_slice %234 {offsets = [0, 0], sizes = [8, 256], strides = [1, 1]} : vector<8x384xf32> to vector<8x256xf32>
    %237 = arith.addf %235, %236 : vector<8x256xf32>
    %238 = arith.negf %237 : vector<8x256xf32>
    %239 = math.exp %238 : vector<8x256xf32>
    %cst_111 = arith.constant 1.000000e+00 : f32
    %240 = vector.broadcast %cst_111 : f32 to vector<8x256xf32>
    %241 = arith.addf %240, %239 : vector<8x256xf32>
    %242 = arith.divf %240, %241 : vector<8x256xf32>
    %243 = vector.extract_strided_slice %242 {offsets = [0, 0], sizes = [8, 128], strides = [1, 1]} : vector<8x256xf32> to vector<8x128xf32>
    %244 = vector.extract_strided_slice %242 {offsets = [0, 128], sizes = [8, 128], strides = [1, 1]} : vector<8x256xf32> to vector<8x128xf32>
    %245 = vector.extract_strided_slice %231 {offsets = [0, 256], sizes = [8, 128], strides = [1, 1]} : vector<8x384xf32> to vector<8x128xf32>
    %246 = vector.extract_strided_slice %234 {offsets = [0, 256], sizes = [8, 128], strides = [1, 1]} : vector<8x384xf32> to vector<8x128xf32>
    %247 = arith.mulf %243, %246 : vector<8x128xf32>
    %248 = arith.addf %245, %247 : vector<8x128xf32>
    %249 = math.tanh %248 : vector<8x128xf32>
    %cst_112 = arith.constant 1.000000e+00 : f32
    %250 = vector.broadcast %cst_112 : f32 to vector<8x128xf32>
    %251 = arith.subf %250, %244 : vector<8x128xf32>
    %252 = arith.mulf %251, %249 : vector<8x128xf32>
    %253 = arith.mulf %244, %228 : vector<8x128xf32>
    %254 = arith.addf %252, %253 : vector<8x128xf32>
    %c1_113 = arith.constant 1 : index
    %c0_114 = arith.constant 0 : index
    %c0_115 = arith.constant 0 : index
    %255 = vector.load %arg10[%c1_113, %c0_114, %c0_115] : memref<2x8x128xf32, #tpu.memory_space<vmem>>, vector<1x8x128xf32>
    %256 = vector.shape_cast %255 : vector<1x8x128xf32> to vector<8x128xf32>
    %257 = vector.shape_cast %254 : vector<8x128xf32> to vector<1x8x128xf32>
    tpu.vector_store %arg10[%c1_113, %c0_114, %c0_115], %257 {strides = array<i32>} : memref<2x8x128xf32, #tpu.memory_space<vmem>>, vector<1x8x128xf32>,
    %c0_116 = arith.constant 0 : index
    %c0_117 = arith.constant 0 : index
    %c0_118 = arith.constant 0 : index
    %258 = vector.load %arg10[%c0_116, %c0_117, %c0_118] : memref<2x8x128xf32, #tpu.memory_space<vmem>>, vector<1x8x128xf32>
    %259 = vector.shape_cast %258 : vector<1x8x128xf32> to vector<8x128xf32>
    %c0_119 = arith.constant 0 : index
    %c0_120 = arith.constant 0 : index
    %260 = vector.load %arg2[%c0_119, %c0_120] : memref<128x384xf32, #tpu.memory_space<vmem>>, vector<128x384xf32>
    %cst_121 = arith.constant dense<0.000000e+00> : vector<8x384xf32>
    %261 = tpu.matmul %259, %260, %cst_121 {dimension_numbers = #tpu.dot_dimension_numbers<[1], [0], [0], [1], [0, 0, 1, 1], [], []>} : vector<8x128xf32>, vector<128x384xf32>, vector<8x384xf32> -> vector<8x384xf32>
    %262 = arith.addf %261, %5 : vector<8x384xf32>
    %c4 = arith.constant 4 : index
    %c0_122 = arith.constant 0 : index
    %c0_123 = arith.constant 0 : index
    %263 = vector.load %arg1[%c4, %c0_122, %c0_123] : memref<8x8x384xf32, #tpu.memory_space<vmem>>, vector<1x8x384xf32>
    %264 = vector.shape_cast %263 : vector<1x8x384xf32> to vector<8x384xf32>
    %265 = vector.extract_strided_slice %264 {offsets = [0, 0], sizes = [8, 256], strides = [1, 1]} : vector<8x384xf32> to vector<8x256xf32>
    %266 = vector.extract_strided_slice %262 {offsets = [0, 0], sizes = [8, 256], strides = [1, 1]} : vector<8x384xf32> to vector<8x256xf32>
    %267 = arith.addf %265, %266 : vector<8x256xf32>
    %268 = arith.negf %267 : vector<8x256xf32>
    %269 = math.exp %268 : vector<8x256xf32>
    %cst_124 = arith.constant 1.000000e+00 : f32
    %270 = vector.broadcast %cst_124 : f32 to vector<8x256xf32>
    %271 = arith.addf %270, %269 : vector<8x256xf32>
    %272 = arith.divf %270, %271 : vector<8x256xf32>
    %273 = vector.extract_strided_slice %272 {offsets = [0, 0], sizes = [8, 128], strides = [1, 1]} : vector<8x256xf32> to vector<8x128xf32>
    %274 = vector.extract_strided_slice %272 {offsets = [0, 128], sizes = [8, 128], strides = [1, 1]} : vector<8x256xf32> to vector<8x128xf32>
    %275 = vector.extract_strided_slice %264 {offsets = [0, 256], sizes = [8, 128], strides = [1, 1]} : vector<8x384xf32> to vector<8x128xf32>
    %276 = vector.extract_strided_slice %262 {offsets = [0, 256], sizes = [8, 128], strides = [1, 1]} : vector<8x384xf32> to vector<8x128xf32>
    %277 = arith.mulf %273, %276 : vector<8x128xf32>
    %278 = arith.addf %275, %277 : vector<8x128xf32>
    %279 = math.tanh %278 : vector<8x128xf32>
    %cst_125 = arith.constant 1.000000e+00 : f32
    %280 = vector.broadcast %cst_125 : f32 to vector<8x128xf32>
    %281 = arith.subf %280, %274 : vector<8x128xf32>
    %282 = arith.mulf %281, %279 : vector<8x128xf32>
    %283 = arith.mulf %274, %259 : vector<8x128xf32>
    %284 = arith.addf %282, %283 : vector<8x128xf32>
    %c0_126 = arith.constant 0 : index
    %c0_127 = arith.constant 0 : index
    %c0_128 = arith.constant 0 : index
    %285 = vector.load %arg10[%c0_126, %c0_127, %c0_128] : memref<2x8x128xf32, #tpu.memory_space<vmem>>, vector<1x8x128xf32>
    %286 = vector.shape_cast %285 : vector<1x8x128xf32> to vector<8x128xf32>
    %287 = vector.shape_cast %284 : vector<8x128xf32> to vector<1x8x128xf32>
    tpu.vector_store %arg10[%c0_126, %c0_127, %c0_128], %287 {strides = array<i32>} : memref<2x8x128xf32, #tpu.memory_space<vmem>>, vector<1x8x128xf32>,
    %c1_129 = arith.constant 1 : index
    %c0_130 = arith.constant 0 : index
    %c0_131 = arith.constant 0 : index
    %288 = vector.load %arg10[%c1_129, %c0_130, %c0_131] : memref<2x8x128xf32, #tpu.memory_space<vmem>>, vector<1x8x128xf32>
    %289 = vector.shape_cast %288 : vector<1x8x128xf32> to vector<8x128xf32>
    %c0_132 = arith.constant 0 : index
    %c0_133 = arith.constant 0 : index
    %290 = vector.load %arg4[%c0_132, %c0_133] : memref<128x384xf32, #tpu.memory_space<vmem>>, vector<128x384xf32>
    %cst_134 = arith.constant dense<0.000000e+00> : vector<8x384xf32>
    %291 = tpu.matmul %284, %290, %cst_134 {dimension_numbers = #tpu.dot_dimension_numbers<[1], [0], [0], [1], [0, 0, 1, 1], [], []>} : vector<8x128xf32>, vector<128x384xf32>, vector<8x384xf32> -> vector<8x384xf32>
    %292 = arith.addf %291, %9 : vector<8x384xf32>
    %c0_135 = arith.constant 0 : index
    %c0_136 = arith.constant 0 : index
    %293 = vector.load %arg5[%c0_135, %c0_136] : memref<128x384xf32, #tpu.memory_space<vmem>>, vector<128x384xf32>
    %cst_137 = arith.constant dense<0.000000e+00> : vector<8x384xf32>
    %294 = tpu.matmul %289, %293, %cst_137 {dimension_numbers = #tpu.dot_dimension_numbers<[1], [0], [0], [1], [0, 0, 1, 1], [], []>} : vector<8x128xf32>, vector<128x384xf32>, vector<8x384xf32> -> vector<8x384xf32>
    %295 = arith.addf %294, %13 : vector<8x384xf32>
    %296 = vector.extract_strided_slice %292 {offsets = [0, 0], sizes = [8, 256], strides = [1, 1]} : vector<8x384xf32> to vector<8x256xf32>
    %297 = vector.extract_strided_slice %295 {offsets = [0, 0], sizes = [8, 256], strides = [1, 1]} : vector<8x384xf32> to vector<8x256xf32>
    %298 = arith.addf %296, %297 : vector<8x256xf32>
    %299 = arith.negf %298 : vector<8x256xf32>
    %300 = math.exp %299 : vector<8x256xf32>
    %cst_138 = arith.constant 1.000000e+00 : f32
    %301 = vector.broadcast %cst_138 : f32 to vector<8x256xf32>
    %302 = arith.addf %301, %300 : vector<8x256xf32>
    %303 = arith.divf %301, %302 : vector<8x256xf32>
    %304 = vector.extract_strided_slice %303 {offsets = [0, 0], sizes = [8, 128], strides = [1, 1]} : vector<8x256xf32> to vector<8x128xf32>
    %305 = vector.extract_strided_slice %303 {offsets = [0, 128], sizes = [8, 128], strides = [1, 1]} : vector<8x256xf32> to vector<8x128xf32>
    %306 = vector.extract_strided_slice %292 {offsets = [0, 256], sizes = [8, 128], strides = [1, 1]} : vector<8x384xf32> to vector<8x128xf32>
    %307 = vector.extract_strided_slice %295 {offsets = [0, 256], sizes = [8, 128], strides = [1, 1]} : vector<8x384xf32> to vector<8x128xf32>
    %308 = arith.mulf %304, %307 : vector<8x128xf32>
    %309 = arith.addf %306, %308 : vector<8x128xf32>
    %310 = math.tanh %309 : vector<8x128xf32>
    %cst_139 = arith.constant 1.000000e+00 : f32
    %311 = vector.broadcast %cst_139 : f32 to vector<8x128xf32>
    %312 = arith.subf %311, %305 : vector<8x128xf32>
    %313 = arith.mulf %312, %310 : vector<8x128xf32>
    %314 = arith.mulf %305, %289 : vector<8x128xf32>
    %315 = arith.addf %313, %314 : vector<8x128xf32>
    %c1_140 = arith.constant 1 : index
    %c0_141 = arith.constant 0 : index
    %c0_142 = arith.constant 0 : index
    %316 = vector.load %arg10[%c1_140, %c0_141, %c0_142] : memref<2x8x128xf32, #tpu.memory_space<vmem>>, vector<1x8x128xf32>
    %317 = vector.shape_cast %316 : vector<1x8x128xf32> to vector<8x128xf32>
    %318 = vector.shape_cast %315 : vector<8x128xf32> to vector<1x8x128xf32>
    tpu.vector_store %arg10[%c1_140, %c0_141, %c0_142], %318 {strides = array<i32>} : memref<2x8x128xf32, #tpu.memory_space<vmem>>, vector<1x8x128xf32>,
    %c0_143 = arith.constant 0 : index
    %c0_144 = arith.constant 0 : index
    %c0_145 = arith.constant 0 : index
    %319 = vector.load %arg10[%c0_143, %c0_144, %c0_145] : memref<2x8x128xf32, #tpu.memory_space<vmem>>, vector<1x8x128xf32>
    %320 = vector.shape_cast %319 : vector<1x8x128xf32> to vector<8x128xf32>
    %c0_146 = arith.constant 0 : index
    %c0_147 = arith.constant 0 : index
    %321 = vector.load %arg2[%c0_146, %c0_147] : memref<128x384xf32, #tpu.memory_space<vmem>>, vector<128x384xf32>
    %cst_148 = arith.constant dense<0.000000e+00> : vector<8x384xf32>
    %322 = tpu.matmul %320, %321, %cst_148 {dimension_numbers = #tpu.dot_dimension_numbers<[1], [0], [0], [1], [0, 0, 1, 1], [], []>} : vector<8x128xf32>, vector<128x384xf32>, vector<8x384xf32> -> vector<8x384xf32>
    %323 = arith.addf %322, %5 : vector<8x384xf32>
    %c5 = arith.constant 5 : index
    %c0_149 = arith.constant 0 : index
    %c0_150 = arith.constant 0 : index
    %324 = vector.load %arg1[%c5, %c0_149, %c0_150] : memref<8x8x384xf32, #tpu.memory_space<vmem>>, vector<1x8x384xf32>
    %325 = vector.shape_cast %324 : vector<1x8x384xf32> to vector<8x384xf32>
    %326 = vector.extract_strided_slice %325 {offsets = [0, 0], sizes = [8, 256], strides = [1, 1]} : vector<8x384xf32> to vector<8x256xf32>
    %327 = vector.extract_strided_slice %323 {offsets = [0, 0], sizes = [8, 256], strides = [1, 1]} : vector<8x384xf32> to vector<8x256xf32>
    %328 = arith.addf %326, %327 : vector<8x256xf32>
    %329 = arith.negf %328 : vector<8x256xf32>
    %330 = math.exp %329 : vector<8x256xf32>
    %cst_151 = arith.constant 1.000000e+00 : f32
    %331 = vector.broadcast %cst_151 : f32 to vector<8x256xf32>
    %332 = arith.addf %331, %330 : vector<8x256xf32>
    %333 = arith.divf %331, %332 : vector<8x256xf32>
    %334 = vector.extract_strided_slice %333 {offsets = [0, 0], sizes = [8, 128], strides = [1, 1]} : vector<8x256xf32> to vector<8x128xf32>
    %335 = vector.extract_strided_slice %333 {offsets = [0, 128], sizes = [8, 128], strides = [1, 1]} : vector<8x256xf32> to vector<8x128xf32>
    %336 = vector.extract_strided_slice %325 {offsets = [0, 256], sizes = [8, 128], strides = [1, 1]} : vector<8x384xf32> to vector<8x128xf32>
    %337 = vector.extract_strided_slice %323 {offsets = [0, 256], sizes = [8, 128], strides = [1, 1]} : vector<8x384xf32> to vector<8x128xf32>
    %338 = arith.mulf %334, %337 : vector<8x128xf32>
    %339 = arith.addf %336, %338 : vector<8x128xf32>
    %340 = math.tanh %339 : vector<8x128xf32>
    %cst_152 = arith.constant 1.000000e+00 : f32
    %341 = vector.broadcast %cst_152 : f32 to vector<8x128xf32>
    %342 = arith.subf %341, %335 : vector<8x128xf32>
    %343 = arith.mulf %342, %340 : vector<8x128xf32>
    %344 = arith.mulf %335, %320 : vector<8x128xf32>
    %345 = arith.addf %343, %344 : vector<8x128xf32>
    %c0_153 = arith.constant 0 : index
    %c0_154 = arith.constant 0 : index
    %c0_155 = arith.constant 0 : index
    %346 = vector.load %arg10[%c0_153, %c0_154, %c0_155] : memref<2x8x128xf32, #tpu.memory_space<vmem>>, vector<1x8x128xf32>
    %347 = vector.shape_cast %346 : vector<1x8x128xf32> to vector<8x128xf32>
    %348 = vector.shape_cast %345 : vector<8x128xf32> to vector<1x8x128xf32>
    tpu.vector_store %arg10[%c0_153, %c0_154, %c0_155], %348 {strides = array<i32>} : memref<2x8x128xf32, #tpu.memory_space<vmem>>, vector<1x8x128xf32>,
    %c1_156 = arith.constant 1 : index
    %c0_157 = arith.constant 0 : index
    %c0_158 = arith.constant 0 : index
    %349 = vector.load %arg10[%c1_156, %c0_157, %c0_158] : memref<2x8x128xf32, #tpu.memory_space<vmem>>, vector<1x8x128xf32>
    %350 = vector.shape_cast %349 : vector<1x8x128xf32> to vector<8x128xf32>
    %c0_159 = arith.constant 0 : index
    %c0_160 = arith.constant 0 : index
    %351 = vector.load %arg4[%c0_159, %c0_160] : memref<128x384xf32, #tpu.memory_space<vmem>>, vector<128x384xf32>
    %cst_161 = arith.constant dense<0.000000e+00> : vector<8x384xf32>
    %352 = tpu.matmul %345, %351, %cst_161 {dimension_numbers = #tpu.dot_dimension_numbers<[1], [0], [0], [1], [0, 0, 1, 1], [], []>} : vector<8x128xf32>, vector<128x384xf32>, vector<8x384xf32> -> vector<8x384xf32>
    %353 = arith.addf %352, %9 : vector<8x384xf32>
    %c0_162 = arith.constant 0 : index
    %c0_163 = arith.constant 0 : index
    %354 = vector.load %arg5[%c0_162, %c0_163] : memref<128x384xf32, #tpu.memory_space<vmem>>, vector<128x384xf32>
    %cst_164 = arith.constant dense<0.000000e+00> : vector<8x384xf32>
    %355 = tpu.matmul %350, %354, %cst_164 {dimension_numbers = #tpu.dot_dimension_numbers<[1], [0], [0], [1], [0, 0, 1, 1], [], []>} : vector<8x128xf32>, vector<128x384xf32>, vector<8x384xf32> -> vector<8x384xf32>
    %356 = arith.addf %355, %13 : vector<8x384xf32>
    %357 = vector.extract_strided_slice %353 {offsets = [0, 0], sizes = [8, 256], strides = [1, 1]} : vector<8x384xf32> to vector<8x256xf32>
    %358 = vector.extract_strided_slice %356 {offsets = [0, 0], sizes = [8, 256], strides = [1, 1]} : vector<8x384xf32> to vector<8x256xf32>
    %359 = arith.addf %357, %358 : vector<8x256xf32>
    %360 = arith.negf %359 : vector<8x256xf32>
    %361 = math.exp %360 : vector<8x256xf32>
    %cst_165 = arith.constant 1.000000e+00 : f32
    %362 = vector.broadcast %cst_165 : f32 to vector<8x256xf32>
    %363 = arith.addf %362, %361 : vector<8x256xf32>
    %364 = arith.divf %362, %363 : vector<8x256xf32>
    %365 = vector.extract_strided_slice %364 {offsets = [0, 0], sizes = [8, 128], strides = [1, 1]} : vector<8x256xf32> to vector<8x128xf32>
    %366 = vector.extract_strided_slice %364 {offsets = [0, 128], sizes = [8, 128], strides = [1, 1]} : vector<8x256xf32> to vector<8x128xf32>
    %367 = vector.extract_strided_slice %353 {offsets = [0, 256], sizes = [8, 128], strides = [1, 1]} : vector<8x384xf32> to vector<8x128xf32>
    %368 = vector.extract_strided_slice %356 {offsets = [0, 256], sizes = [8, 128], strides = [1, 1]} : vector<8x384xf32> to vector<8x128xf32>
    %369 = arith.mulf %365, %368 : vector<8x128xf32>
    %370 = arith.addf %367, %369 : vector<8x128xf32>
    %371 = math.tanh %370 : vector<8x128xf32>
    %cst_166 = arith.constant 1.000000e+00 : f32
    %372 = vector.broadcast %cst_166 : f32 to vector<8x128xf32>
    %373 = arith.subf %372, %366 : vector<8x128xf32>
    %374 = arith.mulf %373, %371 : vector<8x128xf32>
    %375 = arith.mulf %366, %350 : vector<8x128xf32>
    %376 = arith.addf %374, %375 : vector<8x128xf32>
    %c1_167 = arith.constant 1 : index
    %c0_168 = arith.constant 0 : index
    %c0_169 = arith.constant 0 : index
    %377 = vector.load %arg10[%c1_167, %c0_168, %c0_169] : memref<2x8x128xf32, #tpu.memory_space<vmem>>, vector<1x8x128xf32>
    %378 = vector.shape_cast %377 : vector<1x8x128xf32> to vector<8x128xf32>
    %379 = vector.shape_cast %376 : vector<8x128xf32> to vector<1x8x128xf32>
    tpu.vector_store %arg10[%c1_167, %c0_168, %c0_169], %379 {strides = array<i32>} : memref<2x8x128xf32, #tpu.memory_space<vmem>>, vector<1x8x128xf32>,
    %c0_170 = arith.constant 0 : index
    %c0_171 = arith.constant 0 : index
    %c0_172 = arith.constant 0 : index
    %380 = vector.load %arg10[%c0_170, %c0_171, %c0_172] : memref<2x8x128xf32, #tpu.memory_space<vmem>>, vector<1x8x128xf32>
    %381 = vector.shape_cast %380 : vector<1x8x128xf32> to vector<8x128xf32>
    %c0_173 = arith.constant 0 : index
    %c0_174 = arith.constant 0 : index
    %382 = vector.load %arg2[%c0_173, %c0_174] : memref<128x384xf32, #tpu.memory_space<vmem>>, vector<128x384xf32>
    %cst_175 = arith.constant dense<0.000000e+00> : vector<8x384xf32>
    %383 = tpu.matmul %381, %382, %cst_175 {dimension_numbers = #tpu.dot_dimension_numbers<[1], [0], [0], [1], [0, 0, 1, 1], [], []>} : vector<8x128xf32>, vector<128x384xf32>, vector<8x384xf32> -> vector<8x384xf32>
    %384 = arith.addf %383, %5 : vector<8x384xf32>
    %c6 = arith.constant 6 : index
    %c0_176 = arith.constant 0 : index
    %c0_177 = arith.constant 0 : index
    %385 = vector.load %arg1[%c6, %c0_176, %c0_177] : memref<8x8x384xf32, #tpu.memory_space<vmem>>, vector<1x8x384xf32>
    %386 = vector.shape_cast %385 : vector<1x8x384xf32> to vector<8x384xf32>
    %387 = vector.extract_strided_slice %386 {offsets = [0, 0], sizes = [8, 256], strides = [1, 1]} : vector<8x384xf32> to vector<8x256xf32>
    %388 = vector.extract_strided_slice %384 {offsets = [0, 0], sizes = [8, 256], strides = [1, 1]} : vector<8x384xf32> to vector<8x256xf32>
    %389 = arith.addf %387, %388 : vector<8x256xf32>
    %390 = arith.negf %389 : vector<8x256xf32>
    %391 = math.exp %390 : vector<8x256xf32>
    %cst_178 = arith.constant 1.000000e+00 : f32
    %392 = vector.broadcast %cst_178 : f32 to vector<8x256xf32>
    %393 = arith.addf %392, %391 : vector<8x256xf32>
    %394 = arith.divf %392, %393 : vector<8x256xf32>
    %395 = vector.extract_strided_slice %394 {offsets = [0, 0], sizes = [8, 128], strides = [1, 1]} : vector<8x256xf32> to vector<8x128xf32>
    %396 = vector.extract_strided_slice %394 {offsets = [0, 128], sizes = [8, 128], strides = [1, 1]} : vector<8x256xf32> to vector<8x128xf32>
    %397 = vector.extract_strided_slice %386 {offsets = [0, 256], sizes = [8, 128], strides = [1, 1]} : vector<8x384xf32> to vector<8x128xf32>
    %398 = vector.extract_strided_slice %384 {offsets = [0, 256], sizes = [8, 128], strides = [1, 1]} : vector<8x384xf32> to vector<8x128xf32>
    %399 = arith.mulf %395, %398 : vector<8x128xf32>
    %400 = arith.addf %397, %399 : vector<8x128xf32>
    %401 = math.tanh %400 : vector<8x128xf32>
    %cst_179 = arith.constant 1.000000e+00 : f32
    %402 = vector.broadcast %cst_179 : f32 to vector<8x128xf32>
    %403 = arith.subf %402, %396 : vector<8x128xf32>
    %404 = arith.mulf %403, %401 : vector<8x128xf32>
    %405 = arith.mulf %396, %381 : vector<8x128xf32>
    %406 = arith.addf %404, %405 : vector<8x128xf32>
    %c0_180 = arith.constant 0 : index
    %c0_181 = arith.constant 0 : index
    %c0_182 = arith.constant 0 : index
    %407 = vector.load %arg10[%c0_180, %c0_181, %c0_182] : memref<2x8x128xf32, #tpu.memory_space<vmem>>, vector<1x8x128xf32>
    %408 = vector.shape_cast %407 : vector<1x8x128xf32> to vector<8x128xf32>
    %409 = vector.shape_cast %406 : vector<8x128xf32> to vector<1x8x128xf32>
    tpu.vector_store %arg10[%c0_180, %c0_181, %c0_182], %409 {strides = array<i32>} : memref<2x8x128xf32, #tpu.memory_space<vmem>>, vector<1x8x128xf32>,
    %c1_183 = arith.constant 1 : index
    %c0_184 = arith.constant 0 : index
    %c0_185 = arith.constant 0 : index
    %410 = vector.load %arg10[%c1_183, %c0_184, %c0_185] : memref<2x8x128xf32, #tpu.memory_space<vmem>>, vector<1x8x128xf32>
    %411 = vector.shape_cast %410 : vector<1x8x128xf32> to vector<8x128xf32>
    %c0_186 = arith.constant 0 : index
    %c0_187 = arith.constant 0 : index
    %412 = vector.load %arg4[%c0_186, %c0_187] : memref<128x384xf32, #tpu.memory_space<vmem>>, vector<128x384xf32>
    %cst_188 = arith.constant dense<0.000000e+00> : vector<8x384xf32>
    %413 = tpu.matmul %406, %412, %cst_188 {dimension_numbers = #tpu.dot_dimension_numbers<[1], [0], [0], [1], [0, 0, 1, 1], [], []>} : vector<8x128xf32>, vector<128x384xf32>, vector<8x384xf32> -> vector<8x384xf32>
    %414 = arith.addf %413, %9 : vector<8x384xf32>
    %c0_189 = arith.constant 0 : index
    %c0_190 = arith.constant 0 : index
    %415 = vector.load %arg5[%c0_189, %c0_190] : memref<128x384xf32, #tpu.memory_space<vmem>>, vector<128x384xf32>
    %cst_191 = arith.constant dense<0.000000e+00> : vector<8x384xf32>
    %416 = tpu.matmul %411, %415, %cst_191 {dimension_numbers = #tpu.dot_dimension_numbers<[1], [0], [0], [1], [0, 0, 1, 1], [], []>} : vector<8x128xf32>, vector<128x384xf32>, vector<8x384xf32> -> vector<8x384xf32>
    %417 = arith.addf %416, %13 : vector<8x384xf32>
    %418 = vector.extract_strided_slice %414 {offsets = [0, 0], sizes = [8, 256], strides = [1, 1]} : vector<8x384xf32> to vector<8x256xf32>
    %419 = vector.extract_strided_slice %417 {offsets = [0, 0], sizes = [8, 256], strides = [1, 1]} : vector<8x384xf32> to vector<8x256xf32>
    %420 = arith.addf %418, %419 : vector<8x256xf32>
    %421 = arith.negf %420 : vector<8x256xf32>
    %422 = math.exp %421 : vector<8x256xf32>
    %cst_192 = arith.constant 1.000000e+00 : f32
    %423 = vector.broadcast %cst_192 : f32 to vector<8x256xf32>
    %424 = arith.addf %423, %422 : vector<8x256xf32>
    %425 = arith.divf %423, %424 : vector<8x256xf32>
    %426 = vector.extract_strided_slice %425 {offsets = [0, 0], sizes = [8, 128], strides = [1, 1]} : vector<8x256xf32> to vector<8x128xf32>
    %427 = vector.extract_strided_slice %425 {offsets = [0, 128], sizes = [8, 128], strides = [1, 1]} : vector<8x256xf32> to vector<8x128xf32>
    %428 = vector.extract_strided_slice %414 {offsets = [0, 256], sizes = [8, 128], strides = [1, 1]} : vector<8x384xf32> to vector<8x128xf32>
    %429 = vector.extract_strided_slice %417 {offsets = [0, 256], sizes = [8, 128], strides = [1, 1]} : vector<8x384xf32> to vector<8x128xf32>
    %430 = arith.mulf %426, %429 : vector<8x128xf32>
    %431 = arith.addf %428, %430 : vector<8x128xf32>
    %432 = math.tanh %431 : vector<8x128xf32>
    %cst_193 = arith.constant 1.000000e+00 : f32
    %433 = vector.broadcast %cst_193 : f32 to vector<8x128xf32>
    %434 = arith.subf %433, %427 : vector<8x128xf32>
    %435 = arith.mulf %434, %432 : vector<8x128xf32>
    %436 = arith.mulf %427, %411 : vector<8x128xf32>
    %437 = arith.addf %435, %436 : vector<8x128xf32>
    %c1_194 = arith.constant 1 : index
    %c0_195 = arith.constant 0 : index
    %c0_196 = arith.constant 0 : index
    %438 = vector.load %arg10[%c1_194, %c0_195, %c0_196] : memref<2x8x128xf32, #tpu.memory_space<vmem>>, vector<1x8x128xf32>
    %439 = vector.shape_cast %438 : vector<1x8x128xf32> to vector<8x128xf32>
    %440 = vector.shape_cast %437 : vector<8x128xf32> to vector<1x8x128xf32>
    tpu.vector_store %arg10[%c1_194, %c0_195, %c0_196], %440 {strides = array<i32>} : memref<2x8x128xf32, #tpu.memory_space<vmem>>, vector<1x8x128xf32>,
    %c0_197 = arith.constant 0 : index
    %c0_198 = arith.constant 0 : index
    %c0_199 = arith.constant 0 : index
    %441 = vector.load %arg10[%c0_197, %c0_198, %c0_199] : memref<2x8x128xf32, #tpu.memory_space<vmem>>, vector<1x8x128xf32>
    %442 = vector.shape_cast %441 : vector<1x8x128xf32> to vector<8x128xf32>
    %c0_200 = arith.constant 0 : index
    %c0_201 = arith.constant 0 : index
    %443 = vector.load %arg2[%c0_200, %c0_201] : memref<128x384xf32, #tpu.memory_space<vmem>>, vector<128x384xf32>
    %cst_202 = arith.constant dense<0.000000e+00> : vector<8x384xf32>
    %444 = tpu.matmul %442, %443, %cst_202 {dimension_numbers = #tpu.dot_dimension_numbers<[1], [0], [0], [1], [0, 0, 1, 1], [], []>} : vector<8x128xf32>, vector<128x384xf32>, vector<8x384xf32> -> vector<8x384xf32>
    %445 = arith.addf %444, %5 : vector<8x384xf32>
    %c7 = arith.constant 7 : index
    %c0_203 = arith.constant 0 : index
    %c0_204 = arith.constant 0 : index
    %446 = vector.load %arg1[%c7, %c0_203, %c0_204] : memref<8x8x384xf32, #tpu.memory_space<vmem>>, vector<1x8x384xf32>
    %447 = vector.shape_cast %446 : vector<1x8x384xf32> to vector<8x384xf32>
    %448 = vector.extract_strided_slice %447 {offsets = [0, 0], sizes = [8, 256], strides = [1, 1]} : vector<8x384xf32> to vector<8x256xf32>
    %449 = vector.extract_strided_slice %445 {offsets = [0, 0], sizes = [8, 256], strides = [1, 1]} : vector<8x384xf32> to vector<8x256xf32>
    %450 = arith.addf %448, %449 : vector<8x256xf32>
    %451 = arith.negf %450 : vector<8x256xf32>
    %452 = math.exp %451 : vector<8x256xf32>
    %cst_205 = arith.constant 1.000000e+00 : f32
    %453 = vector.broadcast %cst_205 : f32 to vector<8x256xf32>
    %454 = arith.addf %453, %452 : vector<8x256xf32>
    %455 = arith.divf %453, %454 : vector<8x256xf32>
    %456 = vector.extract_strided_slice %455 {offsets = [0, 0], sizes = [8, 128], strides = [1, 1]} : vector<8x256xf32> to vector<8x128xf32>
    %457 = vector.extract_strided_slice %455 {offsets = [0, 128], sizes = [8, 128], strides = [1, 1]} : vector<8x256xf32> to vector<8x128xf32>
    %458 = vector.extract_strided_slice %447 {offsets = [0, 256], sizes = [8, 128], strides = [1, 1]} : vector<8x384xf32> to vector<8x128xf32>
    %459 = vector.extract_strided_slice %445 {offsets = [0, 256], sizes = [8, 128], strides = [1, 1]} : vector<8x384xf32> to vector<8x128xf32>
    %460 = arith.mulf %456, %459 : vector<8x128xf32>
    %461 = arith.addf %458, %460 : vector<8x128xf32>
    %462 = math.tanh %461 : vector<8x128xf32>
    %cst_206 = arith.constant 1.000000e+00 : f32
    %463 = vector.broadcast %cst_206 : f32 to vector<8x128xf32>
    %464 = arith.subf %463, %457 : vector<8x128xf32>
    %465 = arith.mulf %464, %462 : vector<8x128xf32>
    %466 = arith.mulf %457, %442 : vector<8x128xf32>
    %467 = arith.addf %465, %466 : vector<8x128xf32>
    %c0_207 = arith.constant 0 : index
    %c0_208 = arith.constant 0 : index
    %c0_209 = arith.constant 0 : index
    %468 = vector.load %arg10[%c0_207, %c0_208, %c0_209] : memref<2x8x128xf32, #tpu.memory_space<vmem>>, vector<1x8x128xf32>
    %469 = vector.shape_cast %468 : vector<1x8x128xf32> to vector<8x128xf32>
    %470 = vector.shape_cast %467 : vector<8x128xf32> to vector<1x8x128xf32>
    tpu.vector_store %arg10[%c0_207, %c0_208, %c0_209], %470 {strides = array<i32>} : memref<2x8x128xf32, #tpu.memory_space<vmem>>, vector<1x8x128xf32>,
    %c1_210 = arith.constant 1 : index
    %c0_211 = arith.constant 0 : index
    %c0_212 = arith.constant 0 : index
    %471 = vector.load %arg10[%c1_210, %c0_211, %c0_212] : memref<2x8x128xf32, #tpu.memory_space<vmem>>, vector<1x8x128xf32>
    %472 = vector.shape_cast %471 : vector<1x8x128xf32> to vector<8x128xf32>
    %c0_213 = arith.constant 0 : index
    %c0_214 = arith.constant 0 : index
    %473 = vector.load %arg4[%c0_213, %c0_214] : memref<128x384xf32, #tpu.memory_space<vmem>>, vector<128x384xf32>
    %cst_215 = arith.constant dense<0.000000e+00> : vector<8x384xf32>
    %474 = tpu.matmul %467, %473, %cst_215 {dimension_numbers = #tpu.dot_dimension_numbers<[1], [0], [0], [1], [0, 0, 1, 1], [], []>} : vector<8x128xf32>, vector<128x384xf32>, vector<8x384xf32> -> vector<8x384xf32>
    %475 = arith.addf %474, %9 : vector<8x384xf32>
    %c0_216 = arith.constant 0 : index
    %c0_217 = arith.constant 0 : index
    %476 = vector.load %arg5[%c0_216, %c0_217] : memref<128x384xf32, #tpu.memory_space<vmem>>, vector<128x384xf32>
    %cst_218 = arith.constant dense<0.000000e+00> : vector<8x384xf32>
    %477 = tpu.matmul %472, %476, %cst_218 {dimension_numbers = #tpu.dot_dimension_numbers<[1], [0], [0], [1], [0, 0, 1, 1], [], []>} : vector<8x128xf32>, vector<128x384xf32>, vector<8x384xf32> -> vector<8x384xf32>
    %478 = arith.addf %477, %13 : vector<8x384xf32>
    %479 = vector.extract_strided_slice %475 {offsets = [0, 0], sizes = [8, 256], strides = [1, 1]} : vector<8x384xf32> to vector<8x256xf32>
    %480 = vector.extract_strided_slice %478 {offsets = [0, 0], sizes = [8, 256], strides = [1, 1]} : vector<8x384xf32> to vector<8x256xf32>
    %481 = arith.addf %479, %480 : vector<8x256xf32>
    %482 = arith.negf %481 : vector<8x256xf32>
    %483 = math.exp %482 : vector<8x256xf32>
    %cst_219 = arith.constant 1.000000e+00 : f32
    %484 = vector.broadcast %cst_219 : f32 to vector<8x256xf32>
    %485 = arith.addf %484, %483 : vector<8x256xf32>
    %486 = arith.divf %484, %485 : vector<8x256xf32>
    %487 = vector.extract_strided_slice %486 {offsets = [0, 0], sizes = [8, 128], strides = [1, 1]} : vector<8x256xf32> to vector<8x128xf32>
    %488 = vector.extract_strided_slice %486 {offsets = [0, 128], sizes = [8, 128], strides = [1, 1]} : vector<8x256xf32> to vector<8x128xf32>
    %489 = vector.extract_strided_slice %475 {offsets = [0, 256], sizes = [8, 128], strides = [1, 1]} : vector<8x384xf32> to vector<8x128xf32>
    %490 = vector.extract_strided_slice %478 {offsets = [0, 256], sizes = [8, 128], strides = [1, 1]} : vector<8x384xf32> to vector<8x128xf32>
    %491 = arith.mulf %487, %490 : vector<8x128xf32>
    %492 = arith.addf %489, %491 : vector<8x128xf32>
    %493 = math.tanh %492 : vector<8x128xf32>
    %cst_220 = arith.constant 1.000000e+00 : f32
    %494 = vector.broadcast %cst_220 : f32 to vector<8x128xf32>
    %495 = arith.subf %494, %488 : vector<8x128xf32>
    %496 = arith.mulf %495, %493 : vector<8x128xf32>
    %497 = arith.mulf %488, %472 : vector<8x128xf32>
    %498 = arith.addf %496, %497 : vector<8x128xf32>
    %c1_221 = arith.constant 1 : index
    %c0_222 = arith.constant 0 : index
    %c0_223 = arith.constant 0 : index
    %499 = vector.load %arg10[%c1_221, %c0_222, %c0_223] : memref<2x8x128xf32, #tpu.memory_space<vmem>>, vector<1x8x128xf32>
    %500 = vector.shape_cast %499 : vector<1x8x128xf32> to vector<8x128xf32>
    %501 = vector.shape_cast %498 : vector<8x128xf32> to vector<1x8x128xf32>
    tpu.vector_store %arg10[%c1_221, %c0_222, %c0_223], %501 {strides = array<i32>} : memref<2x8x128xf32, #tpu.memory_space<vmem>>, vector<1x8x128xf32>,
    %c0_i32_224 = arith.constant 0 : i32
    %502 = arith.cmpi eq, %arg0, %c0_i32_224 : i32
    %503 = arith.extui %502 : i1 to i32
    %c0_i32_225 = arith.constant 0 : i32
    %504 = arith.cmpi ne, %503, %c0_i32_225 : i32
    scf.if %504 {
      %c1_226 = arith.constant 1 : index
      %c0_227 = arith.constant 0 : index
      %c0_228 = arith.constant 0 : index
      %505 = vector.load %arg10[%c1_226, %c0_227, %c0_228] : memref<2x8x128xf32, #tpu.memory_space<vmem>>, vector<1x8x128xf32>
      %506 = vector.shape_cast %505 : vector<1x8x128xf32> to vector<8x128xf32>
      %c0_229 = arith.constant 0 : index
      %c0_230 = arith.constant 0 : index
      %507 = vector.load %arg7[%c0_229, %c0_230] : memref<128x128xf32, #tpu.memory_space<vmem>>, vector<128x128xf32>
      %cst_231 = arith.constant dense<0.000000e+00> : vector<8x128xf32>
      %508 = tpu.matmul %506, %507, %cst_231 {dimension_numbers = #tpu.dot_dimension_numbers<[1], [0], [0], [1], [0, 0, 1, 1], [], []>} : vector<8x128xf32>, vector<128x128xf32>, vector<8x128xf32> -> vector<8x128xf32>
      %c0_232 = arith.constant 0 : index
      %c0_233 = arith.constant 0 : index
      %509 = vector.load %arg8[%c0_232, %c0_233] : memref<1x128xf32, #tpu.memory_space<vmem>>, vector<1x128xf32>
      %510 = vector.broadcast %509 : vector<1x128xf32> to vector<8x128xf32>
      %511 = arith.addf %508, %510 : vector<8x128xf32>
      %c0_234 = arith.constant 0 : index
      %c0_235 = arith.constant 0 : index
      %512 = vector.load %arg9[%c0_234, %c0_235] : memref<8x128xf32, #tpu.memory_space<vmem>>, vector<8x128xf32>
      tpu.vector_store %arg9[%c0_234, %c0_235], %511 {strides = array<i32>} : memref<8x128xf32, #tpu.memory_space<vmem>>, vector<8x128xf32>,
    } else {
    }
    return
  }
  func.func @transform_0(%arg0: i32) -> (i32, i32, i32) {
    %c0_i32 = arith.constant 0 : i32
    %c0_i32_0 = arith.constant 0 : i32
    %c0_i32_1 = arith.constant 0 : i32
    return %arg0, %c0_i32, %c0_i32_0 : i32, i32, i32
  }
  func.func @transform_1(%arg0: i32) -> (i32, i32) {
    %c0_i32 = arith.constant 0 : i32
    %c0_i32_0 = arith.constant 0 : i32
    %c0_i32_1 = arith.constant 0 : i32
    return %c0_i32, %c0_i32_0 : i32, i32
  }
  func.func @transform_2(%arg0: i32) -> (i32, i32) {
    %c0_i32 = arith.constant 0 : i32
    %c0_i32_0 = arith.constant 0 : i32
    %c0_i32_1 = arith.constant 0 : i32
    return %c0_i32, %c0_i32_0 : i32, i32
  }
  func.func @transform_3(%arg0: i32) -> (i32, i32) {
    %c0_i32 = arith.constant 0 : i32
    %c0_i32_0 = arith.constant 0 : i32
    %c0_i32_1 = arith.constant 0 : i32
    return %c0_i32, %c0_i32_0 : i32, i32
  }
  func.func @transform_4(%arg0: i32) -> (i32, i32) {
    %c0_i32 = arith.constant 0 : i32
    %c0_i32_0 = arith.constant 0 : i32
    %c0_i32_1 = arith.constant 0 : i32
    return %c0_i32, %c0_i32_0 : i32, i32
  }
  func.func @transform_5(%arg0: i32) -> (i32, i32, i32) {
    %c0_i32 = arith.constant 0 : i32
    %c0_i32_0 = arith.constant 0 : i32
    %c0_i32_1 = arith.constant 0 : i32
    %c0_i32_2 = arith.constant 0 : i32
    return %c0_i32, %c0_i32_0, %c0_i32_1 : i32, i32, i32
  }
  func.func @transform_6(%arg0: i32) -> (i32, i32) {
    %c0_i32 = arith.constant 0 : i32
    %c0_i32_0 = arith.constant 0 : i32
    %c0_i32_1 = arith.constant 0 : i32
    return %c0_i32, %c0_i32_0 : i32, i32
  }
  func.func @transform_7(%arg0: i32) -> (i32, i32) {
    %c0_i32 = arith.constant 0 : i32
    %c0_i32_0 = arith.constant 0 : i32
    %c0_i32_1 = arith.constant 0 : i32
    return %c0_i32, %c0_i32_0 : i32, i32
  }
  func.func @transform_8(%arg0: i32) -> (i32, i32) {
    %c0_i32 = arith.constant 0 : i32
    %c0_i32_0 = arith.constant 0 : i32
    %c0_i32_1 = arith.constant 0 : i32
    return %c0_i32, %c0_i32_0 : i32, i32
  }
}

</mosaic_0001>

<bundles_post_ra>
// kernel: tpu_custom_call.1
= control target key start
LH: loop header
LB: loop body
LE: loop exit
PB: predicated region body
PF: predicated region fallthrough
CT: control target
= control target key end

     0   :  { %13 = vsyncpa [#allocation4], 0  ;;  %s6941_s0 = inlined_call_operand.hbm [shape: f32[8,8,384], index: 0, kind: input, shape index: {}]   ;;  %s6942_s1 = inlined_call_operand.hbm [shape: f32[128,384], index: 1, kind: input, shape index: {}]   ;;  %s6943_s2 = inlined_call_operand.hbm [shape: f32[1,384], index: 2, kind: input, shape index: {}]   ;;  %s6944_s3 = inlined_call_operand.hbm [shape: f32[128,384], index: 3, kind: input, shape index: {}]   ;;  %s6945_s4 = inlined_call_operand.hbm [shape: f32[128,384], index: 4, kind: input, shape index: {}]   ;;  %s6946_s5 = inlined_call_operand.hbm [shape: f32[2,1,384], index: 5, kind: input, shape index: {}]   ;;  %s6947_s6 = inlined_call_operand.hbm [shape: f32[128,128], index: 6, kind: input, shape index: {}]   ;;  %s6948_s7 = inlined_call_operand.vmem [shape: f32[1,128], index: 7, kind: input, shape index: {}]   ;;  %s6949_s8 = inlined_call_operand.hbm [shape: f32[8,128], index: 8, kind: output, shape index: {}]  }
   0x1   :  { %14 = vsyncpa [#allocation7], 0 }
   0x2   :  { %15 = vsyncpa [#allocation10], 0 }
   0x3   :  { %16 = vsyncpa [#allocation13], 0 }
   0x4   :  { %17 = vsyncpa [#allocation5], 0  ;;  %s35_s29 = sshll.u32 %s6942_s1, 4  ;;  %s4051_s30 = smov [#allocation6]   ;;  %s36_s29 = int_to_ptr.hbm [resolvable:$true] %s35_s29 }
   0x5   :  { %s37_s9 = sshll.u32 %s4051_s30, 4  ;;  %s59_s12 = sshll.u32 %s6944_s3, 4  ;;  %s38_s9 = int_to_ptr.vmem [resolvable:$true] %s37_s9  ;;  %s60_s12 = int_to_ptr.hbm [resolvable:$true] %s59_s12 }
   0x6   :  { %s4052_s13 = smov 384   ;;  %s4053_s14 = smov 24  }
   0x7   :  { %43 = dma.hbm_to_vmem [thread:$0]  %s36_s29, 6144, %s38_s9, [#allocation7], %s4052_s13, %s4052_s13, %s4053_s14  }
   0x8   :  { %s4054_s15 = smov [#allocation9]   ;;  %s85_s1 = sshll.u32 %s6946_s5, 4  ;;  %s86_s1 = int_to_ptr.hbm [resolvable:$true] %s85_s1 }
   0x9   :  { %s61_s16 = sshll.u32 %s4054_s15, 4  ;;  %s4055_s3 = smov [#allocation12]   ;;  %s62_s16 = int_to_ptr.vmem [resolvable:$true] %s61_s16 }
   0xa   :  { %67 = dma.hbm_to_vmem [thread:$0]  %s60_s12, 6144, %s62_s16, [#allocation10], %s4052_s13, %s4052_s13, %s4053_s14  }
   0xb   :  { %s87_s19 = sshll.u32 %s4055_s3, 4  ;;  %s22_s22 = sshll.u32 %s6941_s0, 4  ;;  %s88_s19 = int_to_ptr.vmem [resolvable:$true] %s87_s19  ;;  %s23_s22 = int_to_ptr.hbm [resolvable:$true] %s22_s22 }
   0xc   :  { %s4056_s23 = smov 48   ;;  %s4057_s24 = smov 3  }
   0xd   :  { %93 = dma.hbm_to_vmem [thread:$0]  %s86_s1, 96, %s88_s19, [#allocation13], %s4056_s23, %s4056_s23, %s4057_s24  }
   0xe   :  { %s4058_s25 = smov [#allocation3]   ;;  %s49_s28 = sshll.u32 %s6943_s2, 4  ;;  %s50_s28 = int_to_ptr.hbm [resolvable:$true] %s49_s28 }
   0xf   :  { %s24_s26 = sshll.u32 %s4058_s25, 4  ;;  %s72_s0 = sshll.u32 %s6945_s4, 4  ;;  %s25_s26 = int_to_ptr.vmem [resolvable:$true] %s24_s26  ;;  %s73_s0 = int_to_ptr.hbm [resolvable:$true] %s72_s0 }
  0x10   :  { %30 = dma.hbm_to_vmem [thread:$0]  %s23_s22, 3072, %s25_s26, [#allocation4], %s4052_s13, %s4052_s13, %s4053_s14  }
  0x11   :  { %s4059_s9 = smov [#allocation8]   ;;  %s4060_s11 = smov [#allocation11]  }
  0x12   :  { %s51_s10 = sshll.u32 %s4059_s9, 4  ;;  %s74_s12 = sshll.u32 %s4060_s11, 4  ;;  %s52_s10 = int_to_ptr.vmem [resolvable:$true] %s51_s10  ;;  %s75_s12 = int_to_ptr.vmem [resolvable:$true] %s74_s12 }
  0x13   :  { %54 = dma.hbm_to_vmem [thread:$0]  %s50_s28, 48, %s52_s10, [#allocation7]  }
  0x14   :  { %s98_s2 = sshll.u32 %s6947_s6, 4  ;;  %s4061_s17 = smov [#allocation14]   ;;  %s99_s2 = int_to_ptr.hbm [resolvable:$true] %s98_s2 }
  0x15   :  { %80 = dma.hbm_to_vmem [thread:$0]  %s73_s0, 6144, %s75_s12, [#allocation10], %s4052_s13, %s4052_s13, %s4053_s14  }
  0x16   :  { %s100_s18 = sshll.u32 %s4061_s17, 4  ;;  %s4062_s4 = smov 128   ;;  %s101_s18 = int_to_ptr.vmem [resolvable:$true] %s100_s18 }
  0x17   :  { %s4063_s1 = smov 8  }
  0x18   :  { %106 = dma.hbm_to_vmem [thread:$0]  %s99_s2, 2048, %s101_s18, [#allocation13], %s4062_s4, %s4062_s4, %s4063_s1  }
  0x19   :  { %4041 = dma.done.wait [#allocation4], 3072  }
  0x1a   :  { %4042 = vsyncadd [#allocation4], 4294964224 }
  0x1b   :  { %4043 = dma.done.wait [#allocation7], 6192  }
  0x1c   :  { %4044 = vsyncadd [#allocation7], 4294961104 }
  0x1d   :  { %4045 = dma.done.wait [#allocation10], 12288  }
  0x1e   :  { %4046 = vsyncadd [#allocation10], 4294955008 }
  0x1f   :  { %4047 = dma.done.wait [#allocation13], 2144  }
  0x20   :  { %4048 = vsyncadd [#allocation13], 4294965152  ;;  %v4144_v0 = vld [vmem:[#allocation6 + $0x168] sm:$0xff]  ;;  %v4146_v1 = vld [vmem:[#allocation6 + $0x170] sm:$0xff]  ;;  %v6951_v52 = vmov 0.0   ;;  %s4065_s14 = smov [#allocation15]  }
  0x21   :  { %v4148_v2 = vld [vmem:[#allocation6 + $0x150] sm:$0xff]  ;;  %217 = vmatpush.msra.mxu0 %v4144_v0  ;;  %237 = vmatpush.msra.mxu1 %v4146_v1  ;;  %v4152_v3 = vld [vmem:[#allocation6 + $0x158] sm:$0xff]  ;;  %v4156_v5 = vld [vmem:[#allocation6 + $0x140] sm:$0xff]  ;;  %s3626_s3 = sshll.u32 %s4065_s14, 4  ;;  %s3628_s21 = sshll.u32 %s6949_s8, 4  ;;  %s3627_s3 = int_to_ptr.vmem [resolvable:$true] %s3626_s3  ;;  %s3629_s21 = int_to_ptr.hbm [resolvable:$true] %s3628_s21 }
  0x22   :  { %v4154_v4 = vld [vmem:[#allocation6 + $0x138] sm:$0xff]  ;;  %v4160_v6 = vld [vmem:[#allocation6 + $0x120] sm:$0xff]  ;;  %v4162_v7 = vld [vmem:[#allocation6 + $0x128] sm:$0xff] }
  0x23   :  { %218 = vmatpush.msra.mxu0 %v4148_v2  ;;  %238 = vmatpush.msra.mxu1 %v4152_v3  ;;  %v4166_v8 = vld [vmem:[#allocation6 + $0x108] sm:$0xff]  ;;  %v4168_v9 = vld [vmem:[#allocation6 + $0x110] sm:$0xff]  ;;  %v4174_v11 = vld [vmem:[#allocation6 + $0xf8] sm:$0xff] }
  0x24   :  { %v4172_v10 = vld [vmem:[#allocation6 + $0xf0] sm:$0xff]  ;;  %v4176_v12 = vld [vmem:[#allocation6 + $0x178] sm:$0xff]  ;;  %v4180_v13 = vld [vmem:[#allocation6 + $0x160] sm:$0xff] }
  0x25   :  { %219 = vmatpush.msra.mxu0 %v4154_v4  ;;  %239 = vmatpush.msra.mxu1 %v4156_v5  ;;  %v4182_v14 = vld [vmem:[#allocation6 + $0xd8] sm:$0xff]  ;;  %v4184_v15 = vld [vmem:[#allocation6 + $0xe0] sm:$0xff]  ;;  %v4189_v16 = vld [vmem:[#allocation6 + $0x148] sm:$0xff] }
  0x26   :  { %257 = vmatpush.msra.mxu2 %v4176_v12  ;;  %v4191_v17 = vld [vmem:[#allocation6 + $0xc0] sm:$0xff]  ;;  %v4193_v18 = vld [vmem:[#allocation6 + $0xc8] sm:$0xff]  ;;  %v4198_v19 = vld [vmem:[#allocation6 + $0x130] sm:$0xff] }
  0x27   :  { %220 = vmatpush.msra.mxu0 %v4160_v6  ;;  %240 = vmatpush.msra.mxu1 %v4162_v7  ;;  %v4200_v20 = vld [vmem:[#allocation6 + $0xa8] sm:$0xff]  ;;  %v4202_v21 = vld [vmem:[#allocation6 + $0xb0] sm:$0xff]  ;;  %v4207_v22 = vld [vmem:[#allocation6 + $0x118] sm:$0xff] }
  0x28   :  { %258 = vmatpush.msra.mxu2 %v4180_v13  ;;  %v4209_v23 = vld [vmem:[#allocation6 + $0x90] sm:$0xff]  ;;  %v4211_v24 = vld [vmem:[#allocation6 + $0x98] sm:$0xff]  ;;  %v4218_v26 = vld [vmem:[#allocation6 + $0x100] sm:$0xff] }
  0x29   :  { %221 = vmatpush.msra.mxu0 %v4166_v8  ;;  %241 = vmatpush.msra.mxu1 %v4168_v9  ;;  %v4214_v25 = vld [vmem:[#allocation9 + $0x168] sm:$0xff]  ;;  %7267 = vst [vmem:[#allocation21_spill] sm:$0xff] %v4218_v26  ;;  %v4220_v27 = vld [vmem:[#allocation9 + $0x150] sm:$0xff]  ;;  %v4224_v29 = vld [vmem:[#allocation6 + $0x80] sm:$0xff] }
  0x2a   :  { %259 = vmatpush.msra.mxu2 %v4189_v16  ;;  %v4222_v28 = vld [vmem:[#allocation6 + $0x78] sm:$0xff]  ;;  %378 = vmatpush.msra.mxu3 %v4214_v25  ;;  %v4230_v30 = vld [vmem:[#allocation6 + $0xe8] sm:$0xff]  ;;  %v4234_v32 = vld [vmem:[#allocation6 + $0x60] sm:$0xff] }
  0x2b   :  { %222 = vmatpush.msra.mxu0 %v4172_v10  ;;  %242 = vmatpush.msra.mxu1 %v4174_v11  ;;  %7268 = vst [vmem:[#allocation22_spill] sm:$0xff] %v4230_v30  ;;  %v4232_v31 = vld [vmem:[#allocation9 + $0x138] sm:$0xff]  ;;  %v4236_v33 = vld [vmem:[#allocation6 + $0x68] sm:$0xff]  ;;  %v4242_v34 = vld [vmem:[#allocation6 + $0xd0] sm:$0xff] }
  0x2c   :  { %260 = vmatpush.msra.mxu2 %v4198_v19  ;;  %7269 = vst [vmem:[#allocation23_spill] sm:$0xff] %v4232_v31  ;;  %379 = vmatpush.msra.mxu3 %v4220_v27  ;;  %v4244_v35 = vld [vmem:[#allocation9 + $0x120] sm:$0xff]  ;;  %v4248_v37 = vld [vmem:[#allocation6 + $0x50] sm:$0xff]  ;;  %v4254_v38 = vld [vmem:[#allocation6 + $0xb8] sm:$0xff] }
  0x2d   :  { %223 = vmatpush.msra.mxu0 %v4182_v14  ;;  %243 = vmatpush.msra.mxu1 %v4184_v15  ;;  %7270 = vst [vmem:[#allocation24_spill] sm:$0xff] %v4242_v34  ;;  %v4246_v36 = vld [vmem:[#allocation6 + $0x48] sm:$0xff]  ;;  %v4258_v40 = vld [vmem:[#allocation6 + $0x30] sm:$0xff]  ;;  %v4260_v41 = vld [vmem:[#allocation6 + $0x38] sm:$0xff] }
  0x2e   :  { %261 = vmatpush.msra.mxu2 %v4207_v22  ;;  %7271 = vst [vmem:[#allocation25_spill] sm:$0xff] %v4244_v35  ;;  %380 = vmatpush.msra.mxu3 %v4232_v31  ;;  %v4256_v39 = vld [vmem:[#allocation9 + $0x108] sm:$0xff]  ;;  %v4266_v42 = vld [vmem:[#allocation6 + $0xa0] sm:$0xff]  ;;  %v4268_v43 = vld [vmem:[#allocation9 + $0xf0] sm:$0xff] }
  0x2f   :  { %224 = vmatpush.msra.mxu0 %v4191_v17  ;;  %244 = vmatpush.msra.mxu1 %v4193_v18  ;;  %7272 = vst [vmem:[#allocation26_spill] sm:$0xff] %v4254_v38  ;;  %v4270_v44 = vld [vmem:[#allocation6 + $0x18] sm:$0xff]  ;;  %v4272_v45 = vld [vmem:[#allocation6 + $0x20] sm:$0xff]  ;;  %v4278_v46 = vld [vmem:[#allocation6 + $0x88] sm:$0xff] }
  0x30   :  { %262 = vmatpush.msra.mxu2 %v4218_v26  ;;  %7273 = vst [vmem:[#allocation27_spill] sm:$0xff] %v4256_v39  ;;  %381 = vmatpush.msra.mxu3 %v4244_v35  ;;  %v4280_v47 = vld [vmem:[#allocation9 + $0xd8] sm:$0xff]  ;;  %v4284_v49 = vld [vmem:[#allocation6 + $0x8] sm:$0xff]  ;;  %v4291_v50 = vld [vmem:[#allocation6 + $0x70] sm:$0xff] }
  0x31   :  { %225 = vmatpush.msra.mxu0 %v4200_v20  ;;  %245 = vmatpush.msra.mxu1 %v4202_v21  ;;  %7274 = vst [vmem:[#allocation28_spill] sm:$0xff] %v4266_v42  ;;  %v4282_v48 = vld [vmem:[#allocation6] sm:$0xff]  ;;  %v4300_v53 = vld [vmem:[#allocation6 + $0x58] sm:$0xff]  ;;  %v4308_v56 = vld [vmem:[#allocation9 + $0x148] sm:$0xff] }
  0x32   :  { %263 = vmatpush.msra.mxu2 %v4230_v30  ;;  %7275 = vst [vmem:[#allocation29_spill] sm:$0xff] %v4268_v43  ;;  %382 = vmatpush.msra.mxu3 %v4256_v39  ;;  %v4293_v51 = vld [vmem:[#allocation9 + $0x178] sm:$0xff]  ;;  %v4302_v54 = vld [vmem:[#allocation9 + $0x160] sm:$0xff]  ;;  %v4316_v58 = vld [vmem:[#allocation6 + $0x10] sm:$0xff] }
  0x33   :  { %226 = vmatpush.msra.mxu0 %v4209_v23  ;;  %246 = vmatpush.msra.mxu1 %v4211_v24  ;;  %7276 = vst [vmem:[#allocation30_spill] sm:$0xff] %v4278_v46  ;;  %v4306_v55 = vld [vmem:[#allocation6 + $0x40] sm:$0xff]  ;;  %v4312_v57 = vld [vmem:[#allocation6 + $0x28] sm:$0xff]  ;;  %v4323_v60 = vld [vmem:[#allocation11 + $0x150] sm:$0xff] }
  0x34   :  { %264 = vmatpush.msra.mxu2 %v4242_v34  ;;  %7277 = vst [vmem:[#allocation31_spill] sm:$0xff] %v4280_v47  ;;  %383 = vmatpush.msra.mxu3 %v4268_v43  ;;  %v4319_v59 = vld [vmem:[#allocation11 + $0x168] sm:$0xff]  ;;  %v4326_v61 = vld [vmem:[#allocation11 + $0x138] sm:$0xff]  ;;  %v4329_v62 = vld [vmem:[#allocation11 + $0x120] sm:$0xff] }
  0x35   :  { %227 = vmatpush.msra.mxu0 %v4222_v28  ;;  %247 = vmatpush.msra.mxu1 %v4224_v29  ;;  %7278 = vst [vmem:[#allocation32_spill] sm:$0xff] %v4291_v50  ;;  %v4332_v63 = vld [vmem:[#allocation11 + $0x108] sm:$0xff]  ;;  %v4424_v43 = vld [vmem:[#allocation11 + $0x170] sm:$0xff]  ;;  %v4444_v39 = vld [vmem:[#allocation11 + $0x140] sm:$0xff] }
  0x36   :  { %265 = vmatpush.msra.mxu2 %v4254_v38  ;;  %384 = vmatpush.msra.mxu3 %v4280_v47  ;;  %7279 = vst [vmem:[#allocation33_spill] sm:$0xff] %v4300_v53  ;;  %v4407_v47 = vld [vmem:[#allocation9 + $0x88] sm:$0xff]  ;;  %v4434_v38 = vld [vmem:[#allocation11 + $0x158] sm:$0xff]  ;;  %v4464_v35 = vld [vmem:[#allocation11 + $0x110] sm:$0xff] }
  0x37   :  { %228 = vmatpush.msra.mxu0 %v4234_v32  ;;  %248 = vmatpush.msra.mxu1 %v4236_v33  ;;  %7280 = vst [vmem:[#allocation34_spill] sm:$0xff] %v4306_v55  ;;  %v4454_v34 = vld [vmem:[#allocation11 + $0x128] sm:$0xff]  ;;  %v4474_v30 = vld [vmem:[#allocation11 + $0xf8] sm:$0xff] }
  0x38   :  { %266 = vmatpush.msra.mxu2 %v4266_v42  ;;  %7281 = vst [vmem:[#allocation35_spill] sm:$0xff] %v4312_v57  ;;  %v4416_v42 = vld [vmem:[#allocation9 + $0x70] sm:$0xff] }
  0x39   :  { %229 = vmatpush.msra.mxu0 %v4246_v36  ;;  %249 = vmatpush.msra.mxu1 %v4248_v37  ;;  %7282 = vst [vmem:[#allocation36_spill] sm:$0xff] %v4316_v58 }
  0x3a   :  { %267 = vmatpush.msra.mxu2 %v4278_v46  ;;  %7283 = vst [vmem:[#allocation37_spill] sm:$0xff] %v4319_v59  ;;  %v4398_v46 = vld [vmem:[#allocation9 + $0xa0] sm:$0xff] }
  0x3b   :  { %230 = vmatpush.msra.mxu0 %v4258_v40  ;;  %250 = vmatpush.msra.mxu1 %v4260_v41  ;;  %7284 = vst [vmem:[#allocation38_spill] sm:$0xff] %v4323_v60 }
  0x3c   :  { %268 = vmatpush.msra.mxu2 %v4291_v50  ;;  %7285 = vst [vmem:[#allocation39_spill] sm:$0xff] %v4326_v61  ;;  %v4380_v50 = vld [vmem:[#allocation9 + $0xd0] sm:$0xff] }
  0x3d   :  { %231 = vmatpush.msra.mxu0 %v4270_v44  ;;  %251 = vmatpush.msra.mxu1 %v4272_v45  ;;  %7286 = vst [vmem:[#allocation40_spill] sm:$0xff] %v4329_v62 }
  0x3e   :  { %269 = vmatpush.msra.mxu2 %v4300_v53  ;;  %7287 = vst [vmem:[#allocation41_spill] sm:$0xff] %v4332_v63  ;;  %v4371_v53 = vld [vmem:[#allocation9 + $0xe8] sm:$0xff] }
  0x3f   :  { %232 = vmatpush.msra.mxu0 %v4282_v48  ;;  %252 = vmatpush.msra.mxu1 %v4284_v49  ;;  %7308 = vst [vmem:[#allocation62_spill] sm:$0xff] %v4424_v43 }
  0x40   :  { %233 = vmatmul.f32.vlgmr.msra.gmra.mxu0 %v6951_v52  ;;  %253 = vmatmul.f32.vlgmr.msra.gmra.mxu1 %v6951_v52  ;;  %7309 = vst [vmem:[#allocation63_spill] sm:$0xff] %v4434_v38 }
  0x41   :  { %418 = vmatpush.msrb.mxu1 %v4293_v51  ;;  %270 = vmatpush.msra.mxu2 %v4306_v55  ;;  %v4364_v55 = vld [vmem:[#allocation11 + $0x90] sm:$0xff]  ;;  %7310 = vst [vmem:[#allocation64_spill] sm:$0xff] %v4444_v39 }
  0x42   :  { %7295 = vst [vmem:[#allocation49_spill] sm:$0xff] %v4364_v55 }
  0x43   :  { %419 = vmatpush.msrb.mxu1 %v4302_v54  ;;  %271 = vmatpush.msra.mxu2 %v4312_v57  ;;  %v4335_v57 = vld [vmem:[#allocation11 + $0xf0] sm:$0xff]  ;;  %7312 = vst [vmem:[#allocation66_spill] sm:$0xff] %v4454_v34 }
  0x44   :  { %7288 = vst [vmem:[#allocation42_spill] sm:$0xff] %v4335_v57 }
  0x45   :  { %420 = vmatpush.msrb.mxu1 %v4308_v56  ;;  %272 = vmatpush.msra.mxu2 %v4316_v58  ;;  %v4346_v58 = vld [vmem:[#allocation11 + $0xc0] sm:$0xff]  ;;  %7314 = vst [vmem:[#allocation68_spill] sm:$0xff] %v4464_v35 }
  0x46   :  { %273 = vmatmul.f32.vlgmr.msra.gmra.mxu2 %v6951_v52  ;;  %v4338_v52 = vld [vmem:[#allocation11 + $0xd8] sm:$0xff]  ;;  %7291 = vst [vmem:[#allocation45_spill] sm:$0xff] %v4346_v58 }
  0x47   :  { %486 = vmatpush.msrb.mxu2 %v4319_v59  ;;  %7289 = vst [vmem:[#allocation43_spill] sm:$0xff] %v4338_v52  ;;  %v4342_v59 = vld [vmem:[#allocation9 + $0xc0] sm:$0xff] }
  0x48   :  { %7290 = vst [vmem:[#allocation44_spill] sm:$0xff] %v4342_v59  ;;  %385 = vmatpush.msra.mxu3 %v4342_v59  ;;  %v4389_v59 = vld [vmem:[#allocation9 + $0xb8] sm:$0xff] }
  0x49   :  { %487 = vmatpush.msrb.mxu2 %v4323_v60  ;;  %v4344_v60 = vld [vmem:[#allocation9 + $0x130] sm:$0xff]  ;;  %7316 = vst [vmem:[#allocation70_spill] sm:$0xff] %v4474_v30 }
  0x4a   :  { %421 = vmatpush.msrb.mxu1 %v4344_v60 }
  0x4b   :  { %488 = vmatpush.msrb.mxu2 %v4326_v61  ;;  %v4362_v61 = vld [vmem:[#allocation9 + $0x100] sm:$0xff] }
  0x4d   :  { %489 = vmatpush.msrb.mxu2 %v4329_v62  ;;  %v4351_v62 = vld [vmem:[#allocation9 + $0xa8] sm:$0xff] }
  0x4e   :  { %7292 = vst [vmem:[#allocation46_spill] sm:$0xff] %v4351_v62  ;;  %386 = vmatpush.msra.mxu3 %v4351_v62  ;;  %v4373_v62 = vld [vmem:[#allocation11 + $0x78] sm:$0xff] }
  0x4f   :  { %490 = vmatpush.msrb.mxu2 %v4332_v63  ;;  %v4353_v63 = vld [vmem:[#allocation9 + $0x118] sm:$0xff]  ;;  %7297 = vst [vmem:[#allocation51_spill] sm:$0xff] %v4373_v62 }
  0x50   :  { %422 = vmatpush.msrb.mxu1 %v4353_v63 }
  0x51   :  { %491 = vmatpush.msrb.mxu2 %v4335_v57  ;;  %v4360_v57 = vld [vmem:[#allocation9 + $0x90] sm:$0xff] }
  0x52   :  { %7294 = vst [vmem:[#allocation48_spill] sm:$0xff] %v4360_v57  ;;  %387 = vmatpush.msra.mxu3 %v4360_v57  ;;  %423 = vmatpush.msrb.mxu1 %v4362_v61  ;;  %v4382_v57 = vld [vmem:[#allocation11 + $0x60] sm:$0xff] }
  0x53   :  { %492 = vmatpush.msrb.mxu2 %v4338_v52  ;;  %v4357_v52 = vld [vmem:[#allocation11 + $0xa8] sm:$0xff]  ;;  %7299 = vst [vmem:[#allocation53_spill] sm:$0xff] %v4382_v57 }
  0x54   :  { %7293 = vst [vmem:[#allocation47_spill] sm:$0xff] %v4357_v52  ;;  %424 = vmatpush.msrb.mxu1 %v4371_v53 }
  0x55   :  { %493 = vmatpush.msrb.mxu2 %v4346_v58  ;;  %v4369_v58 = vld [vmem:[#allocation9 + $0x78] sm:$0xff] }
  0x56   :  { %7296 = vst [vmem:[#allocation50_spill] sm:$0xff] %v4369_v58  ;;  %388 = vmatpush.msra.mxu3 %v4369_v58  ;;  %425 = vmatpush.msrb.mxu1 %v4380_v50  ;;  %v4391_v58 = vld [vmem:[#allocation11 + $0x48] sm:$0xff] }
  0x57   :  { %494 = vmatpush.msrb.mxu2 %v4357_v52  ;;  %v4378_v52 = vld [vmem:[#allocation9 + $0x60] sm:$0xff]  ;;  %7301 = vst [vmem:[#allocation55_spill] sm:$0xff] %v4391_v58 }
  0x58   :  { %7298 = vst [vmem:[#allocation52_spill] sm:$0xff] %v4378_v52  ;;  %389 = vmatpush.msra.mxu3 %v4378_v52  ;;  %426 = vmatpush.msrb.mxu1 %v4389_v59  ;;  %v4400_v52 = vld [vmem:[#allocation11 + $0x30] sm:$0xff] }
  0x59   :  { %495 = vmatpush.msrb.mxu2 %v4364_v55  ;;  %v4387_v55 = vld [vmem:[#allocation9 + $0x48] sm:$0xff]  ;;  %7303 = vst [vmem:[#allocation57_spill] sm:$0xff] %v4400_v52 }
  0x5a   :  { %7300 = vst [vmem:[#allocation54_spill] sm:$0xff] %v4387_v55  ;;  %390 = vmatpush.msra.mxu3 %v4387_v55  ;;  %427 = vmatpush.msrb.mxu1 %v4398_v46  ;;  %v4409_v55 = vld [vmem:[#allocation11 + $0x18] sm:$0xff] }
  0x5b   :  { %496 = vmatpush.msrb.mxu2 %v4373_v62  ;;  %v4396_v62 = vld [vmem:[#allocation9 + $0x30] sm:$0xff]  ;;  %7305 = vst [vmem:[#allocation59_spill] sm:$0xff] %v4409_v55 }
  0x5c   :  { %7302 = vst [vmem:[#allocation56_spill] sm:$0xff] %v4396_v62  ;;  %391 = vmatpush.msra.mxu3 %v4396_v62  ;;  %428 = vmatpush.msrb.mxu1 %v4407_v47  ;;  %v4418_v62 = vld [vmem:[#allocation11] sm:$0xff] }
  0x5d   :  { %497 = vmatpush.msrb.mxu2 %v4382_v57  ;;  %v4405_v57 = vld [vmem:[#allocation9 + $0x18] sm:$0xff]  ;;  %7307 = vst [vmem:[#allocation61_spill] sm:$0xff] %v4418_v62 }
  0x5e   :  { %7304 = vst [vmem:[#allocation58_spill] sm:$0xff] %v4405_v57  ;;  %392 = vmatpush.msra.mxu3 %v4405_v57  ;;  %429 = vmatpush.msrb.mxu1 %v4416_v42  ;;  %v4428_v57 = vld [vmem:[#allocation9 + $0x58] sm:$0xff] }
  0x5f   :  { %498 = vmatpush.msrb.mxu2 %v4391_v58  ;;  %v4414_v58 = vld [vmem:[#allocation9] sm:$0xff] }
  0x60   :  { %7306 = vst [vmem:[#allocation60_spill] sm:$0xff] %v4414_v58  ;;  %393 = vmatpush.msra.mxu3 %v4414_v58  ;;  %430 = vmatpush.msrb.mxu1 %v4428_v57  ;;  %v4438_v58 = vld [vmem:[#allocation9 + $0x40] sm:$0xff] }
  0x61   :  { %499 = vmatpush.msrb.mxu2 %v4400_v52  ;;  %v4422_v52 = vld [vmem:[#allocation9 + $0x170] sm:$0xff] }
  0x62   :  { %398 = vmatpush.msrb.mxu0 %v4422_v52  ;;  %506 = vmatpush.msrb.mxu3 %v4424_v43  ;;  %v4452_v43 = vld [vmem:[#allocation9 + $0x128] sm:$0xff] }
  0x63   :  { %500 = vmatpush.msrb.mxu2 %v4409_v55  ;;  %v4432_v55 = vld [vmem:[#allocation9 + $0x158] sm:$0xff]  ;;  %431 = vmatpush.msrb.mxu1 %v4438_v58  ;;  %7311 = vst [vmem:[#allocation65_spill] sm:$0xff] %v4452_v43 }
  0x64   :  { %399 = vmatpush.msrb.mxu0 %v4432_v55  ;;  %507 = vmatpush.msrb.mxu3 %v4434_v38  ;;  %v4462_v38 = vld [vmem:[#allocation9 + $0x110] sm:$0xff] }
  0x65   :  { %501 = vmatpush.msrb.mxu2 %v4418_v62  ;;  %v4442_v62 = vld [vmem:[#allocation9 + $0x140] sm:$0xff]  ;;  %7313 = vst [vmem:[#allocation67_spill] sm:$0xff] %v4462_v38 }
  0x66   :  { %400 = vmatpush.msrb.mxu0 %v4442_v62  ;;  %508 = vmatpush.msrb.mxu3 %v4444_v39  ;;  %v4466_v39 = vld [vmem:[#allocation8] sm:$0x7] }
  0x67   :  { %663 = vmatpush.msra.mxu2 %v4146_v1  ;;  %v4448_v1 = vld [vmem:[#allocation9 + $0x28] sm:$0xff]  ;;  %v4483_v31 = vperm.slane %v4466_v39, 0 }
  0x68   :  { %432 = vmatpush.msrb.mxu1 %v4448_v1  ;;  %401 = vmatpush.msrb.mxu0 %v4452_v43  ;;  %v278_v43 = vld [vmem:[#allocation3 + $0x8] sm:$0xff] }
  0x69   :  { %664 = vmatpush.msra.mxu2 %v4152_v3  ;;  %v4458_v3 = vld [vmem:[#allocation9 + $0x10] sm:$0xff]  ;;  %509 = vmatpush.msrb.mxu3 %v4454_v34  ;;  %v4480_v34 = vld [vmem:[#allocation11 + $0xe0] sm:$0xff]  ;;  %7318 = vst [vmem:[#allocation72_spill] sm:$0xff] %v4483_v31 }
  0x6a   :  { %433 = vmatpush.msrb.mxu1 %v4458_v3  ;;  %402 = vmatpush.msrb.mxu0 %v4462_v38  ;;  %7317 = vst [vmem:[#allocation71_spill] sm:$0xff] %v4480_v34  ;;  %v4486_v38 = vperm.slane %v4466_v39, 1 }
  0x6b   :  { %665 = vmatpush.msra.mxu2 %v4156_v5  ;;  %510 = vmatpush.msrb.mxu3 %v4464_v35  ;;  %v4472_v5 = vld [vmem:[#allocation9 + $0xf8] sm:$0xff] }
  0x6c   :  { %643 = vmatpush.msra.mxu1 %v4144_v0  ;;  %7315 = vst [vmem:[#allocation69_spill] sm:$0xff] %v4472_v5  ;;  %403 = vmatpush.msrb.mxu0 %v4472_v5  ;;  %v4494_v0 = vld [vmem:[#allocation9 + $0xc8] sm:$0xff]  ;;  %v277_v5 = vld [vmem:[#allocation3] sm:$0xff] }
  0x6d   :  { %666 = vmatpush.msra.mxu2 %v4162_v7  ;;  %v4478_v7 = vld [vmem:[#allocation9 + $0xe0] sm:$0xff]  ;;  %7319 = vst [vmem:[#allocation73_spill] sm:$0xff] %v4486_v38  ;;  %511 = vmatpush.msrb.mxu3 %v4474_v30 }
  0x6e   :  { %644 = vmatpush.msra.mxu1 %v4148_v2  ;;  %404 = vmatpush.msrb.mxu0 %v4478_v7 }
  0x6f   :  { %667 = vmatpush.msra.mxu2 %v4168_v9  ;;  %512 = vmatpush.msrb.mxu3 %v4480_v34  ;;  %v4496_v9 = vld [vmem:[#allocation11 + $0xc8] sm:$0xff]  ;;  %v4506_v34 = vld [vmem:[#allocation11 + $0xb0] sm:$0xff] }
  0x70   :  { %645 = vmatpush.msra.mxu1 %v4154_v4  ;;  %405 = vmatpush.msrb.mxu0 %v4494_v0  ;;  %v4504_v4 = vld [vmem:[#allocation9 + $0xb0] sm:$0xff] }
  0x71   :  { %668 = vmatpush.msra.mxu2 %v4174_v11  ;;  %513 = vmatpush.msrb.mxu3 %v4496_v9 }
  0x72   :  { %646 = vmatpush.msra.mxu1 %v4160_v6  ;;  %406 = vmatpush.msrb.mxu0 %v4504_v4 }
  0x73   :  { %669 = vmatpush.msra.mxu2 %v4184_v15  ;;  %514 = vmatpush.msrb.mxu3 %v4506_v34 }
  0x74   :  { %647 = vmatpush.msra.mxu1 %v4166_v8  ;;  %v4528_v8 = vld [vmem:[#allocation9 + $0x68] sm:$0xff] }
  0x75   :  { %670 = vmatpush.msra.mxu2 %v4193_v18  ;;  %v4520_v18 = vld [vmem:[#allocation9 + $0x80] sm:$0xff] }
  0x76   :  { %648 = vmatpush.msra.mxu1 %v4172_v10  ;;  %v4536_v10 = vld [vmem:[#allocation9 + $0x50] sm:$0xff] }
  0x77   :  { %671 = vmatpush.msra.mxu2 %v4202_v21  ;;  %v4530_v21 = vld [vmem:[#allocation11 + $0x68] sm:$0xff] }
  0x78   :  { %649 = vmatpush.msra.mxu1 %v4182_v14  ;;  %v7320_v14 = vmov 0.0  }
  0x79   :  { %672 = vmatpush.msra.mxu2 %v4211_v24  ;;  %v4538_v24 = vld [vmem:[#allocation11 + $0x50] sm:$0xff] }
  0x7a   :  { %650 = vmatpush.msra.mxu1 %v4191_v17  ;;  %502 = vmatmul.f32.vlgmr.msrb.gmra.mxu2 %v7320_v14 }
  0x7b   :  { %673 = vmatpush.msra.mxu2 %v4224_v29  ;;  %v4546_v29 = vld [vmem:[#allocation11 + $0x38] sm:$0xff] }
  0x7c   :  { %651 = vmatpush.msra.mxu1 %v4200_v20  ;;  %v4560_v20 = vld [vmem:[#allocation11 + $0x8] sm:$0xff] }
  0x7d   :  { %674 = vmatpush.msra.mxu2 %v4236_v33  ;;  %v4554_v33 = vld [vmem:[#allocation11 + $0x20] sm:$0xff] }
  0x7e   :  { %652 = vmatpush.msra.mxu1 %v4209_v23 }
  0x7f   :  { %675 = vmatpush.msra.mxu2 %v4248_v37 }
  0x80   :  { %653 = vmatpush.msra.mxu1 %v4222_v28  ;;  %v4577_v28 = vld [vmem:[#allocation11 + $0x178] sm:$0xff] }
  0x81   :  { %676 = vmatpush.msra.mxu2 %v4260_v41 }
  0x82   :  { %654 = vmatpush.msra.mxu1 %v4234_v32 }
  0x83   :  { %677 = vmatpush.msra.mxu2 %v4272_v45 }
  0x84   :  { %655 = vmatpush.msra.mxu1 %v4246_v36  ;;  %v4586_v36 = vperm.slane %v4466_v39, 2 }
  0x85   :  { %678 = vmatpush.msra.mxu2 %v4284_v49  ;;  %v4583_v49 = vld [vmem:[#allocation11 + $0x160] sm:$0xff] }
  0x86   :  { %656 = vmatpush.msra.mxu1 %v4258_v40 }
  0x87   :  { %844 = vmatpush.msrb.mxu2 %v4293_v51 }
  0x88   :  { %657 = vmatpush.msra.mxu1 %v4270_v44 }
  0x89   :  { %845 = vmatpush.msrb.mxu2 %v4302_v54 }
  0x8a   :  { %658 = vmatpush.msra.mxu1 %v4282_v48 }
  0x8b   :  { %846 = vmatpush.msrb.mxu2 %v4308_v56  ;;  %v4591_v56 = vld [vmem:[#allocation11 + $0x148] sm:$0xff] }
  0x8d   :  { %847 = vmatpush.msrb.mxu2 %v4344_v60 }
  0x8f   :  { %848 = vmatpush.msrb.mxu2 %v4353_v63  ;;  %v279_v63 = vld [vmem:[#allocation3 + $0x10] sm:$0xff] }
  0x91   :  { %849 = vmatpush.msrb.mxu2 %v4362_v61 }
  0x93   :  { %850 = vmatpush.msrb.mxu2 %v4371_v53 }
  0x95   :  { %851 = vmatpush.msrb.mxu2 %v4380_v50  ;;  %v4619_v50 = vld [vmem:[#allocation11 + $0xb8] sm:$0xff] }
  0x97   :  { %852 = vmatpush.msrb.mxu2 %v4389_v59 }
  0x99   :  { %853 = vmatpush.msrb.mxu2 %v4398_v46 }
  0x9b   :  { %854 = vmatpush.msrb.mxu2 %v4407_v47 }
  0x9d   :  { %855 = vmatpush.msrb.mxu2 %v4416_v42  ;;  %v4643_v42 = vld [vmem:[#allocation11 + $0x40] sm:$0xff] }
  0x9f   :  { %856 = vmatpush.msrb.mxu2 %v4428_v57  ;;  %v4647_v57 = vld [vmem:[#allocation11 + $0x28] sm:$0xff] }
  0xa1   :  { %857 = vmatpush.msrb.mxu2 %v4438_v58  ;;  %v4651_v58 = vld [vmem:[#allocation11 + $0x10] sm:$0xff] }
  0xa3   :  { %858 = vmatpush.msrb.mxu2 %v4448_v1  ;;  %v7329_v1 = vld [vmem:[#allocation27_spill] sm:$0xff] }
  0xa5   :  { %859 = vmatpush.msrb.mxu2 %v4458_v3  ;;  %v7332_v3 = vld [vmem:[#allocation28_spill] sm:$0xff] }
  0xbd   :  { %v234_v35 = vpop.f32.mrf.mxu0  ;;  %v254_v26 = vpop.f32.mrf.mxu1 }
  0xbe   :  { %v235_v2 = vadd.f32 %v234_v35, %v4483_v31  ;;  %v255_v11 = vadd.f32 %v254_v26, %v4486_v38  ;;  %v4512_v35 = vld [vmem:[#allocation9 + $0x98] sm:$0xff] }
  0xbf   :  { %v4514_v26 = vld [vmem:[#allocation11 + $0x98] sm:$0xff]  ;;  %407 = vmatpush.msrb.mxu0 %v4512_v35 }
  0xc0   :  { %v280_v30 = vadd.f32 %v277_v5, %v235_v2  ;;  %v281_v15 = vadd.f32 %v278_v43, %v255_v11  ;;  %515 = vmatpush.msrb.mxu3 %v4514_v26  ;;  %v4522_v43 = vld [vmem:[#allocation11 + $0x80] sm:$0xff]  ;;  %v4558_v11 = vld [vmem:[#allocation9 + $0x8] sm:$0xff] }
  0xc1   :  { %408 = vmatpush.msrb.mxu0 %v4520_v18 }
  0xc2   :  { %v3641_v6 = vmul.f32 -1.442695, %v280_v30  ;;  %v3642_v31 = vmul.f32 -1.442695, %v281_v15  ;;  %516 = vmatpush.msrb.mxu3 %v4522_v43  ;;  %v4544_v30 = vld [vmem:[#allocation9 + $0x38] sm:$0xff] }
  0xc3   :  { %409 = vmatpush.msrb.mxu0 %v4528_v8 }
  0xc4   :  { %3689 = vpow2.f32 %v3641_v6  ;;  %517 = vmatpush.msrb.mxu3 %v4530_v21 }
  0xc5   :  { %3691 = vpow2.f32 %v3642_v31  ;;  %410 = vmatpush.msrb.mxu0 %v4536_v10  ;;  %v4552_v31 = vld [vmem:[#allocation9 + $0x20] sm:$0xff] }
  0xc6   :  { %518 = vmatpush.msrb.mxu3 %v4538_v24 }
  0xc7   :  { %411 = vmatpush.msrb.mxu0 %v4544_v30 }
  0xc8   :  { %519 = vmatpush.msrb.mxu3 %v4546_v29 }
  0xc9   :  { %412 = vmatpush.msrb.mxu0 %v4552_v31  ;;  %v274_v54 = vpop.f32.mrf.mxu2 }
  0xca   :  { %v3690_v17 = vpop.eup %3689  ;;  %520 = vmatpush.msrb.mxu3 %v4554_v33 }
  0xcb   :  { %v3692_v5 = vpop.eup %3691  ;;  %v288_v2 = vadd.f32 1.0, %v3690_v17  ;;  %413 = vmatpush.msrb.mxu0 %v4558_v11  ;;  %v4595_v17 = vld [vmem:[#allocation11 + $0x130] sm:$0xff] }
  0xcc   :  { %v4562_v37 = vadd.f32 1.0, %v3692_v5  ;;  %521 = vmatpush.msrb.mxu3 %v4560_v20  ;;  %v275_v5 = vadd.f32 %v274_v54, %v4586_v36 }
  0xcd   :  { %3693 = vrcp.f32 %v288_v2  ;;  %526 = vmatpush.msra.mxu0 %v4577_v28  ;;  %v301_v15 = vand.u32 2147483648, %v288_v2  ;;  %v299_v44 = vand.u32 2147483647, %v288_v2  ;;  %vm295_vm1 = vweird.f32 %v288_v2 }
  0xce   :  { %3695 = vrcp.f32 %v4562_v37  ;;  %vm310_vm4 = vweird.f32 %v4562_v37  ;;  %v316_v61 = vand.u32 2147483648, %v4562_v37 }
  0xcf   :  { %527 = vmatpush.msra.mxu0 %v4583_v49  ;;  %v302_v48 = vor.u32 1.1754944e-38, %v301_v15  ;;  %vm300_vm3 = vcmp.eq.f32.partialorder %v299_v44, 8.507059e+37  ;;  %v4611_v15 = vld [vmem:[#allocation11 + $0xe8] sm:$0xff]  ;;  %v4615_v44 = vld [vmem:[#allocation11 + $0xd0] sm:$0xff] }
  0xd1   :  { %528 = vmatpush.msra.mxu0 %v4591_v56 }
  0xd3   :  { %v3694_v23 = vpop.eup %3693  ;;  %529 = vmatpush.msra.mxu0 %v4595_v17 }
  0xd4   :  { %v3696_v41 = vpop.eup %3695  ;;  %v291_v45 = vmul.f32 %v3694_v23, %v288_v2  ;;  %vm296_vm0 = vweird.f32 %v3694_v23 }
  0xd5   :  { %v306_v32 = vmul.f32 %v3696_v41, %v4562_v37  ;;  %vm297_vm2 = vmor %vm295_vm1, %vm296_vm0  ;;  %vm311_vm5 = vweird.f32 %v3696_v41 }
  0xd6   :  { %v292_v51 = vsub.f32 1.0, %v291_v45  ;;  %v4600_v45 = vld [vmem:[#allocation11 + $0x118] sm:$0xff]  ;;  %vm312_vm6 = vmor %vm310_vm4, %vm311_vm5 }
  0xd7   :  { %v307_v40 = vsub.f32 1.0, %v306_v32  ;;  %530 = vmatpush.msra.mxu0 %v4600_v45 }
  0xd8   :  { %v293_v6 = vmul.f32 %v3694_v23, %v292_v51 }
  0xd9   :  { %v308_v39 = vmul.f32 %v3696_v41, %v307_v40  ;;  %v4605_v40 = vld [vmem:[#allocation11 + $0x100] sm:$0xff] }
  0xda   :  { %v294_v60 = vadd.f32 %v3694_v23, %v293_v6  ;;  %531 = vmatpush.msra.mxu0 %v4605_v40 }
  0xdb   :  { %v309_v2 = vadd.f32 %v3696_v41, %v308_v39  ;;  %v317_v39 = vor.u32 1.1754944e-38, %v316_v61  ;;  %v7336_v61 = vld [vmem:[#allocation32_spill] sm:$0xff] }
  0xdc   :  { %v298_v32 = vsel %vm297_vm2, %v3694_v23, %v294_v60  ;;  %v314_v23 = vand.u32 2147483647, %v4562_v37  ;;  %532 = vmatpush.msra.mxu0 %v4611_v15 }
  0xdd   :  { %v303_v51 = vsel %vm300_vm3, %v302_v48, %v298_v32  ;;  %v313_v6 = vsel %vm312_vm6, %v3696_v41, %v309_v2  ;;  %v4627_v41 = vld [vmem:[#allocation11 + $0x88] sm:$0xff]  ;;  %v4631_v32 = vld [vmem:[#allocation11 + $0x70] sm:$0xff] }
  0xde   :  { %v320_v54 = vmul.f32 %v303_v51, %v275_v5  ;;  %533 = vmatpush.msra.mxu0 %v4615_v44  ;;  %vm315_vm7 = vcmp.eq.f32.partialorder %v314_v23, 8.507059e+37  ;;  %v4623_v5 = vld [vmem:[#allocation11 + $0xa0] sm:$0xff]  ;;  %v7334_v51 = vld [vmem:[#allocation30_spill] sm:$0xff] }
  0xdf   :  { %v318_v37 = vsel %vm315_vm7, %v317_v39, %v313_v6  ;;  %v7335_v2 = vld [vmem:[#allocation44_spill] sm:$0xff]  ;;  %v7340_v23 = vld [vmem:[#allocation34_spill] sm:$0xff] }
  0xe0   :  { %v321_v53 = vadd.f32 %v320_v54, %v279_v63  ;;  %534 = vmatpush.msra.mxu0 %v4619_v50  ;;  %v323_v59 = vsub.f32 1.0, %v318_v37  ;;  %v325_v48 = vmul.f32 0.0, %v318_v37  ;;  %v4637_v63 = vld [vmem:[#allocation11 + $0x58] sm:$0xff]  ;;  %v7338_v54 = vld [vmem:[#allocation33_spill] sm:$0xff]  ;;  %v7344_v6 = vld [vmem:[#allocation36_spill] sm:$0xff] }
  0xe1   :  { %v7347_v39 = vld [vmem:[#allocation56_spill] sm:$0xff]  ;;  %v7349_v37 = vld [vmem:[#allocation58_spill] sm:$0xff] }
  0xe2   :  { %3697 = vtanh.f32 %v321_v53  ;;  %535 = vmatpush.msra.mxu0 %v4623_v5  ;;  %v7342_v53 = vld [vmem:[#allocation35_spill] sm:$0xff] }
  0xe4   :  { %536 = vmatpush.msra.mxu0 %v4627_v41 }
  0xe6   :  { %537 = vmatpush.msra.mxu0 %v4631_v32 }
  0xe8   :  { %v3698_v60 = vpop.eup %3697  ;;  %538 = vmatpush.msra.mxu0 %v4637_v63 }
  0xe9   :  { %v324_v46 = vmul.f32 %v3698_v60, %v323_v59  ;;  %v7351_v59 = vld [vmem:[#allocation60_spill] sm:$0xff]  ;;  %v7352_v60 = vld [vmem:[#allocation62_spill] sm:$0xff] }
  0xea   :  { %539 = vmatpush.msra.mxu0 %v4643_v42 }
  0xeb   :  { %v4635_v47 = vadd.f32 %v325_v48, %v324_v46  ;;  %v7354_v46 = vld [vmem:[#allocation63_spill] sm:$0xff]  ;;  %v7356_v48 = vld [vmem:[#allocation64_spill] sm:$0xff] }
  0xec   :  { %540 = vmatpush.msra.mxu0 %v4647_v57 }
  0xed   :  { %394 = vmatmul.f32.vlgmr.msra.gmra.mxu3 %v4635_v47  ;;  %414 = vmatmul.f32.vlgmr.msrb.gmra.mxu0 %v4635_v47 }
  0xee   :  { %434 = vmatmul.f32.vlgmr.msrb.gmra.mxu1 %v4635_v47  ;;  %679 = vmatmul.f32.vlgmr.msra.gmra.mxu2 %v4635_v47 }
  0xef   :  { %683 = vmatpush.msra.mxu3 %v4176_v12  ;;  %824 = vmatpush.msrb.mxu1 %v4422_v52  ;;  %v7321_v12 = vld [vmem:[#allocation65_spill] sm:$0xff]  ;;  %v7325_v52 = vld [vmem:[#allocation22_spill] sm:$0xff] }
  0xf0   :  { %541 = vmatpush.msra.mxu0 %v4651_v58 }
  0xf1   :  { %684 = vmatpush.msra.mxu3 %v4180_v13  ;;  %825 = vmatpush.msrb.mxu1 %v4432_v55  ;;  %v7322_v13 = vld [vmem:[#allocation21_spill] sm:$0xff] }
  0xf2   :  { %804 = vmatpush.msrb.mxu0 %v4214_v25  ;;  %v7324_v25 = vld [vmem:[#allocation67_spill] sm:$0xff]  ;;  %v7327_v55 = vld [vmem:[#allocation69_spill] sm:$0xff] }
  0xf3   :  { %685 = vmatpush.msra.mxu3 %v4189_v16  ;;  %826 = vmatpush.msrb.mxu1 %v4442_v62  ;;  %v7323_v16 = vld [vmem:[#allocation23_spill] sm:$0xff]  ;;  %v7328_v62 = vld [vmem:[#allocation24_spill] sm:$0xff] }
  0xf4   :  { %805 = vmatpush.msrb.mxu0 %v4220_v27  ;;  %v7331_v27 = vld [vmem:[#allocation29_spill] sm:$0xff] }
  0xf5   :  { %686 = vmatpush.msra.mxu3 %v4198_v19  ;;  %542 = vmatmul.f32.vlgmr.msra.gmra.mxu0 %v7320_v14  ;;  %v7326_v19 = vld [vmem:[#allocation25_spill] sm:$0xff] }
  0xf6   :  { %522 = vmatmul.f32.vlgmr.msrb.gmra.mxu3 %v7320_v14  ;;  %659 = vmatmul.f32.vlgmr.msra.gmra.mxu1 %v4635_v47  ;;  %v7333_v14 = vld [vmem:[#allocation31_spill] sm:$0xff] }
  0xf7   :  { %687 = vmatpush.msra.mxu3 %v4207_v22  ;;  %827 = vmatpush.msrb.mxu1 %v7321_v12  ;;  %v7330_v22 = vld [vmem:[#allocation26_spill] sm:$0xff] }
  0xf8   :  { %806 = vmatpush.msrb.mxu0 %v7323_v16  ;;  %v7358_v12 = vld [vmem:[#allocation66_spill] sm:$0xff]  ;;  %v7361_v16 = vld [vmem:[#allocation45_spill] sm:$0xff] }
  0xf9   :  { %688 = vmatpush.msra.mxu3 %v7322_v13  ;;  %828 = vmatpush.msrb.mxu1 %v7324_v25  ;;  %v7359_v13 = vld [vmem:[#allocation43_spill] sm:$0xff] }
  0xfa   :  { %807 = vmatpush.msrb.mxu0 %v7326_v19  ;;  %v7363_v25 = vld [vmem:[#allocation47_spill] sm:$0xff] }
  0xfb   :  { %689 = vmatpush.msra.mxu3 %v7325_v52  ;;  %829 = vmatpush.msrb.mxu1 %v7327_v55  ;;  %v7365_v52 = vld [vmem:[#allocation49_spill] sm:$0xff]  ;;  %v705_v19 = vld [vmem:[#allocation3 + $0x20] sm:$0xff] }
  0xfc   :  { %808 = vmatpush.msrb.mxu0 %v7329_v1  ;;  %v4784_v55 = vld [vmem:[#allocation6 + $0x138] sm:$0xff] }
  0xfd   :  { %690 = vmatpush.msra.mxu3 %v7328_v62  ;;  %830 = vmatpush.msrb.mxu1 %v4478_v7  ;;  %v7337_v7 = vld [vmem:[#allocation46_spill] sm:$0xff]  ;;  %v4786_v62 = vld [vmem:[#allocation6 + $0x128] sm:$0xff] }
  0xfe   :  { %809 = vmatpush.msrb.mxu0 %v7331_v27 }
  0xff   :  { %691 = vmatpush.msra.mxu3 %v7330_v22  ;;  %831 = vmatpush.msrb.mxu1 %v4494_v0  ;;  %v7339_v0 = vld [vmem:[#allocation48_spill] sm:$0xff] }
 0x100   :  { %810 = vmatpush.msrb.mxu0 %v7333_v14  ;;  %v4791_v14 = vld [vmem:[#allocation6 + $0x120] sm:$0xff] }
 0x101   :  { %692 = vmatpush.msra.mxu3 %v7332_v3  ;;  %832 = vmatpush.msrb.mxu1 %v4504_v4  ;;  %v7341_v4 = vld [vmem:[#allocation50_spill] sm:$0xff] }
 0x102   :  { %811 = vmatpush.msrb.mxu0 %v7335_v2  ;;  %v704_v3 = vld [vmem:[#allocation3 + $0x18] sm:$0xff] }
 0x103   :  { %693 = vmatpush.msra.mxu3 %v7334_v51  ;;  %833 = vmatpush.msrb.mxu1 %v4512_v35  ;;  %v7343_v35 = vld [vmem:[#allocation52_spill] sm:$0xff] }
 0x104   :  { %812 = vmatpush.msrb.mxu0 %v7337_v7  ;;  %v4793_v51 = vld [vmem:[#allocation6 + $0x110] sm:$0xff] }
 0x105   :  { %694 = vmatpush.msra.mxu3 %v7336_v61  ;;  %834 = vmatpush.msrb.mxu1 %v4520_v18  ;;  %v7345_v18 = vld [vmem:[#allocation54_spill] sm:$0xff]  ;;  %v7374_v61 = vld [vmem:[#allocation72_spill] sm:$0xff] }
 0x106   :  { %813 = vmatpush.msrb.mxu0 %v7339_v0  ;;  %v4798_v0 = vld [vmem:[#allocation6 + $0x108] sm:$0xff] }
 0x107   :  { %695 = vmatpush.msra.mxu3 %v7338_v54  ;;  %835 = vmatpush.msrb.mxu1 %v4528_v8  ;;  %v7346_v8 = vld [vmem:[#allocation37_spill] sm:$0xff] }
 0x108   :  { %814 = vmatpush.msrb.mxu0 %v7341_v4 }
 0x109   :  { %696 = vmatpush.msra.mxu3 %v7340_v23  ;;  %836 = vmatpush.msrb.mxu1 %v4536_v10  ;;  %v7348_v10 = vld [vmem:[#allocation38_spill] sm:$0xff] }
 0x10a   :  { %815 = vmatpush.msrb.mxu0 %v7343_v35  ;;  %v4800_v23 = vld [vmem:[#allocation6 + $0xf8] sm:$0xff] }
 0x10b   :  { %697 = vmatpush.msra.mxu3 %v7342_v53  ;;  %837 = vmatpush.msrb.mxu1 %v4544_v30  ;;  %v7350_v30 = vld [vmem:[#allocation39_spill] sm:$0xff] }
 0x10c   :  { %816 = vmatpush.msrb.mxu0 %v7345_v18 }
 0x10d   :  { %698 = vmatpush.msra.mxu3 %v7344_v6  ;;  %838 = vmatpush.msrb.mxu1 %v4552_v31  ;;  %v7353_v31 = vld [vmem:[#allocation40_spill] sm:$0xff] }
 0x10e   :  { %699 = vmatmul.f32.vlgmr.msra.gmra.mxu3 %v4635_v47  ;;  %817 = vmatpush.msrb.mxu0 %v7347_v39  ;;  %v4812_v39 = vld [vmem:[#allocation6 + $0xe0] sm:$0xff] }
 0x10f   :  { %912 = vmatpush.msrb.mxu3 %v7346_v8  ;;  %839 = vmatpush.msrb.mxu1 %v4558_v11  ;;  %v7355_v11 = vld [vmem:[#allocation41_spill] sm:$0xff] }
 0x110   :  { %818 = vmatpush.msrb.mxu0 %v7349_v37  ;;  %v4810_v8 = vld [vmem:[#allocation6 + $0xf0] sm:$0xff] }
 0x111   :  { %913 = vmatpush.msrb.mxu3 %v7348_v10  ;;  %952 = vmatpush.msra.mxu1 %v4577_v28  ;;  %v7357_v28 = vld [vmem:[#allocation42_spill] sm:$0xff] }
 0x112   :  { %819 = vmatpush.msrb.mxu0 %v7351_v59  ;;  %v4818_v59 = vld [vmem:[#allocation6 + $0xc8] sm:$0xff] }
 0x113   :  { %914 = vmatpush.msrb.mxu3 %v7350_v30  ;;  %953 = vmatpush.msra.mxu1 %v4583_v49  ;;  %v7360_v49 = vld [vmem:[#allocation68_spill] sm:$0xff]  ;;  %v4816_v30 = vld [vmem:[#allocation6 + $0xd8] sm:$0xff] }
 0x114   :  { %932 = vmatpush.msra.mxu0 %v7352_v60 }
 0x115   :  { %915 = vmatpush.msrb.mxu3 %v7353_v31  ;;  %954 = vmatpush.msra.mxu1 %v4591_v56  ;;  %v7362_v56 = vld [vmem:[#allocation70_spill] sm:$0xff] }
 0x116   :  { %933 = vmatpush.msra.mxu0 %v7354_v46  ;;  %v4824_v46 = vld [vmem:[#allocation6 + $0xc0] sm:$0xff] }
 0x117   :  { %916 = vmatpush.msrb.mxu3 %v7355_v11  ;;  %955 = vmatpush.msra.mxu1 %v4595_v17  ;;  %v7364_v17 = vld [vmem:[#allocation71_spill] sm:$0xff]  ;;  %v4826_v11 = vld [vmem:[#allocation6 + $0xb0] sm:$0xff] }
 0x118   :  { %934 = vmatpush.msra.mxu0 %v7356_v48 }
 0x119   :  { %917 = vmatpush.msrb.mxu3 %v7357_v28  ;;  %956 = vmatpush.msra.mxu1 %v4600_v45  ;;  %v7366_v45 = vld [vmem:[#allocation51_spill] sm:$0xff] }
 0x11a   :  { %935 = vmatpush.msra.mxu0 %v7358_v12  ;;  %v4830_v12 = vld [vmem:[#allocation6 + $0xa8] sm:$0xff] }
 0x11b   :  { %918 = vmatpush.msrb.mxu3 %v7359_v13  ;;  %957 = vmatpush.msra.mxu1 %v4605_v40  ;;  %v7367_v40 = vld [vmem:[#allocation53_spill] sm:$0xff] }
 0x11c   :  { %936 = vmatpush.msra.mxu0 %v7360_v49  ;;  %v4832_v13 = vld [vmem:[#allocation6 + $0x98] sm:$0xff] }
 0x11d   :  { %919 = vmatpush.msrb.mxu3 %v7361_v16  ;;  %958 = vmatpush.msra.mxu1 %v4611_v15  ;;  %v7368_v15 = vld [vmem:[#allocation55_spill] sm:$0xff] }
 0x11e   :  { %937 = vmatpush.msra.mxu0 %v7362_v56 }
 0x11f   :  { %920 = vmatpush.msrb.mxu3 %v7363_v25  ;;  %959 = vmatpush.msra.mxu1 %v4615_v44 }
 0x120   :  { %938 = vmatpush.msra.mxu0 %v7364_v17  ;;  %v4840_v17 = vld [vmem:[#allocation6 + $0x90] sm:$0xff] }
 0x121   :  { %921 = vmatpush.msrb.mxu3 %v7365_v52  ;;  %960 = vmatpush.msra.mxu1 %v4619_v50  ;;  %v4762_v50 = vld [vmem:[#allocation6 + $0x170] sm:$0xff]  ;;  %v4842_v52 = vld [vmem:[#allocation6 + $0x80] sm:$0xff] }
 0x122   :  { %939 = vmatpush.msra.mxu0 %v4496_v9  ;;  %v7369_v9 = vld [vmem:[#allocation57_spill] sm:$0xff] }
 0x123   :  { %922 = vmatpush.msrb.mxu3 %v7366_v45  ;;  %961 = vmatpush.msra.mxu1 %v4623_v5  ;;  %v4764_v5 = vld [vmem:[#allocation12] sm:$0x7] }
 0x124   :  { %940 = vmatpush.msra.mxu0 %v4506_v34  ;;  %v7370_v34 = vld [vmem:[#allocation59_spill] sm:$0xff]  ;;  %v4803_v4 = vperm.slane %v4764_v5, 1 }
 0x125   :  { %923 = vmatpush.msrb.mxu3 %v7367_v40  ;;  %962 = vmatpush.msra.mxu1 %v4627_v41 }
 0x126   :  { %941 = vmatpush.msra.mxu0 %v4514_v26  ;;  %v7371_v26 = vld [vmem:[#allocation61_spill] sm:$0xff]  ;;  %7375 = vst [vmem:[#allocation23_spill] sm:$0xff] %v4803_v4 }
 0x127   :  { %924 = vmatpush.msrb.mxu3 %v7368_v15  ;;  %963 = vmatpush.msra.mxu1 %v4631_v32  ;;  %v4777_v32 = vld [vmem:[#allocation6 + $0x150] sm:$0xff]  ;;  %v4850_v15 = vld [vmem:[#allocation6 + $0x78] sm:$0xff] }
 0x128   :  { %942 = vmatpush.msra.mxu0 %v4522_v43  ;;  %v503_v43 = vpop.f32.mrf.mxu2 }
 0x129   :  { %925 = vmatpush.msrb.mxu3 %v7369_v9  ;;  %964 = vmatpush.msra.mxu1 %v4637_v63  ;;  %v4779_v63 = vld [vmem:[#allocation6 + $0x140] sm:$0xff]  ;;  %v4852_v9 = vld [vmem:[#allocation6 + $0x68] sm:$0xff] }
 0x12a   :  { %943 = vmatpush.msra.mxu0 %v4530_v21  ;;  %v4755_v21 = vld [vmem:[#allocation12 + $0x3] sm:$0x7] }
 0x12b   :  { %926 = vmatpush.msrb.mxu3 %v7370_v34  ;;  %965 = vmatpush.msra.mxu1 %v4643_v42  ;;  %v4758_v44 = vperm.slane %v4755_v21, 0  ;;  %v4806_v6 = vperm.slane %v4755_v21, 1  ;;  %v4856_v34 = vld [vmem:[#allocation6 + $0x60] sm:$0xff] }
 0x12c   :  { %944 = vmatpush.msra.mxu0 %v4538_v24 }
 0x12d   :  { %927 = vmatpush.msrb.mxu3 %v7371_v26  ;;  %966 = vmatpush.msra.mxu1 %v4647_v57  ;;  %7372 = vst [vmem:[#allocation65_spill] sm:$0xff] %v4758_v44  ;;  %v504_v41 = vadd.f32 %v503_v43, %v4758_v44  ;;  %v4858_v26 = vld [vmem:[#allocation6 + $0x50] sm:$0xff]  ;;  %v4863_v43 = vld [vmem:[#allocation6 + $0x48] sm:$0xff] }
 0x12e   :  { %945 = vmatpush.msra.mxu0 %v4546_v29  ;;  %v4768_v29 = vperm.slane %v4764_v5, 0  ;;  %7376 = vst [vmem:[#allocation67_spill] sm:$0xff] %v4806_v6 }
 0x12f   :  { %967 = vmatpush.msra.mxu1 %v4651_v58  ;;  %1089 = vmatpush.msra.mxu3 %v4762_v50  ;;  %7377 = vst [vmem:[#allocation22_spill] sm:$0xff] %v4863_v43 }
 0x130   :  { %946 = vmatpush.msra.mxu0 %v4554_v33  ;;  %7373 = vst [vmem:[#allocation21_spill] sm:$0xff] %v4768_v29  ;;  %v4770_v33 = vld [vmem:[#allocation6 + $0x168] sm:$0xff] }
 0x131   :  { %1069 = vmatpush.msra.mxu2 %v4770_v33 }
 0x132   :  { %947 = vmatpush.msra.mxu0 %v4560_v20  ;;  %v4772_v20 = vld [vmem:[#allocation6 + $0x158] sm:$0xff] }
 0x133   :  { %1090 = vmatpush.msra.mxu3 %v4772_v20  ;;  %1070 = vmatpush.msra.mxu2 %v4777_v32 }
 0x135   :  { %1091 = vmatpush.msra.mxu3 %v4779_v63  ;;  %1071 = vmatpush.msra.mxu2 %v4784_v55 }
 0x137   :  { %1092 = vmatpush.msra.mxu3 %v4786_v62  ;;  %1072 = vmatpush.msra.mxu2 %v4791_v14 }
 0x139   :  { %1093 = vmatpush.msra.mxu3 %v4793_v51  ;;  %1073 = vmatpush.msra.mxu2 %v4798_v0 }
 0x13b   :  { %1094 = vmatpush.msra.mxu3 %v4800_v23  ;;  %1074 = vmatpush.msra.mxu2 %v4810_v8 }
 0x13d   :  { %1095 = vmatpush.msra.mxu3 %v4812_v39  ;;  %1075 = vmatpush.msra.mxu2 %v4816_v30 }
 0x13f   :  { %1096 = vmatpush.msra.mxu3 %v4818_v59  ;;  %1076 = vmatpush.msra.mxu2 %v4824_v46 }
 0x141   :  { %1097 = vmatpush.msra.mxu3 %v4826_v11  ;;  %1077 = vmatpush.msra.mxu2 %v4830_v12 }
 0x143   :  { %1098 = vmatpush.msra.mxu3 %v4832_v13  ;;  %1078 = vmatpush.msra.mxu2 %v4840_v17 }
 0x145   :  { %1099 = vmatpush.msra.mxu3 %v4842_v52  ;;  %1079 = vmatpush.msra.mxu2 %v4850_v15 }
 0x147   :  { %1100 = vmatpush.msra.mxu3 %v4852_v9  ;;  %1080 = vmatpush.msra.mxu2 %v4856_v34 }
 0x149   :  { %1101 = vmatpush.msra.mxu3 %v4858_v26  ;;  %1081 = vmatpush.msra.mxu2 %v4863_v43 }
 0x16a   :  { %v415_v18 = vpop.f32.mrf.mxu0 }
 0x16b   :  { %v4760_v24 = vpop.f32.mrf.mxu1  ;;  %v416_v60 = vadd.f32 %v415_v18, %v4803_v4 }
 0x170   :  { %v395_v42 = vpop.f32.mrf.mxu3 }
 0x171   :  { %v396_v57 = vadd.f32 %v395_v42, %v4768_v29  ;;  %v680_v58 = vpop.f32.mrf.mxu2 }
 0x172   :  { %v681_v1 = vadd.f32 %v680_v58, %v4486_v38  ;;  %v4871_v58 = vld [vmem:[#allocation6 + $0x20] sm:$0xff]  ;;  %v543_v18 = vpop.f32.mrf.mxu0 }
 0x173   :  { %v546_v22 = vadd.f32 %v504_v41, %v396_v57  ;;  %v660_v27 = vpop.f32.mrf.mxu1  ;;  %v4865_v41 = vld [vmem:[#allocation6 + $0x38] sm:$0xff]  ;;  %v4869_v57 = vld [vmem:[#allocation6 + $0x30] sm:$0xff] }
 0x174   :  { %v708_v2 = vadd.f32 %v705_v19, %v681_v1  ;;  %v661_v7 = vadd.f32 %v660_v27, %v7374_v61  ;;  %1102 = vmatpush.msra.mxu3 %v4865_v41  ;;  %7378 = vst [vmem:[#allocation25_spill] sm:$0xff] %v4869_v57  ;;  %1082 = vmatpush.msra.mxu2 %v4869_v57 }
 0x175   :  { %v3643_v54 = vmul.f32 -1.442695, %v546_v22 }
 0x176   :  { %v3646_v53 = vmul.f32 -1.442695, %v708_v2  ;;  %v707_v35 = vadd.f32 %v704_v3, %v661_v7  ;;  %1103 = vmatpush.msra.mxu3 %v4871_v58  ;;  %v4880_v3 = vld [vmem:[#allocation6 + $0x18] sm:$0xff]  ;;  %v4882_v2 = vld [vmem:[#allocation6 + $0x8] sm:$0xff] }
 0x177   :  { %3699 = vpow2.f32 %v3643_v54  ;;  %7379 = vst [vmem:[#allocation69_spill] sm:$0xff] %v4880_v3  ;;  %1083 = vmatpush.msra.mxu2 %v4880_v3 }
 0x178   :  { %3701 = vpow2.f32 %v3646_v53  ;;  %v3645_v10 = vmul.f32 -1.442695, %v707_v35  ;;  %v4887_v53 = vperm.slane %v4755_v21, 2  ;;  %1104 = vmatpush.msra.mxu3 %v4882_v2  ;;  %v4898_v21 = vperm.slane %v4764_v5, 2 }
 0x179   :  { %v523_v37 = vpop.f32.mrf.mxu3 }
 0x17a   :  { %3703 = vpow2.f32 %v3645_v10  ;;  %v524_v31 = vadd.f32 %v523_v37, %v4806_v6  ;;  %7380 = vst [vmem:[#allocation24_spill] sm:$0xff] %v4887_v53 }
 0x17b   :  { %7382 = vst [vmem:[#allocation26_spill] sm:$0xff] %v4898_v21 }
 0x17c   :  { %v547_v48 = vadd.f32 %v524_v31, %v416_v60  ;;  %v4894_v31 = vld [vmem:[#allocation6] sm:$0xff] }
 0x17d   :  { %v3700_v28 = vpop.eup %3699  ;;  %7381 = vst [vmem:[#allocation27_spill] sm:$0xff] %v4894_v31  ;;  %1084 = vmatpush.msra.mxu2 %v4894_v31 }
 0x17e   :  { %v3702_v49 = vpop.eup %3701  ;;  %v4834_v16 = vadd.f32 1.0, %v3700_v28  ;;  %v3644_v56 = vmul.f32 -1.442695, %v547_v48 }
 0x17f   :  { %v4838_v25 = vadd.f32 1.0, %v3702_v49 }
 0x180   :  { %v3704_v45 = vpop.eup %3703  ;;  %3705 = vrcp.f32 %v4834_v16  ;;  %v565_v10 = vand.u32 2147483647, %v4834_v16  ;;  %v567_v37 = vand.u32 2147483648, %v4834_v16  ;;  %vm561_vm9 = vweird.f32 %v4834_v16 }
 0x181   :  { %3707 = vrcp.f32 %v4838_v25  ;;  %v4848_v40 = vadd.f32 1.0, %v3704_v45  ;;  %vm737_vm1 = vweird.f32 %v4838_v25 }
 0x182   :  { %3709 = vpow2.f32 %v3644_v56  ;;  %v544_v56 = vadd.f32 %v543_v18, %v4887_v53  ;;  %vm566_vm12 = vcmp.eq.f32.partialorder %v565_v10, 8.507059e+37  ;;  %v706_v10 = vld [vmem:[#allocation3 + $0x28] sm:$0xff] }
 0x183   :  { %3711 = vrcp.f32 %v4848_v40  ;;  %vm722_vm13 = vweird.f32 %v4848_v40 }
 0x186   :  { %v3706_v42 = vpop.eup %3705 }
 0x187   :  { %v4873_v19 = vpop.eup %3707  ;;  %v557_v1 = vmul.f32 %v3706_v42, %v4834_v16  ;;  %vm562_vm8 = vweird.f32 %v3706_v42  ;;  %v436_v16 = vadd.f32 %v4760_v24, %v4898_v21 }
 0x188   :  { %v3710_v22 = vpop.eup %3709  ;;  %v733_v27 = vmul.f32 %v4873_v19, %v4838_v25  ;;  %vm563_vm10 = vmor %vm561_vm9, %vm562_vm8  ;;  %vm738_vm0 = vweird.f32 %v4873_v19 }
 0x189   :  { %v3712_v7 = vpop.eup %3711  ;;  %v4884_v54 = vadd.f32 1.0, %v3710_v22  ;;  %v558_v35 = vsub.f32 1.0, %v557_v1  ;;  %v728_v1 = vand.u32 2147483648, %v4848_v40  ;;  %v568_v22 = vor.u32 1.1754944e-38, %v567_v37  ;;  %vm739_vm2 = vmor %vm737_vm1, %vm738_vm0 }
 0x18a   :  { %v718_v60 = vmul.f32 %v3712_v7, %v4848_v40  ;;  %v734_v48 = vsub.f32 1.0, %v733_v27  ;;  %vm723_vm11 = vweird.f32 %v3712_v7 }
 0x18b   :  { %3713 = vrcp.f32 %v4884_v54  ;;  %v559_v28 = vmul.f32 %v3706_v42, %v558_v35  ;;  %v726_v35 = vand.u32 2147483647, %v4848_v40  ;;  %vm724_vm14 = vmor %vm722_vm13, %vm723_vm11  ;;  %v729_v37 = vor.u32 1.1754944e-38, %v728_v1 }
 0x18c   :  { %v719_v49 = vsub.f32 1.0, %v718_v60  ;;  %v735_v3 = vmul.f32 %v4873_v19, %v734_v48  ;;  %v741_v1 = vand.u32 2147483647, %v4838_v25  ;;  %vm576_vm4 = vweird.f32 %v4884_v54 }
 0x18d   :  { %v560_v45 = vadd.f32 %v3706_v42, %v559_v28  ;;  %vm727_vm15 = vcmp.eq.f32.partialorder %v726_v35, 8.507059e+37 }
 0x18e   :  { %v720_v27 = vmul.f32 %v3712_v7, %v719_v49  ;;  %v736_v40 = vadd.f32 %v4873_v19, %v735_v3  ;;  %vm742_vm5 = vcmp.eq.f32.partialorder %v741_v1, 8.507059e+37  ;;  %v4950_v1 = vld [vmem:[#allocation6 + $0xe8] sm:$0xff] }
 0x18f   :  { %v564_v5 = vsel %vm563_vm10, %v3706_v42, %v560_v45  ;;  %v743_v45 = vand.u32 2147483648, %v4838_v25  ;;  %7386 = vst [vmem:[#allocation30_spill] sm:$0xff] %v4950_v1 }
 0x190   :  { %v569_v60 = vsel %vm566_vm12, %v568_v22, %v564_v5  ;;  %v721_v57 = vadd.f32 %v3712_v7, %v720_v27  ;;  %v580_v22 = vand.u32 2147483647, %v4884_v54 }
 0x191   :  { %v3714_v18 = vpop.eup %3713  ;;  %v586_v28 = vmul.f32 %v569_v60, %v544_v56  ;;  %v700_v31 = vpop.f32.mrf.mxu3  ;;  %v744_v3 = vor.u32 1.1754944e-38, %v743_v45  ;;  %v4934_v45 = vld [vmem:[#allocation6 + $0x148] sm:$0xff] }
 0x192   :  { %v572_v49 = vmul.f32 %v3714_v18, %v4884_v54  ;;  %v701_v43 = vadd.f32 %v700_v31, %v4586_v36  ;;  %v725_v53 = vsel %vm724_vm14, %v3712_v7, %v721_v57  ;;  %v582_v31 = vand.u32 2147483648, %v4884_v54  ;;  %v4925_v54 = vld [vmem:[#allocation6 + $0x178] sm:$0xff] }
 0x193   :  { %v587_v42 = vadd.f32 %v586_v28, %v436_v16  ;;  %v730_v48 = vsel %vm727_vm15, %v729_v37, %v725_v53  ;;  %vm577_vm3 = vweird.f32 %v3714_v18  ;;  %v740_v53 = vsel %vm739_vm2, %v4873_v19, %v736_v40 }
 0x194   :  { %v573_v24 = vsub.f32 1.0, %v572_v49  ;;  %v747_v56 = vmul.f32 %v730_v48, %v701_v43  ;;  %vm578_vm6 = vmor %vm576_vm4, %vm577_vm3  ;;  %v583_v43 = vor.u32 1.1754944e-38, %v582_v31  ;;  %v745_v35 = vsel %vm742_vm5, %v744_v3, %v740_v53  ;;  %v4953_v31 = vld [vmem:[#allocation6 + $0xd0] sm:$0xff]  ;;  %v4968_v3 = vld [vmem:[#allocation6 + $0x58] sm:$0xff] }
 0x195   :  { %3715 = vtanh.f32 %v587_v42  ;;  %vm581_vm7 = vcmp.eq.f32.partialorder %v580_v22, 8.507059e+37  ;;  %v750_v28 = vsub.f32 1.0, %v745_v35  ;;  %v752_v19 = vmul.f32 %v745_v35, %v4635_v47  ;;  %v4937_v47 = vld [vmem:[#allocation6 + $0x130] sm:$0xff]  ;;  %7387 = vst [vmem:[#allocation44_spill] sm:$0xff] %v4953_v31  ;;  %v4962_v22 = vld [vmem:[#allocation6 + $0x88] sm:$0xff] }
 0x196   :  { %v748_v57 = vadd.f32 %v747_v56, %v706_v10  ;;  %v574_v7 = vmul.f32 %v3714_v18, %v573_v24  ;;  %7383 = vst [vmem:[#allocation29_spill] sm:$0xff] %v4937_v47  ;;  %v4940_v24 = vld [vmem:[#allocation6 + $0x118] sm:$0xff]  ;;  %v4946_v56 = vld [vmem:[#allocation6 + $0x100] sm:$0xff]  ;;  %v4965_v53 = vld [vmem:[#allocation6 + $0x70] sm:$0xff] }
 0x197   :  { %7384 = vst [vmem:[#allocation28_spill] sm:$0xff] %v4940_v24  ;;  %v4977_v35 = vld [vmem:[#allocation6 + $0x10] sm:$0xff] }
 0x198   :  { %3717 = vtanh.f32 %v748_v57  ;;  %v575_v27 = vadd.f32 %v3714_v18, %v574_v7  ;;  %7385 = vst [vmem:[#allocation31_spill] sm:$0xff] %v4946_v56  ;;  %v4956_v57 = vld [vmem:[#allocation6 + $0xb8] sm:$0xff]  ;;  %v4959_v7 = vld [vmem:[#allocation6 + $0xa0] sm:$0xff] }
 0x199   :  { %7388 = vst [vmem:[#allocation32_spill] sm:$0xff] %v4956_v57 }
 0x19a   :  { %v579_v25 = vsel %vm578_vm6, %v3714_v18, %v575_v27  ;;  %v4930_v18 = vld [vmem:[#allocation6 + $0x160] sm:$0xff]  ;;  %7389 = vst [vmem:[#allocation46_spill] sm:$0xff] %v4959_v7 }
 0x19b   :  { %v3716_v5 = vpop.eup %3715  ;;  %v584_v60 = vsel %vm581_vm7, %v583_v43, %v579_v25  ;;  %7390 = vst [vmem:[#allocation33_spill] sm:$0xff] %v4962_v22  ;;  %v4971_v27 = vld [vmem:[#allocation6 + $0x40] sm:$0xff]  ;;  %v4974_v43 = vld [vmem:[#allocation6 + $0x28] sm:$0xff] }
 0x19c   :  { %v589_v16 = vsub.f32 1.0, %v584_v60  ;;  %v591_v42 = vmul.f32 0.0, %v584_v60  ;;  %7391 = vst [vmem:[#allocation48_spill] sm:$0xff] %v4965_v53  ;;  %v4982_v25 = vld [vmem:[#allocation9 + $0x168] sm:$0xff]  ;;  %v4986_v60 = vld [vmem:[#allocation9 + $0x150] sm:$0xff] }
 0x19d   :  { %7392 = vst [vmem:[#allocation34_spill] sm:$0xff] %v4968_v3 }
 0x19e   :  { %v3718_v37 = vpop.eup %3717  ;;  %v590_v49 = vmul.f32 %v3716_v5, %v589_v16  ;;  %7393 = vst [vmem:[#allocation50_spill] sm:$0xff] %v4971_v27  ;;  %v4984_v5 = vld [vmem:[#allocation11 + $0x168] sm:$0xff]  ;;  %v4990_v16 = vld [vmem:[#allocation11 + $0x150] sm:$0xff] }
 0x19f   :  { %v751_v10 = vmul.f32 %v3718_v37, %v750_v28  ;;  %7394 = vst [vmem:[#allocation35_spill] sm:$0xff] %v4974_v43  ;;  %v4994_v28 = vld [vmem:[#allocation9 + $0x138] sm:$0xff] }
 0x1a0   :  { %v4921_v48 = vadd.f32 %v591_v42, %v590_v49  ;;  %7395 = vst [vmem:[#allocation52_spill] sm:$0xff] %v4977_v35  ;;  %v4996_v37 = vld [vmem:[#allocation11 + $0x138] sm:$0xff]  ;;  %v5000_v49 = vld [vmem:[#allocation9 + $0x120] sm:$0xff] }
 0x1a1   :  { %v4923_v40 = vadd.f32 %v752_v19, %v751_v10  ;;  %7396 = vst [vmem:[#allocation36_spill] sm:$0xff] %v4984_v5  ;;  %v5002_v42 = vld [vmem:[#allocation11 + $0x120] sm:$0xff]  ;;  %v5006_v10 = vld [vmem:[#allocation9 + $0x108] sm:$0xff]  ;;  %v5008_v19 = vld [vmem:[#allocation9 + $0x170] sm:$0xff] }
 0x1a2   :  { %928 = vmatmul.f32.vlgmr.msrb.gmra.mxu3 %v4921_v48  ;;  %7397 = vst [vmem:[#allocation54_spill] sm:$0xff] %v4990_v16 }
 0x1a3   :  { %820 = vmatmul.f32.vlgmr.msrb.gmra.mxu0 %v4923_v40  ;;  %840 = vmatmul.f32.vlgmr.msrb.gmra.mxu1 %v4923_v40  ;;  %7398 = vst [vmem:[#allocation37_spill] sm:$0xff] %v4996_v37 }
 0x1a4   :  { %860 = vmatmul.f32.vlgmr.msrb.gmra.mxu2 %v4923_v40  ;;  %1109 = vmatpush.msrb.mxu0 %v4925_v54  ;;  %7399 = vst [vmem:[#allocation56_spill] sm:$0xff] %v5000_v49 }
 0x1a5   :  { %1230 = vmatpush.msrb.mxu1 %v4982_v25  ;;  %7400 = vst [vmem:[#allocation38_spill] sm:$0xff] %v5002_v42  ;;  %1250 = vmatpush.msrb.mxu2 %v5008_v19 }
 0x1a6   :  { %1110 = vmatpush.msrb.mxu0 %v4930_v18  ;;  %7401 = vst [vmem:[#allocation58_spill] sm:$0xff] %v5006_v10 }
 0x1a7   :  { %1231 = vmatpush.msrb.mxu1 %v4986_v60 }
 0x1a8   :  { %1111 = vmatpush.msrb.mxu0 %v4934_v45 }
 0x1a9   :  { %1232 = vmatpush.msrb.mxu1 %v4994_v28 }
 0x1aa   :  { %1105 = vmatmul.f32.vlgmr.msra.gmra.mxu3 %v4923_v40  ;;  %1112 = vmatpush.msrb.mxu0 %v4937_v47  ;;  %v5158_v47 = vld [vmem:[#allocation11 + $0x158] sm:$0xff] }
 0x1ab   :  { %948 = vmatmul.f32.vlgmr.msra.gmra.mxu0 %v4921_v48  ;;  %968 = vmatmul.f32.vlgmr.msra.gmra.mxu1 %v4921_v48  ;;  %7443 = vst [vmem:[#allocation93_spill] sm:$0xff] %v5158_v47 }
 0x1ac   :  { %1085 = vmatmul.f32.vlgmr.msra.gmra.mxu2 %v4923_v40  ;;  %1113 = vmatpush.msrb.mxu0 %v4940_v24  ;;  %v5122_v24 = vld [vmem:[#allocation11 + $0x30] sm:$0xff] }
 0x1ad   :  { %1233 = vmatpush.msrb.mxu1 %v5000_v49  ;;  %v5110_v49 = vld [vmem:[#allocation11 + $0x48] sm:$0xff]  ;;  %7431 = vst [vmem:[#allocation81_spill] sm:$0xff] %v5122_v24 }
 0x1ae   :  { %1114 = vmatpush.msrb.mxu0 %v4946_v56  ;;  %v5086_v56 = vld [vmem:[#allocation11 + $0x78] sm:$0xff]  ;;  %7427 = vst [vmem:[#allocation77_spill] sm:$0xff] %v5110_v49 }
 0x1af   :  { %1234 = vmatpush.msrb.mxu1 %v5006_v10  ;;  %v5074_v10 = vld [vmem:[#allocation11 + $0x90] sm:$0xff]  ;;  %7419 = vst [vmem:[#allocation53_spill] sm:$0xff] %v5086_v56 }
 0x1b0   :  { %1115 = vmatpush.msrb.mxu0 %v4950_v1  ;;  %v5068_v1 = vld [vmem:[#allocation9 + $0xf8] sm:$0xff]  ;;  %7416 = vst [vmem:[#allocation71_spill] sm:$0xff] %v5074_v10 }
 0x1b1   :  { %7415 = vst [vmem:[#allocation47_spill] sm:$0xff] %v5068_v1 }
 0x1b2   :  { %1116 = vmatpush.msrb.mxu0 %v4953_v31  ;;  %v5056_v31 = vld [vmem:[#allocation9 + $0x110] sm:$0xff] }
 0x1b3   :  { %7412 = vst [vmem:[#allocation68_spill] sm:$0xff] %v5056_v31 }
 0x1b4   :  { %1117 = vmatpush.msrb.mxu0 %v4956_v57  ;;  %v5050_v57 = vld [vmem:[#allocation11 + $0xc0] sm:$0xff] }
 0x1b5   :  { %7410 = vst [vmem:[#allocation66_spill] sm:$0xff] %v5050_v57 }
 0x1b6   :  { %1118 = vmatpush.msrb.mxu0 %v4959_v7  ;;  %v5044_v7 = vld [vmem:[#allocation9 + $0x128] sm:$0xff] }
 0x1b7   :  { %7409 = vst [vmem:[#allocation42_spill] sm:$0xff] %v5044_v7 }
 0x1b8   :  { %1119 = vmatpush.msrb.mxu0 %v4962_v22  ;;  %v5042_v22 = vld [vmem:[#allocation9 + $0xc0] sm:$0xff] }
 0x1b9   :  { %7408 = vst [vmem:[#allocation64_spill] sm:$0xff] %v5042_v22 }
 0x1ba   :  { %1120 = vmatpush.msrb.mxu0 %v4965_v53  ;;  %v5038_v53 = vld [vmem:[#allocation11 + $0xd8] sm:$0xff] }
 0x1bb   :  { %7407 = vst [vmem:[#allocation41_spill] sm:$0xff] %v5038_v53 }
 0x1bc   :  { %1121 = vmatpush.msrb.mxu0 %v4968_v3  ;;  %v5032_v3 = vld [vmem:[#allocation9 + $0x140] sm:$0xff] }
 0x1bd   :  { %7406 = vst [vmem:[#allocation63_spill] sm:$0xff] %v5032_v3 }
 0x1be   :  { %1122 = vmatpush.msrb.mxu0 %v4971_v27  ;;  %v5030_v27 = vld [vmem:[#allocation9 + $0xd8] sm:$0xff] }
 0x1bf   :  { %7405 = vst [vmem:[#allocation40_spill] sm:$0xff] %v5030_v27 }
 0x1c0   :  { %1123 = vmatpush.msrb.mxu0 %v4974_v43  ;;  %v5026_v43 = vld [vmem:[#allocation11 + $0xf0] sm:$0xff] }
 0x1c1   :  { %7404 = vst [vmem:[#allocation62_spill] sm:$0xff] %v5026_v43 }
 0x1c2   :  { %1124 = vmatpush.msrb.mxu0 %v4977_v35  ;;  %v5020_v35 = vld [vmem:[#allocation9 + $0x158] sm:$0xff] }
 0x1c3   :  { %1125 = vmatmul.f32.vlgmr.msrb.gmra.mxu0 %v4923_v40  ;;  %1251 = vmatpush.msrb.mxu2 %v5020_v35 }
 0x1c4   :  { %1338 = vmatpush.msra.mxu0 %v4984_v5  ;;  %v5014_v5 = vld [vmem:[#allocation11 + $0x108] sm:$0xff] }
 0x1c5   :  { %7402 = vst [vmem:[#allocation39_spill] sm:$0xff] %v5014_v5  ;;  %1252 = vmatpush.msrb.mxu2 %v5032_v3 }
 0x1c6   :  { %1339 = vmatpush.msra.mxu0 %v4990_v16  ;;  %v5010_v16 = vld [vmem:[#allocation9 + $0x178] sm:$0xff] }
 0x1c7   :  { %1270 = vmatpush.msrb.mxu3 %v5010_v16  ;;  %1253 = vmatpush.msrb.mxu2 %v5044_v7  ;;  %v5098_v7 = vld [vmem:[#allocation11 + $0x60] sm:$0xff] }
 0x1c8   :  { %1340 = vmatpush.msra.mxu0 %v4996_v37  ;;  %v5018_v37 = vld [vmem:[#allocation9 + $0xf0] sm:$0xff]  ;;  %7423 = vst [vmem:[#allocation61_spill] sm:$0xff] %v5098_v7 }
 0x1c9   :  { %7403 = vst [vmem:[#allocation60_spill] sm:$0xff] %v5018_v37  ;;  %1235 = vmatpush.msrb.mxu1 %v5018_v37  ;;  %1254 = vmatpush.msrb.mxu2 %v5056_v31  ;;  %v5062_v37 = vld [vmem:[#allocation11 + $0xa8] sm:$0xff]  ;;  %v5080_v31 = vld [vmem:[#allocation9 + $0xe0] sm:$0xff] }
 0x1ca   :  { %1341 = vmatpush.msra.mxu0 %v5002_v42  ;;  %v5022_v42 = vld [vmem:[#allocation9 + $0x160] sm:$0xff]  ;;  %7413 = vst [vmem:[#allocation45_spill] sm:$0xff] %v5062_v37 }
 0x1cb   :  { %1271 = vmatpush.msrb.mxu3 %v5022_v42  ;;  %1236 = vmatpush.msrb.mxu1 %v5030_v27  ;;  %v5054_v27 = vld [vmem:[#allocation9 + $0xa8] sm:$0xff]  ;;  %7418 = vst [vmem:[#allocation51_spill] sm:$0xff] %v5080_v31 }
 0x1cc   :  { %1342 = vmatpush.msra.mxu0 %v5014_v5  ;;  %v5034_v5 = vld [vmem:[#allocation9 + $0x148] sm:$0xff]  ;;  %7411 = vst [vmem:[#allocation43_spill] sm:$0xff] %v5054_v27  ;;  %1255 = vmatpush.msrb.mxu2 %v5068_v1 }
 0x1cd   :  { %1272 = vmatpush.msrb.mxu3 %v5034_v5  ;;  %1237 = vmatpush.msrb.mxu1 %v5042_v22  ;;  %v5066_v22 = vld [vmem:[#allocation9 + $0x90] sm:$0xff]  ;;  %v5092_v1 = vld [vmem:[#allocation9 + $0xc8] sm:$0xff] }
 0x1ce   :  { %1343 = vmatpush.msra.mxu0 %v5026_v43  ;;  %v5046_v43 = vld [vmem:[#allocation9 + $0x130] sm:$0xff]  ;;  %7414 = vst [vmem:[#allocation70_spill] sm:$0xff] %v5066_v22  ;;  %1256 = vmatpush.msrb.mxu2 %v5080_v31 }
 0x1cf   :  { %1273 = vmatpush.msrb.mxu3 %v5046_v43  ;;  %1238 = vmatpush.msrb.mxu1 %v5054_v27  ;;  %v5078_v27 = vld [vmem:[#allocation9 + $0x78] sm:$0xff]  ;;  %7421 = vst [vmem:[#allocation57_spill] sm:$0xff] %v5092_v1  ;;  %v5104_v31 = vld [vmem:[#allocation9 + $0xb0] sm:$0xff] }
 0x1d0   :  { %1344 = vmatpush.msra.mxu0 %v5038_v53  ;;  %v5058_v53 = vld [vmem:[#allocation9 + $0x118] sm:$0xff]  ;;  %7417 = vst [vmem:[#allocation49_spill] sm:$0xff] %v5078_v27  ;;  %1257 = vmatpush.msrb.mxu2 %v5092_v1 }
 0x1d1   :  { %1274 = vmatpush.msrb.mxu3 %v5058_v53  ;;  %1239 = vmatpush.msrb.mxu1 %v5066_v22  ;;  %v5090_v22 = vld [vmem:[#allocation9 + $0x60] sm:$0xff]  ;;  %7425 = vst [vmem:[#allocation75_spill] sm:$0xff] %v5104_v31  ;;  %v5116_v1 = vld [vmem:[#allocation9 + $0x98] sm:$0xff] }
 0x1d2   :  { %1345 = vmatpush.msra.mxu0 %v5050_v57  ;;  %v5070_v57 = vld [vmem:[#allocation9 + $0x100] sm:$0xff]  ;;  %7420 = vst [vmem:[#allocation55_spill] sm:$0xff] %v5090_v22  ;;  %1258 = vmatpush.msrb.mxu2 %v5104_v31 }
 0x1d3   :  { %1275 = vmatpush.msrb.mxu3 %v5070_v57  ;;  %1240 = vmatpush.msrb.mxu1 %v5078_v27  ;;  %v5102_v27 = vld [vmem:[#allocation9 + $0x48] sm:$0xff]  ;;  %7429 = vst [vmem:[#allocation79_spill] sm:$0xff] %v5116_v1  ;;  %v5128_v31 = vld [vmem:[#allocation9 + $0x80] sm:$0xff] }
 0x1d4   :  { %1346 = vmatpush.msra.mxu0 %v5062_v37  ;;  %v5082_v37 = vld [vmem:[#allocation9 + $0xe8] sm:$0xff]  ;;  %7424 = vst [vmem:[#allocation74_spill] sm:$0xff] %v5102_v27  ;;  %1259 = vmatpush.msrb.mxu2 %v5116_v1  ;;  %v5138_v1 = vld [vmem:[#allocation9] sm:$0xff] }
 0x1d5   :  { %1276 = vmatpush.msrb.mxu3 %v5082_v37  ;;  %1241 = vmatpush.msrb.mxu1 %v5090_v22  ;;  %v5114_v22 = vld [vmem:[#allocation9 + $0x30] sm:$0xff]  ;;  %7433 = vst [vmem:[#allocation83_spill] sm:$0xff] %v5128_v31 }
 0x1d6   :  { %1347 = vmatpush.msra.mxu0 %v5074_v10  ;;  %v5094_v10 = vld [vmem:[#allocation9 + $0xd0] sm:$0xff]  ;;  %7428 = vst [vmem:[#allocation78_spill] sm:$0xff] %v5114_v22  ;;  %1260 = vmatpush.msrb.mxu2 %v5128_v31 }
 0x1d7   :  { %7422 = vst [vmem:[#allocation59_spill] sm:$0xff] %v5094_v10  ;;  %1277 = vmatpush.msrb.mxu3 %v5094_v10  ;;  %1242 = vmatpush.msrb.mxu1 %v5102_v27  ;;  %v5126_v27 = vld [vmem:[#allocation9 + $0x18] sm:$0xff]  ;;  %v5148_v31 = vld [vmem:[#allocation11 + $0x170] sm:$0xff] }
 0x1d8   :  { %1348 = vmatpush.msra.mxu0 %v5086_v56  ;;  %v5106_v56 = vld [vmem:[#allocation9 + $0xb8] sm:$0xff]  ;;  %7432 = vst [vmem:[#allocation82_spill] sm:$0xff] %v5126_v27 }
 0x1d9   :  { %7426 = vst [vmem:[#allocation76_spill] sm:$0xff] %v5106_v56  ;;  %1278 = vmatpush.msrb.mxu3 %v5106_v56  ;;  %1243 = vmatpush.msrb.mxu1 %v5114_v22  ;;  %v5134_v56 = vld [vmem:[#allocation11 + $0x18] sm:$0xff] }
 0x1da   :  { %1349 = vmatpush.msra.mxu0 %v5098_v7  ;;  %v5118_v7 = vld [vmem:[#allocation9 + $0xa0] sm:$0xff]  ;;  %7435 = vst [vmem:[#allocation85_spill] sm:$0xff] %v5134_v56 }
 0x1db   :  { %7430 = vst [vmem:[#allocation80_spill] sm:$0xff] %v5118_v7  ;;  %1279 = vmatpush.msrb.mxu3 %v5118_v7  ;;  %1244 = vmatpush.msrb.mxu1 %v5126_v27  ;;  %v5142_v7 = vld [vmem:[#allocation9 + $0x70] sm:$0xff]  ;;  %v5146_v27 = vld [vmem:[#allocation11] sm:$0xff] }
 0x1dc   :  { %1350 = vmatpush.msra.mxu0 %v5110_v49  ;;  %v5130_v49 = vld [vmem:[#allocation9 + $0x88] sm:$0xff]  ;;  %7436 = vst [vmem:[#allocation86_spill] sm:$0xff] %v5138_v1 }
 0x1dd   :  { %7434 = vst [vmem:[#allocation84_spill] sm:$0xff] %v5130_v49  ;;  %1280 = vmatpush.msrb.mxu3 %v5130_v49  ;;  %1245 = vmatpush.msrb.mxu1 %v5138_v1  ;;  %v5152_v49 = vld [vmem:[#allocation9 + $0x50] sm:$0xff]  ;;  %v5162_v1 = vld [vmem:[#allocation9 + $0x38] sm:$0xff] }
 0x1de   :  { %1351 = vmatpush.msra.mxu0 %v5122_v24  ;;  %v5140_v24 = vld [vmem:[#allocation9 + $0x68] sm:$0xff]  ;;  %7438 = vst [vmem:[#allocation88_spill] sm:$0xff] %v5142_v7 }
 0x1df   :  { %7437 = vst [vmem:[#allocation87_spill] sm:$0xff] %v5140_v24  ;;  %1261 = vmatpush.msrb.mxu2 %v5140_v24  ;;  %1281 = vmatpush.msrb.mxu3 %v5142_v7  ;;  %v5164_v24 = vld [vmem:[#allocation9 + $0x40] sm:$0xff] }
 0x1e0   :  { %1352 = vmatpush.msra.mxu0 %v5134_v56  ;;  %7439 = vst [vmem:[#allocation89_spill] sm:$0xff] %v5146_v27  ;;  %v5154_v56 = vld [vmem:[#allocation9 + $0x58] sm:$0xff]  ;;  %1358 = vmatpush.msra.mxu1 %v5148_v31 }
 0x1e1   :  { %7440 = vst [vmem:[#allocation90_spill] sm:$0xff] %v5148_v31  ;;  %1262 = vmatpush.msrb.mxu2 %v5152_v49  ;;  %1282 = vmatpush.msrb.mxu3 %v5154_v56 }
 0x1e2   :  { %1353 = vmatpush.msra.mxu0 %v5146_v27  ;;  %7441 = vst [vmem:[#allocation91_spill] sm:$0xff] %v5152_v49  ;;  %1359 = vmatpush.msra.mxu1 %v5158_v47  ;;  %v5168_v27 = vld [vmem:[#allocation11 + $0x140] sm:$0xff] }
 0x1e3   :  { %7442 = vst [vmem:[#allocation92_spill] sm:$0xff] %v5154_v56  ;;  %1263 = vmatpush.msrb.mxu2 %v5162_v1  ;;  %1283 = vmatpush.msrb.mxu3 %v5164_v24  ;;  %v5174_v49 = vld [vmem:[#allocation9 + $0x20] sm:$0xff]  ;;  %v5176_v56 = vld [vmem:[#allocation9 + $0x28] sm:$0xff] }
 0x1e4   :  { %1515 = vmatpush.msrb.mxu0 %v4762_v50  ;;  %7444 = vst [vmem:[#allocation94_spill] sm:$0xff] %v5162_v1  ;;  %1360 = vmatpush.msra.mxu1 %v5168_v27 }
 0x1e5   :  { %7445 = vst [vmem:[#allocation95_spill] sm:$0xff] %v5168_v27  ;;  %1264 = vmatpush.msrb.mxu2 %v5174_v49  ;;  %1284 = vmatpush.msrb.mxu3 %v5176_v56 }
 0x1e6   :  { %1516 = vmatpush.msrb.mxu0 %v4772_v20  ;;  %v5182_v20 = vld [vmem:[#allocation11 + $0x128] sm:$0xff] }
 0x1e7   :  { %1361 = vmatpush.msra.mxu1 %v5182_v20 }
 0x1e8   :  { %1517 = vmatpush.msrb.mxu0 %v4779_v63  ;;  %v5194_v63 = vld [vmem:[#allocation11 + $0x110] sm:$0xff] }
 0x1e9   :  { %7446 = vst [vmem:[#allocation96_spill] sm:$0xff] %v5194_v63  ;;  %1362 = vmatpush.msra.mxu1 %v5194_v63 }
 0x1ea   :  { %1518 = vmatpush.msrb.mxu0 %v4786_v62 }
 0x1ec   :  { %1519 = vmatpush.msrb.mxu0 %v4793_v51  ;;  %v1130_v51 = vld [vmem:[#allocation3 + $0x30] sm:$0xff] }
 0x1ee   :  { %1520 = vmatpush.msrb.mxu0 %v4800_v23  ;;  %v5230_v23 = vld [vmem:[#allocation11 + $0x118] sm:$0xff] }
 0x1f0   :  { %1521 = vmatpush.msrb.mxu0 %v4812_v39 }
 0x1f2   :  { %1522 = vmatpush.msrb.mxu0 %v4818_v59  ;;  %v5249_v59 = vld [vmem:[#allocation11 + $0xe8] sm:$0xff] }
 0x1f4   :  { %1523 = vmatpush.msrb.mxu0 %v4826_v11  ;;  %v5268_v11 = vld [vmem:[#allocation11 + $0xb8] sm:$0xff] }
 0x1f6   :  { %1524 = vmatpush.msrb.mxu0 %v4832_v13 }
 0x1f8   :  { %1525 = vmatpush.msrb.mxu0 %v4842_v52  ;;  %v5278_v52 = vld [vmem:[#allocation11 + $0xa0] sm:$0xff] }
 0x1fa   :  { %1526 = vmatpush.msrb.mxu0 %v4852_v9  ;;  %v5288_v9 = vld [vmem:[#allocation11 + $0x20] sm:$0xff] }
 0x1fb   :  { %7451 = vst [vmem:[#allocation101_spill] sm:$0xff] %v5288_v9 }
 0x1fc   :  { %1527 = vmatpush.msrb.mxu0 %v4858_v26  ;;  %v5298_v26 = vld [vmem:[#allocation11 + $0x70] sm:$0xff] }
 0x1fd   :  { %7454 = vst [vmem:[#allocation104_spill] sm:$0xff] %v5298_v26 }
 0x1fe   :  { %1528 = vmatpush.msrb.mxu0 %v4865_v41 }
 0x200   :  { %1529 = vmatpush.msrb.mxu0 %v4871_v58 }
 0x202   :  { %1530 = vmatpush.msrb.mxu0 %v4882_v2 }
 0x220   :  { %v821_v22 = vpop.f32.mrf.mxu0  ;;  %v841_v50 = vpop.f32.mrf.mxu1 }
 0x221   :  { %v822_v31 = vadd.f32 %v821_v22, %v4768_v29  ;;  %v842_v47 = vadd.f32 %v841_v50, %v4803_v4  ;;  %v5202_v50 = vld [vmem:[#allocation11 + $0xf8] sm:$0xff] }
 0x222   :  { %7447 = vst [vmem:[#allocation97_spill] sm:$0xff] %v5202_v50  ;;  %1363 = vmatpush.msra.mxu1 %v5202_v50 }
 0x225   :  { %v929_v7 = vpop.f32.mrf.mxu3 }
 0x226   :  { %v930_v10 = vadd.f32 %v929_v7, %v4758_v44  ;;  %v5186_v7 = vld [vmem:[#allocation9 + $0x8] sm:$0xff]  ;;  %v5188_v44 = vld [vmem:[#allocation9 + $0x10] sm:$0xff] }
 0x227   :  { %v5178_v3 = vpop.f32.mrf.mxu2  ;;  %1265 = vmatpush.msrb.mxu2 %v5186_v7  ;;  %1285 = vmatpush.msrb.mxu3 %v5188_v44 }
 0x228   :  { %v972_v22 = vadd.f32 %v930_v10, %v822_v31  ;;  %v949_v29 = vpop.f32.mrf.mxu0  ;;  %v5196_v31 = vld [vmem:[#allocation11 + $0x178] sm:$0xff] }
 0x229   :  { %v950_v1 = vadd.f32 %v949_v29, %v4806_v6  ;;  %1378 = vmatpush.msra.mxu2 %v5196_v31  ;;  %v5204_v29 = vld [vmem:[#allocation11 + $0x160] sm:$0xff]  ;;  %1495 = vmatpush.msra.mxu3 %v4770_v33  ;;  %v1131_v6 = vld [vmem:[#allocation3 + $0x38] sm:$0xff] }
 0x22a   :  { %v3647_v10 = vmul.f32 -1.442695, %v972_v22 }
 0x22b   :  { %v973_v27 = vadd.f32 %v950_v1, %v842_v47  ;;  %1379 = vmatpush.msra.mxu2 %v5204_v29  ;;  %v5210_v47 = vld [vmem:[#allocation11 + $0xe0] sm:$0xff]  ;;  %v5212_v1 = vld [vmem:[#allocation11 + $0x148] sm:$0xff]  ;;  %1496 = vmatpush.msra.mxu3 %v4777_v32  ;;  %v5228_v32 = vld [vmem:[#allocation11 + $0xb0] sm:$0xff] }
 0x22c   :  { %3719 = vpow2.f32 %v3647_v10  ;;  %1364 = vmatpush.msra.mxu1 %v5210_v47  ;;  %v5221_v10 = vld [vmem:[#allocation11 + $0x130] sm:$0xff] }
 0x22d   :  { %v3648_v62 = vmul.f32 -1.442695, %v973_v27  ;;  %v1106_v22 = vpop.f32.mrf.mxu3  ;;  %1380 = vmatpush.msra.mxu2 %v5212_v1  ;;  %v5219_v27 = vld [vmem:[#allocation11 + $0xc8] sm:$0xff]  ;;  %1497 = vmatpush.msra.mxu3 %v4784_v55  ;;  %v5238_v55 = vld [vmem:[#allocation11 + $0x98] sm:$0xff] }
 0x22e   :  { %v1107_v4 = vadd.f32 %v1106_v22, %v4486_v38  ;;  %1365 = vmatpush.msra.mxu1 %v5219_v27 }
 0x22f   :  { %3721 = vpow2.f32 %v3648_v62  ;;  %v1086_v33 = vpop.f32.mrf.mxu2  ;;  %1381 = vmatpush.msra.mxu2 %v5221_v10  ;;  %1498 = vmatpush.msra.mxu3 %v4791_v14  ;;  %v5247_v14 = vld [vmem:[#allocation11 + $0x80] sm:$0xff] }
 0x230   :  { %v1134_v50 = vadd.f32 %v1131_v6, %v1107_v4  ;;  %v1087_v63 = vadd.f32 %v1086_v33, %v7374_v61  ;;  %1366 = vmatpush.msra.mxu1 %v5228_v32  ;;  %v5240_v6 = vld [vmem:[#allocation11 + $0x100] sm:$0xff] }
 0x231   :  { %1382 = vmatpush.msra.mxu2 %v5230_v23  ;;  %1499 = vmatpush.msra.mxu3 %v4798_v0  ;;  %v5259_v0 = vld [vmem:[#allocation11 + $0xd0] sm:$0xff] }
 0x232   :  { %v3720_v62 = vpop.eup %3719  ;;  %v3650_v22 = vmul.f32 -1.442695, %v1134_v50  ;;  %v1133_v38 = vadd.f32 %v1130_v51, %v1087_v63  ;;  %1367 = vmatpush.msra.mxu1 %v5238_v55 }
 0x233   :  { %v5234_v4 = vadd.f32 1.0, %v3720_v62  ;;  %1383 = vmatpush.msra.mxu2 %v5240_v6  ;;  %1500 = vmatpush.msra.mxu3 %v4810_v8  ;;  %v5266_v8 = vld [vmem:[#allocation11 + $0x50] sm:$0xff] }
 0x234   :  { %3723 = vpow2.f32 %v3650_v22  ;;  %v3649_v39 = vmul.f32 -1.442695, %v1133_v38  ;;  %1368 = vmatpush.msra.mxu1 %v5247_v14  ;;  %v5257_v38 = vld [vmem:[#allocation11 + $0x68] sm:$0xff]  ;;  %7449 = vst [vmem:[#allocation99_spill] sm:$0xff] %v5266_v8 }
 0x235   :  { %v3722_v63 = vpop.eup %3721  ;;  %3725 = vrcp.f32 %v5234_v4  ;;  %1384 = vmatpush.msra.mxu2 %v5249_v59  ;;  %7448 = vst [vmem:[#allocation98_spill] sm:$0xff] %v5257_v38  ;;  %1501 = vmatpush.msra.mxu3 %v4816_v30  ;;  %v5276_v30 = vld [vmem:[#allocation11 + $0x38] sm:$0xff]  ;;  %v993_v61 = vand.u32 2147483648, %v5234_v4  ;;  %vm987_vm9 = vweird.f32 %v5234_v4 }
 0x236   :  { %v5251_v50 = vadd.f32 1.0, %v3722_v63  ;;  %3727 = vpow2.f32 %v3649_v39  ;;  %1369 = vmatpush.msra.mxu1 %v5257_v38  ;;  %7450 = vst [vmem:[#allocation100_spill] sm:$0xff] %v5276_v30  ;;  %v5290_v39 = vld [vmem:[#allocation11 + $0x88] sm:$0xff] }
 0x237   :  { %1385 = vmatpush.msra.mxu2 %v5259_v0  ;;  %1502 = vmatpush.msra.mxu3 %v4824_v46  ;;  %7452 = vst [vmem:[#allocation102_spill] sm:$0xff] %v5290_v39 }
 0x238   :  { %3729 = vrcp.f32 %v5251_v50  ;;  %1370 = vmatpush.msra.mxu1 %v5266_v8  ;;  %v5311_v8 = vld [vmem:[#allocation11 + $0x58] sm:$0xff]  ;;  %vm1002_vm13 = vweird.f32 %v5251_v50 }
 0x239   :  { %1386 = vmatpush.msra.mxu2 %v5268_v11  ;;  %1503 = vmatpush.msra.mxu3 %v4830_v12  ;;  %v5296_v12 = vld [vmem:[#allocation11 + $0x8] sm:$0xff] }
 0x23a   :  { %v3724_v13 = vpop.eup %3723  ;;  %1371 = vmatpush.msra.mxu1 %v5276_v30  ;;  %7453 = vst [vmem:[#allocation103_spill] sm:$0xff] %v5296_v12  ;;  %v969_v30 = vpop.f32.mrf.mxu1 }
 0x23b   :  { %v3726_v33 = vpop.eup %3725  ;;  %v5272_v51 = vadd.f32 1.0, %v3724_v13  ;;  %1387 = vmatpush.msra.mxu2 %v5278_v52  ;;  %1504 = vmatpush.msra.mxu3 %v4840_v17  ;;  %v991_v17 = vand.u32 2147483647, %v5234_v4 }
 0x23c   :  { %v3728_v62 = vpop.eup %3727  ;;  %v983_v22 = vmul.f32 %v3726_v33, %v5234_v4  ;;  %1372 = vmatpush.msra.mxu1 %v5288_v9  ;;  %vm988_vm8 = vweird.f32 %v3726_v33 }
 0x23d   :  { %3731 = vrcp.f32 %v5272_v51  ;;  %v5284_v46 = vadd.f32 1.0, %v3728_v62  ;;  %1388 = vmatpush.msra.mxu2 %v5290_v39  ;;  %1505 = vmatpush.msra.mxu3 %v4850_v15  ;;  %vm989_vm10 = vmor %vm987_vm9, %vm988_vm8  ;;  %v994_v15 = vor.u32 1.1754944e-38, %v993_v61  ;;  %vm992_vm11 = vcmp.eq.f32.partialorder %v991_v17, 8.507059e+37  ;;  %v7458_v17 = vld [vmem:[#allocation25_spill] sm:$0xff] }
 0x23e   :  { %v5292_v63 = vpop.eup %3729  ;;  %v984_v13 = vsub.f32 1.0, %v983_v22  ;;  %1373 = vmatpush.msra.mxu1 %v5296_v12  ;;  %v7455_v12 = vld [vmem:[#allocation24_spill] sm:$0xff]  ;;  %v1008_v61 = vand.u32 2147483648, %v5251_v50  ;;  %vm1163_vm5 = vweird.f32 %v5272_v51 }
 0x23f   :  { %v998_v62 = vmul.f32 %v5292_v63, %v5251_v50  ;;  %3733 = vrcp.f32 %v5284_v46  ;;  %1389 = vmatpush.msra.mxu2 %v5298_v26  ;;  %1506 = vmatpush.msra.mxu3 %v4856_v34  ;;  %v970_v9 = vadd.f32 %v969_v30, %v7455_v12  ;;  %v7456_v34 = vld [vmem:[#allocation22_spill] sm:$0xff]  ;;  %vm1003_vm12 = vweird.f32 %v5292_v63 }
 0x240   :  { %v985_v22 = vmul.f32 %v3726_v33, %v984_v13  ;;  %vm5343_vm14 = vmor %vm1002_vm13, %vm1003_vm12  ;;  %vm1148_vm1 = vweird.f32 %v5284_v46 }
 0x241   :  { %v999_v41 = vsub.f32 1.0, %v998_v62  ;;  %1390 = vmatpush.msra.mxu2 %v5311_v8  ;;  %v5320_v62 = vld [vmem:[#allocation11 + $0x40] sm:$0xff]  ;;  %1507 = vmatpush.msra.mxu3 %v7456_v34 }
 0x242   :  { %v986_v38 = vadd.f32 %v3726_v33, %v985_v22 }
 0x243   :  { %v5316_v13 = vpop.eup %3731  ;;  %v1000_v58 = vmul.f32 %v5292_v63, %v999_v41  ;;  %1391 = vmatpush.msra.mxu2 %v5320_v62  ;;  %v5330_v41 = vld [vmem:[#allocation11 + $0x28] sm:$0xff]  ;;  %1508 = vmatpush.msra.mxu3 %v7458_v17 }
 0x244   :  { %v990_v26 = vsel %vm989_vm10, %v3726_v33, %v986_v38  ;;  %v1159_v4 = vmul.f32 %v5316_v13, %v5272_v51  ;;  %7457 = vst [vmem:[#allocation22_spill] sm:$0xff] %v5330_v41  ;;  %v862_v38 = vadd.f32 %v5178_v3, %v4898_v21  ;;  %v1126_v21 = vpop.f32.mrf.mxu0  ;;  %vm1164_vm4 = vweird.f32 %v5316_v13 }
 0x245   :  { %v3734_v2 = vpop.eup %3733  ;;  %v995_v22 = vsel %vm992_vm11, %v994_v15, %v990_v26  ;;  %v1001_v39 = vadd.f32 %v5292_v63, %v1000_v58  ;;  %v1006_v26 = vand.u32 2147483647, %v5251_v50  ;;  %1392 = vmatpush.msra.mxu2 %v5330_v41  ;;  %v5339_v15 = vld [vmem:[#allocation11 + $0x10] sm:$0xff]  ;;  %vm1165_vm6 = vmor %vm1163_vm5, %vm1164_vm4 }
 0x246   :  { %v1012_v33 = vmul.f32 %v995_v22, %v970_v9  ;;  %v1144_v30 = vmul.f32 %v3734_v2, %v5284_v46  ;;  %v1160_v34 = vsub.f32 1.0, %v1159_v4  ;;  %v7461_v9 = vld [vmem:[#allocation69_spill] sm:$0xff]  ;;  %v1154_v4 = vand.u32 2147483648, %v5284_v46 }
 0x247   :  { %1509 = vmatpush.msra.mxu3 %v7461_v9  ;;  %v1005_v50 = vsel %vm5343_vm14, %v5292_v63, %v1001_v39  ;;  %v1009_v22 = vor.u32 1.1754944e-38, %v1008_v61  ;;  %1393 = vmatpush.msra.mxu2 %v5339_v15  ;;  %vm1149_vm15 = vweird.f32 %v3734_v2  ;;  %vm1007_vm0 = vcmp.eq.f32.partialorder %v1006_v26, 8.507059e+37 }
 0x248   :  { %v1013_v58 = vadd.f32 %v1012_v33, %v862_v38  ;;  %v1145_v12 = vsub.f32 1.0, %v1144_v30  ;;  %v1152_v33 = vand.u32 2147483647, %v5284_v46  ;;  %v7462_v30 = vld [vmem:[#allocation27_spill] sm:$0xff]  ;;  %v1161_v17 = vmul.f32 %v5316_v13, %v1160_v34  ;;  %vm1150_vm2 = vmor %vm1148_vm1, %vm1149_vm15 }
 0x249   :  { %1510 = vmatpush.msra.mxu3 %v7462_v30  ;;  %v1010_v41 = vsel %vm1007_vm0, %v1009_v22, %v1005_v50  ;;  %v1155_v39 = vor.u32 1.1754944e-38, %v1154_v4  ;;  %v1127_v63 = vadd.f32 %v1126_v21, %v4586_v36  ;;  %v1169_v26 = vand.u32 2147483648, %v5272_v51 }
 0x24a   :  { %3735 = vtanh.f32 %v1013_v58  ;;  %v1146_v38 = vmul.f32 %v3734_v2, %v1145_v12  ;;  %vm1153_vm3 = vcmp.eq.f32.partialorder %v1152_v33, 8.507059e+37  ;;  %v1132_v12 = vld [vmem:[#allocation3 + $0x40] sm:$0xff]  ;;  %v1162_v3 = vadd.f32 %v5316_v13, %v1161_v17 }
 0x24b   :  { %v1015_v30 = vsub.f32 1.0, %v1010_v41  ;;  %v1167_v46 = vand.u32 2147483647, %v5272_v51  ;;  %v1017_v21 = vmul.f32 %v1010_v41, %v4921_v48  ;;  %v1170_v33 = vor.u32 1.1754944e-38, %v1169_v26  ;;  %v7487_v26 = vld [vmem:[#allocation43_spill] sm:$0xff] }
 0x24c   :  { %v1147_v9 = vadd.f32 %v3734_v2, %v1146_v38  ;;  %v1166_v50 = vsel %vm1165_vm6, %v5316_v13, %v1162_v3  ;;  %v7484_v3 = vld [vmem:[#allocation57_spill] sm:$0xff] }
 0x24d   :  { %vm1168_vm7 = vcmp.eq.f32.partialorder %v1167_v46, 8.507059e+37  ;;  %v7489_v46 = vld [vmem:[#allocation33_spill] sm:$0xff] }
 0x24e   :  { %v1151_v61 = vsel %vm1150_vm2, %v3734_v2, %v1147_v9  ;;  %v1171_v17 = vsel %vm1168_vm7, %v1170_v33, %v1166_v50  ;;  %v7493_v50 = vld [vmem:[#allocation49_spill] sm:$0xff]  ;;  %v7494_v33 = vld [vmem:[#allocation83_spill] sm:$0xff] }
 0x24f   :  { %v1156_v58 = vsel %vm1153_vm3, %v1155_v39, %v1151_v61  ;;  %v1176_v51 = vsub.f32 1.0, %v1171_v17  ;;  %v1178_v41 = vmul.f32 %v1171_v17, %v4923_v40  ;;  %v7463_v40 = vld [vmem:[#allocation63_spill] sm:$0xff]  ;;  %v7479_v39 = vld [vmem:[#allocation40_spill] sm:$0xff]  ;;  %v7495_v17 = vld [vmem:[#allocation34_spill] sm:$0xff] }
 0x250   :  { %v3736_v34 = vpop.eup %3735  ;;  %v1173_v38 = vmul.f32 %v1156_v58, %v1127_v63  ;;  %v7480_v63 = vld [vmem:[#allocation51_spill] sm:$0xff]  ;;  %v7481_v61 = vld [vmem:[#allocation88_spill] sm:$0xff] }
 0x251   :  { %v1016_v4 = vmul.f32 %v3736_v34, %v1015_v30  ;;  %v7483_v58 = vld [vmem:[#allocation64_spill] sm:$0xff]  ;;  %v7486_v34 = vld [vmem:[#allocation46_spill] sm:$0xff] }
 0x252   :  { %v1174_v2 = vadd.f32 %v1173_v38, %v1132_v12  ;;  %v7482_v12 = vld [vmem:[#allocation32_spill] sm:$0xff]  ;;  %v7488_v38 = vld [vmem:[#allocation75_spill] sm:$0xff] }
 0x253   :  { %v5365_v22 = vadd.f32 %v1017_v21, %v1016_v4  ;;  %v7485_v30 = vld [vmem:[#allocation92_spill] sm:$0xff]  ;;  %v7490_v4 = vld [vmem:[#allocation70_spill] sm:$0xff]  ;;  %v7491_v21 = vld [vmem:[#allocation79_spill] sm:$0xff] }
 0x254   :  { %3737 = vtanh.f32 %v1174_v2  ;;  %v7492_v2 = vld [vmem:[#allocation48_spill] sm:$0xff] }
 0x255   :  { %1354 = vmatmul.f32.vlgmr.msra.gmra.mxu0 %v5365_v22 }
 0x256   :  { %1696 = vmatpush.msra.mxu0 %v5010_v16  ;;  %v7474_v16 = vld [vmem:[#allocation30_spill] sm:$0xff] }
 0x258   :  { %1697 = vmatpush.msra.mxu0 %v5022_v42  ;;  %v7477_v42 = vld [vmem:[#allocation84_spill] sm:$0xff] }
 0x25a   :  { %v3738_v9 = vpop.eup %3737  ;;  %1698 = vmatpush.msra.mxu0 %v5034_v5  ;;  %v7472_v5 = vld [vmem:[#allocation68_spill] sm:$0xff] }
 0x25b   :  { %v1177_v48 = vmul.f32 %v3738_v9, %v1176_v51  ;;  %v7496_v51 = vld [vmem:[#allocation55_spill] sm:$0xff]  ;;  %v7498_v9 = vld [vmem:[#allocation50_spill] sm:$0xff] }
 0x25c   :  { %1699 = vmatpush.msra.mxu0 %v5046_v43  ;;  %v7468_v43 = vld [vmem:[#allocation42_spill] sm:$0xff] }
 0x25d   :  { %v5373_v13 = vadd.f32 %v1178_v41, %v1177_v48  ;;  %v7499_v48 = vld [vmem:[#allocation74_spill] sm:$0xff]  ;;  %v7500_v41 = vld [vmem:[#allocation91_spill] sm:$0xff] }
 0x25e   :  { %1700 = vmatpush.msra.mxu0 %v5058_v53  ;;  %v7465_v53 = vld [vmem:[#allocation29_spill] sm:$0xff] }
 0x25f   :  { %1246 = vmatmul.f32.vlgmr.msrb.gmra.mxu1 %v5373_v13  ;;  %1266 = vmatmul.f32.vlgmr.msrb.gmra.mxu2 %v5373_v13 }
 0x260   :  { %1286 = vmatmul.f32.vlgmr.msrb.gmra.mxu3 %v5373_v13  ;;  %1531 = vmatmul.f32.vlgmr.msrb.gmra.mxu0 %v5373_v13 }
 0x261   :  { %1535 = vmatpush.msrb.mxu1 %v4925_v54  ;;  %1656 = vmatpush.msrb.mxu2 %v4982_v25  ;;  %v7464_v54 = vld [vmem:[#allocation59_spill] sm:$0xff]  ;;  %v7471_v25 = vld [vmem:[#allocation58_spill] sm:$0xff] }
 0x262   :  { %1676 = vmatpush.msrb.mxu3 %v5008_v19  ;;  %1701 = vmatpush.msra.mxu0 %v5070_v57  ;;  %v7467_v57 = vld [vmem:[#allocation56_spill] sm:$0xff] }
 0x263   :  { %1536 = vmatpush.msrb.mxu1 %v4930_v18  ;;  %1657 = vmatpush.msrb.mxu2 %v4986_v60  ;;  %v7466_v18 = vld [vmem:[#allocation28_spill] sm:$0xff] }
 0x264   :  { %1677 = vmatpush.msrb.mxu3 %v5020_v35  ;;  %1702 = vmatpush.msra.mxu0 %v5082_v37  ;;  %v7470_v35 = vld [vmem:[#allocation31_spill] sm:$0xff]  ;;  %v7473_v60 = vld [vmem:[#allocation80_spill] sm:$0xff] }
 0x265   :  { %1537 = vmatpush.msrb.mxu1 %v4934_v45  ;;  %1658 = vmatpush.msrb.mxu2 %v4994_v28  ;;  %v7469_v45 = vld [vmem:[#allocation76_spill] sm:$0xff]  ;;  %v7476_v37 = vld [vmem:[#allocation47_spill] sm:$0xff] }
 0x266   :  { %1678 = vmatpush.msrb.mxu3 %v7463_v40  ;;  %1703 = vmatpush.msra.mxu0 %v7464_v54  ;;  %v7475_v28 = vld [vmem:[#allocation60_spill] sm:$0xff]  ;;  %v7502_v40 = vld [vmem:[#allocation78_spill] sm:$0xff] }
 0x267   :  { %1538 = vmatpush.msrb.mxu1 %v7465_v53  ;;  %1394 = vmatmul.f32.vlgmr.msra.gmra.mxu2 %v5365_v22  ;;  %v7478_v19 = vld [vmem:[#allocation44_spill] sm:$0xff]  ;;  %v7503_v54 = vld [vmem:[#allocation94_spill] sm:$0xff] }
 0x268   :  { %1374 = vmatmul.f32.vlgmr.msra.gmra.mxu1 %v5365_v22  ;;  %1511 = vmatmul.f32.vlgmr.msra.gmra.mxu3 %v5373_v13  ;;  %v7504_v53 = vld [vmem:[#allocation52_spill] sm:$0xff] }
 0x269   :  { %1539 = vmatpush.msrb.mxu1 %v7466_v18  ;;  %1659 = vmatpush.msrb.mxu2 %v7467_v57  ;;  %v7506_v18 = vld [vmem:[#allocation36_spill] sm:$0xff]  ;;  %v7507_v57 = vld [vmem:[#allocation86_spill] sm:$0xff] }
 0x26a   :  { %1679 = vmatpush.msrb.mxu3 %v7468_v43  ;;  %1704 = vmatpush.msra.mxu0 %v7469_v45  ;;  %v7508_v43 = vld [vmem:[#allocation90_spill] sm:$0xff] }
 0x26b   :  { %1540 = vmatpush.msrb.mxu1 %v7470_v35  ;;  %1660 = vmatpush.msrb.mxu2 %v7471_v25  ;;  %v7509_v45 = vld [vmem:[#allocation54_spill] sm:$0xff]  ;;  %v7510_v35 = vld [vmem:[#allocation93_spill] sm:$0xff] }
 0x26c   :  { %1680 = vmatpush.msrb.mxu3 %v7472_v5  ;;  %1705 = vmatpush.msra.mxu0 %v7473_v60  ;;  %v7511_v25 = vld [vmem:[#allocation37_spill] sm:$0xff]  ;;  %v7512_v5 = vld [vmem:[#allocation95_spill] sm:$0xff] }
 0x26d   :  { %1541 = vmatpush.msrb.mxu1 %v7474_v16  ;;  %1661 = vmatpush.msrb.mxu2 %v7475_v28  ;;  %v7514_v60 = vld [vmem:[#allocation39_spill] sm:$0xff]  ;;  %v7517_v16 = vld [vmem:[#allocation97_spill] sm:$0xff] }
 0x26e   :  { %1681 = vmatpush.msrb.mxu3 %v7476_v37  ;;  %1706 = vmatpush.msra.mxu0 %v7477_v42  ;;  %v7533_v28 = vld [vmem:[#allocation89_spill] sm:$0xff]  ;;  %v7534_v37 = vld [vmem:[#allocation22_spill] sm:$0xff]  ;;  %v7535_v42 = vld [vmem:[#allocation103_spill] sm:$0xff] }
 0x26f   :  { %1542 = vmatpush.msrb.mxu1 %v7478_v19  ;;  %1662 = vmatpush.msrb.mxu2 %v7479_v39 }
 0x270   :  { %1682 = vmatpush.msrb.mxu3 %v7480_v63  ;;  %1707 = vmatpush.msra.mxu0 %v7481_v61  ;;  %v7536_v63 = vld [vmem:[#allocation65_spill] sm:$0xff] }
 0x271   :  { %1543 = vmatpush.msrb.mxu1 %v7482_v12  ;;  %1663 = vmatpush.msrb.mxu2 %v7483_v58  ;;  %v7537_v61 = vld [vmem:[#allocation21_spill] sm:$0xff] }
 0x272   :  { %1683 = vmatpush.msrb.mxu3 %v7484_v3  ;;  %1708 = vmatpush.msra.mxu0 %v7485_v30  ;;  %v5493_v3 = vld [vmem:[#allocation6 + $0x170] sm:$0xff] }
 0x273   :  { %1544 = vmatpush.msrb.mxu1 %v7486_v34  ;;  %1664 = vmatpush.msrb.mxu2 %v7487_v26  ;;  %v1557_v34 = vld [vmem:[#allocation3 + $0x50] sm:$0xff] }
 0x274   :  { %1684 = vmatpush.msrb.mxu3 %v7488_v38  ;;  %1709 = vmatpush.msra.mxu0 %v5164_v24  ;;  %v7497_v24 = vld [vmem:[#allocation87_spill] sm:$0xff]  ;;  %v5497_v38 = vld [vmem:[#allocation6 + $0x158] sm:$0xff] }
 0x275   :  { %1545 = vmatpush.msrb.mxu1 %v7489_v46  ;;  %1665 = vmatpush.msrb.mxu2 %v7490_v4  ;;  %v5500_v4 = vld [vmem:[#allocation6 + $0x140] sm:$0xff] }
 0x276   :  { %1685 = vmatpush.msrb.mxu3 %v7491_v21  ;;  %1710 = vmatpush.msra.mxu0 %v5176_v56  ;;  %v7501_v56 = vld [vmem:[#allocation35_spill] sm:$0xff] }
 0x277   :  { %1546 = vmatpush.msrb.mxu1 %v7492_v2  ;;  %1666 = vmatpush.msrb.mxu2 %v7493_v50  ;;  %v5505_v50 = vld [vmem:[#allocation6 + $0x128] sm:$0xff] }
 0x278   :  { %1686 = vmatpush.msrb.mxu3 %v7494_v33  ;;  %1711 = vmatpush.msra.mxu0 %v5188_v44  ;;  %v7505_v44 = vld [vmem:[#allocation82_spill] sm:$0xff] }
 0x279   :  { %1547 = vmatpush.msrb.mxu1 %v7495_v17  ;;  %1667 = vmatpush.msrb.mxu2 %v7496_v51  ;;  %v5508_v51 = vld [vmem:[#allocation6 + $0x168] sm:$0xff] }
 0x27a   :  { %1687 = vmatpush.msrb.mxu3 %v7497_v24  ;;  %v5510_v24 = vld [vmem:[#allocation6 + $0x110] sm:$0xff]  ;;  %1921 = vmatpush.msrb.mxu0 %v5508_v51 }
 0x27b   :  { %1548 = vmatpush.msrb.mxu1 %v7498_v9  ;;  %1668 = vmatpush.msrb.mxu2 %v7499_v48  ;;  %v7539_v9 = vld [vmem:[#allocation23_spill] sm:$0xff] }
 0x27c   :  { %1688 = vmatpush.msrb.mxu3 %v7500_v41  ;;  %v7540_v41 = vld [vmem:[#allocation67_spill] sm:$0xff] }
 0x27d   :  { %1549 = vmatpush.msrb.mxu1 %v7501_v56  ;;  %1669 = vmatpush.msrb.mxu2 %v7502_v40  ;;  %v5516_v40 = vld [vmem:[#allocation6 + $0x150] sm:$0xff] }
 0x27e   :  { %1689 = vmatpush.msrb.mxu3 %v7503_v54  ;;  %v5518_v54 = vld [vmem:[#allocation6 + $0xf8] sm:$0xff]  ;;  %1922 = vmatpush.msrb.mxu0 %v5516_v40 }
 0x27f   :  { %1550 = vmatpush.msrb.mxu1 %v7504_v53  ;;  %1670 = vmatpush.msrb.mxu2 %v7505_v44 }
 0x280   :  { %1551 = vmatmul.f32.vlgmr.msrb.gmra.mxu1 %v5373_v13  ;;  %1690 = vmatpush.msrb.mxu3 %v5174_v49  ;;  %v7513_v49 = vld [vmem:[#allocation38_spill] sm:$0xff] }
 0x281   :  { %1764 = vmatpush.msra.mxu1 %v7506_v18  ;;  %1671 = vmatpush.msrb.mxu2 %v7507_v57  ;;  %v5522_v18 = vld [vmem:[#allocation6 + $0x138] sm:$0xff]  ;;  %v5524_v57 = vld [vmem:[#allocation6 + $0xe0] sm:$0xff] }
 0x282   :  { %1691 = vmatpush.msrb.mxu3 %v5186_v7  ;;  %v7515_v7 = vld [vmem:[#allocation96_spill] sm:$0xff]  ;;  %1923 = vmatpush.msrb.mxu0 %v5522_v18 }
 0x283   :  { %1784 = vmatpush.msra.mxu2 %v7508_v43  ;;  %1765 = vmatpush.msra.mxu1 %v7509_v45 }
 0x284   :  { %1804 = vmatpush.msra.mxu3 %v5196_v31  ;;  %v7516_v31 = vld [vmem:[#allocation62_spill] sm:$0xff] }
 0x285   :  { %1785 = vmatpush.msra.mxu2 %v7510_v35  ;;  %1766 = vmatpush.msra.mxu1 %v7511_v25  ;;  %v5530_v25 = vld [vmem:[#allocation6 + $0x120] sm:$0xff] }
 0x286   :  { %1805 = vmatpush.msra.mxu3 %v5204_v29  ;;  %v7518_v29 = vld [vmem:[#allocation41_spill] sm:$0xff]  ;;  %1924 = vmatpush.msrb.mxu0 %v5530_v25 }
 0x287   :  { %1786 = vmatpush.msra.mxu2 %v7512_v5  ;;  %1767 = vmatpush.msra.mxu1 %v7513_v49  ;;  %v5532_v5 = vld [vmem:[#allocation6 + $0xc8] sm:$0xff] }
 0x288   :  { %1806 = vmatpush.msra.mxu3 %v5212_v1  ;;  %v7519_v1 = vld [vmem:[#allocation66_spill] sm:$0xff]  ;;  %v1556_v49 = vld [vmem:[#allocation3 + $0x48] sm:$0xff] }
 0x289   :  { %1787 = vmatpush.msra.mxu2 %v5182_v20  ;;  %1768 = vmatpush.msra.mxu1 %v7514_v60  ;;  %v7520_v20 = vld [vmem:[#allocation45_spill] sm:$0xff]  ;;  %v7541_v60 = vld [vmem:[#allocation72_spill] sm:$0xff] }
 0x28a   :  { %1807 = vmatpush.msra.mxu3 %v5221_v10  ;;  %v7521_v10 = vld [vmem:[#allocation71_spill] sm:$0xff] }
 0x28b   :  { %1788 = vmatpush.msra.mxu2 %v7515_v7  ;;  %1769 = vmatpush.msra.mxu1 %v7516_v31  ;;  %v5538_v31 = vld [vmem:[#allocation6 + $0x108] sm:$0xff] }
 0x28c   :  { %1808 = vmatpush.msra.mxu3 %v5230_v23  ;;  %v7522_v23 = vld [vmem:[#allocation53_spill] sm:$0xff]  ;;  %1925 = vmatpush.msrb.mxu0 %v5538_v31 }
 0x28d   :  { %1789 = vmatpush.msra.mxu2 %v7517_v16  ;;  %1770 = vmatpush.msra.mxu1 %v7518_v29  ;;  %v5540_v16 = vld [vmem:[#allocation6 + $0xb0] sm:$0xff] }
 0x28e   :  { %1809 = vmatpush.msra.mxu3 %v5240_v6  ;;  %v7525_v6 = vld [vmem:[#allocation98_spill] sm:$0xff] }
 0x28f   :  { %1790 = vmatpush.msra.mxu2 %v5210_v47  ;;  %1771 = vmatpush.msra.mxu1 %v7519_v1  ;;  %v7523_v47 = vld [vmem:[#allocation61_spill] sm:$0xff] }
 0x290   :  { %1810 = vmatpush.msra.mxu3 %v5249_v59  ;;  %v7526_v59 = vld [vmem:[#allocation77_spill] sm:$0xff] }
 0x291   :  { %1791 = vmatpush.msra.mxu2 %v5219_v27  ;;  %1772 = vmatpush.msra.mxu1 %v7520_v20  ;;  %v7524_v27 = vld [vmem:[#allocation102_spill] sm:$0xff] }
 0x292   :  { %1811 = vmatpush.msra.mxu3 %v5259_v0  ;;  %v7528_v0 = vld [vmem:[#allocation99_spill] sm:$0xff] }
 0x293   :  { %1792 = vmatpush.msra.mxu2 %v5228_v32  ;;  %1773 = vmatpush.msra.mxu1 %v7521_v10  ;;  %v7527_v32 = vld [vmem:[#allocation104_spill] sm:$0xff] }
 0x294   :  { %1812 = vmatpush.msra.mxu3 %v5268_v11  ;;  %v7529_v11 = vld [vmem:[#allocation81_spill] sm:$0xff] }
 0x295   :  { %1793 = vmatpush.msra.mxu2 %v5238_v55  ;;  %1774 = vmatpush.msra.mxu1 %v7522_v23  ;;  %v7530_v55 = vld [vmem:[#allocation100_spill] sm:$0xff]  ;;  %v5546_v23 = vld [vmem:[#allocation6 + $0x98] sm:$0xff] }
 0x296   :  { %1813 = vmatpush.msra.mxu3 %v5278_v52  ;;  %v7531_v52 = vld [vmem:[#allocation85_spill] sm:$0xff] }
 0x297   :  { %1794 = vmatpush.msra.mxu2 %v5247_v14  ;;  %1775 = vmatpush.msra.mxu1 %v7523_v47  ;;  %v7532_v14 = vld [vmem:[#allocation101_spill] sm:$0xff] }
 0x298   :  { %1814 = vmatpush.msra.mxu3 %v7524_v27  ;;  %v5544_v10 = vld [vmem:[#allocation6 + $0xf0] sm:$0xff] }
 0x299   :  { %1795 = vmatpush.msra.mxu2 %v7525_v6  ;;  %1776 = vmatpush.msra.mxu1 %v7526_v59  ;;  %v5553_v59 = vld [vmem:[#allocation6 + $0xd8] sm:$0xff] }
 0x29a   :  { %1815 = vmatpush.msra.mxu3 %v7527_v32  ;;  %1926 = vmatpush.msrb.mxu0 %v5544_v10  ;;  %v5555_v32 = vld [vmem:[#allocation6 + $0x80] sm:$0xff] }
 0x29b   :  { %1796 = vmatpush.msra.mxu2 %v7528_v0  ;;  %1777 = vmatpush.msra.mxu1 %v7529_v11 }
 0x29c   :  { %1816 = vmatpush.msra.mxu3 %v5311_v8  ;;  %1927 = vmatpush.msrb.mxu0 %v5553_v59 }
 0x29d   :  { %1797 = vmatpush.msra.mxu2 %v7530_v55  ;;  %1778 = vmatpush.msra.mxu1 %v7531_v52  ;;  %v5561_v52 = vld [vmem:[#allocation6 + $0xc0] sm:$0xff] }
 0x29e   :  { %1817 = vmatpush.msra.mxu3 %v5320_v62  ;;  %v7538_v62 = vld [vmem:[#allocation73_spill] sm:$0xff]  ;;  %1928 = vmatpush.msrb.mxu0 %v5561_v52 }
 0x29f   :  { %1798 = vmatpush.msra.mxu2 %v7532_v14  ;;  %1779 = vmatpush.msra.mxu1 %v7533_v28  ;;  %v5563_v14 = vld [vmem:[#allocation6 + $0x68] sm:$0xff] }
 0x2a0   :  { %1818 = vmatpush.msra.mxu3 %v7534_v37 }
 0x2a1   :  { %1799 = vmatpush.msra.mxu2 %v7535_v42  ;;  %1941 = vmatpush.msrb.mxu1 %v5493_v3 }
 0x2a2   :  { %1819 = vmatpush.msra.mxu3 %v5339_v15 }
 0x2a3   :  { %1942 = vmatpush.msrb.mxu1 %v5497_v38 }
 0x2a5   :  { %1943 = vmatpush.msrb.mxu1 %v5500_v4 }
 0x2a7   :  { %1944 = vmatpush.msrb.mxu1 %v5505_v50 }
 0x2a9   :  { %1945 = vmatpush.msrb.mxu1 %v5510_v24 }
 0x2ab   :  { %1946 = vmatpush.msrb.mxu1 %v5518_v54 }
 0x2ad   :  { %1947 = vmatpush.msrb.mxu1 %v5524_v57 }
 0x2af   :  { %1948 = vmatpush.msrb.mxu1 %v5532_v5 }
 0x2b1   :  { %1949 = vmatpush.msrb.mxu1 %v5540_v16 }
 0x2b3   :  { %1950 = vmatpush.msrb.mxu1 %v5546_v23 }
 0x2b5   :  { %1951 = vmatpush.msrb.mxu1 %v5555_v32 }
 0x2b7   :  { %1952 = vmatpush.msrb.mxu1 %v5563_v14 }
 0x2d2   :  { %v1355_v19 = vpop.f32.mrf.mxu0 }
 0x2d3   :  { %v1356_v8 = vadd.f32 %v1355_v19, %v7536_v63  ;;  %v5571_v19 = vld [vmem:[#allocation6 + $0xa8] sm:$0xff] }
 0x2d4   :  { %1929 = vmatpush.msrb.mxu0 %v5571_v19 }
 0x2dc   :  { %v1247_v39 = vpop.f32.mrf.mxu1 }
 0x2dd   :  { %v1248_v12 = vadd.f32 %v1247_v39, %v7537_v61  ;;  %v1532_v58 = vpop.f32.mrf.mxu0  ;;  %v5573_v39 = vld [vmem:[#allocation6 + $0x50] sm:$0xff] }
 0x2de   :  { %v1533_v30 = vadd.f32 %v1532_v58, %v7538_v62  ;;  %1953 = vmatpush.msrb.mxu1 %v5573_v39 }
 0x2df   :  { %v1398_v26 = vadd.f32 %v1356_v8, %v1248_v12 }
 0x2e0   :  { %v1560_v46 = vadd.f32 %v1557_v34, %v1533_v30  ;;  %v5578_v30 = vld [vmem:[#allocation6 + $0x90] sm:$0xff]  ;;  %v5580_v34 = vld [vmem:[#allocation6 + $0x38] sm:$0xff] }
 0x2e1   :  { %v3651_v15 = vmul.f32 -1.442695, %v1398_v26  ;;  %1930 = vmatpush.msrb.mxu0 %v5578_v30  ;;  %1954 = vmatpush.msrb.mxu1 %v5580_v34 }
 0x2e2   :  { %v1267_v21 = vpop.f32.mrf.mxu2  ;;  %v3654_v33 = vmul.f32 -1.442695, %v1560_v46  ;;  %v5586_v46 = vld [vmem:[#allocation6 + $0x78] sm:$0xff] }
 0x2e3   :  { %3739 = vpow2.f32 %v3651_v15  ;;  %v5503_v2 = vpop.f32.mrf.mxu3  ;;  %v1268_v48 = vadd.f32 %v1267_v21, %v7539_v9  ;;  %v5588_v21 = vld [vmem:[#allocation6 + $0x20] sm:$0xff]  ;;  %1931 = vmatpush.msrb.mxu0 %v5586_v46 }
 0x2e4   :  { %3741 = vpow2.f32 %v3654_v33  ;;  %v7542_v33 = vld [vmem:[#allocation24_spill] sm:$0xff]  ;;  %1955 = vmatpush.msrb.mxu1 %v5588_v21 }
 0x2e5   :  { %v1375_v17 = vpop.f32.mrf.mxu1 }
 0x2e6   :  { %v1376_v56 = vadd.f32 %v1375_v17, %v7540_v41 }
 0x2e8   :  { %v1399_v53 = vadd.f32 %v1376_v56, %v1268_v48  ;;  %v5591_v56 = vld [vmem:[#allocation6 + $0x60] sm:$0xff] }
 0x2e9   :  { %v3740_v44 = vpop.eup %3739  ;;  %1932 = vmatpush.msrb.mxu0 %v5591_v56 }
 0x2ea   :  { %v5526_v43 = vadd.f32 1.0, %v3740_v44  ;;  %v3652_v45 = vmul.f32 -1.442695, %v1399_v53  ;;  %v3742_v29 = vpop.eup %3741  ;;  %v1395_v8 = vpop.f32.mrf.mxu2  ;;  %v5593_v53 = vld [vmem:[#allocation6 + $0x8] sm:$0xff] }
 0x2eb   :  { %v1512_v35 = vpop.f32.mrf.mxu3  ;;  %v5548_v27 = vadd.f32 1.0, %v3742_v29  ;;  %v1396_v17 = vadd.f32 %v1395_v8, %v7542_v33  ;;  %1956 = vmatpush.msrb.mxu1 %v5593_v53 }
 0x2ec   :  { %3743 = vrcp.f32 %v5526_v43  ;;  %v1513_v7 = vadd.f32 %v1512_v35, %v7541_v60  ;;  %v1419_v28 = vand.u32 2147483648, %v5526_v43  ;;  %v1417_v42 = vand.u32 2147483647, %v5526_v43  ;;  %v7543_v35 = vld [vmem:[#allocation26_spill] sm:$0xff] }
 0x2ed   :  { %3745 = vpow2.f32 %v3652_v45  ;;  %vm1413_vm9 = vweird.f32 %v5526_v43  ;;  %vm1589_vm5 = vweird.f32 %v5548_v27 }
 0x2ee   :  { %v1559_v1 = vadd.f32 %v1556_v49, %v1513_v7  ;;  %v1420_v26 = vor.u32 1.1754944e-38, %v1419_v28  ;;  %vm1418_vm11 = vcmp.eq.f32.partialorder %v1417_v42, 8.507059e+37  ;;  %v1288_v49 = vadd.f32 %v5503_v2, %v7543_v35  ;;  %v5615_v42 = vld [vmem:[#allocation6 + $0x18] sm:$0xff] }
 0x2f0   :  { %v3653_v20 = vmul.f32 -1.442695, %v1559_v1  ;;  %v5605_v1 = vld [vmem:[#allocation6 + $0x48] sm:$0xff] }
 0x2f1   :  { %1933 = vmatpush.msrb.mxu0 %v5605_v1 }
 0x2f2   :  { %v3744_v47 = vpop.eup %3743  ;;  %3747 = vpow2.f32 %v3653_v20 }
 0x2f3   :  { %v1409_v6 = vmul.f32 %v3744_v47, %v5526_v43  ;;  %v3746_v0 = vpop.eup %3745  ;;  %3749 = vrcp.f32 %v5548_v27  ;;  %vm1414_vm8 = vweird.f32 %v3744_v47 }
 0x2f4   :  { %v5559_v11 = vadd.f32 1.0, %v3746_v0  ;;  %vm1415_vm10 = vmor %vm1413_vm9, %vm1414_vm8  ;;  %v5610_v0 = vld [vmem:[#allocation6 + $0x30] sm:$0xff] }
 0x2f5   :  { %v1410_v55 = vsub.f32 1.0, %v1409_v6  ;;  %1934 = vmatpush.msrb.mxu0 %v5610_v0 }
 0x2f6   :  { %3751 = vrcp.f32 %v5559_v11  ;;  %v1434_v2 = vand.u32 2147483648, %v5559_v11  ;;  %vm1428_vm13 = vweird.f32 %v5559_v11 }
 0x2f7   :  { %v1411_v37 = vmul.f32 %v3744_v47, %v1410_v55  ;;  %1935 = vmatpush.msrb.mxu0 %v5615_v42 }
 0x2f8   :  { %v3748_v12 = vpop.eup %3747 }
 0x2f9   :  { %v1412_v58 = vadd.f32 %v3744_v47, %v1411_v37  ;;  %v5582_v15 = vadd.f32 1.0, %v3748_v12  ;;  %v5595_v44 = vpop.eup %3749  ;;  %v1432_v37 = vand.u32 2147483647, %v5559_v11 }
 0x2fa   :  { %vm1590_vm4 = vweird.f32 %v5595_v44 }
 0x2fb   :  { %v1416_v48 = vsel %vm1415_vm10, %v3744_v47, %v1412_v58  ;;  %3753 = vrcp.f32 %v5582_v15  ;;  %v1585_v47 = vmul.f32 %v5595_v44, %v5548_v27  ;;  %vm1433_vm15 = vcmp.eq.f32.partialorder %v1432_v37, 8.507059e+37  ;;  %vm1591_vm6 = vmor %vm1589_vm5, %vm1590_vm4 }
 0x2fc   :  { %v1421_v43 = vsel %vm1418_vm11, %v1420_v26, %v1416_v48  ;;  %v3752_v45 = vpop.eup %3751  ;;  %v5620_v26 = vld [vmem:[#allocation6] sm:$0xff]  ;;  %v1435_v48 = vor.u32 1.1754944e-38, %v1434_v2  ;;  %vm1574_vm1 = vweird.f32 %v5582_v15 }
 0x2fd   :  { %v1438_v7 = vmul.f32 %v1421_v43, %v1396_v17  ;;  %v1424_v29 = vmul.f32 %v3752_v45, %v5559_v11  ;;  %vm1429_vm12 = vweird.f32 %v3752_v45  ;;  %v1586_v12 = vsub.f32 1.0, %v1585_v47  ;;  %1936 = vmatpush.msrb.mxu0 %v5620_v26 }
 0x2fe   :  { %vm1430_vm14 = vmor %vm1428_vm13, %vm1429_vm12  ;;  %v1580_v43 = vand.u32 2147483648, %v5582_v15 }
 0x2ff   :  { %v1439_v20 = vadd.f32 %v1438_v7, %v1288_v49  ;;  %v1425_v6 = vsub.f32 1.0, %v1424_v29  ;;  %v1587_v11 = vmul.f32 %v5595_v44, %v1586_v12 }
 0x300   :  { %v1581_v2 = vor.u32 1.1754944e-38, %v1580_v43  ;;  %v1593_v43 = vand.u32 2147483647, %v5548_v27 }
 0x301   :  { %3755 = vtanh.f32 %v1439_v20  ;;  %v3754_v55 = vpop.eup %3753  ;;  %v1426_v28 = vmul.f32 %v3752_v45, %v1425_v6  ;;  %v1578_v20 = vand.u32 2147483647, %v5582_v15  ;;  %v1552_v6 = vpop.f32.mrf.mxu1  ;;  %v1588_v12 = vadd.f32 %v5595_v44, %v1587_v11 }
 0x302   :  { %v1570_v8 = vmul.f32 %v3754_v55, %v5582_v15  ;;  %vm1575_vm0 = vweird.f32 %v3754_v55  ;;  %v1553_v37 = vadd.f32 %v1552_v6, %v4586_v36  ;;  %vm1594_vm7 = vcmp.eq.f32.partialorder %v1593_v43, 8.507059e+37  ;;  %v5686_v43 = vld [vmem:[#allocation6 + $0x40] sm:$0xff] }
 0x303   :  { %v1427_v58 = vadd.f32 %v3752_v45, %v1426_v28  ;;  %vm1576_vm2 = vmor %vm1574_vm1, %vm1575_vm0  ;;  %vm1579_vm3 = vcmp.eq.f32.partialorder %v1578_v20, 8.507059e+37  ;;  %7554 = vst [vmem:[#allocation31_spill] sm:$0xff] %v5686_v43 }
 0x304   :  { %v1571_v17 = vsub.f32 1.0, %v1570_v8 }
 0x305   :  { %v1431_v49 = vsel %vm1430_vm14, %v3752_v45, %v1427_v58 }
 0x306   :  { %v1572_v29 = vmul.f32 %v3754_v55, %v1571_v17  ;;  %v1436_v47 = vsel %vm1433_vm15, %v1435_v48, %v1431_v49  ;;  %v1558_v17 = vld [vmem:[#allocation3 + $0x58] sm:$0xff] }
 0x307   :  { %v3756_v7 = vpop.eup %3755  ;;  %v1441_v28 = vsub.f32 1.0, %v1436_v47  ;;  %v1443_v45 = vmul.f32 %v1436_v47, %v5365_v22 }
 0x308   :  { %v1573_v35 = vadd.f32 %v3754_v55, %v1572_v29  ;;  %v1595_v29 = vand.u32 2147483648, %v5548_v27  ;;  %v5647_v27 = vld [vmem:[#allocation6 + $0x160] sm:$0xff] }
 0x309   :  { %v1442_v8 = vmul.f32 %v3756_v7, %v1441_v28 }
 0x30a   :  { %v1577_v58 = vsel %vm1576_vm2, %v3754_v55, %v1573_v35  ;;  %v1592_v35 = vsel %vm1591_vm6, %v5595_v44, %v1588_v12  ;;  %v1596_v55 = vor.u32 1.1754944e-38, %v1595_v29  ;;  %v5650_v44 = vld [vmem:[#allocation6 + $0x148] sm:$0xff]  ;;  %v5680_v29 = vld [vmem:[#allocation6 + $0x70] sm:$0xff] }
 0x30b   :  { %v1582_v48 = vsel %vm1579_vm3, %v1581_v2, %v1577_v58  ;;  %v5631_v49 = vadd.f32 %v1443_v45, %v1442_v8  ;;  %v5641_v2 = vld [vmem:[#allocation6 + $0x178] sm:$0xff]  ;;  %v5662_v45 = vld [vmem:[#allocation6 + $0x100] sm:$0xff]  ;;  %v5668_v58 = vld [vmem:[#allocation6 + $0xd0] sm:$0xff]  ;;  %7552 = vst [vmem:[#allocation42_spill] sm:$0xff] %v5680_v29 }
 0x30c   :  { %v1599_v15 = vmul.f32 %v1582_v48, %v1553_v37  ;;  %v1597_v7 = vsel %vm1594_vm7, %v1596_v55, %v1592_v35  ;;  %v5656_v8 = vld [vmem:[#allocation6 + $0x118] sm:$0xff]  ;;  %7546 = vst [vmem:[#allocation27_spill] sm:$0xff] %v5662_v45  ;;  %v5665_v37 = vld [vmem:[#allocation6 + $0xe8] sm:$0xff]  ;;  %v5674_v48 = vld [vmem:[#allocation6 + $0xa0] sm:$0xff] }
 0x30d   :  { %1780 = vmatmul.f32.vlgmr.msra.gmra.mxu1 %v5631_v49  ;;  %v1602_v20 = vsub.f32 1.0, %v1597_v7  ;;  %v1604_v6 = vmul.f32 %v1597_v7, %v5373_v13  ;;  %v5653_v13 = vld [vmem:[#allocation6 + $0x130] sm:$0xff]  ;;  %7545 = vst [vmem:[#allocation69_spill] sm:$0xff] %v5656_v8  ;;  %v5677_v12 = vld [vmem:[#allocation6 + $0x88] sm:$0xff] }
 0x30e   :  { %v1600_v22 = vadd.f32 %v1599_v15, %v1558_v17  ;;  %7544 = vst [vmem:[#allocation25_spill] sm:$0xff] %v5653_v13  ;;  %v5671_v17 = vld [vmem:[#allocation6 + $0xb8] sm:$0xff]  ;;  %v5692_v35 = vld [vmem:[#allocation6 + $0x10] sm:$0xff] }
 0x30f   :  { %7547 = vst [vmem:[#allocation63_spill] sm:$0xff] %v5665_v37  ;;  %v5683_v15 = vld [vmem:[#allocation6 + $0x58] sm:$0xff]  ;;  %v5697_v55 = vld [vmem:[#allocation9 + $0x168] sm:$0xff] }
 0x310   :  { %3757 = vtanh.f32 %v1600_v22  ;;  %7548 = vst [vmem:[#allocation59_spill] sm:$0xff] %v5668_v58  ;;  %v5689_v22 = vld [vmem:[#allocation6 + $0x28] sm:$0xff]  ;;  %v5699_v7 = vld [vmem:[#allocation9 + $0x150] sm:$0xff] }
 0x311   :  { %7549 = vst [vmem:[#allocation29_spill] sm:$0xff] %v5671_v17 }
 0x312   :  { %7550 = vst [vmem:[#allocation28_spill] sm:$0xff] %v5674_v48 }
 0x313   :  { %7551 = vst [vmem:[#allocation56_spill] sm:$0xff] %v5677_v12 }
 0x314   :  { %7553 = vst [vmem:[#allocation76_spill] sm:$0xff] %v5683_v15 }
 0x315   :  { %7555 = vst [vmem:[#allocation58_spill] sm:$0xff] %v5689_v22 }
 0x316   :  { %v3758_v47 = vpop.eup %3757  ;;  %7556 = vst [vmem:[#allocation68_spill] sm:$0xff] %v5692_v35 }
 0x317   :  { %v1603_v11 = vmul.f32 %v3758_v47, %v1602_v20  ;;  %v5702_v20 = vld [vmem:[#allocation9 + $0x138] sm:$0xff]  ;;  %v5706_v47 = vld [vmem:[#allocation9 + $0x120] sm:$0xff] }
 0x318   :  { %7557 = vst [vmem:[#allocation80_spill] sm:$0xff] %v5702_v20 }
 0x319   :  { %v5639_v28 = vadd.f32 %v1604_v6, %v1603_v11  ;;  %7558 = vst [vmem:[#allocation30_spill] sm:$0xff] %v5706_v47  ;;  %v5708_v11 = vld [vmem:[#allocation11 + $0x168] sm:$0xff] }
 0x31a   :  { %7559 = vst [vmem:[#allocation60_spill] sm:$0xff] %v5708_v11  ;;  %v5712_v6 = vld [vmem:[#allocation9 + $0x108] sm:$0xff] }
 0x31b   :  { %1672 = vmatmul.f32.vlgmr.msrb.gmra.mxu2 %v5639_v28  ;;  %1692 = vmatmul.f32.vlgmr.msrb.gmra.mxu3 %v5639_v28  ;;  %7560 = vst [vmem:[#allocation47_spill] sm:$0xff] %v5712_v6 }
 0x31c   :  { %1712 = vmatmul.f32.vlgmr.msra.gmra.mxu0 %v5639_v28  ;;  %1957 = vmatmul.f32.vlgmr.msrb.gmra.mxu1 %v5639_v28 }
 0x31d   :  { %1961 = vmatpush.msrb.mxu2 %v5641_v2  ;;  %2082 = vmatpush.msrb.mxu3 %v5697_v55 }
 0x31f   :  { %1962 = vmatpush.msrb.mxu2 %v5647_v27  ;;  %2083 = vmatpush.msrb.mxu3 %v5699_v7 }
 0x321   :  { %1963 = vmatpush.msrb.mxu2 %v5650_v44  ;;  %2084 = vmatpush.msrb.mxu3 %v5702_v20  ;;  %v1983_v20 = vld [vmem:[#allocation3 + $0x68] sm:$0xff] }
 0x323   :  { %1964 = vmatpush.msrb.mxu2 %v5653_v13  ;;  %1820 = vmatmul.f32.vlgmr.msra.gmra.mxu3 %v5631_v49 }
 0x324   :  { %1800 = vmatmul.f32.vlgmr.msra.gmra.mxu2 %v5631_v49  ;;  %1937 = vmatmul.f32.vlgmr.msrb.gmra.mxu0 %v5639_v28 }
 0x325   :  { %1965 = vmatpush.msrb.mxu2 %v5656_v8  ;;  %2085 = vmatpush.msrb.mxu3 %v5706_v47  ;;  %v5768_v47 = vld [vmem:[#allocation11 + $0xf0] sm:$0xff]  ;;  %v5852_v8 = vld [vmem:[#allocation11 + $0x48] sm:$0xff] }
 0x326   :  { %7575 = vst [vmem:[#allocation79_spill] sm:$0xff] %v5768_v47 }
 0x327   :  { %1966 = vmatpush.msrb.mxu2 %v5662_v45  ;;  %2086 = vmatpush.msrb.mxu3 %v5712_v6  ;;  %v5756_v6 = vld [vmem:[#allocation11 + $0x108] sm:$0xff]  ;;  %v5762_v45 = vld [vmem:[#allocation9 + $0x110] sm:$0xff]  ;;  %7603 = vst [vmem:[#allocation66_spill] sm:$0xff] %v5852_v8 }
 0x328   :  { %7571 = vst [vmem:[#allocation43_spill] sm:$0xff] %v5756_v6 }
 0x329   :  { %1967 = vmatpush.msrb.mxu2 %v5665_v37  ;;  %v5750_v37 = vld [vmem:[#allocation9 + $0x128] sm:$0xff]  ;;  %7573 = vst [vmem:[#allocation33_spill] sm:$0xff] %v5762_v45 }
 0x32a   :  { %7569 = vst [vmem:[#allocation92_spill] sm:$0xff] %v5750_v37 }
 0x32b   :  { %1968 = vmatpush.msrb.mxu2 %v5668_v58  ;;  %v5744_v58 = vld [vmem:[#allocation11 + $0x120] sm:$0xff] }
 0x32c   :  { %7567 = vst [vmem:[#allocation64_spill] sm:$0xff] %v5744_v58 }
 0x32d   :  { %1969 = vmatpush.msrb.mxu2 %v5671_v17  ;;  %v5738_v17 = vld [vmem:[#allocation9 + $0x140] sm:$0xff] }
 0x32e   :  { %7565 = vst [vmem:[#allocation88_spill] sm:$0xff] %v5738_v17 }
 0x32f   :  { %1970 = vmatpush.msrb.mxu2 %v5674_v48  ;;  %v5736_v48 = vld [vmem:[#allocation9 + $0xd8] sm:$0xff] }
 0x330   :  { %7564 = vst [vmem:[#allocation51_spill] sm:$0xff] %v5736_v48 }
 0x331   :  { %1971 = vmatpush.msrb.mxu2 %v5677_v12  ;;  %v5732_v12 = vld [vmem:[#allocation11 + $0x138] sm:$0xff] }
 0x332   :  { %7563 = vst [vmem:[#allocation40_spill] sm:$0xff] %v5732_v12 }
 0x333   :  { %1972 = vmatpush.msrb.mxu2 %v5680_v29  ;;  %v5726_v29 = vld [vmem:[#allocation9 + $0x158] sm:$0xff] }
 0x335   :  { %1973 = vmatpush.msrb.mxu2 %v5683_v15  ;;  %v5724_v15 = vld [vmem:[#allocation9 + $0xf0] sm:$0xff] }
 0x336   :  { %7562 = vst [vmem:[#allocation44_spill] sm:$0xff] %v5724_v15  ;;  %2087 = vmatpush.msrb.mxu3 %v5724_v15  ;;  %v5748_v15 = vld [vmem:[#allocation9 + $0xc0] sm:$0xff] }
 0x337   :  { %1974 = vmatpush.msrb.mxu2 %v5686_v43  ;;  %v5720_v43 = vld [vmem:[#allocation11 + $0x150] sm:$0xff]  ;;  %7568 = vst [vmem:[#allocation57_spill] sm:$0xff] %v5748_v15 }
 0x338   :  { %7561 = vst [vmem:[#allocation84_spill] sm:$0xff] %v5720_v43  ;;  %2088 = vmatpush.msrb.mxu3 %v5736_v48  ;;  %v5760_v48 = vld [vmem:[#allocation9 + $0xa8] sm:$0xff] }
 0x339   :  { %1975 = vmatpush.msrb.mxu2 %v5689_v22  ;;  %v5716_v22 = vld [vmem:[#allocation9 + $0x178] sm:$0xff]  ;;  %7572 = vst [vmem:[#allocation75_spill] sm:$0xff] %v5760_v48 }
 0x33a   :  { %2122 = vmatpush.msra.mxu1 %v5716_v22  ;;  %2089 = vmatpush.msrb.mxu3 %v5748_v15  ;;  %v5772_v15 = vld [vmem:[#allocation9 + $0x90] sm:$0xff] }
 0x33b   :  { %1976 = vmatpush.msrb.mxu2 %v5692_v35  ;;  %v5714_v35 = vld [vmem:[#allocation9 + $0x170] sm:$0xff]  ;;  %7576 = vst [vmem:[#allocation48_spill] sm:$0xff] %v5772_v15 }
 0x33c   :  { %1977 = vmatmul.f32.vlgmr.msrb.gmra.mxu2 %v5639_v28  ;;  %2102 = vmatpush.msra.mxu0 %v5714_v35 }
 0x33d   :  { %2190 = vmatpush.msra.mxu2 %v5708_v11  ;;  %v5728_v11 = vld [vmem:[#allocation9 + $0x160] sm:$0xff]  ;;  %2090 = vmatpush.msrb.mxu3 %v5760_v48  ;;  %v5784_v48 = vld [vmem:[#allocation9 + $0x78] sm:$0xff] }
 0x33e   :  { %2103 = vmatpush.msra.mxu0 %v5726_v29  ;;  %2123 = vmatpush.msra.mxu1 %v5728_v11  ;;  %7580 = vst [vmem:[#allocation55_spill] sm:$0xff] %v5784_v48 }
 0x33f   :  { %2191 = vmatpush.msra.mxu2 %v5720_v43  ;;  %v5740_v43 = vld [vmem:[#allocation9 + $0x148] sm:$0xff]  ;;  %2091 = vmatpush.msrb.mxu3 %v5772_v15  ;;  %v5796_v15 = vld [vmem:[#allocation9 + $0x60] sm:$0xff] }
 0x340   :  { %7566 = vst [vmem:[#allocation32_spill] sm:$0xff] %v5740_v43  ;;  %2104 = vmatpush.msra.mxu0 %v5738_v17  ;;  %2124 = vmatpush.msra.mxu1 %v5740_v43  ;;  %v5878_v17 = vld [vmem:[#allocation11 + $0x140] sm:$0xff]  ;;  %v5903_v43 = vld [vmem:[#allocation11 + $0x110] sm:$0xff] }
 0x341   :  { %2192 = vmatpush.msra.mxu2 %v5732_v12  ;;  %v5752_v12 = vld [vmem:[#allocation9 + $0x130] sm:$0xff]  ;;  %2092 = vmatpush.msrb.mxu3 %v5784_v48  ;;  %7584 = vst [vmem:[#allocation91_spill] sm:$0xff] %v5796_v15  ;;  %v5808_v48 = vld [vmem:[#allocation9 + $0x48] sm:$0xff] }
 0x342   :  { %7570 = vst [vmem:[#allocation46_spill] sm:$0xff] %v5752_v12  ;;  %2105 = vmatpush.msra.mxu0 %v5750_v37  ;;  %2125 = vmatpush.msra.mxu1 %v5752_v12  ;;  %v5774_v12 = vld [vmem:[#allocation9 + $0xf8] sm:$0xff] }
 0x343   :  { %2193 = vmatpush.msra.mxu2 %v5744_v58  ;;  %v5764_v58 = vld [vmem:[#allocation9 + $0x118] sm:$0xff]  ;;  %7577 = vst [vmem:[#allocation49_spill] sm:$0xff] %v5774_v12  ;;  %2093 = vmatpush.msrb.mxu3 %v5796_v15  ;;  %v5820_v15 = vld [vmem:[#allocation9 + $0x30] sm:$0xff] }
 0x344   :  { %7574 = vst [vmem:[#allocation70_spill] sm:$0xff] %v5764_v58  ;;  %2106 = vmatpush.msra.mxu0 %v5762_v45  ;;  %2126 = vmatpush.msra.mxu1 %v5764_v58  ;;  %v5780_v37 = vld [vmem:[#allocation11 + $0xd8] sm:$0xff]  ;;  %v5786_v58 = vld [vmem:[#allocation9 + $0xe0] sm:$0xff] }
 0x345   :  { %2194 = vmatpush.msra.mxu2 %v5756_v6  ;;  %v5776_v6 = vld [vmem:[#allocation9 + $0x100] sm:$0xff]  ;;  %7579 = vst [vmem:[#allocation34_spill] sm:$0xff] %v5780_v37  ;;  %2094 = vmatpush.msrb.mxu3 %v5808_v48 }
 0x346   :  { %7578 = vst [vmem:[#allocation83_spill] sm:$0xff] %v5776_v6  ;;  %2107 = vmatpush.msra.mxu0 %v5774_v12  ;;  %2127 = vmatpush.msra.mxu1 %v5776_v6  ;;  %v5792_v45 = vld [vmem:[#allocation11 + $0xc0] sm:$0xff]  ;;  %v5798_v6 = vld [vmem:[#allocation9 + $0xc8] sm:$0xff] }
 0x347   :  { %2195 = vmatpush.msra.mxu2 %v5768_v47  ;;  %7581 = vst [vmem:[#allocation87_spill] sm:$0xff] %v5786_v58  ;;  %v5788_v47 = vld [vmem:[#allocation9 + $0xe8] sm:$0xff]  ;;  %2095 = vmatpush.msrb.mxu3 %v5820_v15 }
 0x348   :  { %7582 = vst [vmem:[#allocation50_spill] sm:$0xff] %v5788_v47  ;;  %2108 = vmatpush.msra.mxu0 %v5786_v58  ;;  %2128 = vmatpush.msra.mxu1 %v5788_v47  ;;  %v5804_v12 = vld [vmem:[#allocation11 + $0xa8] sm:$0xff]  ;;  %v5810_v47 = vld [vmem:[#allocation9 + $0xb0] sm:$0xff] }
 0x349   :  { %2196 = vmatpush.msra.mxu2 %v5780_v37  ;;  %7583 = vst [vmem:[#allocation74_spill] sm:$0xff] %v5792_v45  ;;  %v5800_v37 = vld [vmem:[#allocation9 + $0xd0] sm:$0xff] }
 0x34a   :  { %7585 = vst [vmem:[#allocation35_spill] sm:$0xff] %v5798_v6  ;;  %2109 = vmatpush.msra.mxu0 %v5798_v6  ;;  %2129 = vmatpush.msra.mxu1 %v5800_v37  ;;  %v5816_v58 = vld [vmem:[#allocation11 + $0x90] sm:$0xff]  ;;  %v5828_v6 = vld [vmem:[#allocation11 + $0x78] sm:$0xff] }
 0x34b   :  { %2197 = vmatpush.msra.mxu2 %v5792_v45  ;;  %7586 = vst [vmem:[#allocation78_spill] sm:$0xff] %v5800_v37  ;;  %v5812_v45 = vld [vmem:[#allocation9 + $0xb8] sm:$0xff] }
 0x34c   :  { %7587 = vst [vmem:[#allocation94_spill] sm:$0xff] %v5804_v12  ;;  %2110 = vmatpush.msra.mxu0 %v5810_v47  ;;  %2130 = vmatpush.msra.mxu1 %v5812_v45  ;;  %v5822_v37 = vld [vmem:[#allocation9 + $0x98] sm:$0xff] }
 0x34d   :  { %2198 = vmatpush.msra.mxu2 %v5804_v12  ;;  %7588 = vst [vmem:[#allocation52_spill] sm:$0xff] %v5808_v48  ;;  %v5824_v12 = vld [vmem:[#allocation9 + $0xa0] sm:$0xff]  ;;  %v5832_v48 = vld [vmem:[#allocation9 + $0x18] sm:$0xff] }
 0x34e   :  { %7589 = vst [vmem:[#allocation82_spill] sm:$0xff] %v5810_v47  ;;  %2111 = vmatpush.msra.mxu0 %v5822_v37  ;;  %2131 = vmatpush.msra.mxu1 %v5824_v12 }
 0x34f   :  { %7590 = vst [vmem:[#allocation36_spill] sm:$0xff] %v5812_v45  ;;  %2199 = vmatpush.msra.mxu2 %v5816_v58  ;;  %v5834_v45 = vld [vmem:[#allocation9 + $0x80] sm:$0xff]  ;;  %2096 = vmatpush.msrb.mxu3 %v5832_v48 }
 0x350   :  { %7591 = vst [vmem:[#allocation86_spill] sm:$0xff] %v5816_v58  ;;  %v5836_v58 = vld [vmem:[#allocation9 + $0x88] sm:$0xff]  ;;  %2112 = vmatpush.msra.mxu0 %v5834_v45 }
 0x351   :  { %7592 = vst [vmem:[#allocation90_spill] sm:$0xff] %v5820_v15  ;;  %2200 = vmatpush.msra.mxu2 %v5828_v6  ;;  %v5840_v15 = vld [vmem:[#allocation11 + $0x60] sm:$0xff]  ;;  %2132 = vmatpush.msra.mxu1 %v5836_v58 }
 0x352   :  { %7593 = vst [vmem:[#allocation54_spill] sm:$0xff] %v5822_v37  ;;  %v5848_v37 = vld [vmem:[#allocation9 + $0x70] sm:$0xff] }
 0x353   :  { %7594 = vst [vmem:[#allocation93_spill] sm:$0xff] %v5824_v12  ;;  %2201 = vmatpush.msra.mxu2 %v5840_v15  ;;  %v5844_v12 = vld [vmem:[#allocation9] sm:$0xff]  ;;  %2133 = vmatpush.msra.mxu1 %v5848_v37 }
 0x354   :  { %7595 = vst [vmem:[#allocation37_spill] sm:$0xff] %v5828_v6  ;;  %v5846_v6 = vld [vmem:[#allocation9 + $0x68] sm:$0xff]  ;;  %2097 = vmatpush.msrb.mxu3 %v5844_v12 }
 0x355   :  { %7596 = vst [vmem:[#allocation95_spill] sm:$0xff] %v5832_v48  ;;  %2113 = vmatpush.msra.mxu0 %v5846_v6  ;;  %v5854_v48 = vld [vmem:[#allocation11 + $0x170] sm:$0xff]  ;;  %2202 = vmatpush.msra.mxu2 %v5852_v8  ;;  %v5874_v8 = vld [vmem:[#allocation11 + $0x18] sm:$0xff] }
 0x356   :  { %7597 = vst [vmem:[#allocation38_spill] sm:$0xff] %v5834_v45  ;;  %v5862_v45 = vld [vmem:[#allocation11 + $0x30] sm:$0xff]  ;;  %2210 = vmatpush.msra.mxu3 %v5854_v48 }
 0x357   :  { %7598 = vst [vmem:[#allocation39_spill] sm:$0xff] %v5836_v58  ;;  %v5858_v58 = vld [vmem:[#allocation9 + $0x50] sm:$0xff]  ;;  %2203 = vmatpush.msra.mxu2 %v5862_v45 }
 0x358   :  { %7599 = vst [vmem:[#allocation96_spill] sm:$0xff] %v5840_v15  ;;  %v5860_v15 = vld [vmem:[#allocation9 + $0x58] sm:$0xff]  ;;  %2114 = vmatpush.msra.mxu0 %v5858_v58 }
 0x359   :  { %7600 = vst [vmem:[#allocation62_spill] sm:$0xff] %v5844_v12  ;;  %v5866_v12 = vld [vmem:[#allocation11 + $0x158] sm:$0xff]  ;;  %2134 = vmatpush.msra.mxu1 %v5860_v15  ;;  %2204 = vmatpush.msra.mxu2 %v5874_v8 }
 0x35a   :  { %7601 = vst [vmem:[#allocation97_spill] sm:$0xff] %v5846_v6  ;;  %v5870_v6 = vld [vmem:[#allocation9 + $0x38] sm:$0xff]  ;;  %2211 = vmatpush.msra.mxu3 %v5866_v12 }
 0x35b   :  { %7602 = vst [vmem:[#allocation41_spill] sm:$0xff] %v5848_v37  ;;  %v5872_v37 = vld [vmem:[#allocation9 + $0x40] sm:$0xff]  ;;  %2115 = vmatpush.msra.mxu0 %v5870_v6 }
 0x35c   :  { %7604 = vst [vmem:[#allocation45_spill] sm:$0xff] %v5854_v48  ;;  %2135 = vmatpush.msra.mxu1 %v5872_v37  ;;  %v5882_v48 = vld [vmem:[#allocation9 + $0x20] sm:$0xff]  ;;  %2212 = vmatpush.msra.mxu3 %v5878_v17 }
 0x35d   :  { %7605 = vst [vmem:[#allocation71_spill] sm:$0xff] %v5858_v58  ;;  %2116 = vmatpush.msra.mxu0 %v5882_v48 }
 0x35e   :  { %7606 = vst [vmem:[#allocation53_spill] sm:$0xff] %v5860_v15  ;;  %v5884_v15 = vld [vmem:[#allocation9 + $0x28] sm:$0xff] }
 0x35f   :  { %7607 = vst [vmem:[#allocation61_spill] sm:$0xff] %v5862_v45  ;;  %v5886_v45 = vld [vmem:[#allocation11] sm:$0xff]  ;;  %2136 = vmatpush.msra.mxu1 %v5884_v15 }
 0x360   :  { %7608 = vst [vmem:[#allocation102_spill] sm:$0xff] %v5866_v12  ;;  %v5892_v12 = vld [vmem:[#allocation11 + $0x128] sm:$0xff]  ;;  %2205 = vmatpush.msra.mxu2 %v5886_v45 }
 0x361   :  { %7609 = vst [vmem:[#allocation98_spill] sm:$0xff] %v5870_v6  ;;  %v5899_v6 = vld [vmem:[#allocation9 + $0x10] sm:$0xff]  ;;  %2213 = vmatpush.msra.mxu3 %v5892_v12 }
 0x362   :  { %7610 = vst [vmem:[#allocation77_spill] sm:$0xff] %v5872_v37  ;;  %2367 = vmatpush.msrb.mxu2 %v5493_v3  ;;  %2137 = vmatpush.msra.mxu1 %v5899_v6 }
 0x363   :  { %7611 = vst [vmem:[#allocation104_spill] sm:$0xff] %v5874_v8  ;;  %v5897_v8 = vld [vmem:[#allocation9 + $0x8] sm:$0xff]  ;;  %2214 = vmatpush.msra.mxu3 %v5903_v43 }
 0x364   :  { %7612 = vst [vmem:[#allocation99_spill] sm:$0xff] %v5878_v17  ;;  %v5905_v17 = vld [vmem:[#allocation11 + $0x178] sm:$0xff]  ;;  %2117 = vmatpush.msra.mxu0 %v5897_v8  ;;  %2347 = vmatpush.msrb.mxu1 %v5508_v51 }
 0x365   :  { %7613 = vst [vmem:[#allocation81_spill] sm:$0xff] %v5882_v48  ;;  %2368 = vmatpush.msrb.mxu2 %v5497_v38  ;;  %v1982_v38 = vld [vmem:[#allocation3 + $0x60] sm:$0xff] }
 0x366   :  { %7614 = vst [vmem:[#allocation100_spill] sm:$0xff] %v5886_v45  ;;  %2230 = vmatpush.msrb.mxu0 %v5905_v17  ;;  %2348 = vmatpush.msrb.mxu1 %v5516_v40 }
 0x367   :  { %7615 = vst [vmem:[#allocation85_spill] sm:$0xff] %v5892_v12  ;;  %2369 = vmatpush.msrb.mxu2 %v5500_v4  ;;  %v5938_v4 = vld [vmem:[#allocation11 + $0xb0] sm:$0xff] }
 0x368   :  { %7616 = vst [vmem:[#allocation101_spill] sm:$0xff] %v5903_v43  ;;  %v5923_v43 = vld [vmem:[#allocation11 + $0x148] sm:$0xff]  ;;  %2349 = vmatpush.msrb.mxu1 %v5522_v18  ;;  %v5948_v18 = vld [vmem:[#allocation11 + $0x100] sm:$0xff] }
 0x369   :  { %2370 = vmatpush.msrb.mxu2 %v5505_v50  ;;  %v5946_v50 = vld [vmem:[#allocation11 + $0x98] sm:$0xff] }
 0x36a   :  { %2350 = vmatpush.msrb.mxu1 %v5530_v25  ;;  %v5956_v25 = vld [vmem:[#allocation11 + $0xe8] sm:$0xff] }
 0x36b   :  { %2371 = vmatpush.msrb.mxu2 %v5510_v24  ;;  %v5954_v24 = vld [vmem:[#allocation11 + $0x80] sm:$0xff] }
 0x36c   :  { %2351 = vmatpush.msrb.mxu1 %v5538_v31  ;;  %v5968_v31 = vld [vmem:[#allocation11 + $0xd0] sm:$0xff] }
 0x36d   :  { %2372 = vmatpush.msrb.mxu2 %v5518_v54  ;;  %v5966_v54 = vld [vmem:[#allocation11 + $0x68] sm:$0xff] }
 0x36e   :  { %2352 = vmatpush.msrb.mxu1 %v5544_v10  ;;  %v5974_v10 = vld [vmem:[#allocation11 + $0x50] sm:$0xff] }
 0x36f   :  { %2373 = vmatpush.msrb.mxu2 %v5524_v57  ;;  %v5976_v57 = vld [vmem:[#allocation11 + $0xb8] sm:$0xff] }
 0x370   :  { %2353 = vmatpush.msrb.mxu1 %v5553_v59  ;;  %v5987_v59 = vld [vmem:[#allocation11 + $0xa0] sm:$0xff] }
 0x371   :  { %2374 = vmatpush.msrb.mxu2 %v5532_v5  ;;  %v5985_v5 = vld [vmem:[#allocation11 + $0x38] sm:$0xff] }
 0x372   :  { %2354 = vmatpush.msrb.mxu1 %v5561_v52  ;;  %v5998_v52 = vld [vmem:[#allocation11 + $0x88] sm:$0xff] }
 0x373   :  { %2375 = vmatpush.msrb.mxu2 %v5540_v16  ;;  %v5996_v16 = vld [vmem:[#allocation11 + $0x20] sm:$0xff] }
 0x374   :  { %2355 = vmatpush.msrb.mxu1 %v5571_v19  ;;  %7617 = vst [vmem:[#allocation89_spill] sm:$0xff] %v5996_v16  ;;  %v6004_v19 = vld [vmem:[#allocation11 + $0x70] sm:$0xff] }
 0x375   :  { %2376 = vmatpush.msrb.mxu2 %v5546_v23 }
 0x376   :  { %2356 = vmatpush.msrb.mxu1 %v5578_v30  ;;  %v6019_v30 = vld [vmem:[#allocation11 + $0x40] sm:$0xff] }
 0x377   :  { %2377 = vmatpush.msrb.mxu2 %v5555_v32  ;;  %7619 = vst [vmem:[#allocation103_spill] sm:$0xff] %v6019_v30 }
 0x378   :  { %2357 = vmatpush.msrb.mxu1 %v5586_v46 }
 0x379   :  { %2378 = vmatpush.msrb.mxu2 %v5563_v14 }
 0x37a   :  { %2358 = vmatpush.msrb.mxu1 %v5591_v56 }
 0x37b   :  { %2379 = vmatpush.msrb.mxu2 %v5573_v39 }
 0x37c   :  { %2359 = vmatpush.msrb.mxu1 %v5605_v1 }
 0x37d   :  { %2380 = vmatpush.msrb.mxu2 %v5580_v34 }
 0x37e   :  { %2360 = vmatpush.msrb.mxu1 %v5610_v0 }
 0x37f   :  { %2381 = vmatpush.msrb.mxu2 %v5588_v21 }
 0x380   :  { %2361 = vmatpush.msrb.mxu1 %v5615_v42 }
 0x381   :  { %2382 = vmatpush.msrb.mxu2 %v5593_v53 }
 0x382   :  { %2362 = vmatpush.msrb.mxu1 %v5620_v26 }
 0x38a   :  { %v1781_v47 = vpop.f32.mrf.mxu1 }
 0x38b   :  { %v1782_v3 = vadd.f32 %v1781_v47, %v7536_v63  ;;  %v5931_v47 = vld [vmem:[#allocation11 + $0x130] sm:$0xff] }
 0x399   :  { %v5888_v58 = vpop.f32.mrf.mxu0  ;;  %v1958_v13 = vpop.f32.mrf.mxu1 }
 0x39a   :  { %v1959_v37 = vadd.f32 %v1958_v13, %v7538_v62  ;;  %v5911_v13 = vld [vmem:[#allocation11 + $0xf8] sm:$0xff]  ;;  %v5913_v62 = vld [vmem:[#allocation11 + $0x160] sm:$0xff] }
 0x39b   :  { %2215 = vmatpush.msra.mxu3 %v5911_v13  ;;  %2231 = vmatpush.msrb.mxu0 %v5913_v62 }
 0x39c   :  { %v1986_v48 = vadd.f32 %v1983_v20, %v1959_v37  ;;  %v5921_v20 = vld [vmem:[#allocation11 + $0xe0] sm:$0xff] }
 0x39d   :  { %2216 = vmatpush.msra.mxu3 %v5921_v20  ;;  %2232 = vmatpush.msrb.mxu0 %v5923_v43 }
 0x39e   :  { %v3658_v45 = vmul.f32 -1.442695, %v1986_v48  ;;  %v1673_v12 = vpop.f32.mrf.mxu2 }
 0x39f   :  { %v1674_v37 = vadd.f32 %v1673_v12, %v7537_v61  ;;  %v5929_v12 = vld [vmem:[#allocation11 + $0xc8] sm:$0xff]  ;;  %2233 = vmatpush.msrb.mxu0 %v5931_v47 }
 0x3a0   :  { %3759 = vpow2.f32 %v3658_v45  ;;  %2217 = vmatpush.msra.mxu3 %v5929_v12  ;;  %v5940_v45 = vld [vmem:[#allocation11 + $0x118] sm:$0xff] }
 0x3a1   :  { %v1824_v51 = vadd.f32 %v1782_v3, %v1674_v37  ;;  %v1938_v48 = vpop.f32.mrf.mxu0  ;;  %v1693_v37 = vpop.f32.mrf.mxu3  ;;  %2234 = vmatpush.msrb.mxu0 %v5940_v45 }
 0x3a2   :  { %v1939_v61 = vadd.f32 %v1938_v48, %v7541_v60  ;;  %2218 = vmatpush.msra.mxu3 %v5938_v4 }
 0x3a3   :  { %v3655_v40 = vmul.f32 -1.442695, %v1824_v51  ;;  %2235 = vmatpush.msrb.mxu0 %v5948_v18 }
 0x3a4   :  { %v1985_v3 = vadd.f32 %v1982_v38, %v1939_v61  ;;  %2219 = vmatpush.msra.mxu3 %v5946_v50 }
 0x3a5   :  { %3761 = vpow2.f32 %v3655_v40  ;;  %v1694_v40 = vadd.f32 %v1693_v37, %v7539_v9  ;;  %2236 = vmatpush.msrb.mxu0 %v5956_v25 }
 0x3a6   :  { %v3760_v51 = vpop.eup %3759  ;;  %v3657_v48 = vmul.f32 -1.442695, %v1985_v3  ;;  %2220 = vmatpush.msra.mxu3 %v5954_v24 }
 0x3a7   :  { %v1801_v61 = vpop.f32.mrf.mxu2  ;;  %v5958_v38 = vadd.f32 1.0, %v3760_v51  ;;  %2237 = vmatpush.msrb.mxu0 %v5968_v31 }
 0x3a8   :  { %3763 = vpow2.f32 %v3657_v48  ;;  %v1802_v3 = vadd.f32 %v1801_v61, %v7540_v41  ;;  %2221 = vmatpush.msra.mxu3 %v5966_v54 }
 0x3a9   :  { %3765 = vrcp.f32 %v5958_v38  ;;  %2238 = vmatpush.msrb.mxu0 %v5976_v57  ;;  %vm2015_vm14 = vweird.f32 %v5958_v38 }
 0x3aa   :  { %v1825_v60 = vadd.f32 %v1802_v3, %v1694_v40  ;;  %2222 = vmatpush.msra.mxu3 %v5974_v10  ;;  %v6002_v40 = vld [vmem:[#allocation11 + $0x8] sm:$0xff]  ;;  %v6013_v3 = vld [vmem:[#allocation11 + $0x58] sm:$0xff] }
 0x3ab   :  { %v3762_v37 = vpop.eup %3761  ;;  %2239 = vmatpush.msrb.mxu0 %v5987_v59  ;;  %7618 = vst [vmem:[#allocation22_spill] sm:$0xff] %v6002_v40 }
 0x3ac   :  { %v5979_v51 = vadd.f32 1.0, %v3762_v37  ;;  %v3656_v48 = vmul.f32 -1.442695, %v1825_v60  ;;  %2223 = vmatpush.msra.mxu3 %v5985_v5 }
 0x3ad   :  { %2240 = vmatpush.msrb.mxu0 %v5998_v52 }
 0x3ae   :  { %v3764_v61 = vpop.eup %3763  ;;  %3767 = vrcp.f32 %v5979_v51  ;;  %2224 = vmatpush.msra.mxu3 %v5996_v16  ;;  %v1845_v41 = vand.u32 2147483648, %v5979_v51  ;;  %v1843_v63 = vand.u32 2147483647, %v5979_v51  ;;  %vm1839_vm9 = vweird.f32 %v5979_v51 }
 0x3af   :  { %v5992_v60 = vadd.f32 1.0, %v3764_v61  ;;  %3769 = vpow2.f32 %v3656_v48  ;;  %v6009_v23 = vpop.eup %3765  ;;  %2241 = vmatpush.msrb.mxu0 %v6004_v19  ;;  %v6029_v61 = vld [vmem:[#allocation11 + $0x28] sm:$0xff] }
 0x3b0   :  { %2225 = vmatpush.msra.mxu3 %v6002_v40  ;;  %v2011_v48 = vmul.f32 %v6009_v23, %v5958_v38  ;;  %7620 = vst [vmem:[#allocation105_spill] sm:$0xff] %v6029_v61  ;;  %v1846_v0 = vor.u32 1.1754944e-38, %v1845_v41  ;;  %vm1844_vm12 = vcmp.eq.f32.partialorder %v1843_v63, 8.507059e+37  ;;  %vm2016_vm0 = vweird.f32 %v6009_v23 }
 0x3b1   :  { %3771 = vrcp.f32 %v5992_v60  ;;  %2242 = vmatpush.msrb.mxu0 %v6013_v3  ;;  %v2006_v21 = vand.u32 2147483648, %v5992_v60  ;;  %vm2000_vm13 = vweird.f32 %v5992_v60  ;;  %vm2017_vm3 = vmor %vm2015_vm14, %vm2016_vm0 }
 0x3b2   :  { %v2012_v1 = vsub.f32 1.0, %v2011_v48 }
 0x3b3   :  { %2243 = vmatpush.msrb.mxu0 %v6019_v30 }
 0x3b4   :  { %v3768_v32 = vpop.eup %3767 }
 0x3b5   :  { %v3770_v37 = vpop.eup %3769  ;;  %v1835_v46 = vmul.f32 %v3768_v32, %v5979_v51  ;;  %vm1840_vm8 = vweird.f32 %v3768_v32  ;;  %2244 = vmatpush.msrb.mxu0 %v6029_v61  ;;  %v7622_v51 = vld [vmem:[#allocation26_spill] sm:$0xff] }
 0x3b6   :  { %v6025_v14 = vadd.f32 1.0, %v3770_v37  ;;  %v6037_v37 = vld [vmem:[#allocation11 + $0x10] sm:$0xff]  ;;  %vm1841_vm10 = vmor %vm1839_vm9, %vm1840_vm8  ;;  %v1714_v61 = vadd.f32 %v5888_v58, %v7622_v51 }
 0x3b7   :  { %v3772_v56 = vpop.eup %3771  ;;  %v1836_v39 = vsub.f32 1.0, %v1835_v46  ;;  %7621 = vst [vmem:[#allocation106_spill] sm:$0xff] %v6037_v37  ;;  %v1821_v46 = vpop.f32.mrf.mxu3  ;;  %2245 = vmatpush.msrb.mxu0 %v6037_v37 }
 0x3b8   :  { %3773 = vrcp.f32 %v6025_v14  ;;  %v1996_v9 = vmul.f32 %v3772_v56, %v5992_v60  ;;  %vm2001_vm11 = vweird.f32 %v3772_v56  ;;  %v1822_v42 = vadd.f32 %v1821_v46, %v7542_v33  ;;  %v1984_v46 = vld [vmem:[#allocation3 + $0x70] sm:$0xff] }
 0x3b9   :  { %v1837_v34 = vmul.f32 %v3768_v32, %v1836_v39  ;;  %v2004_v39 = vand.u32 2147483647, %v5992_v60  ;;  %vm2002_vm15 = vmor %vm2000_vm13, %vm2001_vm11  ;;  %vm1854_vm4 = vweird.f32 %v6025_v14 }
 0x3ba   :  { %v1997_v40 = vsub.f32 1.0, %v1996_v9  ;;  %v2013_v9 = vmul.f32 %v6009_v23, %v2012_v1  ;;  %v2007_v1 = vor.u32 1.1754944e-38, %v2006_v21 }
 0x3bb   :  { %v1838_v30 = vadd.f32 %v3768_v32, %v1837_v34  ;;  %vm2005_vm1 = vcmp.eq.f32.partialorder %v2004_v39, 8.507059e+37 }
 0x3bc   :  { %v1998_v48 = vmul.f32 %v3772_v56, %v1997_v40  ;;  %v2014_v60 = vadd.f32 %v6009_v23, %v2013_v9 }
 0x3bd   :  { %v1842_v53 = vsel %vm1841_vm10, %v3768_v32, %v1838_v30 }
 0x3be   :  { %v3774_v34 = vpop.eup %3773  ;;  %v1847_v16 = vsel %vm1844_vm12, %v1846_v0, %v1842_v53  ;;  %v1999_v37 = vadd.f32 %v3772_v56, %v1998_v48  ;;  %v2021_v48 = vand.u32 2147483648, %v5958_v38  ;;  %v1860_v53 = vand.u32 2147483648, %v6025_v14 }
 0x3bf   :  { %v1850_v41 = vmul.f32 %v3774_v34, %v6025_v14  ;;  %v1864_v40 = vmul.f32 %v1847_v16, %v1822_v42  ;;  %v1978_v26 = vpop.f32.mrf.mxu2  ;;  %v2019_v16 = vand.u32 2147483647, %v5958_v38  ;;  %vm1855_vm2 = vweird.f32 %v3774_v34 }
 0x3c0   :  { %v1979_v63 = vadd.f32 %v1978_v26, %v4586_v36  ;;  %v2003_v32 = vsel %vm2002_vm15, %v3772_v56, %v1999_v37  ;;  %v1858_v26 = vand.u32 2147483647, %v6025_v14  ;;  %v2018_v56 = vsel %vm2017_vm3, %v6009_v23, %v2014_v60  ;;  %vm1856_vm5 = vmor %vm1854_vm4, %vm1855_vm2 }
 0x3c1   :  { %v1851_v58 = vsub.f32 1.0, %v1850_v41  ;;  %v1865_v30 = vadd.f32 %v1864_v40, %v1714_v61  ;;  %v2008_v0 = vsel %vm2005_vm1, %v2007_v1, %v2003_v32  ;;  %v2022_v39 = vor.u32 1.1754944e-38, %v2021_v48  ;;  %v7635_v48 = vld [vmem:[#allocation70_spill] sm:$0xff] }
 0x3c2   :  { %v2025_v42 = vmul.f32 %v2008_v0, %v1979_v63  ;;  %v1861_v9 = vor.u32 1.1754944e-38, %v1860_v53  ;;  %vm2020_vm6 = vcmp.eq.f32.partialorder %v2019_v16, 8.507059e+37  ;;  %vm1859_vm7 = vcmp.eq.f32.partialorder %v1858_v26, 8.507059e+37  ;;  %v7636_v16 = vld [vmem:[#allocation44_spill] sm:$0xff]  ;;  %v7638_v53 = vld [vmem:[#allocation59_spill] sm:$0xff] }
 0x3c3   :  { %3775 = vtanh.f32 %v1865_v30  ;;  %v1852_v21 = vmul.f32 %v3774_v34, %v1851_v58  ;;  %v2023_v40 = vsel %vm2020_vm6, %v2022_v39, %v2018_v56  ;;  %v7640_v26 = vld [vmem:[#allocation51_spill] sm:$0xff]  ;;  %v7642_v56 = vld [vmem:[#allocation29_spill] sm:$0xff] }
 0x3c4   :  { %v2026_v61 = vadd.f32 %v2025_v42, %v1984_v46  ;;  %v2028_v58 = vsub.f32 1.0, %v2023_v40  ;;  %v2030_v0 = vmul.f32 %v2023_v40, %v5639_v28  ;;  %v7624_v28 = vld [vmem:[#allocation80_spill] sm:$0xff]  ;;  %v7637_v42 = vld [vmem:[#allocation49_spill] sm:$0xff]  ;;  %v7647_v40 = vld [vmem:[#allocation78_spill] sm:$0xff] }
 0x3c5   :  { %v1853_v37 = vadd.f32 %v3774_v34, %v1852_v21  ;;  %v7639_v21 = vld [vmem:[#allocation83_spill] sm:$0xff]  ;;  %v7644_v39 = vld [vmem:[#allocation57_spill] sm:$0xff] }
 0x3c6   :  { %3777 = vtanh.f32 %v2026_v61  ;;  %v7641_v61 = vld [vmem:[#allocation87_spill] sm:$0xff] }
 0x3c7   :  { %v1857_v41 = vsel %vm1856_vm5, %v3774_v34, %v1853_v37  ;;  %v7634_v34 = vld [vmem:[#allocation63_spill] sm:$0xff]  ;;  %v7643_v37 = vld [vmem:[#allocation50_spill] sm:$0xff] }
 0x3c8   :  { %v1862_v1 = vsel %vm1859_vm7, %v1861_v9, %v1857_v41  ;;  %v7645_v9 = vld [vmem:[#allocation35_spill] sm:$0xff]  ;;  %v7646_v41 = vld [vmem:[#allocation28_spill] sm:$0xff] }
 0x3c9   :  { %v3776_v63 = vpop.eup %3775  ;;  %v1867_v32 = vsub.f32 1.0, %v1862_v1  ;;  %v1869_v30 = vmul.f32 %v1862_v1, %v5631_v49  ;;  %v7623_v49 = vld [vmem:[#allocation32_spill] sm:$0xff]  ;;  %v7648_v1 = vld [vmem:[#allocation75_spill] sm:$0xff] }
 0x3cb   :  { %v1868_v38 = vmul.f32 %v3776_v63, %v1867_v32  ;;  %v7649_v63 = vld [vmem:[#allocation82_spill] sm:$0xff]  ;;  %v7650_v32 = vld [vmem:[#allocation56_spill] sm:$0xff] }
 0x3cc   :  { %v3778_v46 = vpop.eup %3777 }
 0x3cd   :  { %v2029_v23 = vmul.f32 %v3778_v46, %v2028_v58  ;;  %v6071_v14 = vadd.f32 %v1869_v30, %v1868_v38  ;;  %v7651_v58 = vld [vmem:[#allocation36_spill] sm:$0xff]  ;;  %v7653_v30 = vld [vmem:[#allocation54_spill] sm:$0xff] }
 0x3ce   :  { %v7652_v38 = vld [vmem:[#allocation48_spill] sm:$0xff]  ;;  %v7654_v46 = vld [vmem:[#allocation42_spill] sm:$0xff] }
 0x3cf   :  { %v6073_v60 = vadd.f32 %v2030_v0, %v2029_v23  ;;  %2206 = vmatmul.f32.vlgmr.msra.gmra.mxu2 %v6071_v14  ;;  %v7655_v23 = vld [vmem:[#allocation93_spill] sm:$0xff]  ;;  %v7656_v0 = vld [vmem:[#allocation55_spill] sm:$0xff] }
 0x3d0   :  { %2548 = vmatpush.msra.mxu2 %v5716_v22  ;;  %v7626_v22 = vld [vmem:[#allocation88_spill] sm:$0xff] }
 0x3d1   :  { %2098 = vmatmul.f32.vlgmr.msrb.gmra.mxu3 %v6073_v60  ;;  %2118 = vmatmul.f32.vlgmr.msra.gmra.mxu0 %v6073_v60 }
 0x3d2   :  { %2138 = vmatmul.f32.vlgmr.msra.gmra.mxu1 %v6073_v60  ;;  %2387 = vmatpush.msrb.mxu3 %v5641_v2  ;;  %v7625_v2 = vld [vmem:[#allocation25_spill] sm:$0xff] }
 0x3d3   :  { %2508 = vmatpush.msra.mxu0 %v5697_v55  ;;  %2528 = vmatpush.msra.mxu1 %v5714_v35  ;;  %v7630_v35 = vld [vmem:[#allocation27_spill] sm:$0xff]  ;;  %v7631_v55 = vld [vmem:[#allocation46_spill] sm:$0xff] }
 0x3d4   :  { %2388 = vmatpush.msrb.mxu3 %v5647_v27  ;;  %2549 = vmatpush.msra.mxu2 %v5728_v11  ;;  %v7627_v27 = vld [vmem:[#allocation69_spill] sm:$0xff] }
 0x3d5   :  { %2509 = vmatpush.msra.mxu0 %v5699_v7  ;;  %2529 = vmatpush.msra.mxu1 %v5726_v29  ;;  %v7628_v29 = vld [vmem:[#allocation30_spill] sm:$0xff]  ;;  %v7632_v7 = vld [vmem:[#allocation47_spill] sm:$0xff]  ;;  %v7633_v11 = vld [vmem:[#allocation33_spill] sm:$0xff] }
 0x3d6   :  { %2389 = vmatpush.msrb.mxu3 %v5650_v44  ;;  %2550 = vmatpush.msra.mxu2 %v7623_v49  ;;  %v7629_v44 = vld [vmem:[#allocation92_spill] sm:$0xff]  ;;  %v7657_v49 = vld [vmem:[#allocation38_spill] sm:$0xff] }
 0x3d7   :  { %2383 = vmatmul.f32.vlgmr.msrb.gmra.mxu2 %v6073_v60  ;;  %2510 = vmatpush.msra.mxu0 %v7624_v28  ;;  %v7658_v28 = vld [vmem:[#allocation76_spill] sm:$0xff] }
 0x3d8   :  { %2390 = vmatpush.msrb.mxu3 %v7625_v2  ;;  %2530 = vmatpush.msra.mxu1 %v7626_v22  ;;  %v7659_v2 = vld [vmem:[#allocation39_spill] sm:$0xff] }
 0x3d9   :  { %2226 = vmatmul.f32.vlgmr.msra.gmra.mxu3 %v6071_v14  ;;  %2246 = vmatmul.f32.vlgmr.msrb.gmra.mxu0 %v6071_v14  ;;  %v7660_v22 = vld [vmem:[#allocation91_spill] sm:$0xff] }
 0x3da   :  { %2363 = vmatmul.f32.vlgmr.msrb.gmra.mxu1 %v6073_v60  ;;  %2391 = vmatpush.msrb.mxu3 %v7627_v27  ;;  %v7661_v27 = vld [vmem:[#allocation97_spill] sm:$0xff] }
 0x3db   :  { %2511 = vmatpush.msra.mxu0 %v7628_v29  ;;  %2531 = vmatpush.msra.mxu1 %v7629_v44  ;;  %v7662_v29 = vld [vmem:[#allocation31_spill] sm:$0xff]  ;;  %v7663_v44 = vld [vmem:[#allocation41_spill] sm:$0xff] }
 0x3dc   :  { %2392 = vmatpush.msrb.mxu3 %v7630_v35  ;;  %2551 = vmatpush.msra.mxu2 %v7631_v55  ;;  %v7664_v35 = vld [vmem:[#allocation52_spill] sm:$0xff]  ;;  %v7665_v55 = vld [vmem:[#allocation71_spill] sm:$0xff] }
 0x3dd   :  { %2512 = vmatpush.msra.mxu0 %v7632_v7  ;;  %2532 = vmatpush.msra.mxu1 %v7633_v11  ;;  %v7666_v7 = vld [vmem:[#allocation58_spill] sm:$0xff]  ;;  %v7667_v11 = vld [vmem:[#allocation53_spill] sm:$0xff] }
 0x3de   :  { %2393 = vmatpush.msrb.mxu3 %v7634_v34  ;;  %2552 = vmatpush.msra.mxu2 %v7635_v48  ;;  %v7668_v34 = vld [vmem:[#allocation90_spill] sm:$0xff] }
 0x3df   :  { %2513 = vmatpush.msra.mxu0 %v7636_v16  ;;  %2533 = vmatpush.msra.mxu1 %v7637_v42  ;;  %v7669_v48 = vld [vmem:[#allocation98_spill] sm:$0xff]  ;;  %v7670_v16 = vld [vmem:[#allocation68_spill] sm:$0xff]  ;;  %v7671_v42 = vld [vmem:[#allocation77_spill] sm:$0xff] }
 0x3e0   :  { %2394 = vmatpush.msrb.mxu3 %v7638_v53  ;;  %2553 = vmatpush.msra.mxu2 %v7639_v21  ;;  %v7672_v53 = vld [vmem:[#allocation95_spill] sm:$0xff]  ;;  %v7673_v21 = vld [vmem:[#allocation60_spill] sm:$0xff] }
 0x3e1   :  { %2514 = vmatpush.msra.mxu0 %v7640_v26  ;;  %2534 = vmatpush.msra.mxu1 %v7641_v61  ;;  %v7674_v26 = vld [vmem:[#allocation81_spill] sm:$0xff]  ;;  %v7675_v61 = vld [vmem:[#allocation62_spill] sm:$0xff] }
 0x3e2   :  { %2395 = vmatpush.msrb.mxu3 %v7642_v56  ;;  %2554 = vmatpush.msra.mxu2 %v7643_v37  ;;  %v7676_v56 = vld [vmem:[#allocation84_spill] sm:$0xff]  ;;  %v7677_v37 = vld [vmem:[#allocation45_spill] sm:$0xff] }
 0x3e3   :  { %2515 = vmatpush.msra.mxu0 %v7644_v39  ;;  %2535 = vmatpush.msra.mxu1 %v7645_v9  ;;  %v7678_v39 = vld [vmem:[#allocation40_spill] sm:$0xff]  ;;  %v7679_v9 = vld [vmem:[#allocation102_spill] sm:$0xff] }
 0x3e4   :  { %2396 = vmatpush.msrb.mxu3 %v7646_v41  ;;  %2555 = vmatpush.msra.mxu2 %v7647_v40  ;;  %v7680_v41 = vld [vmem:[#allocation64_spill] sm:$0xff]  ;;  %v7681_v40 = vld [vmem:[#allocation99_spill] sm:$0xff] }
 0x3e5   :  { %2516 = vmatpush.msra.mxu0 %v7648_v1  ;;  %2536 = vmatpush.msra.mxu1 %v7649_v63  ;;  %v7683_v1 = vld [vmem:[#allocation85_spill] sm:$0xff]  ;;  %v7686_v63 = vld [vmem:[#allocation34_spill] sm:$0xff] }
 0x3e6   :  { %2397 = vmatpush.msrb.mxu3 %v7650_v32  ;;  %2556 = vmatpush.msra.mxu2 %v7651_v58  ;;  %v7701_v32 = vld [vmem:[#allocation65_spill] sm:$0xff] }
 0x3e7   :  { %2517 = vmatpush.msra.mxu0 %v7652_v38  ;;  %2537 = vmatpush.msra.mxu1 %v7653_v30  ;;  %v7702_v38 = vld [vmem:[#allocation21_spill] sm:$0xff] }
 0x3e8   :  { %2398 = vmatpush.msrb.mxu3 %v7654_v46  ;;  %2557 = vmatpush.msra.mxu2 %v7655_v23  ;;  %v6215_v46 = vld [vmem:[#allocation6 + $0x138] sm:$0xff]  ;;  %v6217_v23 = vld [vmem:[#allocation6 + $0x128] sm:$0xff] }
 0x3e9   :  { %2518 = vmatpush.msra.mxu0 %v7656_v0  ;;  %2538 = vmatpush.msra.mxu1 %v7657_v49 }
 0x3ea   :  { %2399 = vmatpush.msrb.mxu3 %v7658_v28  ;;  %2558 = vmatpush.msra.mxu2 %v7659_v2  ;;  %v2408_v28 = vld [vmem:[#allocation3 + $0x78] sm:$0xff]  ;;  %v6221_v2 = vld [vmem:[#allocation6 + $0x120] sm:$0xff] }
 0x3eb   :  { %2519 = vmatpush.msra.mxu0 %v7660_v22  ;;  %2539 = vmatpush.msra.mxu1 %v7661_v27  ;;  %v6223_v22 = vld [vmem:[#allocation6 + $0x110] sm:$0xff] }
 0x3ec   :  { %2400 = vmatpush.msrb.mxu3 %v7662_v29  ;;  %2559 = vmatpush.msra.mxu2 %v7663_v44  ;;  %v7703_v27 = vld [vmem:[#allocation72_spill] sm:$0xff] }
 0x3ed   :  { %2520 = vmatpush.msra.mxu0 %v7664_v35  ;;  %2540 = vmatpush.msra.mxu1 %v7665_v55  ;;  %v6228_v35 = vld [vmem:[#allocation6 + $0x108] sm:$0xff]  ;;  %v6230_v55 = vld [vmem:[#allocation6 + $0xf8] sm:$0xff] }
 0x3ee   :  { %2401 = vmatpush.msrb.mxu3 %v7666_v7  ;;  %2560 = vmatpush.msra.mxu2 %v7667_v11 }
 0x3ef   :  { %2521 = vmatpush.msra.mxu0 %v7668_v34  ;;  %2541 = vmatpush.msra.mxu1 %v7669_v48  ;;  %v2409_v48 = vld [vmem:[#allocation3 + $0x80] sm:$0xff] }
 0x3f0   :  { %2402 = vmatpush.msrb.mxu3 %v7670_v16  ;;  %2561 = vmatpush.msra.mxu2 %v7671_v42  ;;  %v7704_v16 = vld [vmem:[#allocation73_spill] sm:$0xff] }
 0x3f1   :  { %2403 = vmatmul.f32.vlgmr.msrb.gmra.mxu3 %v6073_v60  ;;  %2522 = vmatpush.msra.mxu0 %v7672_v53  ;;  %v6235_v53 = vld [vmem:[#allocation6 + $0xf0] sm:$0xff] }
 0x3f2   :  { %2616 = vmatpush.msra.mxu3 %v7673_v21  ;;  %2542 = vmatpush.msra.mxu1 %v7674_v26  ;;  %v6237_v21 = vld [vmem:[#allocation6 + $0xe0] sm:$0xff] }
 0x3f3   :  { %2523 = vmatpush.msra.mxu0 %v7675_v61  ;;  %2562 = vmatpush.msra.mxu2 %v5884_v15  ;;  %v7682_v15 = vld [vmem:[#allocation43_spill] sm:$0xff] }
 0x3f4   :  { %2617 = vmatpush.msra.mxu3 %v7676_v56  ;;  %2543 = vmatpush.msra.mxu1 %v5897_v8  ;;  %v7684_v8 = vld [vmem:[#allocation79_spill] sm:$0xff] }
 0x3f5   :  { %2636 = vmatpush.msrb.mxu0 %v7677_v37  ;;  %2563 = vmatpush.msra.mxu2 %v5899_v6  ;;  %v7685_v6 = vld [vmem:[#allocation101_spill] sm:$0xff]  ;;  %v7705_v56 = vld [vmem:[#allocation23_spill] sm:$0xff] }
 0x3f6   :  { %2618 = vmatpush.msra.mxu3 %v7678_v39  ;;  %2656 = vmatpush.msrb.mxu1 %v5905_v17  ;;  %v7687_v17 = vld [vmem:[#allocation74_spill] sm:$0xff] }
 0x3f7   :  { %2637 = vmatpush.msrb.mxu0 %v7679_v9  ;;  %v7706_v9 = vld [vmem:[#allocation67_spill] sm:$0xff] }
 0x3f8   :  { %2619 = vmatpush.msra.mxu3 %v7680_v41  ;;  %2657 = vmatpush.msrb.mxu1 %v5913_v62  ;;  %v7688_v62 = vld [vmem:[#allocation94_spill] sm:$0xff] }
 0x3f9   :  { %2638 = vmatpush.msrb.mxu0 %v7681_v40  ;;  %v6243_v40 = vld [vmem:[#allocation6 + $0xd8] sm:$0xff] }
 0x3fa   :  { %2620 = vmatpush.msra.mxu3 %v7682_v15  ;;  %2658 = vmatpush.msrb.mxu1 %v5923_v43  ;;  %v7689_v43 = vld [vmem:[#allocation86_spill] sm:$0xff]  ;;  %v6245_v15 = vld [vmem:[#allocation6 + $0xc8] sm:$0xff] }
 0x3fb   :  { %2639 = vmatpush.msrb.mxu0 %v7683_v1 }
 0x3fc   :  { %2621 = vmatpush.msra.mxu3 %v7684_v8  ;;  %2659 = vmatpush.msrb.mxu1 %v5931_v47  ;;  %v7693_v47 = vld [vmem:[#allocation61_spill] sm:$0xff] }
 0x3fd   :  { %2640 = vmatpush.msrb.mxu0 %v7685_v6  ;;  %v6249_v6 = vld [vmem:[#allocation6 + $0xc0] sm:$0xff] }
 0x3fe   :  { %2622 = vmatpush.msra.mxu3 %v7686_v63  ;;  %2660 = vmatpush.msrb.mxu1 %v5940_v45  ;;  %v7695_v45 = vld [vmem:[#allocation100_spill] sm:$0xff] }
 0x3ff   :  { %2641 = vmatpush.msrb.mxu0 %v5911_v13  ;;  %v7690_v13 = vld [vmem:[#allocation37_spill] sm:$0xff] }
 0x400   :  { %2623 = vmatpush.msra.mxu3 %v7687_v17  ;;  %2661 = vmatpush.msrb.mxu1 %v5948_v18  ;;  %v7697_v18 = vld [vmem:[#allocation103_spill] sm:$0xff]  ;;  %v6251_v63 = vld [vmem:[#allocation6 + $0xb0] sm:$0xff] }
 0x401   :  { %2642 = vmatpush.msrb.mxu0 %v5921_v20  ;;  %v7691_v20 = vld [vmem:[#allocation96_spill] sm:$0xff] }
 0x402   :  { %2624 = vmatpush.msra.mxu3 %v7688_v62  ;;  %2662 = vmatpush.msrb.mxu1 %v5956_v25  ;;  %v7699_v25 = vld [vmem:[#allocation105_spill] sm:$0xff] }
 0x403   :  { %2643 = vmatpush.msrb.mxu0 %v5929_v12  ;;  %v7692_v12 = vld [vmem:[#allocation66_spill] sm:$0xff] }
 0x404   :  { %2625 = vmatpush.msra.mxu3 %v7689_v43  ;;  %2663 = vmatpush.msrb.mxu1 %v5968_v31  ;;  %v6255_v43 = vld [vmem:[#allocation6 + $0xa8] sm:$0xff] }
 0x405   :  { %2644 = vmatpush.msrb.mxu0 %v5938_v4  ;;  %v7694_v4 = vld [vmem:[#allocation104_spill] sm:$0xff] }
 0x406   :  { %2626 = vmatpush.msra.mxu3 %v7690_v13  ;;  %2664 = vmatpush.msrb.mxu1 %v5976_v57  ;;  %v6201_v57 = vld [vmem:[#allocation6 + $0x168] sm:$0xff]  ;;  %v6257_v13 = vld [vmem:[#allocation6 + $0x98] sm:$0xff] }
 0x407   :  { %2645 = vmatpush.msrb.mxu0 %v5946_v50  ;;  %v7696_v50 = vld [vmem:[#allocation89_spill] sm:$0xff]  ;;  %2773 = vmatpush.msrb.mxu2 %v6201_v57 }
 0x408   :  { %2627 = vmatpush.msra.mxu3 %v7691_v20  ;;  %2665 = vmatpush.msrb.mxu1 %v5987_v59 }
 0x409   :  { %2646 = vmatpush.msrb.mxu0 %v5954_v24  ;;  %v7698_v24 = vld [vmem:[#allocation22_spill] sm:$0xff] }
 0x40a   :  { %2628 = vmatpush.msra.mxu3 %v7692_v12  ;;  %2666 = vmatpush.msrb.mxu1 %v5998_v52  ;;  %v6207_v52 = vld [vmem:[#allocation6 + $0x150] sm:$0xff] }
 0x40b   :  { %2647 = vmatpush.msrb.mxu0 %v5966_v54  ;;  %v7700_v54 = vld [vmem:[#allocation106_spill] sm:$0xff]  ;;  %2774 = vmatpush.msrb.mxu2 %v6207_v52  ;;  %v6261_v12 = vld [vmem:[#allocation6 + $0x90] sm:$0xff] }
 0x40c   :  { %2629 = vmatpush.msra.mxu3 %v7693_v47  ;;  %2667 = vmatpush.msrb.mxu1 %v6004_v19  ;;  %v6209_v19 = vld [vmem:[#allocation6 + $0x140] sm:$0xff] }
 0x40d   :  { %2648 = vmatpush.msrb.mxu0 %v5974_v10  ;;  %v6198_v10 = vld [vmem:[#allocation6 + $0x170] sm:$0xff]  ;;  %2775 = vmatpush.msrb.mxu2 %v6215_v46  ;;  %v6263_v47 = vld [vmem:[#allocation6 + $0x80] sm:$0xff] }
 0x40e   :  { %2630 = vmatpush.msra.mxu3 %v7694_v4  ;;  %2668 = vmatpush.msrb.mxu1 %v6013_v3 }
 0x40f   :  { %2649 = vmatpush.msrb.mxu0 %v5985_v5  ;;  %v6203_v5 = vld [vmem:[#allocation6 + $0x158] sm:$0xff]  ;;  %2776 = vmatpush.msrb.mxu2 %v6221_v2 }
 0x410   :  { %2631 = vmatpush.msra.mxu3 %v7695_v45  ;;  %2669 = vmatpush.msrb.mxu1 %v7697_v18  ;;  %v6271_v18 = vld [vmem:[#allocation6 + $0x68] sm:$0xff] }
 0x411   :  { %2650 = vmatpush.msrb.mxu0 %v7696_v50  ;;  %2777 = vmatpush.msrb.mxu2 %v6228_v35  ;;  %v6269_v50 = vld [vmem:[#allocation6 + $0x78] sm:$0xff] }
 0x412   :  { %2670 = vmatpush.msrb.mxu1 %v7699_v25  ;;  %2793 = vmatpush.msrb.mxu3 %v6198_v10  ;;  %v6277_v25 = vld [vmem:[#allocation6 + $0x50] sm:$0xff] }
 0x413   :  { %2651 = vmatpush.msrb.mxu0 %v7698_v24  ;;  %2778 = vmatpush.msrb.mxu2 %v6235_v53  ;;  %v6273_v24 = vld [vmem:[#allocation6 + $0x60] sm:$0xff] }
 0x414   :  { %2671 = vmatpush.msrb.mxu1 %v7700_v54  ;;  %2794 = vmatpush.msrb.mxu3 %v6203_v5 }
 0x415   :  { %2779 = vmatpush.msrb.mxu2 %v6243_v40 }
 0x416   :  { %2795 = vmatpush.msrb.mxu3 %v6209_v19 }
 0x417   :  { %2780 = vmatpush.msrb.mxu2 %v6249_v6 }
 0x418   :  { %2796 = vmatpush.msrb.mxu3 %v6217_v23 }
 0x419   :  { %2781 = vmatpush.msrb.mxu2 %v6255_v43 }
 0x41a   :  { %2797 = vmatpush.msrb.mxu3 %v6223_v22 }
 0x41b   :  { %2782 = vmatpush.msrb.mxu2 %v6261_v12 }
 0x41c   :  { %2798 = vmatpush.msrb.mxu3 %v6230_v55 }
 0x41d   :  { %2783 = vmatpush.msrb.mxu2 %v6269_v50 }
 0x41e   :  { %2799 = vmatpush.msrb.mxu3 %v6237_v21 }
 0x41f   :  { %2784 = vmatpush.msrb.mxu2 %v6273_v24 }
 0x420   :  { %2800 = vmatpush.msrb.mxu3 %v6245_v15 }
 0x422   :  { %2801 = vmatpush.msrb.mxu3 %v6251_v63 }
 0x424   :  { %2802 = vmatpush.msrb.mxu3 %v6257_v13 }
 0x426   :  { %2803 = vmatpush.msrb.mxu3 %v6263_v47 }
 0x428   :  { %2804 = vmatpush.msrb.mxu3 %v6271_v18 }
 0x42a   :  { %2805 = vmatpush.msrb.mxu3 %v6277_v25 }
 0x44e   :  { %v2119_v7 = vpop.f32.mrf.mxu0 }
 0x44f   :  { %v6196_v31 = vpop.f32.mrf.mxu1  ;;  %v2120_v37 = vadd.f32 %v2119_v7, %v7705_v56  ;;  %v6300_v7 = vld [vmem:[#allocation6 + $0x18] sm:$0xff] }
 0x450   :  { %7709 = vst [vmem:[#allocation25_spill] sm:$0xff] %v6300_v7 }
 0x452   :  { %v2207_v59 = vpop.f32.mrf.mxu2 }
 0x453   :  { %v2208_v58 = vadd.f32 %v2207_v59, %v7701_v32 }
 0x454   :  { %v2099_v3 = vpop.f32.mrf.mxu3 }
 0x455   :  { %v2100_v30 = vadd.f32 %v2099_v3, %v7702_v38  ;;  %v6284_v3 = vld [vmem:[#allocation6 + $0x48] sm:$0xff] }
 0x456   :  { %7707 = vst [vmem:[#allocation32_spill] sm:$0xff] %v6284_v3  ;;  %2785 = vmatpush.msrb.mxu2 %v6284_v3 }
 0x457   :  { %v2250_v0 = vadd.f32 %v2208_v58, %v2100_v30  ;;  %v2364_v49 = vpop.f32.mrf.mxu1  ;;  %v6286_v58 = vld [vmem:[#allocation6 + $0x38] sm:$0xff] }
 0x458   :  { %v2365_v29 = vadd.f32 %v2364_v49, %v7703_v27  ;;  %2806 = vmatpush.msrb.mxu3 %v6286_v58 }
 0x459   :  { %v3659_v44 = vmul.f32 -1.442695, %v2250_v0 }
 0x45a   :  { %v2411_v11 = vadd.f32 %v2408_v28, %v2365_v29  ;;  %v2384_v34 = vpop.f32.mrf.mxu2  ;;  %v6293_v28 = vld [vmem:[#allocation6 + $0x30] sm:$0xff]  ;;  %v6295_v29 = vld [vmem:[#allocation6 + $0x20] sm:$0xff] }
 0x45b   :  { %3779 = vpow2.f32 %v3659_v44  ;;  %v2385_v42 = vadd.f32 %v2384_v34, %v7704_v16  ;;  %7708 = vst [vmem:[#allocation80_spill] sm:$0xff] %v6293_v28  ;;  %2786 = vmatpush.msrb.mxu2 %v6293_v28  ;;  %2807 = vmatpush.msrb.mxu3 %v6295_v29 }
 0x45c   :  { %v3661_v26 = vmul.f32 -1.442695, %v2411_v11  ;;  %v2227_v61 = vpop.f32.mrf.mxu3  ;;  %v6302_v11 = vld [vmem:[#allocation6 + $0x8] sm:$0xff] }
 0x45d   :  { %v2412_v39 = vadd.f32 %v2409_v48, %v2385_v42  ;;  %v2228_v41 = vadd.f32 %v2227_v61, %v7706_v9  ;;  %7710 = vst [vmem:[#allocation88_spill] sm:$0xff] %v6302_v11  ;;  %v2247_v48 = vpop.f32.mrf.mxu0  ;;  %2787 = vmatpush.msrb.mxu2 %v6300_v7  ;;  %2808 = vmatpush.msrb.mxu3 %v6302_v11 }
 0x45e   :  { %3781 = vpow2.f32 %v3661_v26 }
 0x45f   :  { %v3662_v1 = vmul.f32 -1.442695, %v2412_v39  ;;  %v2251_v8 = vadd.f32 %v2228_v41, %v2120_v37  ;;  %v6307_v39 = vld [vmem:[#allocation6] sm:$0xff] }
 0x460   :  { %7711 = vst [vmem:[#allocation69_spill] sm:$0xff] %v6307_v39  ;;  %2788 = vmatpush.msrb.mxu2 %v6307_v39 }
 0x461   :  { %v3780_v17 = vpop.eup %3779  ;;  %3783 = vpow2.f32 %v3662_v1  ;;  %v3660_v62 = vmul.f32 -1.442695, %v2251_v8 }
 0x462   :  { %v2258_v20 = vadd.f32 1.0, %v3780_v17  ;;  %v2140_v17 = vadd.f32 %v6196_v31, %v7622_v51 }
 0x463   :  { %3785 = vpow2.f32 %v3660_v62  ;;  %v2248_v62 = vadd.f32 %v2247_v48, %v7542_v33 }
 0x464   :  { %v3782_v4 = vpop.eup %3781  ;;  %3787 = vrcp.f32 %v2258_v20  ;;  %v2269_v26 = vand.u32 2147483647, %v2258_v20  ;;  %v2271_v61 = vand.u32 2147483648, %v2258_v20  ;;  %vm2265_vm9 = vweird.f32 %v2258_v20 }
 0x465   :  { %v6267_v45 = vadd.f32 1.0, %v3782_v4 }
 0x466   :  { %vm2270_vm10 = vcmp.eq.f32.partialorder %v2269_v26, 8.507059e+37  ;;  %v2272_v7 = vor.u32 1.1754944e-38, %v2271_v61 }
 0x467   :  { %v3784_v54 = vpop.eup %3783  ;;  %3789 = vrcp.f32 %v6267_v45  ;;  %v2430_v1 = vand.u32 2147483647, %v6267_v45  ;;  %vm2426_vm12 = vweird.f32 %v6267_v45 }
 0x468   :  { %v6280_v59 = vadd.f32 1.0, %v3784_v54  ;;  %v2432_v54 = vand.u32 2147483648, %v6267_v45 }
 0x469   :  { %v3786_v30 = vpop.eup %3785  ;;  %vm6318_vm14 = vcmp.eq.f32.partialorder %v2430_v1, 8.507059e+37 }
 0x46a   :  { %v3788_v0 = vpop.eup %3787  ;;  %3791 = vrcp.f32 %v6280_v59  ;;  %v6289_v49 = vadd.f32 1.0, %v3786_v30  ;;  %v2433_v39 = vor.u32 1.1754944e-38, %v2432_v54  ;;  %vm2441_vm2 = vweird.f32 %v6280_v59 }
 0x46b   :  { %v2261_v44 = vmul.f32 %v3788_v0, %v2258_v20  ;;  %vm2266_vm8 = vweird.f32 %v3788_v0 }
 0x46c   :  { %3793 = vrcp.f32 %v6289_v49  ;;  %vm2267_vm11 = vmor %vm2265_vm9, %vm2266_vm8  ;;  %v2284_v3 = vand.u32 2147483647, %v6289_v49  ;;  %v2286_v1 = vand.u32 2147483648, %v6289_v49  ;;  %vm2280_vm4 = vweird.f32 %v6289_v49 }
 0x46d   :  { %v3790_v34 = vpop.eup %3789  ;;  %v2262_v42 = vsub.f32 1.0, %v2261_v44 }
 0x46e   :  { %v2422_v37 = vmul.f32 %v3790_v34, %v6267_v45  ;;  %vm2427_vm13 = vweird.f32 %v3790_v34  ;;  %vm2285_vm6 = vcmp.eq.f32.partialorder %v2284_v3, 8.507059e+37  ;;  %v6383_v45 = vld [vmem:[#allocation6 + $0x88] sm:$0xff] }
 0x46f   :  { %v2263_v41 = vmul.f32 %v3788_v0, %v2262_v42  ;;  %vm2428_vm15 = vmor %vm2426_vm12, %vm2427_vm13  ;;  %7723 = vst [vmem:[#allocation70_spill] sm:$0xff] %v6383_v45 }
 0x470   :  { %v3792_v8 = vpop.eup %3791  ;;  %v2423_v4 = vsub.f32 1.0, %v2422_v37 }
 0x471   :  { %v2264_v30 = vadd.f32 %v3788_v0, %v2263_v41  ;;  %v2437_v44 = vmul.f32 %v3792_v8, %v6280_v59  ;;  %vm2442_vm0 = vweird.f32 %v3792_v8 }
 0x472   :  { %v3794_v42 = vpop.eup %3793  ;;  %v2424_v28 = vmul.f32 %v3790_v34, %v2423_v4  ;;  %vm6331_vm3 = vmor %vm2441_vm2, %vm2442_vm0 }
 0x473   :  { %v2268_v31 = vsel %vm2267_vm11, %v3788_v0, %v2264_v30  ;;  %v2438_v51 = vsub.f32 1.0, %v2437_v44  ;;  %v2276_v48 = vmul.f32 %v3794_v42, %v6289_v49  ;;  %vm2281_vm1 = vweird.f32 %v3794_v42 }
 0x474   :  { %v2273_v41 = vsel %vm2270_vm10, %v2272_v7, %v2268_v31  ;;  %v2404_v20 = vpop.f32.mrf.mxu3  ;;  %v2425_v26 = vadd.f32 %v3790_v34, %v2424_v28  ;;  %v2410_v7 = vld [vmem:[#allocation3 + $0x88] sm:$0xff]  ;;  %vm2282_vm5 = vmor %vm2280_vm4, %vm2281_vm1 }
 0x475   :  { %v2290_v33 = vmul.f32 %v2273_v41, %v2248_v62  ;;  %v2439_v61 = vmul.f32 %v3792_v8, %v2438_v51  ;;  %v2277_v4 = vsub.f32 1.0, %v2276_v48  ;;  %v2405_v11 = vadd.f32 %v2404_v20, %v4586_v36 }
 0x476   :  { %v2429_v0 = vsel %vm2428_vm15, %v3790_v34, %v2425_v26  ;;  %v2447_v51 = vand.u32 2147483648, %v6280_v59  ;;  %v2445_v34 = vand.u32 2147483647, %v6280_v59 }
 0x477   :  { %v2291_v30 = vadd.f32 %v2290_v33, %v2140_v17  ;;  %v2434_v28 = vsel %vm6318_vm14, %v2433_v39, %v2429_v0  ;;  %v2440_v54 = vadd.f32 %v3792_v8, %v2439_v61  ;;  %v2278_v44 = vmul.f32 %v3794_v42, %v2277_v4 }
 0x478   :  { %v2451_v62 = vmul.f32 %v2434_v28, %v2405_v11  ;;  %v2287_v39 = vor.u32 1.1754944e-38, %v2286_v1  ;;  %v2448_v11 = vor.u32 1.1754944e-38, %v2447_v51  ;;  %vm2446_vm7 = vcmp.eq.f32.partialorder %v2445_v34, 8.507059e+37  ;;  %v6367_v28 = vld [vmem:[#allocation6 + $0x100] sm:$0xff]  ;;  %v6377_v51 = vld [vmem:[#allocation6 + $0xb8] sm:$0xff]  ;;  %v6386_v34 = vld [vmem:[#allocation6 + $0x70] sm:$0xff] }
 0x479   :  { %3795 = vtanh.f32 %v2291_v30  ;;  %v2279_v31 = vadd.f32 %v3794_v42, %v2278_v44  ;;  %v2444_v17 = vsel %vm6331_vm3, %v3792_v8, %v2440_v54  ;;  %v6347_v8 = vld [vmem:[#allocation6 + $0x178] sm:$0xff]  ;;  %7718 = vst [vmem:[#allocation27_spill] sm:$0xff] %v6367_v28  ;;  %v6371_v54 = vld [vmem:[#allocation6 + $0xe8] sm:$0xff]  ;;  %v6374_v44 = vld [vmem:[#allocation6 + $0xd0] sm:$0xff] }
 0x47a   :  { %v2452_v33 = vadd.f32 %v2451_v62, %v2410_v7  ;;  %v2449_v20 = vsel %vm2446_vm7, %v2448_v11, %v2444_v17  ;;  %v6362_v7 = vld [vmem:[#allocation6 + $0x118] sm:$0xff]  ;;  %7719 = vst [vmem:[#allocation46_spill] sm:$0xff] %v6371_v54  ;;  %v6380_v62 = vld [vmem:[#allocation6 + $0xa0] sm:$0xff]  ;;  %v6398_v17 = vld [vmem:[#allocation6 + $0x10] sm:$0xff] }
 0x47b   :  { %v2283_v48 = vsel %vm2282_vm5, %v3794_v42, %v2279_v31  ;;  %v2454_v49 = vsub.f32 1.0, %v2449_v20  ;;  %v2456_v30 = vmul.f32 %v2449_v20, %v6073_v60  ;;  %v6351_v42 = vld [vmem:[#allocation6 + $0x160] sm:$0xff]  ;;  %v6358_v60 = vld [vmem:[#allocation6 + $0x130] sm:$0xff]  ;;  %7717 = vst [vmem:[#allocation92_spill] sm:$0xff] %v6362_v7  ;;  %v6389_v31 = vld [vmem:[#allocation6 + $0x58] sm:$0xff] }
 0x47c   :  { %3797 = vtanh.f32 %v2452_v33  ;;  %v2288_v37 = vsel %vm2285_vm6, %v2287_v39, %v2283_v48  ;;  %7716 = vst [vmem:[#allocation30_spill] sm:$0xff] %v6358_v60  ;;  %v6392_v33 = vld [vmem:[#allocation6 + $0x40] sm:$0xff]  ;;  %v6395_v39 = vld [vmem:[#allocation6 + $0x28] sm:$0xff] }
 0x47d   :  { %v2293_v41 = vsub.f32 1.0, %v2288_v37  ;;  %v2295_v61 = vmul.f32 %v2288_v37, %v6071_v14  ;;  %v6355_v14 = vld [vmem:[#allocation6 + $0x148] sm:$0xff]  ;;  %7720 = vst [vmem:[#allocation47_spill] sm:$0xff] %v6374_v44  ;;  %v6407_v37 = vld [vmem:[#allocation9 + $0x150] sm:$0xff]  ;;  %v6415_v20 = vld [vmem:[#allocation9 + $0x138] sm:$0xff] }
 0x47e   :  { %7721 = vst [vmem:[#allocation33_spill] sm:$0xff] %v6377_v51  ;;  %v6403_v48 = vld [vmem:[#allocation9 + $0x168] sm:$0xff] }
 0x47f   :  { %v3796_v26 = vpop.eup %3795  ;;  %7722 = vst [vmem:[#allocation63_spill] sm:$0xff] %v6380_v62  ;;  %v6405_v11 = vld [vmem:[#allocation11 + $0x168] sm:$0xff] }
 0x480   :  { %v2294_v59 = vmul.f32 %v3796_v26, %v2293_v41  ;;  %7724 = vst [vmem:[#allocation44_spill] sm:$0xff] %v6386_v34  ;;  %v6411_v41 = vld [vmem:[#allocation11 + $0x150] sm:$0xff]  ;;  %v6417_v26 = vld [vmem:[#allocation11 + $0x138] sm:$0xff] }
 0x481   :  { %7725 = vst [vmem:[#allocation49_spill] sm:$0xff] %v6389_v31 }
 0x482   :  { %v3798_v4 = vpop.eup %3797  ;;  %v6341_v0 = vadd.f32 %v2295_v61, %v2294_v59  ;;  %7726 = vst [vmem:[#allocation59_spill] sm:$0xff] %v6392_v33  ;;  %v6421_v59 = vld [vmem:[#allocation9 + $0x120] sm:$0xff] }
 0x483   :  { %v2455_v1 = vmul.f32 %v3798_v4, %v2454_v49  ;;  %7727 = vst [vmem:[#allocation83_spill] sm:$0xff] %v6395_v39  ;;  %v6423_v61 = vld [vmem:[#allocation11 + $0x120] sm:$0xff]  ;;  %v6427_v49 = vld [vmem:[#allocation9 + $0x108] sm:$0xff]  ;;  %v6429_v4 = vld [vmem:[#allocation9 + $0x170] sm:$0xff] }
 0x484   :  { %2632 = vmatmul.f32.vlgmr.msra.gmra.mxu3 %v6341_v0  ;;  %7728 = vst [vmem:[#allocation51_spill] sm:$0xff] %v6398_v17 }
 0x485   :  { %v6345_v3 = vadd.f32 %v2456_v30, %v2455_v1  ;;  %7729 = vst [vmem:[#allocation87_spill] sm:$0xff] %v6405_v11  ;;  %v6431_v1 = vld [vmem:[#allocation9 + $0x178] sm:$0xff]  ;;  %v6435_v30 = vld [vmem:[#allocation11 + $0x108] sm:$0xff] }
 0x486   :  { %7730 = vst [vmem:[#allocation29_spill] sm:$0xff] %v6411_v41  ;;  %2974 = vmatpush.msra.mxu3 %v6431_v1 }
 0x487   :  { %2524 = vmatmul.f32.vlgmr.msra.gmra.mxu0 %v6345_v3  ;;  %2544 = vmatmul.f32.vlgmr.msra.gmra.mxu1 %v6345_v3  ;;  %7731 = vst [vmem:[#allocation50_spill] sm:$0xff] %v6417_v26 }
 0x488   :  { %2564 = vmatmul.f32.vlgmr.msra.gmra.mxu2 %v6345_v3  ;;  %2813 = vmatpush.msra.mxu0 %v6347_v8  ;;  %7732 = vst [vmem:[#allocation57_spill] sm:$0xff] %v6421_v59 }
 0x489   :  { %2934 = vmatpush.msra.mxu1 %v6403_v48  ;;  %7733 = vst [vmem:[#allocation35_spill] sm:$0xff] %v6423_v61  ;;  %2954 = vmatpush.msra.mxu2 %v6429_v4 }
 0x48a   :  { %2814 = vmatpush.msra.mxu0 %v6351_v42  ;;  %7734 = vst [vmem:[#allocation28_spill] sm:$0xff] %v6427_v49 }
 0x48b   :  { %2935 = vmatpush.msra.mxu1 %v6407_v37  ;;  %7735 = vst [vmem:[#allocation78_spill] sm:$0xff] %v6435_v30 }
 0x48c   :  { %2815 = vmatpush.msra.mxu0 %v6355_v14  ;;  %2809 = vmatmul.f32.vlgmr.msrb.gmra.mxu3 %v6345_v3 }
 0x48d   :  { %2936 = vmatpush.msra.mxu1 %v6415_v20 }
 0x48e   :  { %2816 = vmatpush.msra.mxu0 %v6358_v60 }
 0x48f   :  { %2652 = vmatmul.f32.vlgmr.msrb.gmra.mxu0 %v6341_v0  ;;  %2672 = vmatmul.f32.vlgmr.msrb.gmra.mxu1 %v6341_v0 }
 0x490   :  { %2789 = vmatmul.f32.vlgmr.msrb.gmra.mxu2 %v6345_v3  ;;  %2817 = vmatpush.msra.mxu0 %v6362_v7  ;;  %v6579_v7 = vld [vmem:[#allocation11 + $0x158] sm:$0xff] }
 0x491   :  { %2937 = vmatpush.msra.mxu1 %v6421_v59  ;;  %v6555_v59 = vld [vmem:[#allocation11 + $0x18] sm:$0xff]  ;;  %7774 = vst [vmem:[#allocation34_spill] sm:$0xff] %v6579_v7 }
 0x492   :  { %2818 = vmatpush.msra.mxu0 %v6367_v28  ;;  %v6531_v28 = vld [vmem:[#allocation11 + $0x48] sm:$0xff]  ;;  %7766 = vst [vmem:[#allocation40_spill] sm:$0xff] %v6555_v59 }
 0x493   :  { %2938 = vmatpush.msra.mxu1 %v6427_v49  ;;  %v6519_v49 = vld [vmem:[#allocation11 + $0x60] sm:$0xff]  ;;  %7758 = vst [vmem:[#allocation68_spill] sm:$0xff] %v6531_v28 }
 0x494   :  { %2819 = vmatpush.msra.mxu0 %v6371_v54  ;;  %v6501_v54 = vld [vmem:[#allocation9 + $0xe0] sm:$0xff]  ;;  %7754 = vst [vmem:[#allocation58_spill] sm:$0xff] %v6519_v49 }
 0x495   :  { %7750 = vst [vmem:[#allocation31_spill] sm:$0xff] %v6501_v54 }
 0x496   :  { %2820 = vmatpush.msra.mxu0 %v6374_v44  ;;  %v6489_v44 = vld [vmem:[#allocation9 + $0xf8] sm:$0xff] }
 0x497   :  { %7747 = vst [vmem:[#allocation39_spill] sm:$0xff] %v6489_v44 }
 0x498   :  { %2821 = vmatpush.msra.mxu0 %v6377_v51  ;;  %v6477_v51 = vld [vmem:[#allocation9 + $0x110] sm:$0xff] }
 0x499   :  { %7744 = vst [vmem:[#allocation55_spill] sm:$0xff] %v6477_v51 }
 0x49a   :  { %2822 = vmatpush.msra.mxu0 %v6380_v62  ;;  %v6475_v62 = vld [vmem:[#allocation9 + $0xa8] sm:$0xff] }
 0x49b   :  { %7743 = vst [vmem:[#allocation93_spill] sm:$0xff] %v6475_v62 }
 0x49c   :  { %2823 = vmatpush.msra.mxu0 %v6383_v45  ;;  %v6471_v45 = vld [vmem:[#allocation11 + $0xc0] sm:$0xff] }
 0x49d   :  { %7742 = vst [vmem:[#allocation42_spill] sm:$0xff] %v6471_v45 }
 0x49e   :  { %2824 = vmatpush.msra.mxu0 %v6386_v34  ;;  %v6465_v34 = vld [vmem:[#allocation9 + $0x128] sm:$0xff] }
 0x49f   :  { %7741 = vst [vmem:[#allocation54_spill] sm:$0xff] %v6465_v34 }
 0x4a0   :  { %2825 = vmatpush.msra.mxu0 %v6389_v31  ;;  %v6463_v31 = vld [vmem:[#allocation9 + $0xc0] sm:$0xff] }
 0x4a1   :  { %7740 = vst [vmem:[#allocation48_spill] sm:$0xff] %v6463_v31 }
 0x4a2   :  { %2826 = vmatpush.msra.mxu0 %v6392_v33  ;;  %v6459_v33 = vld [vmem:[#allocation11 + $0xd8] sm:$0xff] }
 0x4a3   :  { %7739 = vst [vmem:[#allocation36_spill] sm:$0xff] %v6459_v33 }
 0x4a4   :  { %2827 = vmatpush.msra.mxu0 %v6395_v39  ;;  %v6453_v39 = vld [vmem:[#allocation9 + $0x140] sm:$0xff] }
 0x4a6   :  { %2828 = vmatpush.msra.mxu0 %v6398_v17  ;;  %v6451_v17 = vld [vmem:[#allocation9 + $0xd8] sm:$0xff] }
 0x4a7   :  { %2829 = vmatmul.f32.vlgmr.msra.gmra.mxu0 %v6345_v3  ;;  %7738 = vst [vmem:[#allocation56_spill] sm:$0xff] %v6451_v17 }
 0x4a8   :  { %3042 = vmatpush.msrb.mxu0 %v6405_v11  ;;  %v6447_v11 = vld [vmem:[#allocation11 + $0xf0] sm:$0xff] }
 0x4a9   :  { %7737 = vst [vmem:[#allocation82_spill] sm:$0xff] %v6447_v11 }
 0x4aa   :  { %3043 = vmatpush.msrb.mxu0 %v6411_v41  ;;  %v6441_v41 = vld [vmem:[#allocation9 + $0x158] sm:$0xff] }
 0x4ab   :  { %2955 = vmatpush.msra.mxu2 %v6441_v41 }
 0x4ac   :  { %3044 = vmatpush.msrb.mxu0 %v6417_v26  ;;  %v6439_v26 = vld [vmem:[#allocation9 + $0xf0] sm:$0xff] }
 0x4ad   :  { %7736 = vst [vmem:[#allocation75_spill] sm:$0xff] %v6439_v26  ;;  %2939 = vmatpush.msra.mxu1 %v6439_v26  ;;  %2956 = vmatpush.msra.mxu2 %v6453_v39  ;;  %v6495_v26 = vld [vmem:[#allocation11 + $0x90] sm:$0xff] }
 0x4ae   :  { %3045 = vmatpush.msrb.mxu0 %v6423_v61  ;;  %v6443_v61 = vld [vmem:[#allocation9 + $0x160] sm:$0xff]  ;;  %7748 = vst [vmem:[#allocation91_spill] sm:$0xff] %v6495_v26 }
 0x4af   :  { %2975 = vmatpush.msra.mxu3 %v6443_v61  ;;  %2940 = vmatpush.msra.mxu1 %v6451_v17  ;;  %v6483_v17 = vld [vmem:[#allocation11 + $0xa8] sm:$0xff] }
 0x4b0   :  { %3046 = vmatpush.msrb.mxu0 %v6435_v30  ;;  %v6455_v30 = vld [vmem:[#allocation9 + $0x148] sm:$0xff]  ;;  %2957 = vmatpush.msra.mxu2 %v6465_v34  ;;  %7745 = vst [vmem:[#allocation38_spill] sm:$0xff] %v6483_v17  ;;  %v6543_v34 = vld [vmem:[#allocation11 + $0x30] sm:$0xff] }
 0x4b1   :  { %2976 = vmatpush.msra.mxu3 %v6455_v30  ;;  %2941 = vmatpush.msra.mxu1 %v6463_v31  ;;  %v6487_v31 = vld [vmem:[#allocation9 + $0x90] sm:$0xff]  ;;  %7762 = vst [vmem:[#allocation81_spill] sm:$0xff] %v6543_v34 }
 0x4b2   :  { %3047 = vmatpush.msrb.mxu0 %v6447_v11  ;;  %v6467_v11 = vld [vmem:[#allocation9 + $0x130] sm:$0xff]  ;;  %2958 = vmatpush.msra.mxu2 %v6477_v51  ;;  %7746 = vst [vmem:[#allocation76_spill] sm:$0xff] %v6487_v31  ;;  %v6507_v51 = vld [vmem:[#allocation11 + $0x78] sm:$0xff] }
 0x4b3   :  { %2977 = vmatpush.msra.mxu3 %v6467_v11  ;;  %2942 = vmatpush.msra.mxu1 %v6475_v62  ;;  %v6499_v62 = vld [vmem:[#allocation9 + $0x78] sm:$0xff]  ;;  %7751 = vst [vmem:[#allocation41_spill] sm:$0xff] %v6507_v51 }
 0x4b4   :  { %3048 = vmatpush.msrb.mxu0 %v6459_v33  ;;  %v6479_v33 = vld [vmem:[#allocation9 + $0x118] sm:$0xff]  ;;  %2959 = vmatpush.msra.mxu2 %v6489_v44  ;;  %7749 = vst [vmem:[#allocation97_spill] sm:$0xff] %v6499_v62  ;;  %v6513_v44 = vld [vmem:[#allocation9 + $0xc8] sm:$0xff] }
 0x4b5   :  { %2978 = vmatpush.msra.mxu3 %v6479_v33  ;;  %2943 = vmatpush.msra.mxu1 %v6487_v31  ;;  %v6511_v31 = vld [vmem:[#allocation9 + $0x60] sm:$0xff]  ;;  %7753 = vst [vmem:[#allocation71_spill] sm:$0xff] %v6513_v44 }
 0x4b6   :  { %3049 = vmatpush.msrb.mxu0 %v6471_v45  ;;  %v6491_v45 = vld [vmem:[#allocation9 + $0x100] sm:$0xff]  ;;  %2960 = vmatpush.msra.mxu2 %v6501_v54  ;;  %7752 = vst [vmem:[#allocation52_spill] sm:$0xff] %v6511_v31  ;;  %v6525_v54 = vld [vmem:[#allocation9 + $0xb0] sm:$0xff] }
 0x4b7   :  { %2979 = vmatpush.msra.mxu3 %v6491_v45  ;;  %2944 = vmatpush.msra.mxu1 %v6499_v62  ;;  %v6523_v62 = vld [vmem:[#allocation9 + $0x48] sm:$0xff]  ;;  %7756 = vst [vmem:[#allocation90_spill] sm:$0xff] %v6525_v54 }
 0x4b8   :  { %3050 = vmatpush.msrb.mxu0 %v6483_v17  ;;  %v6503_v17 = vld [vmem:[#allocation9 + $0xe8] sm:$0xff]  ;;  %2961 = vmatpush.msra.mxu2 %v6513_v44  ;;  %7755 = vst [vmem:[#allocation53_spill] sm:$0xff] %v6523_v62  ;;  %v6537_v44 = vld [vmem:[#allocation9 + $0x98] sm:$0xff] }
 0x4b9   :  { %2980 = vmatpush.msra.mxu3 %v6503_v17  ;;  %2945 = vmatpush.msra.mxu1 %v6511_v31  ;;  %v6535_v31 = vld [vmem:[#allocation9 + $0x30] sm:$0xff]  ;;  %7760 = vst [vmem:[#allocation95_spill] sm:$0xff] %v6537_v44 }
 0x4ba   :  { %3051 = vmatpush.msrb.mxu0 %v6495_v26  ;;  %v6515_v26 = vld [vmem:[#allocation9 + $0xd0] sm:$0xff]  ;;  %2962 = vmatpush.msra.mxu2 %v6525_v54  ;;  %7759 = vst [vmem:[#allocation77_spill] sm:$0xff] %v6535_v31  ;;  %v6549_v54 = vld [vmem:[#allocation9 + $0x80] sm:$0xff] }
 0x4bb   :  { %2981 = vmatpush.msra.mxu3 %v6515_v26  ;;  %2946 = vmatpush.msra.mxu1 %v6523_v62  ;;  %v6547_v62 = vld [vmem:[#allocation9 + $0x18] sm:$0xff]  ;;  %7764 = vst [vmem:[#allocation84_spill] sm:$0xff] %v6549_v54 }
 0x4bc   :  { %3052 = vmatpush.msrb.mxu0 %v6507_v51  ;;  %v6527_v51 = vld [vmem:[#allocation9 + $0xb8] sm:$0xff]  ;;  %2963 = vmatpush.msra.mxu2 %v6537_v44  ;;  %7763 = vst [vmem:[#allocation62_spill] sm:$0xff] %v6547_v62  ;;  %v6561_v44 = vld [vmem:[#allocation9 + $0x68] sm:$0xff] }
 0x4bd   :  { %7757 = vst [vmem:[#allocation98_spill] sm:$0xff] %v6527_v51  ;;  %2982 = vmatpush.msra.mxu3 %v6527_v51  ;;  %2947 = vmatpush.msra.mxu1 %v6535_v31  ;;  %v6559_v31 = vld [vmem:[#allocation9] sm:$0xff] }
 0x4be   :  { %3053 = vmatpush.msrb.mxu0 %v6519_v49  ;;  %v6539_v49 = vld [vmem:[#allocation9 + $0xa0] sm:$0xff]  ;;  %2964 = vmatpush.msra.mxu2 %v6549_v54  ;;  %7767 = vst [vmem:[#allocation102_spill] sm:$0xff] %v6559_v31  ;;  %v6569_v54 = vld [vmem:[#allocation11 + $0x170] sm:$0xff] }
 0x4bf   :  { %7761 = vst [vmem:[#allocation60_spill] sm:$0xff] %v6539_v49  ;;  %2983 = vmatpush.msra.mxu3 %v6539_v49  ;;  %2948 = vmatpush.msra.mxu1 %v6547_v62  ;;  %v6567_v62 = vld [vmem:[#allocation11] sm:$0xff] }
 0x4c0   :  { %3054 = vmatpush.msrb.mxu0 %v6531_v28  ;;  %v6551_v28 = vld [vmem:[#allocation9 + $0x88] sm:$0xff]  ;;  %7768 = vst [vmem:[#allocation64_spill] sm:$0xff] %v6561_v44  ;;  %2965 = vmatpush.msra.mxu2 %v6561_v44  ;;  %v6583_v44 = vld [vmem:[#allocation9 + $0x38] sm:$0xff] }
 0x4c1   :  { %7765 = vst [vmem:[#allocation45_spill] sm:$0xff] %v6551_v28  ;;  %2984 = vmatpush.msra.mxu3 %v6551_v28  ;;  %2949 = vmatpush.msra.mxu1 %v6559_v31  ;;  %v6575_v28 = vld [vmem:[#allocation9 + $0x58] sm:$0xff] }
 0x4c2   :  { %3055 = vmatpush.msrb.mxu0 %v6543_v34  ;;  %v6563_v34 = vld [vmem:[#allocation9 + $0x70] sm:$0xff]  ;;  %7770 = vst [vmem:[#allocation43_spill] sm:$0xff] %v6567_v62 }
 0x4c3   :  { %7769 = vst [vmem:[#allocation99_spill] sm:$0xff] %v6563_v34  ;;  %2985 = vmatpush.msra.mxu3 %v6563_v34  ;;  %3062 = vmatpush.msrb.mxu1 %v6569_v54  ;;  %v6585_v34 = vld [vmem:[#allocation9 + $0x40] sm:$0xff] }
 0x4c4   :  { %3056 = vmatpush.msrb.mxu0 %v6555_v59  ;;  %7771 = vst [vmem:[#allocation85_spill] sm:$0xff] %v6569_v54  ;;  %v6573_v59 = vld [vmem:[#allocation9 + $0x50] sm:$0xff]  ;;  %v6595_v54 = vld [vmem:[#allocation9 + $0x20] sm:$0xff] }
 0x4c5   :  { %7772 = vst [vmem:[#allocation79_spill] sm:$0xff] %v6573_v59  ;;  %2966 = vmatpush.msra.mxu2 %v6573_v59  ;;  %2986 = vmatpush.msra.mxu3 %v6575_v28  ;;  %v6597_v59 = vld [vmem:[#allocation9 + $0x28] sm:$0xff] }
 0x4c6   :  { %3057 = vmatpush.msrb.mxu0 %v6567_v62  ;;  %7773 = vst [vmem:[#allocation101_spill] sm:$0xff] %v6575_v28  ;;  %3063 = vmatpush.msrb.mxu1 %v6579_v7 }
 0x4c7   :  { %7775 = vst [vmem:[#allocation74_spill] sm:$0xff] %v6583_v44  ;;  %2967 = vmatpush.msra.mxu2 %v6583_v44  ;;  %2987 = vmatpush.msra.mxu3 %v6585_v34  ;;  %v2835_v44 = vld [vmem:[#allocation3 + $0x98] sm:$0xff] }
 0x4c8   :  { %3219 = vmatpush.msra.mxu0 %v6198_v10  ;;  %v6591_v10 = vld [vmem:[#allocation11 + $0x140] sm:$0xff]  ;;  %7777 = vst [vmem:[#allocation86_spill] sm:$0xff] %v6595_v54 }
 0x4c9   :  { %7776 = vst [vmem:[#allocation94_spill] sm:$0xff] %v6591_v10  ;;  %3064 = vmatpush.msrb.mxu1 %v6591_v10  ;;  %2968 = vmatpush.msra.mxu2 %v6595_v54 }
 0x4ca   :  { %3220 = vmatpush.msra.mxu0 %v6203_v5  ;;  %2988 = vmatpush.msra.mxu3 %v6597_v59  ;;  %v6607_v5 = vld [vmem:[#allocation9 + $0x8] sm:$0xff] }
 0x4cb   :  { %2969 = vmatpush.msra.mxu2 %v6607_v5 }
 0x4cc   :  { %3221 = vmatpush.msra.mxu0 %v6209_v19  ;;  %v6615_v19 = vld [vmem:[#allocation11 + $0x178] sm:$0xff] }
 0x4cd   :  { %3082 = vmatpush.msrb.mxu2 %v6615_v19 }
 0x4ce   :  { %3222 = vmatpush.msra.mxu0 %v6217_v23  ;;  %v6625_v23 = vld [vmem:[#allocation11 + $0x160] sm:$0xff] }
 0x4cf   :  { %3083 = vmatpush.msrb.mxu2 %v6625_v23 }
 0x4d0   :  { %3223 = vmatpush.msra.mxu0 %v6223_v22  ;;  %v6642_v22 = vld [vmem:[#allocation11 + $0x130] sm:$0xff] }
 0x4d2   :  { %3224 = vmatpush.msra.mxu0 %v6230_v55 }
 0x4d4   :  { %3225 = vmatpush.msra.mxu0 %v6237_v21  ;;  %v6659_v21 = vld [vmem:[#allocation11 + $0x98] sm:$0xff] }
 0x4d6   :  { %3226 = vmatpush.msra.mxu0 %v6245_v15  ;;  %v6670_v15 = vld [vmem:[#allocation11 + $0xe8] sm:$0xff] }
 0x4d8   :  { %3227 = vmatpush.msra.mxu0 %v6251_v63  ;;  %v6680_v63 = vld [vmem:[#allocation11 + $0xd0] sm:$0xff] }
 0x4da   :  { %3228 = vmatpush.msra.mxu0 %v6257_v13  ;;  %v6689_v13 = vld [vmem:[#allocation11 + $0xb8] sm:$0xff] }
 0x4dc   :  { %3229 = vmatpush.msra.mxu0 %v6263_v47  ;;  %v6698_v47 = vld [vmem:[#allocation11 + $0x38] sm:$0xff] }
 0x4dd   :  { %7782 = vst [vmem:[#allocation104_spill] sm:$0xff] %v6698_v47 }
 0x4de   :  { %3230 = vmatpush.msra.mxu0 %v6271_v18  ;;  %v6707_v18 = vld [vmem:[#allocation11 + $0x20] sm:$0xff] }
 0x4df   :  { %7783 = vst [vmem:[#allocation100_spill] sm:$0xff] %v6707_v18 }
 0x4e0   :  { %3231 = vmatpush.msra.mxu0 %v6277_v25  ;;  %v6718_v25 = vld [vmem:[#allocation11 + $0x70] sm:$0xff] }
 0x4e1   :  { %7786 = vst [vmem:[#allocation22_spill] sm:$0xff] %v6718_v25 }
 0x4e2   :  { %3232 = vmatpush.msra.mxu0 %v6286_v58 }
 0x4e4   :  { %3233 = vmatpush.msra.mxu0 %v6295_v29  ;;  %v7788_v29 = vld [vmem:[#allocation24_spill] sm:$0xff] }
 0x504   :  { %v2525_v49 = vpop.f32.mrf.mxu0  ;;  %v2545_v28 = vpop.f32.mrf.mxu1 }
 0x505   :  { %v2526_v62 = vadd.f32 %v2525_v49, %v7702_v38  ;;  %v6609_v38 = vld [vmem:[#allocation9 + $0x10] sm:$0xff] }
 0x506   :  { %2989 = vmatpush.msra.mxu3 %v6609_v38 }
 0x507   :  { %v2633_v31 = vpop.f32.mrf.mxu3 }
 0x508   :  { %v2634_v60 = vadd.f32 %v2633_v31, %v7701_v32  ;;  %v6601_v31 = vld [vmem:[#allocation11 + $0x128] sm:$0xff]  ;;  %3199 = vmatpush.msrb.mxu3 %v6201_v57 }
 0x509   :  { %7778 = vst [vmem:[#allocation37_spill] sm:$0xff] %v6601_v31  ;;  %3065 = vmatpush.msrb.mxu1 %v6601_v31  ;;  %v6640_v57 = vld [vmem:[#allocation11 + $0xc8] sm:$0xff] }
 0x50a   :  { %v2676_v51 = vadd.f32 %v2634_v60, %v2526_v62  ;;  %v6613_v60 = vld [vmem:[#allocation11 + $0x110] sm:$0xff]  ;;  %v2546_v62 = vadd.f32 %v2545_v28, %v7705_v56  ;;  %v6634_v28 = vld [vmem:[#allocation11 + $0x148] sm:$0xff]  ;;  %3200 = vmatpush.msrb.mxu3 %v6207_v52 }
 0x50b   :  { %v6603_v49 = vpop.f32.mrf.mxu2  ;;  %3066 = vmatpush.msrb.mxu1 %v6613_v60  ;;  %3084 = vmatpush.msrb.mxu2 %v6634_v28 }
 0x50c   :  { %v3663_v32 = vmul.f32 -1.442695, %v2676_v51  ;;  %v2653_v7 = vpop.f32.mrf.mxu0  ;;  %v6623_v51 = vld [vmem:[#allocation11 + $0xf8] sm:$0xff]  ;;  %3201 = vmatpush.msrb.mxu3 %v6215_v46 }
 0x50d   :  { %v2654_v10 = vadd.f32 %v2653_v7, %v7706_v9  ;;  %3067 = vmatpush.msrb.mxu1 %v6623_v51  ;;  %3085 = vmatpush.msrb.mxu2 %v6642_v22 }
 0x50e   :  { %3799 = vpow2.f32 %v3663_v32  ;;  %v6632_v32 = vld [vmem:[#allocation11 + $0xe0] sm:$0xff]  ;;  %3202 = vmatpush.msrb.mxu3 %v6221_v2 }
 0x50f   :  { %v2677_v31 = vadd.f32 %v2654_v10, %v2546_v62  ;;  %v2810_v54 = vpop.f32.mrf.mxu3  ;;  %3068 = vmatpush.msrb.mxu1 %v6632_v32  ;;  %v2834_v62 = vld [vmem:[#allocation3 + $0x90] sm:$0xff]  ;;  %v6668_v2 = vld [vmem:[#allocation11 + $0x80] sm:$0xff] }
 0x510   :  { %v2811_v7 = vadd.f32 %v2810_v54, %v7704_v16  ;;  %3203 = vmatpush.msrb.mxu3 %v6228_v35  ;;  %7779 = vst [vmem:[#allocation96_spill] sm:$0xff] %v6668_v2  ;;  %v6678_v35 = vld [vmem:[#allocation11 + $0x68] sm:$0xff] }
 0x511   :  { %v3664_v9 = vmul.f32 -1.442695, %v2677_v31  ;;  %3069 = vmatpush.msrb.mxu1 %v6640_v57  ;;  %7780 = vst [vmem:[#allocation66_spill] sm:$0xff] %v6678_v35 }
 0x512   :  { %v2838_v10 = vadd.f32 %v2835_v44, %v2811_v7  ;;  %v6649_v44 = vld [vmem:[#allocation11 + $0xb0] sm:$0xff]  ;;  %v6651_v7 = vld [vmem:[#allocation11 + $0x118] sm:$0xff]  ;;  %3204 = vmatpush.msrb.mxu3 %v6235_v53 }
 0x513   :  { %3801 = vpow2.f32 %v3664_v9  ;;  %v2790_v54 = vpop.f32.mrf.mxu2  ;;  %3070 = vmatpush.msrb.mxu1 %v6649_v44  ;;  %3086 = vmatpush.msrb.mxu2 %v6651_v7  ;;  %v6661_v9 = vld [vmem:[#allocation11 + $0x100] sm:$0xff]  ;;  %v6687_v53 = vld [vmem:[#allocation11 + $0x50] sm:$0xff] }
 0x514   :  { %v3800_v31 = vpop.eup %3799  ;;  %v3666_v52 = vmul.f32 -1.442695, %v2838_v10  ;;  %v2791_v55 = vadd.f32 %v2790_v54, %v7703_v27  ;;  %3205 = vmatpush.msrb.mxu3 %v6243_v40  ;;  %7781 = vst [vmem:[#allocation61_spill] sm:$0xff] %v6687_v53 }
 0x515   :  { %v6653_v56 = vadd.f32 1.0, %v3800_v31  ;;  %3071 = vmatpush.msrb.mxu1 %v6659_v21  ;;  %3087 = vmatpush.msrb.mxu2 %v6661_v9 }
 0x516   :  { %3803 = vpow2.f32 %v3666_v52  ;;  %v2837_v46 = vadd.f32 %v2834_v62, %v2791_v55  ;;  %3206 = vmatpush.msrb.mxu3 %v6249_v6 }
 0x517   :  { %3805 = vrcp.f32 %v6653_v56  ;;  %3072 = vmatpush.msrb.mxu1 %v6668_v2  ;;  %3088 = vmatpush.msrb.mxu2 %v6670_v15  ;;  %vm2691_vm9 = vweird.f32 %v6653_v56 }
 0x518   :  { %v3665_v10 = vmul.f32 -1.442695, %v2837_v46  ;;  %v6700_v46 = vld [vmem:[#allocation11 + $0xa0] sm:$0xff]  ;;  %3207 = vmatpush.msrb.mxu3 %v6255_v43  ;;  %v6716_v43 = vld [vmem:[#allocation11 + $0x8] sm:$0xff] }
 0x519   :  { %v3802_v54 = vpop.eup %3801  ;;  %3073 = vmatpush.msrb.mxu1 %v6678_v35  ;;  %3089 = vmatpush.msrb.mxu2 %v6680_v63  ;;  %7785 = vst [vmem:[#allocation103_spill] sm:$0xff] %v6716_v43  ;;  %v7787_v35 = vld [vmem:[#allocation88_spill] sm:$0xff] }
 0x51a   :  { %v6674_v62 = vadd.f32 1.0, %v3802_v54  ;;  %3807 = vpow2.f32 %v3665_v10  ;;  %v6709_v54 = vld [vmem:[#allocation11 + $0x88] sm:$0xff]  ;;  %3208 = vmatpush.msrb.mxu3 %v6261_v12  ;;  %3234 = vmatpush.msra.mxu0 %v7787_v35 }
 0x51b   :  { %3074 = vmatpush.msrb.mxu1 %v6687_v53  ;;  %3090 = vmatpush.msrb.mxu2 %v6689_v13  ;;  %7784 = vst [vmem:[#allocation89_spill] sm:$0xff] %v6709_v54  ;;  %v2673_v53 = vpop.f32.mrf.mxu1 }
 0x51c   :  { %v3804_v31 = vpop.eup %3803  ;;  %3809 = vrcp.f32 %v6674_v62  ;;  %3209 = vmatpush.msrb.mxu3 %v6269_v50  ;;  %v6735_v50 = vld [vmem:[#allocation11 + $0x58] sm:$0xff]  ;;  %vm2706_vm13 = vweird.f32 %v6674_v62 }
 0x51d   :  { %v3806_v52 = vpop.eup %3805  ;;  %v6691_v55 = vadd.f32 1.0, %v3804_v31  ;;  %3075 = vmatpush.msrb.mxu1 %v6698_v47  ;;  %3091 = vmatpush.msrb.mxu2 %v6700_v46  ;;  %v2697_v31 = vand.u32 2147483648, %v6653_v56  ;;  %v2695_v47 = vand.u32 2147483647, %v6653_v56 }
 0x51e   :  { %v2687_v40 = vmul.f32 %v3806_v52, %v6653_v56  ;;  %vm2692_vm8 = vweird.f32 %v3806_v52  ;;  %3210 = vmatpush.msrb.mxu3 %v6273_v24  ;;  %v7790_v24 = vld [vmem:[#allocation26_spill] sm:$0xff] }
 0x51f   :  { %3811 = vrcp.f32 %v6691_v55  ;;  %3076 = vmatpush.msrb.mxu1 %v6707_v18  ;;  %3092 = vmatpush.msrb.mxu2 %v6709_v54  ;;  %vm2693_vm10 = vmor %vm2691_vm9, %vm2692_vm8  ;;  %v2698_v18 = vor.u32 1.1754944e-38, %v2697_v31  ;;  %vm2696_vm11 = vcmp.eq.f32.partialorder %v2695_v47, 8.507059e+37  ;;  %v6742_v31 = vld [vmem:[#allocation11 + $0x40] sm:$0xff]  ;;  %v2566_v35 = vadd.f32 %v6603_v49, %v7790_v24  ;;  %v7797_v24 = vld [vmem:[#allocation69_spill] sm:$0xff] }
 0x520   :  { %v3808_v10 = vpop.eup %3807  ;;  %v2688_v6 = vsub.f32 1.0, %v2687_v40  ;;  %vm2867_vm5 = vweird.f32 %v6691_v55 }
 0x521   :  { %v6712_v27 = vadd.f32 1.0, %v3808_v10  ;;  %3077 = vmatpush.msrb.mxu1 %v6716_v43  ;;  %3093 = vmatpush.msrb.mxu2 %v6718_v25  ;;  %v7789_v25 = vld [vmem:[#allocation32_spill] sm:$0xff] }
 0x522   :  { %v3810_v40 = vpop.eup %3809  ;;  %v2689_v16 = vmul.f32 %v3806_v52, %v2688_v6  ;;  %3211 = vmatpush.msrb.mxu3 %v7789_v25 }
 0x523   :  { %v2702_v10 = vmul.f32 %v3810_v40, %v6674_v62  ;;  %3813 = vrcp.f32 %v6712_v27  ;;  %3094 = vmatpush.msrb.mxu2 %v6735_v50  ;;  %vm2707_vm12 = vweird.f32 %v3810_v40  ;;  %vm2852_vm1 = vweird.f32 %v6712_v27 }
 0x524   :  { %v2690_v12 = vadd.f32 %v3806_v52, %v2689_v16  ;;  %v2674_v16 = vadd.f32 %v2673_v53, %v7788_v29  ;;  %v2712_v53 = vand.u32 2147483648, %v6674_v62  ;;  %vm6755_vm14 = vmor %vm2706_vm13, %vm2707_vm12 }
 0x525   :  { %v6730_v58 = vpop.eup %3811  ;;  %v2703_v6 = vsub.f32 1.0, %v2702_v10  ;;  %3095 = vmatpush.msrb.mxu2 %v6742_v31 }
 0x526   :  { %v2694_v54 = vsel %vm2693_vm10, %v3806_v52, %v2690_v12  ;;  %v2863_v43 = vmul.f32 %v6730_v58, %v6691_v55  ;;  %v6751_v12 = vld [vmem:[#allocation11 + $0x28] sm:$0xff]  ;;  %vm2868_vm3 = vweird.f32 %v6730_v58 }
 0x527   :  { %v2699_v56 = vsel %vm2696_vm11, %v2698_v18, %v2694_v54  ;;  %v2704_v10 = vmul.f32 %v3810_v40, %v2703_v6  ;;  %v2710_v18 = vand.u32 2147483647, %v6674_v62  ;;  %v7791_v54 = vld [vmem:[#allocation80_spill] sm:$0xff]  ;;  %7792 = vst [vmem:[#allocation105_spill] sm:$0xff] %v6751_v12  ;;  %3096 = vmatpush.msrb.mxu2 %v6751_v12  ;;  %v6763_v62 = vld [vmem:[#allocation11 + $0x10] sm:$0xff]  ;;  %vm2869_vm6 = vmor %vm2867_vm5, %vm2868_vm3 }
 0x528   :  { %v2716_v2 = vmul.f32 %v2699_v56, %v2674_v16  ;;  %3212 = vmatpush.msrb.mxu3 %v7791_v54  ;;  %v2864_v16 = vsub.f32 1.0, %v2863_v43  ;;  %7796 = vst [vmem:[#allocation106_spill] sm:$0xff] %v6763_v62  ;;  %v2856_v43 = vand.u32 2147483647, %v6712_v27 }
 0x529   :  { %v3814_v52 = vpop.eup %3813  ;;  %v2705_v47 = vadd.f32 %v3810_v40, %v2704_v10  ;;  %v7795_v10 = vld [vmem:[#allocation25_spill] sm:$0xff]  ;;  %3097 = vmatpush.msrb.mxu2 %v6763_v62  ;;  %vm2711_vm15 = vcmp.eq.f32.partialorder %v2710_v18, 8.507059e+37 }
 0x52a   :  { %v2717_v25 = vadd.f32 %v2716_v2, %v2566_v35  ;;  %v2848_v6 = vmul.f32 %v3814_v52, %v6712_v27  ;;  %3213 = vmatpush.msrb.mxu3 %v7795_v10  ;;  %v2713_v2 = vor.u32 1.1754944e-38, %v2712_v53  ;;  %v2858_v35 = vand.u32 2147483648, %v6712_v27 }
 0x52b   :  { %v2709_v56 = vsel %vm6755_vm14, %v3810_v40, %v2705_v47  ;;  %vm2853_vm0 = vweird.f32 %v3814_v52  ;;  %v2865_v40 = vmul.f32 %v6730_v58, %v2864_v16  ;;  %v2830_v47 = vpop.f32.mrf.mxu0  ;;  %vm2857_vm4 = vcmp.eq.f32.partialorder %v2856_v43, 8.507059e+37 }
 0x52c   :  { %3815 = vtanh.f32 %v2717_v25  ;;  %v2849_v54 = vsub.f32 1.0, %v2848_v6  ;;  %3214 = vmatpush.msrb.mxu3 %v7797_v24  ;;  %v2714_v49 = vsel %vm2711_vm15, %v2713_v2, %v2709_v56  ;;  %vm2854_vm2 = vmor %vm2852_vm1, %vm2853_vm0  ;;  %v2859_v53 = vor.u32 1.1754944e-38, %v2858_v35 }
 0x52d   :  { %v2719_v25 = vsub.f32 1.0, %v2714_v49  ;;  %v2831_v18 = vadd.f32 %v2830_v47, %v4586_v36  ;;  %v2866_v56 = vadd.f32 %v6730_v58, %v2865_v40  ;;  %v2721_v16 = vmul.f32 %v2714_v49, %v6341_v0 }
 0x52e   :  { %v2850_v29 = vmul.f32 %v3814_v52, %v2849_v54  ;;  %v2836_v54 = vld [vmem:[#allocation3 + $0xa0] sm:$0xff]  ;;  %v2871_v35 = vand.u32 2147483647, %v6691_v55 }
 0x530   :  { %v2851_v10 = vadd.f32 %v3814_v52, %v2850_v29  ;;  %v2873_v29 = vand.u32 2147483648, %v6691_v55  ;;  %vm2872_vm7 = vcmp.eq.f32.partialorder %v2871_v35, 8.507059e+37  ;;  %v7829_v35 = vld [vmem:[#allocation52_spill] sm:$0xff] }
 0x532   :  { %v3816_v6 = vpop.eup %3815  ;;  %v2855_v24 = vsel %vm2854_vm2, %v3814_v52, %v2851_v10  ;;  %v2870_v52 = vsel %vm2869_vm6, %v6730_v58, %v2866_v56  ;;  %v2874_v43 = vor.u32 1.1754944e-38, %v2873_v29  ;;  %v7816_v10 = vld [vmem:[#allocation33_spill] sm:$0xff]  ;;  %v7823_v56 = vld [vmem:[#allocation76_spill] sm:$0xff] }
 0x533   :  { %v2860_v62 = vsel %vm2857_vm4, %v2859_v53, %v2855_v24  ;;  %v2720_v2 = vmul.f32 %v3816_v6, %v2719_v25  ;;  %v7817_v53 = vld [vmem:[#allocation48_spill] sm:$0xff]  ;;  %v7818_v25 = vld [vmem:[#allocation71_spill] sm:$0xff]  ;;  %v7821_v24 = vld [vmem:[#allocation90_spill] sm:$0xff] }
 0x534   :  { %v2877_v27 = vmul.f32 %v2860_v62, %v2831_v18  ;;  %v2875_v0 = vsel %vm2872_vm7, %v2874_v43, %v2870_v52  ;;  %v7819_v6 = vld [vmem:[#allocation63_spill] sm:$0xff]  ;;  %v7820_v18 = vld [vmem:[#allocation93_spill] sm:$0xff] }
 0x535   :  { %v6778_v12 = vadd.f32 %v2721_v16, %v2720_v2  ;;  %v2880_v62 = vsub.f32 1.0, %v2875_v0  ;;  %v2882_v40 = vmul.f32 %v2875_v0, %v6345_v3  ;;  %v7798_v3 = vld [vmem:[#allocation98_spill] sm:$0xff]  ;;  %v7824_v2 = vld [vmem:[#allocation95_spill] sm:$0xff]  ;;  %v7825_v16 = vld [vmem:[#allocation44_spill] sm:$0xff] }
 0x536   :  { %v2878_v47 = vadd.f32 %v2877_v27, %v2836_v54  ;;  %v7822_v54 = vld [vmem:[#allocation70_spill] sm:$0xff]  ;;  %v7826_v29 = vld [vmem:[#allocation97_spill] sm:$0xff]  ;;  %v7833_v43 = vld [vmem:[#allocation79_spill] sm:$0xff] }
 0x537   :  { %3058 = vmatmul.f32.vlgmr.msrb.gmra.mxu0 %v6778_v12  ;;  %v7828_v27 = vld [vmem:[#allocation49_spill] sm:$0xff]  ;;  %v7834_v0 = vld [vmem:[#allocation83_spill] sm:$0xff] }
 0x538   :  { %3817 = vtanh.f32 %v2878_v47  ;;  %3400 = vmatpush.msrb.mxu0 %v6431_v1  ;;  %v7814_v1 = vld [vmem:[#allocation31_spill] sm:$0xff]  ;;  %v7830_v47 = vld [vmem:[#allocation64_spill] sm:$0xff]  ;;  %v7832_v52 = vld [vmem:[#allocation53_spill] sm:$0xff] }
 0x53a   :  { %3401 = vmatpush.msrb.mxu0 %v6443_v61  ;;  %v7812_v61 = vld [vmem:[#allocation47_spill] sm:$0xff] }
 0x53c   :  { %3402 = vmatpush.msrb.mxu0 %v6455_v30  ;;  %v7815_v30 = vld [vmem:[#allocation101_spill] sm:$0xff] }
 0x53e   :  { %v3818_v55 = vpop.eup %3817  ;;  %3403 = vmatpush.msrb.mxu0 %v6467_v11  ;;  %v7807_v11 = vld [vmem:[#allocation45_spill] sm:$0xff] }
 0x53f   :  { %v2881_v49 = vmul.f32 %v3818_v55, %v2880_v62  ;;  %v7836_v62 = vld [vmem:[#allocation74_spill] sm:$0xff]  ;;  %v7837_v55 = vld [vmem:[#allocation51_spill] sm:$0xff] }
 0x540   :  { %3404 = vmatpush.msrb.mxu0 %v6479_v33  ;;  %v7802_v33 = vld [vmem:[#allocation54_spill] sm:$0xff] }
 0x541   :  { %v6788_v58 = vadd.f32 %v2882_v40, %v2881_v49  ;;  %v7838_v49 = vld [vmem:[#allocation62_spill] sm:$0xff] }
 0x542   :  { %3405 = vmatpush.msrb.mxu0 %v6491_v45  ;;  %v7801_v45 = vld [vmem:[#allocation57_spill] sm:$0xff]  ;;  %v7839_v40 = vld [vmem:[#allocation86_spill] sm:$0xff] }
 0x543   :  { %2950 = vmatmul.f32.vlgmr.msra.gmra.mxu1 %v6788_v58  ;;  %2970 = vmatmul.f32.vlgmr.msra.gmra.mxu2 %v6788_v58 }
 0x544   :  { %2990 = vmatmul.f32.vlgmr.msra.gmra.mxu3 %v6788_v58  ;;  %3235 = vmatmul.f32.vlgmr.msra.gmra.mxu0 %v6788_v58 }
 0x545   :  { %3239 = vmatpush.msra.mxu1 %v6347_v8  ;;  %3360 = vmatpush.msra.mxu2 %v6403_v48  ;;  %v7799_v8 = vld [vmem:[#allocation30_spill] sm:$0xff]  ;;  %v7806_v48 = vld [vmem:[#allocation55_spill] sm:$0xff] }
 0x546   :  { %3380 = vmatpush.msra.mxu3 %v6429_v4  ;;  %3406 = vmatpush.msrb.mxu0 %v6503_v17  ;;  %v7804_v17 = vld [vmem:[#allocation27_spill] sm:$0xff]  ;;  %v7813_v4 = vld [vmem:[#allocation56_spill] sm:$0xff] }
 0x547   :  { %3240 = vmatpush.msra.mxu1 %v6351_v42  ;;  %3361 = vmatpush.msra.mxu2 %v6407_v37  ;;  %v7800_v42 = vld [vmem:[#allocation92_spill] sm:$0xff]  ;;  %v7808_v37 = vld [vmem:[#allocation46_spill] sm:$0xff] }
 0x548   :  { %3381 = vmatpush.msra.mxu3 %v6441_v41  ;;  %3407 = vmatpush.msrb.mxu0 %v6515_v26  ;;  %v7809_v41 = vld [vmem:[#allocation75_spill] sm:$0xff] }
 0x549   :  { %3241 = vmatpush.msra.mxu1 %v6355_v14  ;;  %3362 = vmatpush.msra.mxu2 %v6415_v20  ;;  %v7803_v14 = vld [vmem:[#allocation60_spill] sm:$0xff]  ;;  %v7810_v20 = vld [vmem:[#allocation39_spill] sm:$0xff] }
 0x54a   :  { %3382 = vmatpush.msra.mxu3 %v6453_v39  ;;  %3408 = vmatpush.msrb.mxu0 %v7798_v3  ;;  %v7805_v39 = vld [vmem:[#allocation28_spill] sm:$0xff]  ;;  %v7811_v26 = vld [vmem:[#allocation99_spill] sm:$0xff] }
 0x54b   :  { %3242 = vmatpush.msra.mxu1 %v7799_v8  ;;  %3098 = vmatmul.f32.vlgmr.msrb.gmra.mxu2 %v6778_v12  ;;  %v7840_v3 = vld [vmem:[#allocation87_spill] sm:$0xff]  ;;  %v7841_v8 = vld [vmem:[#allocation102_spill] sm:$0xff] }
 0x54c   :  { %3078 = vmatmul.f32.vlgmr.msrb.gmra.mxu1 %v6778_v12  ;;  %3215 = vmatmul.f32.vlgmr.msrb.gmra.mxu3 %v6788_v58 }
 0x54d   :  { %3243 = vmatpush.msra.mxu1 %v7800_v42  ;;  %3363 = vmatpush.msra.mxu2 %v7801_v45  ;;  %v7842_v42 = vld [vmem:[#allocation85_spill] sm:$0xff] }
 0x54e   :  { %3383 = vmatpush.msra.mxu3 %v7802_v33  ;;  %3409 = vmatpush.msrb.mxu0 %v7803_v14  ;;  %v7843_v45 = vld [vmem:[#allocation29_spill] sm:$0xff]  ;;  %v7844_v33 = vld [vmem:[#allocation34_spill] sm:$0xff] }
 0x54f   :  { %3244 = vmatpush.msra.mxu1 %v7804_v17  ;;  %3364 = vmatpush.msra.mxu2 %v7805_v39  ;;  %v7845_v14 = vld [vmem:[#allocation50_spill] sm:$0xff]  ;;  %v7847_v39 = vld [vmem:[#allocation35_spill] sm:$0xff] }
 0x550   :  { %3384 = vmatpush.msra.mxu3 %v7806_v48  ;;  %3410 = vmatpush.msrb.mxu0 %v7807_v11  ;;  %v7846_v17 = vld [vmem:[#allocation94_spill] sm:$0xff]  ;;  %v7848_v48 = vld [vmem:[#allocation37_spill] sm:$0xff]  ;;  %v7866_v11 = vld [vmem:[#allocation100_spill] sm:$0xff] }
 0x551   :  { %3245 = vmatpush.msra.mxu1 %v7808_v37  ;;  %3365 = vmatpush.msra.mxu2 %v7809_v41  ;;  %v7867_v37 = vld [vmem:[#allocation43_spill] sm:$0xff]  ;;  %v7868_v41 = vld [vmem:[#allocation105_spill] sm:$0xff] }
 0x552   :  { %3385 = vmatpush.msra.mxu3 %v7810_v20  ;;  %3411 = vmatpush.msrb.mxu0 %v7811_v26  ;;  %v7869_v20 = vld [vmem:[#allocation103_spill] sm:$0xff]  ;;  %v7870_v26 = vld [vmem:[#allocation106_spill] sm:$0xff] }
 0x553   :  { %3246 = vmatpush.msra.mxu1 %v7812_v61  ;;  %3366 = vmatpush.msra.mxu2 %v7813_v4 }
 0x554   :  { %3386 = vmatpush.msra.mxu3 %v7814_v1  ;;  %3412 = vmatpush.msrb.mxu0 %v7815_v30  ;;  %v7871_v1 = vld [vmem:[#allocation65_spill] sm:$0xff] }
 0x555   :  { %3247 = vmatpush.msra.mxu1 %v7816_v10  ;;  %3367 = vmatpush.msra.mxu2 %v7817_v53  ;;  %v7872_v30 = vld [vmem:[#allocation21_spill] sm:$0xff] }
 0x556   :  { %3387 = vmatpush.msra.mxu3 %v7818_v25  ;;  %3413 = vmatpush.msrb.mxu0 %v6585_v34  ;;  %v7827_v34 = vld [vmem:[#allocation84_spill] sm:$0xff]  ;;  %v7873_v25 = vld [vmem:[#allocation73_spill] sm:$0xff] }
 0x557   :  { %3248 = vmatpush.msra.mxu1 %v7819_v6  ;;  %3368 = vmatpush.msra.mxu2 %v7820_v18 }
 0x558   :  { %3388 = vmatpush.msra.mxu3 %v7821_v24  ;;  %3414 = vmatpush.msrb.mxu0 %v6597_v59  ;;  %v7831_v59 = vld [vmem:[#allocation59_spill] sm:$0xff] }
 0x559   :  { %3249 = vmatpush.msra.mxu1 %v7822_v54  ;;  %3369 = vmatpush.msra.mxu2 %v7823_v56 }
 0x55a   :  { %3389 = vmatpush.msra.mxu3 %v7824_v2  ;;  %3415 = vmatpush.msrb.mxu0 %v6609_v38  ;;  %v7835_v38 = vld [vmem:[#allocation77_spill] sm:$0xff] }
 0x55b   :  { %3250 = vmatpush.msra.mxu1 %v7825_v16  ;;  %3370 = vmatpush.msra.mxu2 %v7826_v29 }
 0x55c   :  { %3390 = vmatpush.msra.mxu3 %v7827_v34  ;;  %v7874_v34 = vld [vmem:[#allocation23_spill] sm:$0xff] }
 0x55d   :  { %3251 = vmatpush.msra.mxu1 %v7828_v27  ;;  %3371 = vmatpush.msra.mxu2 %v7829_v35  ;;  %v7875_v35 = vld [vmem:[#allocation67_spill] sm:$0xff] }
 0x55e   :  { %3391 = vmatpush.msra.mxu3 %v7830_v47 }
 0x55f   :  { %3252 = vmatpush.msra.mxu1 %v7831_v59  ;;  %3372 = vmatpush.msra.mxu2 %v7832_v52 }
 0x560   :  { %3392 = vmatpush.msra.mxu3 %v7833_v43 }
 0x561   :  { %3253 = vmatpush.msra.mxu1 %v7834_v0  ;;  %3373 = vmatpush.msra.mxu2 %v7835_v38 }
 0x562   :  { %3393 = vmatpush.msra.mxu3 %v7836_v62  ;;  %v3260_v62 = vld [vmem:[#allocation3 + $0xa8] sm:$0xff] }
 0x563   :  { %3254 = vmatpush.msra.mxu1 %v7837_v55  ;;  %3374 = vmatpush.msra.mxu2 %v7838_v49  ;;  %v7876_v55 = vld [vmem:[#allocation72_spill] sm:$0xff] }
 0x564   :  { %3255 = vmatmul.f32.vlgmr.msra.gmra.mxu1 %v6788_v58  ;;  %3394 = vmatpush.msra.mxu3 %v7839_v40 }
 0x565   :  { %3468 = vmatpush.msrb.mxu1 %v7840_v3  ;;  %3375 = vmatpush.msra.mxu2 %v7841_v8 }
 0x566   :  { %3395 = vmatpush.msra.mxu3 %v6607_v5  ;;  %v7849_v5 = vld [vmem:[#allocation78_spill] sm:$0xff] }
 0x567   :  { %3488 = vmatpush.msrb.mxu2 %v7842_v42  ;;  %3469 = vmatpush.msrb.mxu1 %v7843_v45 }
 0x568   :  { %3508 = vmatpush.msrb.mxu3 %v6615_v19  ;;  %v7850_v19 = vld [vmem:[#allocation82_spill] sm:$0xff] }
 0x569   :  { %3489 = vmatpush.msrb.mxu2 %v7844_v33  ;;  %3470 = vmatpush.msrb.mxu1 %v7845_v14 }
 0x56a   :  { %3509 = vmatpush.msrb.mxu3 %v6625_v23  ;;  %v7851_v23 = vld [vmem:[#allocation36_spill] sm:$0xff] }
 0x56b   :  { %3490 = vmatpush.msrb.mxu2 %v7846_v17  ;;  %3471 = vmatpush.msrb.mxu1 %v7847_v39 }
 0x56c   :  { %3510 = vmatpush.msrb.mxu3 %v6634_v28  ;;  %v7852_v28 = vld [vmem:[#allocation42_spill] sm:$0xff] }
 0x56d   :  { %3491 = vmatpush.msrb.mxu2 %v7848_v48  ;;  %3472 = vmatpush.msrb.mxu1 %v7849_v5 }
 0x56e   :  { %3511 = vmatpush.msrb.mxu3 %v6642_v22  ;;  %v7853_v22 = vld [vmem:[#allocation38_spill] sm:$0xff] }
 0x56f   :  { %3492 = vmatpush.msrb.mxu2 %v6613_v60  ;;  %3473 = vmatpush.msrb.mxu1 %v7850_v19  ;;  %v7854_v60 = vld [vmem:[#allocation91_spill] sm:$0xff] }
 0x570   :  { %3512 = vmatpush.msrb.mxu3 %v6651_v7  ;;  %v7857_v7 = vld [vmem:[#allocation58_spill] sm:$0xff] }
 0x571   :  { %3493 = vmatpush.msrb.mxu2 %v6623_v51  ;;  %3474 = vmatpush.msrb.mxu1 %v7851_v23  ;;  %v7855_v51 = vld [vmem:[#allocation41_spill] sm:$0xff] }
 0x572   :  { %3513 = vmatpush.msrb.mxu3 %v6661_v9  ;;  %v7859_v9 = vld [vmem:[#allocation66_spill] sm:$0xff] }
 0x573   :  { %3494 = vmatpush.msrb.mxu2 %v6632_v32  ;;  %3475 = vmatpush.msrb.mxu1 %v7852_v28  ;;  %v7856_v32 = vld [vmem:[#allocation96_spill] sm:$0xff] }
 0x574   :  { %3514 = vmatpush.msrb.mxu3 %v6670_v15  ;;  %v7860_v15 = vld [vmem:[#allocation68_spill] sm:$0xff] }
 0x575   :  { %3495 = vmatpush.msrb.mxu2 %v6640_v57  ;;  %3476 = vmatpush.msrb.mxu1 %v7853_v22  ;;  %v7858_v57 = vld [vmem:[#allocation89_spill] sm:$0xff] }
 0x576   :  { %3515 = vmatpush.msrb.mxu3 %v6680_v63  ;;  %v7862_v63 = vld [vmem:[#allocation61_spill] sm:$0xff] }
 0x577   :  { %3496 = vmatpush.msrb.mxu2 %v6649_v44  ;;  %3477 = vmatpush.msrb.mxu1 %v7854_v60  ;;  %v7861_v44 = vld [vmem:[#allocation22_spill] sm:$0xff] }
 0x578   :  { %3516 = vmatpush.msrb.mxu3 %v6689_v13  ;;  %v7863_v13 = vld [vmem:[#allocation81_spill] sm:$0xff] }
 0x579   :  { %3497 = vmatpush.msrb.mxu2 %v6659_v21  ;;  %3478 = vmatpush.msrb.mxu1 %v7855_v51  ;;  %v7864_v21 = vld [vmem:[#allocation104_spill] sm:$0xff] }
 0x57a   :  { %3517 = vmatpush.msrb.mxu3 %v6700_v46  ;;  %v7865_v46 = vld [vmem:[#allocation40_spill] sm:$0xff] }
 0x57b   :  { %3498 = vmatpush.msrb.mxu2 %v7856_v32  ;;  %3479 = vmatpush.msrb.mxu1 %v7857_v7  ;;  %v7877_v32 = vld [vmem:[#allocation24_spill] sm:$0xff] }
 0x57c   :  { %3518 = vmatpush.msrb.mxu3 %v7858_v57 }
 0x57d   :  { %3499 = vmatpush.msrb.mxu2 %v7859_v9  ;;  %3480 = vmatpush.msrb.mxu1 %v7860_v15 }
 0x57e   :  { %3519 = vmatpush.msrb.mxu3 %v7861_v44 }
 0x57f   :  { %3500 = vmatpush.msrb.mxu2 %v7862_v63  ;;  %3481 = vmatpush.msrb.mxu1 %v7863_v13  ;;  %v7878_v63 = vld [vmem:[#allocation26_spill] sm:$0xff] }
 0x580   :  { %3520 = vmatpush.msrb.mxu3 %v6735_v50 }
 0x581   :  { %3501 = vmatpush.msrb.mxu2 %v7864_v21  ;;  %3482 = vmatpush.msrb.mxu1 %v7865_v46 }
 0x582   :  { %3521 = vmatpush.msrb.mxu3 %v6742_v31  ;;  %v3261_v31 = vld [vmem:[#allocation3 + $0xb0] sm:$0xff] }
 0x583   :  { %3502 = vmatpush.msrb.mxu2 %v7866_v11  ;;  %3483 = vmatpush.msrb.mxu1 %v7867_v37 }
 0x584   :  { %3522 = vmatpush.msrb.mxu3 %v7868_v41 }
 0x585   :  { %3503 = vmatpush.msrb.mxu2 %v7869_v20 }
 0x586   :  { %3523 = vmatpush.msrb.mxu3 %v7870_v26 }
 0x5b4   :  { %v3059_v61 = vpop.f32.mrf.mxu0 }
 0x5b5   :  { %v3060_v50 = vadd.f32 %v3059_v61, %v7871_v1 }
 0x5c0   :  { %v2951_v4 = vpop.f32.mrf.mxu1 }
 0x5c1   :  { %v2952_v10 = vadd.f32 %v2951_v4, %v7872_v30  ;;  %v3236_v53 = vpop.f32.mrf.mxu0 }
 0x5c2   :  { %v3237_v6 = vadd.f32 %v3236_v53, %v7873_v25 }
 0x5c3   :  { %v3102_v18 = vadd.f32 %v3060_v50, %v2952_v10 }
 0x5c4   :  { %v3264_v54 = vadd.f32 %v3261_v31, %v3237_v6 }
 0x5c5   :  { %v3667_v24 = vmul.f32 -1.442695, %v3102_v18 }
 0x5c6   :  { %v2971_v56 = vpop.f32.mrf.mxu2  ;;  %v3670_v16 = vmul.f32 -1.442695, %v3264_v54 }
 0x5c7   :  { %3819 = vpow2.f32 %v3667_v24  ;;  %v2991_v2 = vpop.f32.mrf.mxu3  ;;  %v2972_v27 = vadd.f32 %v2971_v56, %v7874_v34 }
 0x5c8   :  { %3821 = vpow2.f32 %v3670_v16  ;;  %v2992_v13 = vadd.f32 %v2991_v2, %v7878_v63 }
 0x5c9   :  { %v3079_v29 = vpop.f32.mrf.mxu1 }
 0x5ca   :  { %v3080_v47 = vadd.f32 %v3079_v29, %v7875_v35 }
 0x5cc   :  { %v3103_v59 = vadd.f32 %v3080_v47, %v2972_v27 }
 0x5cd   :  { %v3820_v52 = vpop.eup %3819 }
 0x5ce   :  { %v3110_v43 = vadd.f32 1.0, %v3820_v52  ;;  %v3668_v0 = vmul.f32 -1.442695, %v3103_v59  ;;  %v3822_v40 = vpop.eup %3821  ;;  %v3099_v23 = vpop.f32.mrf.mxu2 }
 0x5cf   :  { %v3216_v38 = vpop.f32.mrf.mxu3  ;;  %v6911_v45 = vadd.f32 1.0, %v3822_v40  ;;  %v3100_v7 = vadd.f32 %v3099_v23, %v7877_v32  ;;  %v3594_v23 = vld [vmem:[#allocation14 + $0x70] sm:$0xff] }
 0x5d0   :  { %3823 = vrcp.f32 %v3110_v43  ;;  %v3217_v49 = vadd.f32 %v3216_v38, %v7876_v55  ;;  %v3123_v48 = vand.u32 2147483648, %v3110_v43  ;;  %v3121_v19 = vand.u32 2147483647, %v3110_v43 }
 0x5d1   :  { %3825 = vpow2.f32 %v3668_v0  ;;  %vm3117_vm9 = vweird.f32 %v3110_v43  ;;  %vm3293_vm5 = vweird.f32 %v6911_v45 }
 0x5d2   :  { %v3263_v3 = vadd.f32 %v3260_v62, %v3217_v49  ;;  %v3124_v60 = vor.u32 1.1754944e-38, %v3123_v48  ;;  %vm3122_vm11 = vcmp.eq.f32.partialorder %v3121_v19, 8.507059e+37  ;;  %v3262_v62 = vld [vmem:[#allocation3 + $0xb8] sm:$0xff] }
 0x5d4   :  { %v3669_v8 = vmul.f32 -1.442695, %v3263_v3 }
 0x5d6   :  { %v3824_v42 = vpop.eup %3823  ;;  %3827 = vpow2.f32 %v3669_v8  ;;  %v3299_v8 = vand.u32 2147483648, %v6911_v45 }
 0x5d7   :  { %v3113_v33 = vmul.f32 %v3824_v42, %v3110_v43  ;;  %v3826_v14 = vpop.eup %3825  ;;  %3829 = vrcp.f32 %v6911_v45  ;;  %vm3118_vm8 = vweird.f32 %v3824_v42 }
 0x5d8   :  { %v3111_v17 = vadd.f32 1.0, %v3826_v14  ;;  %vm3119_vm10 = vmor %vm3117_vm9, %vm3118_vm8 }
 0x5d9   :  { %v3114_v39 = vsub.f32 1.0, %v3113_v33  ;;  %v3300_v33 = vor.u32 1.1754944e-38, %v3299_v8 }
 0x5da   :  { %3831 = vrcp.f32 %v3111_v17  ;;  %v3138_v20 = vand.u32 2147483648, %v3111_v17  ;;  %v3136_v4 = vand.u32 2147483647, %v3111_v17  ;;  %vm3132_vm13 = vweird.f32 %v3111_v17 }
 0x5db   :  { %v3115_v5 = vmul.f32 %v3824_v42, %v3114_v39 }
 0x5dc   :  { %v3828_v28 = vpop.eup %3827  ;;  %v3139_v6 = vor.u32 1.1754944e-38, %v3138_v20  ;;  %vm3137_vm15 = vcmp.eq.f32.partialorder %v3136_v4, 8.507059e+37  ;;  %v3584_v20 = vld [vmem:[#allocation14 + $0x20] sm:$0xff] }
 0x5dd   :  { %v3116_v22 = vadd.f32 %v3824_v42, %v3115_v5  ;;  %v3271_v51 = vadd.f32 1.0, %v3828_v28  ;;  %v3830_v9 = vpop.eup %3829  ;;  %v3593_v28 = vld [vmem:[#allocation14 + $0x68] sm:$0xff] }
 0x5de   :  { %v3289_v37 = vmul.f32 %v3830_v9, %v6911_v45  ;;  %vm3294_vm4 = vweird.f32 %v3830_v9 }
 0x5df   :  { %v3120_v57 = vsel %vm3119_vm10, %v3824_v42, %v3116_v22  ;;  %3833 = vrcp.f32 %v3271_v51  ;;  %v3284_v31 = vand.u32 2147483648, %v3271_v51  ;;  %v3282_v56 = vand.u32 2147483647, %v3271_v51  ;;  %vm3295_vm6 = vmor %vm3293_vm5, %vm3294_vm4  ;;  %v3592_v22 = vld [vmem:[#allocation14 + $0x60] sm:$0xff] }
 0x5e0   :  { %v3125_v15 = vsel %vm3122_vm11, %v3124_v60, %v3120_v57  ;;  %v3832_v44 = vpop.eup %3831  ;;  %v3290_v10 = vsub.f32 1.0, %v3289_v37  ;;  %vm3278_vm1 = vweird.f32 %v3271_v51  ;;  %v3297_v42 = vand.u32 2147483647, %v6911_v45  ;;  %v3595_v45 = vld [vmem:[#allocation14 + $0x78] sm:$0xff]  ;;  %v3585_v37 = vld [vmem:[#allocation14 + $0x28] sm:$0xff] }
 0x5e1   :  { %v3142_v21 = vmul.f32 %v3125_v15, %v3100_v7  ;;  %v3128_v46 = vmul.f32 %v3832_v44, %v3111_v17  ;;  %vm3133_vm12 = vweird.f32 %v3832_v44  ;;  %v3256_v16 = vpop.f32.mrf.mxu1  ;;  %v3285_v59 = vor.u32 1.1754944e-38, %v3284_v31  ;;  %3600 = vmatpush.msra.mxu0 %v3595_v45  ;;  %v3591_v60 = vld [vmem:[#allocation14 + $0x58] sm:$0xff]  ;;  %v3589_v7 = vld [vmem:[#allocation14 + $0x48] sm:$0xff]  ;;  %v3580_v31 = vld [vmem:[#allocation14] sm:$0xff] }
 0x5e2   :  { %vm3134_vm14 = vmor %vm3132_vm13, %vm3133_vm12  ;;  %v3291_v27 = vmul.f32 %v3830_v9, %v3290_v10  ;;  %v3257_v0 = vadd.f32 %v3256_v16, %v4586_v36  ;;  %vm3283_vm3 = vcmp.eq.f32.partialorder %v3282_v56, 8.507059e+37  ;;  %vm3298_vm7 = vcmp.eq.f32.partialorder %v3297_v42, 8.507059e+37  ;;  %v3581_v10 = vld [vmem:[#allocation14 + $0x8] sm:$0xff]  ;;  %v3688_v45 = vld [vmem:[%s6948_s7] ss:$0 sm:$0xff] }
 0x5e3   :  { %v3143_v11 = vadd.f32 %v3142_v21, %v2992_v13  ;;  %v3129_v41 = vsub.f32 1.0, %v3128_v46  ;;  %3601 = vmatpush.msra.mxu0 %v3594_v23  ;;  %v3587_v13 = vld [vmem:[#allocation14 + $0x38] sm:$0xff]  ;;  %v3586_v46 = vld [vmem:[#allocation14 + $0x30] sm:$0xff] }
 0x5e4   :  { %v3292_v40 = vadd.f32 %v3830_v9, %v3291_v27 }
 0x5e5   :  { %3835 = vtanh.f32 %v3143_v11  ;;  %v3834_v26 = vpop.eup %3833  ;;  %v3130_v61 = vmul.f32 %v3832_v44, %v3129_v41  ;;  %3602 = vmatpush.msra.mxu0 %v3593_v28 }
 0x5e6   :  { %v3274_v50 = vmul.f32 %v3834_v26, %v3271_v51  ;;  %vm3279_vm0 = vweird.f32 %v3834_v26  ;;  %v3296_v36 = vsel %vm3295_vm6, %v3830_v9, %v3292_v40  ;;  %v3590_v51 = vld [vmem:[#allocation14 + $0x50] sm:$0xff]  ;;  %v3588_v9 = vld [vmem:[#allocation14 + $0x40] sm:$0xff] }
 0x5e7   :  { %v3131_v53 = vadd.f32 %v3832_v44, %v3130_v61  ;;  %vm3280_vm2 = vmor %vm3278_vm1, %vm3279_vm0  ;;  %v3301_v14 = vsel %vm3298_vm7, %v3300_v33, %v3296_v36  ;;  %3603 = vmatpush.msra.mxu0 %v3592_v22  ;;  %v3583_v61 = vld [vmem:[#allocation14 + $0x18] sm:$0xff] }
 0x5e8   :  { %v3275_v25 = vsub.f32 1.0, %v3274_v50  ;;  %v3306_v17 = vsub.f32 1.0, %v3301_v14  ;;  %v3308_v5 = vmul.f32 %v3301_v14, %v6788_v58 }
 0x5e9   :  { %v3135_v18 = vsel %vm3134_vm14, %v3832_v44, %v3131_v53  ;;  %3604 = vmatpush.msra.mxu0 %v3591_v60 }
 0x5ea   :  { %v3276_v54 = vmul.f32 %v3834_v26, %v3275_v25  ;;  %v3140_v2 = vsel %vm3137_vm15, %v3139_v6, %v3135_v18 }
 0x5eb   :  { %v3836_v24 = vpop.eup %3835  ;;  %v3145_v29 = vsub.f32 1.0, %v3140_v2  ;;  %v3147_v43 = vmul.f32 %v3140_v2, %v6778_v12  ;;  %3605 = vmatpush.msra.mxu0 %v3590_v51 }
 0x5ec   :  { %v3277_v47 = vadd.f32 %v3834_v26, %v3276_v54 }
 0x5ed   :  { %v3146_v52 = vmul.f32 %v3836_v24, %v3145_v29  ;;  %3606 = vmatpush.msra.mxu0 %v3589_v7 }
 0x5ee   :  { %v3281_v38 = vsel %vm3280_vm2, %v3834_v26, %v3277_v47 }
 0x5ef   :  { %v3286_v55 = vsel %vm3283_vm3, %v3285_v59, %v3281_v38  ;;  %v6919_v49 = vadd.f32 %v3147_v43, %v3146_v52  ;;  %3607 = vmatpush.msra.mxu0 %v3588_v9 }
 0x5f0   :  { %v3303_v3 = vmul.f32 %v3286_v55, %v3257_v0 }
 0x5f1   :  { %3484 = vmatmul.f32.vlgmr.msrb.gmra.mxu1 %v6919_v49  ;;  %3608 = vmatpush.msra.mxu0 %v3587_v13 }
 0x5f2   :  { %v3304_v12 = vadd.f32 %v3303_v3, %v3262_v62 }
 0x5f3   :  { %3609 = vmatpush.msra.mxu0 %v3586_v46 }
 0x5f4   :  { %3837 = vtanh.f32 %v3304_v12 }
 0x5f5   :  { %3610 = vmatpush.msra.mxu0 %v3585_v37 }
 0x5f7   :  { %3611 = vmatpush.msra.mxu0 %v3584_v20 }
 0x5f9   :  { %3612 = vmatpush.msra.mxu0 %v3583_v61 }
 0x5fa   :  { %v3838_v39 = vpop.eup %3837 }
 0x5fb   :  { %v3307_v48 = vmul.f32 %v3838_v39, %v3306_v17 }
 0x5fd   :  { %v3309_v19 = vadd.f32 %v3308_v5, %v3307_v48 }
 0x5ff   :  { %3376 = vmatmul.f32.vlgmr.msra.gmra.mxu2 %v3309_v19  ;;  %3396 = vmatmul.f32.vlgmr.msra.gmra.mxu3 %v3309_v19 }
 0x600   :  { %3416 = vmatmul.f32.vlgmr.msrb.gmra.mxu0 %v3309_v19 }
 0x607   :  { %3504 = vmatmul.f32.vlgmr.msrb.gmra.mxu2 %v6919_v49  ;;  %3524 = vmatmul.f32.vlgmr.msrb.gmra.mxu3 %v6919_v49 }
 0x66e   :  { %v3485_v58 = vpop.f32.mrf.mxu1 }
 0x66f   :  { %v3486_v15 = vadd.f32 %v3485_v58, %v7871_v1 }
 0x67d   :  { %v3417_v59 = vpop.f32.mrf.mxu0 }
 0x67e   :  { %v3418_v55 = vadd.f32 %v3417_v59, %v7878_v63 }
 0x682   :  { %v3377_v57 = vpop.f32.mrf.mxu2  ;;  %v3397_v41 = vpop.f32.mrf.mxu3 }
 0x683   :  { %v3378_v44 = vadd.f32 %v3377_v57, %v7872_v30  ;;  %v3398_v4 = vadd.f32 %v3397_v41, %v7874_v34  ;;  %v3582_v30 = vld [vmem:[#allocation14 + $0x10] sm:$0xff] }
 0x684   :  { %3613 = vmatpush.msra.mxu0 %v3582_v30 }
 0x685   :  { %v3528_v21 = vadd.f32 %v3486_v15, %v3378_v44 }
 0x686   :  { %3614 = vmatpush.msra.mxu0 %v3581_v10 }
 0x687   :  { %v3671_v11 = vmul.f32 -1.442695, %v3528_v21 }
 0x688   :  { %3615 = vmatpush.msra.mxu0 %v3580_v31 }
 0x689   :  { %3839 = vpow2.f32 %v3671_v11 }
 0x68a   :  { %v3505_v26 = vpop.f32.mrf.mxu2  ;;  %v3525_v29 = vpop.f32.mrf.mxu3 }
 0x68b   :  { %v3506_v1 = vadd.f32 %v3505_v26, %v7875_v35  ;;  %v3526_v0 = vadd.f32 %v3525_v29, %v7877_v32 }
 0x68d   :  { %v3529_v50 = vadd.f32 %v3506_v1, %v3398_v4 }
 0x68f   :  { %v3840_v53 = vpop.eup %3839  ;;  %v3672_v25 = vmul.f32 -1.442695, %v3529_v50 }
 0x690   :  { %v3536_v6 = vadd.f32 1.0, %v3840_v53 }
 0x691   :  { %3841 = vpow2.f32 %v3672_v25 }
 0x692   :  { %3843 = vrcp.f32 %v3536_v6  ;;  %v3549_v56 = vand.u32 2147483648, %v3536_v6  ;;  %v3547_v16 = vand.u32 2147483647, %v3536_v6  ;;  %vm3543_vm9 = vweird.f32 %v3536_v6 }
 0x694   :  { %v3550_v52 = vor.u32 1.1754944e-38, %v3549_v56  ;;  %vm3548_vm11 = vcmp.eq.f32.partialorder %v3547_v16, 8.507059e+37 }
 0x697   :  { %v3842_v18 = vpop.eup %3841 }
 0x698   :  { %v3844_v24 = vpop.eup %3843  ;;  %v3537_v54 = vadd.f32 1.0, %v3842_v18 }
 0x699   :  { %v3539_v34 = vmul.f32 %v3844_v24, %v3536_v6  ;;  %vm3544_vm8 = vweird.f32 %v3844_v24 }
 0x69a   :  { %3845 = vrcp.f32 %v3537_v54  ;;  %vm3545_vm10 = vmor %vm3543_vm9, %vm3544_vm8  ;;  %v3564_v8 = vand.u32 2147483648, %v3537_v54  ;;  %v3562_v36 = vand.u32 2147483647, %v3537_v54  ;;  %vm3558_vm13 = vweird.f32 %v3537_v54 }
 0x69b   :  { %v3540_v35 = vsub.f32 1.0, %v3539_v34 }
 0x69c   :  { %v3565_v14 = vor.u32 1.1754944e-38, %v3564_v8  ;;  %vm3563_vm15 = vcmp.eq.f32.partialorder %v3562_v36, 8.507059e+37 }
 0x69d   :  { %v3541_v2 = vmul.f32 %v3844_v24, %v3540_v35 }
 0x69f   :  { %v3542_v27 = vadd.f32 %v3844_v24, %v3541_v2 }
 0x6a0   :  { %v3846_v47 = vpop.eup %3845 }
 0x6a1   :  { %v3554_v43 = vmul.f32 %v3846_v47, %v3537_v54  ;;  %v3546_v38 = vsel %vm3545_vm10, %v3844_v24, %v3542_v27  ;;  %vm3559_vm12 = vweird.f32 %v3846_v47 }
 0x6a2   :  { %v3551_v62 = vsel %vm3548_vm11, %v3550_v52, %v3546_v38  ;;  %vm3560_vm14 = vmor %vm3558_vm13, %vm3559_vm12 }
 0x6a3   :  { %v3555_v40 = vsub.f32 1.0, %v3554_v43  ;;  %v3568_v3 = vmul.f32 %v3551_v62, %v3526_v0 }
 0x6a5   :  { %v3569_v42 = vadd.f32 %v3568_v3, %v3418_v55  ;;  %v3556_v12 = vmul.f32 %v3846_v47, %v3555_v40 }
 0x6a7   :  { %3847 = vtanh.f32 %v3569_v42  ;;  %v3557_v33 = vadd.f32 %v3846_v47, %v3556_v12 }
 0x6a9   :  { %v3561_v17 = vsel %vm3560_vm14, %v3846_v47, %v3557_v33 }
 0x6aa   :  { %v3566_v32 = vsel %vm3563_vm15, %v3565_v14, %v3561_v17 }
 0x6ab   :  { %v3571_v39 = vsub.f32 1.0, %v3566_v32  ;;  %v3573_v63 = vmul.f32 %v3566_v32, %v6919_v49 }
 0x6ad   :  { %v3848_v48 = vpop.eup %3847 }
 0x6ae   :  { %v3572_v5 = vmul.f32 %v3848_v48, %v3571_v39 }
 0x6b0   :  { %v3574_v19 = vadd.f32 %v3573_v63, %v3572_v5 }
 0x6b2   :  { %3616 = vmatmul.f32.vlgmr.msra.gmra.mxu0 %v3574_v19 }
 0x72f   :  { %v3617_v23 = vpop.f32.mrf.mxu0 }
 0x730   :  { %v3618_v28 = vadd.f32 %v3688_v45, %v3617_v23 }
 0x732   :  { %3620 = vst [vmem:[#allocation15] sm:$0xff] %v3618_v28 }
 0x733   :  { %3631 = dma.vmem_to_hbm [thread:$0]  %s3627_s3, 128, %s3629_s21, [#allocation5]  }
 0x734   :  { %4049 = dma.done.wait [#allocation5], 128  }
 0x735   :  { %4050 = vsyncadd [#allocation5], 4294967168 }
 0x736   :  { %3636 = vsyncpa [#allocation4], 1 }
 0x737   :  { %3637 = vsyncpa [#allocation7], 1 }
 0x738   :  { %3638 = vsyncpa [#allocation10], 1 }
 0x739   :  { %3639 = vsyncpa [#allocation13], 1 }
 0x73a   :  { %3640 = vsyncpa [#allocation5], 1 }

</bundles_post_ra>
